<compile_context>
chip_gen: v7x
topology: tpu7x:2x2x1
jax: 0.10.0
libtpu: 0.0.40
codegen_flags: <defaults>
</compile_context>

<pallas_src>
import functools

import numpy as np
import jax
import jax.numpy as jnp
from jax.experimental import pallas as pl
from jax.experimental.pallas import tpu as pltpu


def _round_up(x, m):
    return (x + m - 1) // m * m


def _pad2d(x, rows, cols):
    """Zero-pad a 2D f32 array up to (rows, cols); no-op if already aligned."""
    pr, pc = rows - x.shape[0], cols - x.shape[1]
    if pr == 0 and pc == 0:
        return x
    return jnp.pad(x, ((0, pr), (0, pc)))


_relu = lambda r: jnp.maximum(r, 0.0)
_tanh10 = lambda r: jnp.tanh(r) * 10.0


# ----------------------- Pallas kernels -----------------------

def _matmul_bias_act_1k_kernel(x_ref, w_ref, b_ref, o_ref, *, activation):
    # Single-K-block matmul: full (padded) K and N resident, grid over M only.
    r = jnp.dot(x_ref[...], w_ref[...], preferred_element_type=jnp.float32)
    o_ref[...] = activation(r + b_ref[...]).astype(o_ref.dtype)


def matmul_bias_act_single_k(x, w, b, activation, *, tm=256):
    """out = activation(x @ w + b); K and N in one block, grid over M tiles."""
    M, K = x.shape
    Kw, N = w.shape
    assert K == Kw and b.shape == (N,)
    Mp = _round_up(M, tm)
    Kp = _round_up(K, 128)
    Np = _round_up(N, 128)
    xp = _pad2d(x.astype(jnp.float32), Mp, Kp)
    wp = _pad2d(w.astype(jnp.float32), Kp, Np)
    bp = _pad2d(b.astype(jnp.float32).reshape(1, N), 1, Np)
    out = pl.pallas_call(
        functools.partial(_matmul_bias_act_1k_kernel, activation=activation),
        out_shape=jax.ShapeDtypeStruct((Mp, Np), jnp.float32),
        grid_spec=pltpu.PrefetchScalarGridSpec(
            num_scalar_prefetch=0,
            grid=(Mp // tm,),
            in_specs=[
                pl.BlockSpec((tm, Kp), lambda i: (i, 0)),
                pl.BlockSpec((Kp, Np), lambda i: (0, 0)),
                pl.BlockSpec((1, Np), lambda i: (0, 0)),
            ],
            out_specs=pl.BlockSpec((tm, Np), lambda i: (i, 0)),
        ),
        compiler_params=pltpu.CompilerParams(
            dimension_semantics=("parallel",)),
    )(xp, wp, bp)
    if Mp == M and Np == N:
        return out
    return out[:M, :N]


def _fc_bigk_kernel(x_ref, w_ref, b_ref, o_ref, *, activation):
    # Large-K fc layer: output block is resident across the K grid axis, so
    # accumulate directly into it (f32) — no scratch accumulator needed.
    k = pl.program_id(0)

    @pl.when(k == 0)
    def _():
        o_ref[...] = jnp.zeros_like(o_ref)

    o_ref[...] += jnp.dot(x_ref[...], w_ref[...],
                          preferred_element_type=jnp.float32)

    @pl.when(k == pl.num_programs(0) - 1)
    def _():
        o_ref[...] = activation(o_ref[...] + b_ref[...]).astype(o_ref.dtype)


def matmul_bias_act_bigk(x, w, b, activation, *, tm=8, tk=4096):
    """out = activation(x @ w + b) for small M, large K (fc1).

    M and N are single blocks; K is tiled with a large tk so the K grid has only
    a handful of steps (K=24576, tk=4096 -> 6). The 4096x128 f32 weight block is
    2 MB (4 MB double-buffered), safe on every TPU generation incl. v7x.
    """
    M, K = x.shape
    Kw, N = w.shape
    assert K == Kw and b.shape == (N,)
    Mp = _round_up(M, tm)
    Np = _round_up(N, 128)
    tk = min(tk, _round_up(K, 128))
    Kp = _round_up(K, tk)
    xp = _pad2d(x.astype(jnp.float32), Mp, Kp)
    wp = _pad2d(w.astype(jnp.float32), Kp, Np)
    bp = _pad2d(b.astype(jnp.float32).reshape(1, N), 1, Np)
    out = pl.pallas_call(
        functools.partial(_fc_bigk_kernel, activation=activation),
        out_shape=jax.ShapeDtypeStruct((Mp, Np), jnp.float32),
        grid_spec=pltpu.PrefetchScalarGridSpec(
            num_scalar_prefetch=0,
            grid=(Kp // tk,),
            in_specs=[
                pl.BlockSpec((Mp, tk), lambda k: (0, k)),
                pl.BlockSpec((tk, Np), lambda k: (k, 0)),
                pl.BlockSpec((1, Np), lambda k: (0, 0)),
            ],
            out_specs=pl.BlockSpec((Mp, Np), lambda k: (0, 0)),
        ),
        compiler_params=pltpu.CompilerParams(
            dimension_semantics=("arbitrary",)),
    )(xp, wp, bp)
    if Mp == M and Np == N:
        return out
    return out[:M, :N]


def _maxpool3x3_kernel(x_ref, o_ref):
    # MaxPool2d(3, stride=1), NHWC, whole tensor in VMEM. Max over the 9
    # statically shifted window views sliced in-register (no HBM blowup).
    Ho, Wo = o_ref.shape[1], o_ref.shape[2]
    x = x_ref[...]
    r = x[:, 0:Ho, 0:Wo, :]
    for dy in range(3):
        for dx in range(3):
            if dy == 0 and dx == 0:
                continue
            r = jnp.maximum(r, x[:, dy:dy + Ho, dx:dx + Wo, :])
    o_ref[...] = r


def maxpool3x3_s1(x):
    """MaxPool2d(kernel_size=3, stride=1) on NHWC via a single-block kernel."""
    B, H, W, C = x.shape
    Ho, Wo = H - 2, W - 2
    return pl.pallas_call(
        _maxpool3x3_kernel,
        out_shape=jax.ShapeDtypeStruct((B, Ho, Wo, C), x.dtype),
        grid_spec=pltpu.PrefetchScalarGridSpec(
            num_scalar_prefetch=0,
            grid=(1,),
            in_specs=[pl.BlockSpec((B, H, W, C), lambda i: (0, 0, 0, 0))],
            out_specs=pl.BlockSpec((B, Ho, Wo, C), lambda i: (0, 0, 0, 0)),
        ),
    )(x)


# ----------------------- JAX glue (im2col, conv, forward) -----------------------

def _im2col(x, kh, kw):
    # x: NHWC, valid padding, stride 1. Patch feature order = (dy, dx, cin),
    # matching the (kh, kw, cin, cout) weight reshape in prepare_params.
    B, H, W, C = x.shape
    Ho, Wo = H - kh + 1, W - kw + 1
    cols = [x[:, dy:dy + Ho, dx:dx + Wo, :]
            for dy in range(kh) for dx in range(kw)]
    patches = jnp.concatenate(cols, axis=-1)          # [B, Ho, Wo, kh*kw*C]
    return patches.reshape(B * Ho * Wo, kh * kw * C), (B, Ho, Wo)


def conv2d_act(x, wmat, b, kh, kw, activation, *, tm=256):
    # wmat: [kh*kw*Cin, Cout] (pre-reshaped); x: NHWC; valid conv, stride 1.
    patches, (B, Ho, Wo) = _im2col(x, kh, kw)
    out = matmul_bias_act_single_k(patches, wmat, b, activation, tm=tm)
    return out.reshape(B, Ho, Wo, wmat.shape[1])


def actor_forward(params, x_nchw):
    x = jnp.transpose(x_nchw, (0, 2, 3, 1)).astype(jnp.float32)       # NCHW -> NHWC
    x = conv2d_act(x, params["w1_mat"], params["b1"], 3, 3, _relu)    # conv1 + relu
    x = maxpool3x3_s1(x)                                              # maxpool 3x3 s1
    x = conv2d_act(x, params["w2_mat"], params["b2"], 3, 3, _relu)    # conv2 + relu
    x = conv2d_act(x, params["w3_mat"], params["b3"], 5, 5, _relu)    # conv3 + relu
    x = conv2d_act(x, params["w4_mat"], params["b4"], 3, 5, _relu)    # conv4 + relu
    x = maxpool3x3_s1(x)                                              # maxpool 3x3 s1
    B = x.shape[0]
    x = jnp.transpose(x, (0, 3, 1, 2)).reshape(B, -1)                 # NCHW flatten
    x = matmul_bias_act_bigk(x, params["fc1_w"], params["fc1_b"],
                             _relu, tm=8, tk=4096)                    # fc1 + relu
    action = matmul_bias_act_single_k(x, params["out_w"], params["out_b"],
                                      _tanh10, tm=8)                  # out + tanh*10
    return action


def init_params(key, state_dim, action_dim):
    # PyTorch-layout parameters (same uniform fan-in init scheme as nn.Conv2d/Linear).
    ks = jax.random.split(key, 12)

    def u(k, shape, fan_in):
        bound = 1.0 / np.sqrt(fan_in)
        return jax.random.uniform(k, shape, jnp.float32, -bound, bound)

    p = {}
    p["w1"] = u(ks[0], (16, state_dim, 3, 3), state_dim * 9)
    p["b1"] = u(ks[1], (16,), state_dim * 9)
    p["w2"] = u(ks[2], (32, 16, 3, 3), 16 * 9)
    p["b2"] = u(ks[3], (32,), 16 * 9)
    p["w3"] = u(ks[4], (64, 32, 5, 5), 32 * 25)
    p["b3"] = u(ks[5], (64,), 32 * 25)
    p["w4"] = u(ks[6], (128, 64, 3, 5), 64 * 15)
    p["b4"] = u(ks[7], (128,), 64 * 15)
    p["fc1_w"] = u(ks[8], (128, 24576), 24576)
    p["fc1_b"] = u(ks[9], (128,), 24576)
    p["out_w"] = u(ks[10], (action_dim, 128), 128)
    p["out_b"] = u(ks[11], (action_dim,), 128)
    return p


def prepare_params(p):
    """One-time (outside jit) re-layout of PyTorch-style params for the kernels:
    conv weights -> [kh*kw*Cin, Cout] matrices; fc weights pre-transposed to
    [in_features, out_features]. Removes all per-call weight transposes."""
    q = {}
    for i in (1, 2, 3, 4):
        w = p[f"w{i}"]                                   # [Cout, Cin, kh, kw]
        cout, cin, kh, kw = w.shape
        q[f"w{i}_mat"] = jnp.transpose(w, (2, 3, 1, 0)).reshape(kh * kw * cin, cout)
        q[f"b{i}"] = p[f"b{i}"]
    q["fc1_w"] = jnp.asarray(p["fc1_w"]).T               # [24576, 128]
    q["fc1_b"] = p["fc1_b"]
    q["out_w"] = jnp.asarray(p["out_w"]).T               # [128, action_dim]
    q["out_b"] = p["out_b"]
    return jax.tree_util.tree_map(jnp.asarray, q)


if __name__ == "__main__":
    state_dim, action_dim = 4, 3
    B, H, W = 2, 26, 32   # (H-14)*(W-16)=192 -> 128*192 = 24576 = fc1 in_features
    key = jax.random.PRNGKey(0)
    xkey, pkey = jax.random.split(key)
    x = jax.random.normal(xkey, (B, state_dim, H, W), jnp.float32)

    raw_params = init_params(pkey, state_dim, action_dim)
    params = jax.device_put(prepare_params(raw_params))   # one-time re-layout

    fwd = jax.jit(actor_forward)
    action = fwd(params, x)
    jax.block_until_ready(action)

    assert action.shape == (B, action_dim)
    assert bool(jnp.all(jnp.isfinite(action)))
    assert bool(jnp.all(jnp.abs(action) <= 10.0))
    print("KERNEL_OK")
</pallas_src>

<mosaic_0001>
module attributes {stable_mosaic.version = 11 : i64} {
  func.func @_matmul_bias_act_1k_kernel(%arg0: i32, %arg1: memref<256x128xf32, #tpu.memory_space<vmem>>, %arg2: memref<128x128xf32, #tpu.memory_space<vmem>>, %arg3: memref<1x128xf32, #tpu.memory_space<vmem>>, %arg4: memref<256x128xf32, #tpu.memory_space<vmem>>) attributes {dimension_semantics = [#tpu.dimension_semantics<parallel>], iteration_bounds = array<i64: 6>, scalar_prefetch = 0 : i64, scratch_operands = 0 : i64, tpu.core_type = #tpu.core_type<tc>, window_params = [{transform_indices = @transform_0, window_bounds = array<i64: 256, 128>}, {pipeline_mode = #tpu.pipeline_mode<synchronous>, transform_indices = @transform_1, window_bounds = array<i64: 128, 128>}, {pipeline_mode = #tpu.pipeline_mode<synchronous>, transform_indices = @transform_2, window_bounds = array<i64: 1, 128>}, {transform_indices = @transform_3, window_bounds = array<i64: 256, 128>}]} {
    %c0 = arith.constant 0 : index
    %c0_0 = arith.constant 0 : index
    %0 = vector.load %arg1[%c0, %c0_0] : memref<256x128xf32, #tpu.memory_space<vmem>>, vector<256x128xf32>
    %c0_1 = arith.constant 0 : index
    %c0_2 = arith.constant 0 : index
    %1 = vector.load %arg2[%c0_1, %c0_2] : memref<128x128xf32, #tpu.memory_space<vmem>>, vector<128x128xf32>
    %cst = arith.constant dense<0.000000e+00> : vector<256x128xf32>
    %2 = tpu.matmul %0, %1, %cst {dimension_numbers = #tpu.dot_dimension_numbers<[1], [0], [0], [1], [0, 0, 1, 1], [], []>} : vector<256x128xf32>, vector<128x128xf32>, vector<256x128xf32> -> vector<256x128xf32>
    %c0_3 = arith.constant 0 : index
    %c0_4 = arith.constant 0 : index
    %3 = vector.load %arg3[%c0_3, %c0_4] : memref<1x128xf32, #tpu.memory_space<vmem>>, vector<1x128xf32>
    %4 = vector.broadcast %3 : vector<1x128xf32> to vector<256x128xf32>
    %5 = arith.addf %2, %4 : vector<256x128xf32>
    %cst_5 = arith.constant 0.000000e+00 : f32
    %6 = vector.broadcast %cst_5 : f32 to vector<256x128xf32>
    %7 = arith.maximumf %5, %6 : vector<256x128xf32>
    %c0_6 = arith.constant 0 : index
    %c0_7 = arith.constant 0 : index
    %8 = vector.load %arg4[%c0_6, %c0_7] : memref<256x128xf32, #tpu.memory_space<vmem>>, vector<256x128xf32>
    tpu.vector_store %arg4[%c0_6, %c0_7], %7 {strides = array<i32>} : memref<256x128xf32, #tpu.memory_space<vmem>>, vector<256x128xf32>,
    return
  }
  func.func @transform_0(%arg0: i32) -> (i32, i32) {
    %c0_i32 = arith.constant 0 : i32
    %c0_i32_0 = arith.constant 0 : i32
    return %arg0, %c0_i32 : i32, i32
  }
  func.func @transform_1(%arg0: i32) -> (i32, i32) {
    %c0_i32 = arith.constant 0 : i32
    %c0_i32_0 = arith.constant 0 : i32
    %c0_i32_1 = arith.constant 0 : i32
    return %c0_i32, %c0_i32_0 : i32, i32
  }
  func.func @transform_2(%arg0: i32) -> (i32, i32) {
    %c0_i32 = arith.constant 0 : i32
    %c0_i32_0 = arith.constant 0 : i32
    %c0_i32_1 = arith.constant 0 : i32
    return %c0_i32, %c0_i32_0 : i32, i32
  }
  func.func @transform_3(%arg0: i32) -> (i32, i32) {
    %c0_i32 = arith.constant 0 : i32
    %c0_i32_0 = arith.constant 0 : i32
    return %arg0, %c0_i32 : i32, i32
  }
}

module attributes {stable_mosaic.version = 11 : i64} {
  func.func @_maxpool3x3_kernel(%arg0: i32, %arg1: memref<2x24x30x16xf32, #tpu.memory_space<vmem>>, %arg2: memref<2x22x28x16xf32, #tpu.memory_space<vmem>>) attributes {dimension_semantics = [#tpu.dimension_semantics<arbitrary>], iteration_bounds = array<i64: 1>, scalar_prefetch = 0 : i64, scratch_operands = 0 : i64, tpu.core_type = #tpu.core_type<tc>, window_params = [{pipeline_mode = #tpu.pipeline_mode<synchronous>, transform_indices = @transform_0, window_bounds = array<i64: 2, 24, 30, 16>}, {pipeline_mode = #tpu.pipeline_mode<synchronous>, transform_indices = @transform_1, window_bounds = array<i64: 2, 22, 28, 16>}]} {
    %c0 = arith.constant 0 : index
    %c0_0 = arith.constant 0 : index
    %c0_1 = arith.constant 0 : index
    %c0_2 = arith.constant 0 : index
    %0 = vector.load %arg1[%c0, %c0_0, %c0_1, %c0_2] : memref<2x24x30x16xf32, #tpu.memory_space<vmem>>, vector<2x24x30x16xf32>
    %1 = vector.extract_strided_slice %0 {offsets = [0, 0, 0, 0], sizes = [2, 22, 28, 16], strides = [1, 1, 1, 1]} : vector<2x24x30x16xf32> to vector<2x22x28x16xf32>
    %2 = vector.extract_strided_slice %0 {offsets = [0, 0, 1, 0], sizes = [2, 22, 28, 16], strides = [1, 1, 1, 1]} : vector<2x24x30x16xf32> to vector<2x22x28x16xf32>
    %3 = arith.maximumf %1, %2 : vector<2x22x28x16xf32>
    %4 = vector.extract_strided_slice %0 {offsets = [0, 0, 2, 0], sizes = [2, 22, 28, 16], strides = [1, 1, 1, 1]} : vector<2x24x30x16xf32> to vector<2x22x28x16xf32>
    %5 = arith.maximumf %3, %4 : vector<2x22x28x16xf32>
    %6 = vector.extract_strided_slice %0 {offsets = [0, 1, 0, 0], sizes = [2, 22, 28, 16], strides = [1, 1, 1, 1]} : vector<2x24x30x16xf32> to vector<2x22x28x16xf32>
    %7 = arith.maximumf %5, %6 : vector<2x22x28x16xf32>
    %8 = vector.extract_strided_slice %0 {offsets = [0, 1, 1, 0], sizes = [2, 22, 28, 16], strides = [1, 1, 1, 1]} : vector<2x24x30x16xf32> to vector<2x22x28x16xf32>
    %9 = arith.maximumf %7, %8 : vector<2x22x28x16xf32>
    %10 = vector.extract_strided_slice %0 {offsets = [0, 1, 2, 0], sizes = [2, 22, 28, 16], strides = [1, 1, 1, 1]} : vector<2x24x30x16xf32> to vector<2x22x28x16xf32>
    %11 = arith.maximumf %9, %10 : vector<2x22x28x16xf32>
    %12 = vector.extract_strided_slice %0 {offsets = [0, 2, 0, 0], sizes = [2, 22, 28, 16], strides = [1, 1, 1, 1]} : vector<2x24x30x16xf32> to vector<2x22x28x16xf32>
    %13 = arith.maximumf %11, %12 : vector<2x22x28x16xf32>
    %14 = vector.extract_strided_slice %0 {offsets = [0, 2, 1, 0], sizes = [2, 22, 28, 16], strides = [1, 1, 1, 1]} : vector<2x24x30x16xf32> to vector<2x22x28x16xf32>
    %15 = arith.maximumf %13, %14 : vector<2x22x28x16xf32>
    %16 = vector.extract_strided_slice %0 {offsets = [0, 2, 2, 0], sizes = [2, 22, 28, 16], strides = [1, 1, 1, 1]} : vector<2x24x30x16xf32> to vector<2x22x28x16xf32>
    %17 = arith.maximumf %15, %16 : vector<2x22x28x16xf32>
    %c0_3 = arith.constant 0 : index
    %c0_4 = arith.constant 0 : index
    %c0_5 = arith.constant 0 : index
    %c0_6 = arith.constant 0 : index
    %18 = vector.load %arg2[%c0_3, %c0_4, %c0_5, %c0_6] : memref<2x22x28x16xf32, #tpu.memory_space<vmem>>, vector<2x22x28x16xf32>
    tpu.vector_store %arg2[%c0_3, %c0_4, %c0_5, %c0_6], %17 {strides = array<i32>} : memref<2x22x28x16xf32, #tpu.memory_space<vmem>>, vector<2x22x28x16xf32>,
    return
  }
  func.func @transform_0(%arg0: i32) -> (i32, i32, i32, i32) {
    %c0_i32 = arith.constant 0 : i32
    %c0_i32_0 = arith.constant 0 : i32
    %c0_i32_1 = arith.constant 0 : i32
    %c0_i32_2 = arith.constant 0 : i32
    %c0_i32_3 = arith.constant 0 : i32
    return %c0_i32, %c0_i32_0, %c0_i32_1, %c0_i32_2 : i32, i32, i32, i32
  }
  func.func @transform_1(%arg0: i32) -> (i32, i32, i32, i32) {
    %c0_i32 = arith.constant 0 : i32
    %c0_i32_0 = arith.constant 0 : i32
    %c0_i32_1 = arith.constant 0 : i32
    %c0_i32_2 = arith.constant 0 : i32
    %c0_i32_3 = arith.constant 0 : i32
    return %c0_i32, %c0_i32_0, %c0_i32_1, %c0_i32_2 : i32, i32, i32, i32
  }
}

module attributes {stable_mosaic.version = 11 : i64} {
  func.func @_matmul_bias_act_1k_kernel(%arg0: i32, %arg1: memref<256x256xf32, #tpu.memory_space<vmem>>, %arg2: memref<256x128xf32, #tpu.memory_space<vmem>>, %arg3: memref<1x128xf32, #tpu.memory_space<vmem>>, %arg4: memref<256x128xf32, #tpu.memory_space<vmem>>) attributes {dimension_semantics = [#tpu.dimension_semantics<parallel>], iteration_bounds = array<i64: 5>, scalar_prefetch = 0 : i64, scratch_operands = 0 : i64, tpu.core_type = #tpu.core_type<tc>, window_params = [{transform_indices = @transform_0, window_bounds = array<i64: 256, 256>}, {pipeline_mode = #tpu.pipeline_mode<synchronous>, transform_indices = @transform_1, window_bounds = array<i64: 256, 128>}, {pipeline_mode = #tpu.pipeline_mode<synchronous>, transform_indices = @transform_2, window_bounds = array<i64: 1, 128>}, {transform_indices = @transform_3, window_bounds = array<i64: 256, 128>}]} {
    %c0 = arith.constant 0 : index
    %c0_0 = arith.constant 0 : index
    %0 = vector.load %arg1[%c0, %c0_0] : memref<256x256xf32, #tpu.memory_space<vmem>>, vector<256x256xf32>
    %c0_1 = arith.constant 0 : index
    %c0_2 = arith.constant 0 : index
    %1 = vector.load %arg2[%c0_1, %c0_2] : memref<256x128xf32, #tpu.memory_space<vmem>>, vector<256x128xf32>
    %cst = arith.constant dense<0.000000e+00> : vector<256x128xf32>
    %2 = tpu.matmul %0, %1, %cst {dimension_numbers = #tpu.dot_dimension_numbers<[1], [0], [0], [1], [0, 0, 1, 1], [], []>} : vector<256x256xf32>, vector<256x128xf32>, vector<256x128xf32> -> vector<256x128xf32>
    %c0_3 = arith.constant 0 : index
    %c0_4 = arith.constant 0 : index
    %3 = vector.load %arg3[%c0_3, %c0_4] : memref<1x128xf32, #tpu.memory_space<vmem>>, vector<1x128xf32>
    %4 = vector.broadcast %3 : vector<1x128xf32> to vector<256x128xf32>
    %5 = arith.addf %2, %4 : vector<256x128xf32>
    %cst_5 = arith.constant 0.000000e+00 : f32
    %6 = vector.broadcast %cst_5 : f32 to vector<256x128xf32>
    %7 = arith.maximumf %5, %6 : vector<256x128xf32>
    %c0_6 = arith.constant 0 : index
    %c0_7 = arith.constant 0 : index
    %8 = vector.load %arg4[%c0_6, %c0_7] : memref<256x128xf32, #tpu.memory_space<vmem>>, vector<256x128xf32>
    tpu.vector_store %arg4[%c0_6, %c0_7], %7 {strides = array<i32>} : memref<256x128xf32, #tpu.memory_space<vmem>>, vector<256x128xf32>,
    return
  }
  func.func @transform_0(%arg0: i32) -> (i32, i32) {
    %c0_i32 = arith.constant 0 : i32
    %c0_i32_0 = arith.constant 0 : i32
    return %arg0, %c0_i32 : i32, i32
  }
  func.func @transform_1(%arg0: i32) -> (i32, i32) {
    %c0_i32 = arith.constant 0 : i32
    %c0_i32_0 = arith.constant 0 : i32
    %c0_i32_1 = arith.constant 0 : i32
    return %c0_i32, %c0_i32_0 : i32, i32
  }
  func.func @transform_2(%arg0: i32) -> (i32, i32) {
    %c0_i32 = arith.constant 0 : i32
    %c0_i32_0 = arith.constant 0 : i32
    %c0_i32_1 = arith.constant 0 : i32
    return %c0_i32, %c0_i32_0 : i32, i32
  }
  func.func @transform_3(%arg0: i32) -> (i32, i32) {
    %c0_i32 = arith.constant 0 : i32
    %c0_i32_0 = arith.constant 0 : i32
    return %arg0, %c0_i32 : i32, i32
  }
}

module attributes {stable_mosaic.version = 11 : i64} {
  func.func @_matmul_bias_act_1k_kernel(%arg0: i32, %arg1: memref<256x896xf32, #tpu.memory_space<vmem>>, %arg2: memref<896x128xf32, #tpu.memory_space<vmem>>, %arg3: memref<1x128xf32, #tpu.memory_space<vmem>>, %arg4: memref<256x128xf32, #tpu.memory_space<vmem>>) attributes {dimension_semantics = [#tpu.dimension_semantics<parallel>], iteration_bounds = array<i64: 3>, scalar_prefetch = 0 : i64, scratch_operands = 0 : i64, tpu.core_type = #tpu.core_type<tc>, window_params = [{transform_indices = @transform_0, window_bounds = array<i64: 256, 896>}, {pipeline_mode = #tpu.pipeline_mode<synchronous>, transform_indices = @transform_1, window_bounds = array<i64: 896, 128>}, {pipeline_mode = #tpu.pipeline_mode<synchronous>, transform_indices = @transform_2, window_bounds = array<i64: 1, 128>}, {transform_indices = @transform_3, window_bounds = array<i64: 256, 128>}]} {
    %c0 = arith.constant 0 : index
    %c0_0 = arith.constant 0 : index
    %0 = vector.load %arg1[%c0, %c0_0] : memref<256x896xf32, #tpu.memory_space<vmem>>, vector<256x896xf32>
    %c0_1 = arith.constant 0 : index
    %c0_2 = arith.constant 0 : index
    %1 = vector.load %arg2[%c0_1, %c0_2] : memref<896x128xf32, #tpu.memory_space<vmem>>, vector<896x128xf32>
    %cst = arith.constant dense<0.000000e+00> : vector<256x128xf32>
    %2 = tpu.matmul %0, %1, %cst {dimension_numbers = #tpu.dot_dimension_numbers<[1], [0], [0], [1], [0, 0, 1, 1], [], []>} : vector<256x896xf32>, vector<896x128xf32>, vector<256x128xf32> -> vector<256x128xf32>
    %c0_3 = arith.constant 0 : index
    %c0_4 = arith.constant 0 : index
    %3 = vector.load %arg3[%c0_3, %c0_4] : memref<1x128xf32, #tpu.memory_space<vmem>>, vector<1x128xf32>
    %4 = vector.broadcast %3 : vector<1x128xf32> to vector<256x128xf32>
    %5 = arith.addf %2, %4 : vector<256x128xf32>
    %cst_5 = arith.constant 0.000000e+00 : f32
    %6 = vector.broadcast %cst_5 : f32 to vector<256x128xf32>
    %7 = arith.maximumf %5, %6 : vector<256x128xf32>
    %c0_6 = arith.constant 0 : index
    %c0_7 = arith.constant 0 : index
    %8 = vector.load %arg4[%c0_6, %c0_7] : memref<256x128xf32, #tpu.memory_space<vmem>>, vector<256x128xf32>
    tpu.vector_store %arg4[%c0_6, %c0_7], %7 {strides = array<i32>} : memref<256x128xf32, #tpu.memory_space<vmem>>, vector<256x128xf32>,
    return
  }
  func.func @transform_0(%arg0: i32) -> (i32, i32) {
    %c0_i32 = arith.constant 0 : i32
    %c0_i32_0 = arith.constant 0 : i32
    return %arg0, %c0_i32 : i32, i32
  }
  func.func @transform_1(%arg0: i32) -> (i32, i32) {
    %c0_i32 = arith.constant 0 : i32
    %c0_i32_0 = arith.constant 0 : i32
    %c0_i32_1 = arith.constant 0 : i32
    return %c0_i32, %c0_i32_0 : i32, i32
  }
  func.func @transform_2(%arg0: i32) -> (i32, i32) {
    %c0_i32 = arith.constant 0 : i32
    %c0_i32_0 = arith.constant 0 : i32
    %c0_i32_1 = arith.constant 0 : i32
    return %c0_i32, %c0_i32_0 : i32, i32
  }
  func.func @transform_3(%arg0: i32) -> (i32, i32) {
    %c0_i32 = arith.constant 0 : i32
    %c0_i32_0 = arith.constant 0 : i32
    return %arg0, %c0_i32 : i32, i32
  }
}

module attributes {stable_mosaic.version = 11 : i64} {
  func.func @_matmul_bias_act_1k_kernel(%arg0: i32, %arg1: memref<256x1024xf32, #tpu.memory_space<vmem>>, %arg2: memref<1024x128xf32, #tpu.memory_space<vmem>>, %arg3: memref<1x128xf32, #tpu.memory_space<vmem>>, %arg4: memref<256x128xf32, #tpu.memory_space<vmem>>) attributes {dimension_semantics = [#tpu.dimension_semantics<parallel>], iteration_bounds = array<i64: 2>, scalar_prefetch = 0 : i64, scratch_operands = 0 : i64, tpu.core_type = #tpu.core_type<tc>, window_params = [{transform_indices = @transform_0, window_bounds = array<i64: 256, 1024>}, {pipeline_mode = #tpu.pipeline_mode<synchronous>, transform_indices = @transform_1, window_bounds = array<i64: 1024, 128>}, {pipeline_mode = #tpu.pipeline_mode<synchronous>, transform_indices = @transform_2, window_bounds = array<i64: 1, 128>}, {transform_indices = @transform_3, window_bounds = array<i64: 256, 128>}]} {
    %c0 = arith.constant 0 : index
    %c0_0 = arith.constant 0 : index
    %0 = vector.load %arg1[%c0, %c0_0] : memref<256x1024xf32, #tpu.memory_space<vmem>>, vector<256x1024xf32>
    %c0_1 = arith.constant 0 : index
    %c0_2 = arith.constant 0 : index
    %1 = vector.load %arg2[%c0_1, %c0_2] : memref<1024x128xf32, #tpu.memory_space<vmem>>, vector<1024x128xf32>
    %cst = arith.constant dense<0.000000e+00> : vector<256x128xf32>
    %2 = tpu.matmul %0, %1, %cst {dimension_numbers = #tpu.dot_dimension_numbers<[1], [0], [0], [1], [0, 0, 1, 1], [], []>} : vector<256x1024xf32>, vector<1024x128xf32>, vector<256x128xf32> -> vector<256x128xf32>
    %c0_3 = arith.constant 0 : index
    %c0_4 = arith.constant 0 : index
    %3 = vector.load %arg3[%c0_3, %c0_4] : memref<1x128xf32, #tpu.memory_space<vmem>>, vector<1x128xf32>
    %4 = vector.broadcast %3 : vector<1x128xf32> to vector<256x128xf32>
    %5 = arith.addf %2, %4 : vector<256x128xf32>
    %cst_5 = arith.constant 0.000000e+00 : f32
    %6 = vector.broadcast %cst_5 : f32 to vector<256x128xf32>
    %7 = arith.maximumf %5, %6 : vector<256x128xf32>
    %c0_6 = arith.constant 0 : index
    %c0_7 = arith.constant 0 : index
    %8 = vector.load %arg4[%c0_6, %c0_7] : memref<256x128xf32, #tpu.memory_space<vmem>>, vector<256x128xf32>
    tpu.vector_store %arg4[%c0_6, %c0_7], %7 {strides = array<i32>} : memref<256x128xf32, #tpu.memory_space<vmem>>, vector<256x128xf32>,
    return
  }
  func.func @transform_0(%arg0: i32) -> (i32, i32) {
    %c0_i32 = arith.constant 0 : i32
    %c0_i32_0 = arith.constant 0 : i32
    return %arg0, %c0_i32 : i32, i32
  }
  func.func @transform_1(%arg0: i32) -> (i32, i32) {
    %c0_i32 = arith.constant 0 : i32
    %c0_i32_0 = arith.constant 0 : i32
    %c0_i32_1 = arith.constant 0 : i32
    return %c0_i32, %c0_i32_0 : i32, i32
  }
  func.func @transform_2(%arg0: i32) -> (i32, i32) {
    %c0_i32 = arith.constant 0 : i32
    %c0_i32_0 = arith.constant 0 : i32
    %c0_i32_1 = arith.constant 0 : i32
    return %c0_i32, %c0_i32_0 : i32, i32
  }
  func.func @transform_3(%arg0: i32) -> (i32, i32) {
    %c0_i32 = arith.constant 0 : i32
    %c0_i32_0 = arith.constant 0 : i32
    return %arg0, %c0_i32 : i32, i32
  }
}

module attributes {stable_mosaic.version = 11 : i64} {
  func.func @_maxpool3x3_kernel(%arg0: i32, %arg1: memref<2x14x18x128xf32, #tpu.memory_space<vmem>>, %arg2: memref<2x12x16x128xf32, #tpu.memory_space<vmem>>) attributes {dimension_semantics = [#tpu.dimension_semantics<arbitrary>], iteration_bounds = array<i64: 1>, scalar_prefetch = 0 : i64, scratch_operands = 0 : i64, tpu.core_type = #tpu.core_type<tc>, window_params = [{pipeline_mode = #tpu.pipeline_mode<synchronous>, transform_indices = @transform_0, window_bounds = array<i64: 2, 14, 18, 128>}, {pipeline_mode = #tpu.pipeline_mode<synchronous>, transform_indices = @transform_1, window_bounds = array<i64: 2, 12, 16, 128>}]} {
    %c0 = arith.constant 0 : index
    %c0_0 = arith.constant 0 : index
    %c0_1 = arith.constant 0 : index
    %c0_2 = arith.constant 0 : index
    %0 = vector.load %arg1[%c0, %c0_0, %c0_1, %c0_2] : memref<2x14x18x128xf32, #tpu.memory_space<vmem>>, vector<2x14x18x128xf32>
    %1 = vector.extract_strided_slice %0 {offsets = [0, 0, 0, 0], sizes = [2, 12, 16, 128], strides = [1, 1, 1, 1]} : vector<2x14x18x128xf32> to vector<2x12x16x128xf32>
    %2 = vector.extract_strided_slice %0 {offsets = [0, 0, 1, 0], sizes = [2, 12, 16, 128], strides = [1, 1, 1, 1]} : vector<2x14x18x128xf32> to vector<2x12x16x128xf32>
    %3 = arith.maximumf %1, %2 : vector<2x12x16x128xf32>
    %4 = vector.extract_strided_slice %0 {offsets = [0, 0, 2, 0], sizes = [2, 12, 16, 128], strides = [1, 1, 1, 1]} : vector<2x14x18x128xf32> to vector<2x12x16x128xf32>
    %5 = arith.maximumf %3, %4 : vector<2x12x16x128xf32>
    %6 = vector.extract_strided_slice %0 {offsets = [0, 1, 0, 0], sizes = [2, 12, 16, 128], strides = [1, 1, 1, 1]} : vector<2x14x18x128xf32> to vector<2x12x16x128xf32>
    %7 = arith.maximumf %5, %6 : vector<2x12x16x128xf32>
    %8 = vector.extract_strided_slice %0 {offsets = [0, 1, 1, 0], sizes = [2, 12, 16, 128], strides = [1, 1, 1, 1]} : vector<2x14x18x128xf32> to vector<2x12x16x128xf32>
    %9 = arith.maximumf %7, %8 : vector<2x12x16x128xf32>
    %10 = vector.extract_strided_slice %0 {offsets = [0, 1, 2, 0], sizes = [2, 12, 16, 128], strides = [1, 1, 1, 1]} : vector<2x14x18x128xf32> to vector<2x12x16x128xf32>
    %11 = arith.maximumf %9, %10 : vector<2x12x16x128xf32>
    %12 = vector.extract_strided_slice %0 {offsets = [0, 2, 0, 0], sizes = [2, 12, 16, 128], strides = [1, 1, 1, 1]} : vector<2x14x18x128xf32> to vector<2x12x16x128xf32>
    %13 = arith.maximumf %11, %12 : vector<2x12x16x128xf32>
    %14 = vector.extract_strided_slice %0 {offsets = [0, 2, 1, 0], sizes = [2, 12, 16, 128], strides = [1, 1, 1, 1]} : vector<2x14x18x128xf32> to vector<2x12x16x128xf32>
    %15 = arith.maximumf %13, %14 : vector<2x12x16x128xf32>
    %16 = vector.extract_strided_slice %0 {offsets = [0, 2, 2, 0], sizes = [2, 12, 16, 128], strides = [1, 1, 1, 1]} : vector<2x14x18x128xf32> to vector<2x12x16x128xf32>
    %17 = arith.maximumf %15, %16 : vector<2x12x16x128xf32>
    %c0_3 = arith.constant 0 : index
    %c0_4 = arith.constant 0 : index
    %c0_5 = arith.constant 0 : index
    %c0_6 = arith.constant 0 : index
    %18 = vector.load %arg2[%c0_3, %c0_4, %c0_5, %c0_6] : memref<2x12x16x128xf32, #tpu.memory_space<vmem>>, vector<2x12x16x128xf32>
    tpu.vector_store %arg2[%c0_3, %c0_4, %c0_5, %c0_6], %17 {strides = array<i32>} : memref<2x12x16x128xf32, #tpu.memory_space<vmem>>, vector<2x12x16x128xf32>,
    return
  }
  func.func @transform_0(%arg0: i32) -> (i32, i32, i32, i32) {
    %c0_i32 = arith.constant 0 : i32
    %c0_i32_0 = arith.constant 0 : i32
    %c0_i32_1 = arith.constant 0 : i32
    %c0_i32_2 = arith.constant 0 : i32
    %c0_i32_3 = arith.constant 0 : i32
    return %c0_i32, %c0_i32_0, %c0_i32_1, %c0_i32_2 : i32, i32, i32, i32
  }
  func.func @transform_1(%arg0: i32) -> (i32, i32, i32, i32) {
    %c0_i32 = arith.constant 0 : i32
    %c0_i32_0 = arith.constant 0 : i32
    %c0_i32_1 = arith.constant 0 : i32
    %c0_i32_2 = arith.constant 0 : i32
    %c0_i32_3 = arith.constant 0 : i32
    return %c0_i32, %c0_i32_0, %c0_i32_1, %c0_i32_2 : i32, i32, i32, i32
  }
}

module attributes {stable_mosaic.version = 11 : i64} {
  func.func @_fc_bigk_kernel(%arg0: i32, %arg1: memref<8x4096xf32, #tpu.memory_space<vmem>>, %arg2: memref<4096x128xf32, #tpu.memory_space<vmem>>, %arg3: memref<1x128xf32, #tpu.memory_space<vmem>>, %arg4: memref<8x128xf32, #tpu.memory_space<vmem>>) attributes {dimension_semantics = [#tpu.dimension_semantics<arbitrary>], iteration_bounds = array<i64: 6>, scalar_prefetch = 0 : i64, scratch_operands = 0 : i64, tpu.core_type = #tpu.core_type<tc>, window_params = [{transform_indices = @transform_0, window_bounds = array<i64: 8, 4096>}, {transform_indices = @transform_1, window_bounds = array<i64: 4096, 128>}, {pipeline_mode = #tpu.pipeline_mode<synchronous>, transform_indices = @transform_2, window_bounds = array<i64: 1, 128>}, {pipeline_mode = #tpu.pipeline_mode<synchronous>, transform_indices = @transform_3, window_bounds = array<i64: 8, 128>}]} {
    %c0_i32 = arith.constant 0 : i32
    %0 = arith.cmpi eq, %arg0, %c0_i32 : i32
    %1 = arith.extui %0 : i1 to i32
    %c0_i32_0 = arith.constant 0 : i32
    %2 = arith.cmpi ne, %1, %c0_i32_0 : i32
    scf.if %2 {
      %cst_9 = arith.constant 0.000000e+00 : f32
      %12 = vector.broadcast %cst_9 : f32 to vector<8x128xf32>
      %c0_10 = arith.constant 0 : index
      %c0_11 = arith.constant 0 : index
      %13 = vector.load %arg4[%c0_10, %c0_11] : memref<8x128xf32, #tpu.memory_space<vmem>>, vector<8x128xf32>
      tpu.vector_store %arg4[%c0_10, %c0_11], %12 {strides = array<i32>} : memref<8x128xf32, #tpu.memory_space<vmem>>, vector<8x128xf32>,
    } else {
    }
    %c0 = arith.constant 0 : index
    %c0_1 = arith.constant 0 : index
    %3 = vector.load %arg4[%c0, %c0_1] : memref<8x128xf32, #tpu.memory_space<vmem>>, vector<8x128xf32>
    %c0_2 = arith.constant 0 : index
    %c0_3 = arith.constant 0 : index
    %4 = vector.load %arg1[%c0_2, %c0_3] : memref<8x4096xf32, #tpu.memory_space<vmem>>, vector<8x4096xf32>
    %c0_4 = arith.constant 0 : index
    %c0_5 = arith.constant 0 : index
    %5 = vector.load %arg2[%c0_4, %c0_5] : memref<4096x128xf32, #tpu.memory_space<vmem>>, vector<4096x128xf32>
    %cst = arith.constant dense<0.000000e+00> : vector<8x128xf32>
    %6 = tpu.matmul %4, %5, %cst {dimension_numbers = #tpu.dot_dimension_numbers<[1], [0], [0], [1], [0, 0, 1, 1], [], []>} : vector<8x4096xf32>, vector<4096x128xf32>, vector<8x128xf32> -> vector<8x128xf32>
    %7 = arith.addf %3, %6 : vector<8x128xf32>
    %c0_6 = arith.constant 0 : index
    %c0_7 = arith.constant 0 : index
    %8 = vector.load %arg4[%c0_6, %c0_7] : memref<8x128xf32, #tpu.memory_space<vmem>>, vector<8x128xf32>
    tpu.vector_store %arg4[%c0_6, %c0_7], %7 {strides = array<i32>} : memref<8x128xf32, #tpu.memory_space<vmem>>, vector<8x128xf32>,
    %c5_i32 = arith.constant 5 : i32
    %9 = arith.cmpi eq, %arg0, %c5_i32 : i32
    %10 = arith.extui %9 : i1 to i32
    %c0_i32_8 = arith.constant 0 : i32
    %11 = arith.cmpi ne, %10, %c0_i32_8 : i32
    scf.if %11 {
      %c0_9 = arith.constant 0 : index
      %c0_10 = arith.constant 0 : index
      %12 = vector.load %arg4[%c0_9, %c0_10] : memref<8x128xf32, #tpu.memory_space<vmem>>, vector<8x128xf32>
      %c0_11 = arith.constant 0 : index
      %c0_12 = arith.constant 0 : index
      %13 = vector.load %arg3[%c0_11, %c0_12] : memref<1x128xf32, #tpu.memory_space<vmem>>, vector<1x128xf32>
      %14 = vector.broadcast %13 : vector<1x128xf32> to vector<8x128xf32>
      %15 = arith.addf %12, %14 : vector<8x128xf32>
      %cst_13 = arith.constant 0.000000e+00 : f32
      %16 = vector.broadcast %cst_13 : f32 to vector<8x128xf32>
      %17 = arith.maximumf %15, %16 : vector<8x128xf32>
      %c0_14 = arith.constant 0 : index
      %c0_15 = arith.constant 0 : index
      %18 = vector.load %arg4[%c0_14, %c0_15] : memref<8x128xf32, #tpu.memory_space<vmem>>, vector<8x128xf32>
      tpu.vector_store %arg4[%c0_14, %c0_15], %17 {strides = array<i32>} : memref<8x128xf32, #tpu.memory_space<vmem>>, vector<8x128xf32>,
    } else {
    }
    return
  }
  func.func @transform_0(%arg0: i32) -> (i32, i32) {
    %c0_i32 = arith.constant 0 : i32
    %c0_i32_0 = arith.constant 0 : i32
    return %c0_i32, %arg0 : i32, i32
  }
  func.func @transform_1(%arg0: i32) -> (i32, i32) {
    %c0_i32 = arith.constant 0 : i32
    %c0_i32_0 = arith.constant 0 : i32
    return %arg0, %c0_i32 : i32, i32
  }
  func.func @transform_2(%arg0: i32) -> (i32, i32) {
    %c0_i32 = arith.constant 0 : i32
    %c0_i32_0 = arith.constant 0 : i32
    %c0_i32_1 = arith.constant 0 : i32
    return %c0_i32, %c0_i32_0 : i32, i32
  }
  func.func @transform_3(%arg0: i32) -> (i32, i32) {
    %c0_i32 = arith.constant 0 : i32
    %c0_i32_0 = arith.constant 0 : i32
    %c0_i32_1 = arith.constant 0 : i32
    return %c0_i32, %c0_i32_0 : i32, i32
  }
}

module attributes {stable_mosaic.version = 11 : i64} {
  func.func @_matmul_bias_act_1k_kernel(%arg0: i32, %arg1: memref<8x128xf32, #tpu.memory_space<vmem>>, %arg2: memref<128x128xf32, #tpu.memory_space<vmem>>, %arg3: memref<1x128xf32, #tpu.memory_space<vmem>>, %arg4: memref<8x128xf32, #tpu.memory_space<vmem>>) attributes {dimension_semantics = [#tpu.dimension_semantics<parallel>], iteration_bounds = array<i64: 1>, scalar_prefetch = 0 : i64, scratch_operands = 0 : i64, tpu.core_type = #tpu.core_type<tc>, window_params = [{transform_indices = @transform_0, window_bounds = array<i64: 8, 128>}, {pipeline_mode = #tpu.pipeline_mode<synchronous>, transform_indices = @transform_1, window_bounds = array<i64: 128, 128>}, {pipeline_mode = #tpu.pipeline_mode<synchronous>, transform_indices = @transform_2, window_bounds = array<i64: 1, 128>}, {transform_indices = @transform_3, window_bounds = array<i64: 8, 128>}]} {
    %c0 = arith.constant 0 : index
    %c0_0 = arith.constant 0 : index
    %0 = vector.load %arg1[%c0, %c0_0] : memref<8x128xf32, #tpu.memory_space<vmem>>, vector<8x128xf32>
    %c0_1 = arith.constant 0 : index
    %c0_2 = arith.constant 0 : index
    %1 = vector.load %arg2[%c0_1, %c0_2] : memref<128x128xf32, #tpu.memory_space<vmem>>, vector<128x128xf32>
    %cst = arith.constant dense<0.000000e+00> : vector<8x128xf32>
    %2 = tpu.matmul %0, %1, %cst {dimension_numbers = #tpu.dot_dimension_numbers<[1], [0], [0], [1], [0, 0, 1, 1], [], []>} : vector<8x128xf32>, vector<128x128xf32>, vector<8x128xf32> -> vector<8x128xf32>
    %c0_3 = arith.constant 0 : index
    %c0_4 = arith.constant 0 : index
    %3 = vector.load %arg3[%c0_3, %c0_4] : memref<1x128xf32, #tpu.memory_space<vmem>>, vector<1x128xf32>
    %4 = vector.broadcast %3 : vector<1x128xf32> to vector<8x128xf32>
    %5 = arith.addf %2, %4 : vector<8x128xf32>
    %6 = math.tanh %5 : vector<8x128xf32>
    %cst_5 = arith.constant 1.000000e+01 : f32
    %7 = vector.broadcast %cst_5 : f32 to vector<8x128xf32>
    %8 = arith.mulf %6, %7 : vector<8x128xf32>
    %c0_6 = arith.constant 0 : index
    %c0_7 = arith.constant 0 : index
    %9 = vector.load %arg4[%c0_6, %c0_7] : memref<8x128xf32, #tpu.memory_space<vmem>>, vector<8x128xf32>
    tpu.vector_store %arg4[%c0_6, %c0_7], %8 {strides = array<i32>} : memref<8x128xf32, #tpu.memory_space<vmem>>, vector<8x128xf32>,
    return
  }
  func.func @transform_0(%arg0: i32) -> (i32, i32) {
    %c0_i32 = arith.constant 0 : i32
    %c0_i32_0 = arith.constant 0 : i32
    return %arg0, %c0_i32 : i32, i32
  }
  func.func @transform_1(%arg0: i32) -> (i32, i32) {
    %c0_i32 = arith.constant 0 : i32
    %c0_i32_0 = arith.constant 0 : i32
    %c0_i32_1 = arith.constant 0 : i32
    return %c0_i32, %c0_i32_0 : i32, i32
  }
  func.func @transform_2(%arg0: i32) -> (i32, i32) {
    %c0_i32 = arith.constant 0 : i32
    %c0_i32_0 = arith.constant 0 : i32
    %c0_i32_1 = arith.constant 0 : i32
    return %c0_i32, %c0_i32_0 : i32, i32
  }
  func.func @transform_3(%arg0: i32) -> (i32, i32) {
    %c0_i32 = arith.constant 0 : i32
    %c0_i32_0 = arith.constant 0 : i32
    return %arg0, %c0_i32 : i32, i32
  }
}

</mosaic_0001>

<bundles_post_ra>
// kernel: actor_forward.8
= control target key start
LH: loop header
LB: loop body
LE: loop exit
PB: predicated region body
PF: predicated region fallthrough
CT: control target
= control target key end

     0   :  { %s798_s12 = smov 0   ;;  %s975_s0 = inlined_call_operand.vmem [shape: f32[1536,128], index: 0, kind: input, shape index: {}]   ;;  %s976_s1 = inlined_call_operand.vmem [shape: f32[128,128], index: 1, kind: input, shape index: {}]   ;;  %s977_s2 = inlined_call_operand.vmem [shape: f32[1,128], index: 2, kind: input, shape index: {}]   ;;  %s978_s3 = inlined_call_operand.vmem [shape: f32[1536,128], index: 3, kind: output, shape index: {}]  }
   0x1 LB: > { %s574_s13 = sadd.s32 4294967295, %s776_s12   ;;  %p578_p0 = scmp.ge.s32.totalorder %s776_s12, 1  ;;  %s776_s12 = sphi %s798_s12, %s13_s12  }
   0x2   : > { %p138_p1 = scmp.lt.s32.totalorder %s776_s12, 7 }
   0x4   : > { %p139_p2 = pnand %p578_p0, %p138_p1 }
   0x5   : > { %v206_v0 = vld [vmem:[%s976_s1] sm:$0xff] (!%p139_p2)  ;;  %v207_v1 = vld [vmem:[%s976_s1 + $0x8] sm:$0xff] (!%p139_p2)  ;;  %v208_v2 = vld [vmem:[%s976_s1 + $0x10] sm:$0xff] (!%p139_p2)  ;;  %s579_s20 = sshll.u32 (!%p139_p2), %s574_s13, 5 }
   0x6   : > { %142 = sbr.rel (%p139_p2) target bundleno = 287 (0x11f), region = 32  ;;  %v714_v3 = vpack.c.bf16 (!%p139_p2), %v207_v1, %v206_v0  ;;  %v209_v4 = vld [vmem:[%s976_s1 + $0x18] sm:$0xff] (!%p139_p2)  ;;  %p163_p3 = scmp.lt.s32.totalorder (!%p139_p2), %s579_s20, 191  ;;  %v210_v6 = vld [vmem:[%s976_s1 + $0x20] sm:$0xff] (!%p139_p2)  ;;  %v211_v7 = vld [vmem:[%s976_s1 + $0x28] sm:$0xff] (!%p139_p2) }
   0x7   : > { %v718_v5 = vpack.c.bf16 (!%p139_p2), %v209_v4, %v208_v2  ;;  %v722_v8 = vpack.c.bf16 (!%p139_p2), %v211_v7, %v210_v6  ;;  %v212_v9 = vld [vmem:[%s976_s1 + $0x30] sm:$0xff] (!%p139_p2)  ;;  %v213_v10 = vld [vmem:[%s976_s1 + $0x38] sm:$0xff] (!%p139_p2)  ;;  %v214_v14 = vld [vmem:[%s976_s1 + $0x40] sm:$0xff] (!%p139_p2) }
   0x8   : > { %715 = vmatprep.subr.bf16.mxu0 (!%p139_p2), %v714_v3  ;;  %746 = vmatprep.subr.bf16.mxu1 (!%p139_p2), %v714_v3  ;;  %v726_v13 = vpack.c.bf16 (!%p139_p2), %v213_v10, %v212_v9  ;;  %v215_v15 = vld [vmem:[%s976_s1 + $0x48] sm:$0xff] (!%p139_p2)  ;;  %v216_v17 = vld [vmem:[%s976_s1 + $0x50] sm:$0xff] (!%p139_p2)  ;;  %v217_v18 = vld [vmem:[%s976_s1 + $0x58] sm:$0xff] (!%p139_p2) }
   0x9   : > { %717 = vmatpush3.bf16.msra.mxu0 (!%p139_p2), %v714_v3  ;;  %754 = vmatpush3.bf16.msra.mxu1 (!%p139_p2), %v714_v3  ;;  %v730_v16 = vpack.c.bf16 (!%p139_p2), %v215_v15, %v214_v14  ;;  %v734_v19 = vpack.c.bf16 (!%p139_p2), %v217_v18, %v216_v17  ;;  %v218_v20 = vld [vmem:[%s976_s1 + $0x60] sm:$0xff] (!%p139_p2)  ;;  %v219_v21 = vld [vmem:[%s976_s1 + $0x68] sm:$0xff] (!%p139_p2)  ;;  %v220_v23 = vld [vmem:[%s976_s1 + $0x70] sm:$0xff] (!%p139_p2) }
   0xa   : > { %719 = vmatprep.subr.bf16.mxu0 (!%p139_p2), %v718_v5  ;;  %747 = vmatprep.subr.bf16.mxu1 (!%p139_p2), %v718_v5  ;;  %v738_v22 = vpack.c.bf16 (!%p139_p2), %v219_v21, %v218_v20  ;;  %v221_v24 = vld [vmem:[%s976_s1 + $0x78] sm:$0xff] (!%p139_p2)  ;;  %v899_v56 = vld [vmem:[%s977_s2] ss:$0 sm:$0xff] (!%p139_p2) }
   0xb   : > { %v742_v25 = vpack.c.bf16 (!%p139_p2), %v221_v24, %v220_v23 }
   0xd   : > { %s980_s20 = smov (!%p163_p3, %s579_s20), 191  ;;  %721 = vmatpush3.bf16.msra.mxu0 %v718_v5  ;;  %755 = vmatpush3.bf16.msra.mxu1 %v718_v5 }
   0xe   : > { %s580_s27 = sshll.u32 %s980_s20, 3  ;;  %723 = vmatprep.subr.bf16.mxu0 %v722_v8  ;;  %748 = vmatprep.subr.bf16.mxu1 %v722_v8 }
   0xf   : > { %s838_s7 = scalar_lea.vmem %s975_s0, %s580_s27  ;;  %s908_s4 = scalar_lea.vmem %s978_s3, %s580_s27 }
  0x10   : > { %v174_v11 = vld [vmem:[%s838_s7] sm:$0xff]  ;;  %v175_v26 = vld [vmem:[%s838_s7 + $0x8] sm:$0xff]  ;;  %v176_v28 = vld [vmem:[%s838_s7 + $0x10] sm:$0xff] }
  0x11   : > { %v190_v12 = vld [vmem:[%s838_s7 + $0x80] sm:$0xff]  ;;  %666 = vmatprep.mubr.f32.mxu0 %v174_v11  ;;  %725 = vmatpush3.bf16.msra.mxu0 %v722_v8  ;;  %v191_v27 = vld [vmem:[%s838_s7 + $0x88] sm:$0xff]  ;;  %v192_v29 = vld [vmem:[%s838_s7 + $0x90] sm:$0xff] }
  0x12   : > { %690 = vmatprep.mubr.f32.mxu1 %v190_v12  ;;  %756 = vmatpush3.bf16.msra.mxu1 %v722_v8  ;;  %v177_v30 = vld [vmem:[%s838_s7 + $0x18] sm:$0xff]  ;;  %v178_v32 = vld [vmem:[%s838_s7 + $0x20] sm:$0xff]  ;;  %v179_v34 = vld [vmem:[%s838_s7 + $0x28] sm:$0xff] }
  0x13   : > { %727 = vmatprep.subr.bf16.mxu0 %v726_v13  ;;  %749 = vmatprep.subr.bf16.mxu1 %v726_v13  ;;  %v193_v31 = vld [vmem:[%s838_s7 + $0x98] sm:$0xff]  ;;  %v194_v33 = vld [vmem:[%s838_s7 + $0xa0] sm:$0xff]  ;;  %v195_v35 = vld [vmem:[%s838_s7 + $0xa8] sm:$0xff] }
  0x14   : > { %v180_v36 = vld [vmem:[%s838_s7 + $0x30] sm:$0xff]  ;;  %v181_v38 = vld [vmem:[%s838_s7 + $0x38] sm:$0xff]  ;;  %v182_v40 = vld [vmem:[%s838_s7 + $0x40] sm:$0xff] }
  0x15   : > { %729 = vmatpush3.bf16.msra.mxu0 %v726_v13  ;;  %v196_v37 = vld [vmem:[%s838_s7 + $0xb0] sm:$0xff]  ;;  %v197_v39 = vld [vmem:[%s838_s7 + $0xb8] sm:$0xff]  ;;  %v198_v41 = vld [vmem:[%s838_s7 + $0xc0] sm:$0xff] }
  0x16   : > { %757 = vmatpush3.bf16.msra.mxu1 %v726_v13  ;;  %731 = vmatprep.subr.bf16.mxu0 %v730_v16  ;;  %v183_v42 = vld [vmem:[%s838_s7 + $0x48] sm:$0xff]  ;;  %v184_v44 = vld [vmem:[%s838_s7 + $0x50] sm:$0xff]  ;;  %v185_v46 = vld [vmem:[%s838_s7 + $0x58] sm:$0xff] }
  0x17   : > { %750 = vmatprep.subr.bf16.mxu1 %v730_v16  ;;  %v199_v43 = vld [vmem:[%s838_s7 + $0xc8] sm:$0xff]  ;;  %v200_v45 = vld [vmem:[%s838_s7 + $0xd0] sm:$0xff]  ;;  %v201_v47 = vld [vmem:[%s838_s7 + $0xd8] sm:$0xff] }
  0x18   : > { %v186_v48 = vld [vmem:[%s838_s7 + $0x60] sm:$0xff]  ;;  %v187_v50 = vld [vmem:[%s838_s7 + $0x68] sm:$0xff]  ;;  %v188_v52 = vld [vmem:[%s838_s7 + $0x70] sm:$0xff] }
  0x19   : > { %733 = vmatpush3.bf16.msra.mxu0 %v730_v16  ;;  %v202_v49 = vld [vmem:[%s838_s7 + $0xe0] sm:$0xff]  ;;  %v203_v51 = vld [vmem:[%s838_s7 + $0xe8] sm:$0xff]  ;;  %v204_v53 = vld [vmem:[%s838_s7 + $0xf0] sm:$0xff] }
  0x1a   : > { %758 = vmatpush3.bf16.msra.mxu1 %v730_v16  ;;  %735 = vmatprep.subr.bf16.mxu0 %v734_v19  ;;  %v189_v54 = vld [vmem:[%s838_s7 + $0x78] sm:$0xff] }
  0x1b   : > { %751 = vmatprep.subr.bf16.mxu1 %v734_v19  ;;  %v205_v55 = vld [vmem:[%s838_s7 + $0xf8] sm:$0xff] }
  0x1d   : > { %737 = vmatpush3.bf16.msra.mxu0 %v734_v19 }
  0x1e   : > { %759 = vmatpush3.bf16.msra.mxu1 %v734_v19  ;;  %739 = vmatprep.subr.bf16.mxu0 %v738_v22 }
  0x1f   : > { %752 = vmatprep.subr.bf16.mxu1 %v738_v22 }
  0x21   : > { %741 = vmatpush3.bf16.msra.mxu0 %v738_v22 }
  0x22   : > { %760 = vmatpush3.bf16.msra.mxu1 %v738_v22  ;;  %743 = vmatprep.subr.bf16.mxu0 %v742_v25 }
  0x23   : > { %753 = vmatprep.subr.bf16.mxu1 %v742_v25 }
  0x25   : > { %745 = vmatpush3.bf16.msra.mxu0 %v742_v25 }
  0x26   : > { %761 = vmatpush3.bf16.msra.mxu1 %v742_v25 }
  0x28   : > { %667 = vmatmul.mubr.f32.vlgmr.msra.gmra.mrb[0].mxu0 %v175_v26 }
  0x29   : > { %691 = vmatmul.mubr.f32.vlgmr.msra.gmra.mrb[0].mxu1 %v191_v27  ;;  %669 = vmatprep.mubr.f32.mxu0 %v176_v28 }
  0x2a   : > { %693 = vmatprep.mubr.f32.mxu1 %v192_v29 }
  0x2c   : > { %670 = vmatmul.mubr.f32.gmra.mrb[2].mxu0 %v177_v30 }
  0x2d   : > { %694 = vmatmul.mubr.f32.gmra.mrb[2].mxu1 %v193_v31  ;;  %672 = vmatprep.mubr.f32.mxu0 %v178_v32 }
  0x2e   : > { %696 = vmatprep.mubr.f32.mxu1 %v194_v33 }
  0x30   : > { %673 = vmatmul.mubr.f32.gmra.mrb[4].mxu0 %v179_v34 }
  0x31   : > { %697 = vmatmul.mubr.f32.gmra.mrb[4].mxu1 %v195_v35  ;;  %675 = vmatprep.mubr.f32.mxu0 %v180_v36 }
  0x32   : > { %699 = vmatprep.mubr.f32.mxu1 %v196_v37 }
  0x34   : > { %676 = vmatmul.mubr.f32.gmra.mrb[6].mxu0 %v181_v38 }
  0x35   : > { %700 = vmatmul.mubr.f32.gmra.mrb[6].mxu1 %v197_v39  ;;  %678 = vmatprep.mubr.f32.mxu0 %v182_v40 }
  0x36   : > { %702 = vmatprep.mubr.f32.mxu1 %v198_v41 }
  0x38   : > { %679 = vmatmul.mubr.f32.gmra.mrb[8].mxu0 %v183_v42 }
  0x39   : > { %703 = vmatmul.mubr.f32.gmra.mrb[8].mxu1 %v199_v43  ;;  %681 = vmatprep.mubr.f32.mxu0 %v184_v44 }
  0x3a   : > { %705 = vmatprep.mubr.f32.mxu1 %v200_v45 }
  0x3c   : > { %682 = vmatmul.mubr.f32.gmra.mrb[10].mxu0 %v185_v46 }
  0x3d   : > { %706 = vmatmul.mubr.f32.gmra.mrb[10].mxu1 %v201_v47  ;;  %684 = vmatprep.mubr.f32.mxu0 %v186_v48 }
  0x3e   : > { %708 = vmatprep.mubr.f32.mxu1 %v202_v49 }
  0x40   : > { %685 = vmatmul.mubr.f32.gmra.mrb[12].mxu0 %v187_v50 }
  0x41   : > { %709 = vmatmul.mubr.f32.gmra.mrb[12].mxu1 %v203_v51  ;;  %687 = vmatprep.mubr.f32.mxu0 %v188_v52 }
  0x42   : > { %711 = vmatprep.mubr.f32.mxu1 %v204_v53 }
  0x44   : > { %688 = vmatmul.mubr.f32.gmra.mrb[14].mxu0 %v189_v54 }
  0x45   : > { %712 = vmatmul.mubr.f32.gmra.mrb[14].mxu1 %v205_v55 }
  0xfb   : > { %v668_v57 = vpop.f32.mrb[0].mxu0 }
  0xfc   : > { %v692_v58 = vpop.f32.mrb[0].mxu1  ;;  %v301_v59 = vadd.f32 %v668_v57, %v899_v56  ;;  %v295_v61 = vpop.f32.mrb[1].mxu0 }
  0xfd   : > { %v381_v60 = vadd.f32 %v692_v58, %v899_v56  ;;  %v375_v62 = vpop.f32.mrb[1].mxu1  ;;  %v296_v63 = vadd.f32 %v899_v56, %v295_v61 }
  0xfe   : > { %v376_v0 = vadd.f32 %v899_v56, %v375_v62  ;;  %v455_v1 = vmax.f32 %v301_v59, 0.0 }
  0xff   : > { %v471_v2 = vmax.f32 %v381_v60, 0.0  ;;  %v454_v3 = vmax.f32 %v296_v63, 0.0  ;;  %v671_v5 = vpop.f32.mrb[2].mxu0 }
 0x100   : > { %v470_v4 = vmax.f32 %v376_v0, 0.0  ;;  %v695_v6 = vpop.f32.mrb[2].mxu1  ;;  %487 = vst [vmem:[%s908_s4 + $0x8] sm:$0xff] %v455_v1  ;;  %v311_v7 = vadd.f32 %v671_v5, %v899_v56  ;;  %v305_v9 = vpop.f32.mrb[3].mxu0 }
 0x101   : > { %503 = vst [vmem:[%s908_s4 + $0x88] sm:$0xff] %v471_v2  ;;  %v391_v8 = vadd.f32 %v695_v6, %v899_v56  ;;  %v385_v10 = vpop.f32.mrb[3].mxu1  ;;  %486 = vst [vmem:[%s908_s4] sm:$0xff] %v454_v3  ;;  %v306_v11 = vadd.f32 %v899_v56, %v305_v9 }
 0x102   : > { %502 = vst [vmem:[%s908_s4 + $0x80] sm:$0xff] %v470_v4  ;;  %v386_v12 = vadd.f32 %v899_v56, %v385_v10  ;;  %v457_v13 = vmax.f32 %v311_v7, 0.0 }
 0x103   : > { %v473_v14 = vmax.f32 %v391_v8, 0.0  ;;  %v456_v15 = vmax.f32 %v306_v11, 0.0  ;;  %v674_v17 = vpop.f32.mrb[4].mxu0 }
 0x104   : > { %v472_v16 = vmax.f32 %v386_v12, 0.0  ;;  %v698_v18 = vpop.f32.mrb[4].mxu1  ;;  %489 = vst [vmem:[%s908_s4 + $0x18] sm:$0xff] %v457_v13  ;;  %v321_v19 = vadd.f32 %v674_v17, %v899_v56  ;;  %v315_v21 = vpop.f32.mrb[5].mxu0 }
 0x105   : > { %505 = vst [vmem:[%s908_s4 + $0x98] sm:$0xff] %v473_v14  ;;  %v401_v20 = vadd.f32 %v698_v18, %v899_v56  ;;  %v395_v22 = vpop.f32.mrb[5].mxu1  ;;  %488 = vst [vmem:[%s908_s4 + $0x10] sm:$0xff] %v456_v15  ;;  %v316_v23 = vadd.f32 %v899_v56, %v315_v21 }
 0x106   : > { %504 = vst [vmem:[%s908_s4 + $0x90] sm:$0xff] %v472_v16  ;;  %v396_v24 = vadd.f32 %v899_v56, %v395_v22  ;;  %v459_v25 = vmax.f32 %v321_v19, 0.0 }
 0x107   : > { %v475_v26 = vmax.f32 %v401_v20, 0.0  ;;  %v458_v27 = vmax.f32 %v316_v23, 0.0  ;;  %v677_v29 = vpop.f32.mrb[6].mxu0 }
 0x108   : > { %v474_v28 = vmax.f32 %v396_v24, 0.0  ;;  %v701_v30 = vpop.f32.mrb[6].mxu1  ;;  %491 = vst [vmem:[%s908_s4 + $0x28] sm:$0xff] %v459_v25  ;;  %v331_v31 = vadd.f32 %v677_v29, %v899_v56  ;;  %v325_v33 = vpop.f32.mrb[7].mxu0 }
 0x109   : > { %507 = vst [vmem:[%s908_s4 + $0xa8] sm:$0xff] %v475_v26  ;;  %v411_v32 = vadd.f32 %v701_v30, %v899_v56  ;;  %v405_v34 = vpop.f32.mrb[7].mxu1  ;;  %490 = vst [vmem:[%s908_s4 + $0x20] sm:$0xff] %v458_v27  ;;  %v326_v35 = vadd.f32 %v899_v56, %v325_v33 }
 0x10a   : > { %506 = vst [vmem:[%s908_s4 + $0xa0] sm:$0xff] %v474_v28  ;;  %v406_v36 = vadd.f32 %v899_v56, %v405_v34  ;;  %v461_v37 = vmax.f32 %v331_v31, 0.0 }
 0x10b   : > { %v477_v38 = vmax.f32 %v411_v32, 0.0  ;;  %v460_v39 = vmax.f32 %v326_v35, 0.0  ;;  %v680_v41 = vpop.f32.mrb[8].mxu0 }
 0x10c   : > { %v476_v40 = vmax.f32 %v406_v36, 0.0  ;;  %v704_v42 = vpop.f32.mrb[8].mxu1  ;;  %493 = vst [vmem:[%s908_s4 + $0x38] sm:$0xff] %v461_v37  ;;  %v341_v43 = vadd.f32 %v680_v41, %v899_v56  ;;  %v335_v45 = vpop.f32.mrb[9].mxu0 }
 0x10d   : > { %509 = vst [vmem:[%s908_s4 + $0xb8] sm:$0xff] %v477_v38  ;;  %v421_v44 = vadd.f32 %v704_v42, %v899_v56  ;;  %v415_v46 = vpop.f32.mrb[9].mxu1  ;;  %492 = vst [vmem:[%s908_s4 + $0x30] sm:$0xff] %v460_v39  ;;  %v336_v47 = vadd.f32 %v899_v56, %v335_v45 }
 0x10e   : > { %508 = vst [vmem:[%s908_s4 + $0xb0] sm:$0xff] %v476_v40  ;;  %v416_v48 = vadd.f32 %v899_v56, %v415_v46  ;;  %v463_v49 = vmax.f32 %v341_v43, 0.0 }
 0x10f   : > { %v479_v50 = vmax.f32 %v421_v44, 0.0  ;;  %v462_v51 = vmax.f32 %v336_v47, 0.0  ;;  %v683_v53 = vpop.f32.mrb[10].mxu0 }
 0x110   : > { %v478_v52 = vmax.f32 %v416_v48, 0.0  ;;  %v707_v54 = vpop.f32.mrb[10].mxu1  ;;  %495 = vst [vmem:[%s908_s4 + $0x48] sm:$0xff] %v463_v49  ;;  %v351_v55 = vadd.f32 %v683_v53, %v899_v56  ;;  %v345_v58 = vpop.f32.mrb[11].mxu0 }
 0x111   : > { %511 = vst [vmem:[%s908_s4 + $0xc8] sm:$0xff] %v479_v50  ;;  %v431_v57 = vadd.f32 %v707_v54, %v899_v56  ;;  %v425_v59 = vpop.f32.mrb[11].mxu1  ;;  %494 = vst [vmem:[%s908_s4 + $0x40] sm:$0xff] %v462_v51  ;;  %v346_v60 = vadd.f32 %v899_v56, %v345_v58 }
 0x112   : > { %510 = vst [vmem:[%s908_s4 + $0xc0] sm:$0xff] %v478_v52  ;;  %v426_v61 = vadd.f32 %v899_v56, %v425_v59  ;;  %v465_v62 = vmax.f32 %v351_v55, 0.0 }
 0x113   : > { %v481_v63 = vmax.f32 %v431_v57, 0.0  ;;  %v464_v0 = vmax.f32 %v346_v60, 0.0  ;;  %v686_v2 = vpop.f32.mrb[12].mxu0 }
 0x114   : > { %v480_v1 = vmax.f32 %v426_v61, 0.0  ;;  %v710_v3 = vpop.f32.mrb[12].mxu1  ;;  %497 = vst [vmem:[%s908_s4 + $0x58] sm:$0xff] %v465_v62  ;;  %v361_v4 = vadd.f32 %v686_v2, %v899_v56  ;;  %v355_v6 = vpop.f32.mrb[13].mxu0 }
 0x115   : > { %513 = vst [vmem:[%s908_s4 + $0xd8] sm:$0xff] %v481_v63  ;;  %v441_v5 = vadd.f32 %v710_v3, %v899_v56  ;;  %v435_v7 = vpop.f32.mrb[13].mxu1  ;;  %496 = vst [vmem:[%s908_s4 + $0x50] sm:$0xff] %v464_v0  ;;  %v356_v8 = vadd.f32 %v899_v56, %v355_v6 }
 0x116   : > { %512 = vst [vmem:[%s908_s4 + $0xd0] sm:$0xff] %v480_v1  ;;  %v436_v9 = vadd.f32 %v899_v56, %v435_v7  ;;  %v467_v10 = vmax.f32 %v361_v4, 0.0 }
 0x117   : > { %v483_v11 = vmax.f32 %v441_v5, 0.0  ;;  %v466_v12 = vmax.f32 %v356_v8, 0.0  ;;  %v689_v14 = vpop.f32.mrb[14].mxu0 }
 0x118   : > { %v482_v13 = vmax.f32 %v436_v9, 0.0  ;;  %v713_v15 = vpop.f32.mrb[14].mxu1  ;;  %499 = vst [vmem:[%s908_s4 + $0x68] sm:$0xff] %v467_v10  ;;  %v371_v16 = vadd.f32 %v689_v14, %v899_v56  ;;  %v365_v18 = vpop.f32.mrb[15].mxu0 }
 0x119   : > { %515 = vst [vmem:[%s908_s4 + $0xe8] sm:$0xff] %v483_v11  ;;  %v451_v17 = vadd.f32 %v713_v15, %v899_v56  ;;  %v445_v19 = vpop.f32.mrb[15].mxu1  ;;  %498 = vst [vmem:[%s908_s4 + $0x60] sm:$0xff] %v466_v12  ;;  %v366_v20 = vadd.f32 %v899_v56, %v365_v18 }
 0x11a   : > { %514 = vst [vmem:[%s908_s4 + $0xe0] sm:$0xff] %v482_v13  ;;  %v446_v21 = vadd.f32 %v899_v56, %v445_v19  ;;  %v469_v22 = vmax.f32 %v371_v16, 0.0 }
 0x11b   : > { %v485_v23 = vmax.f32 %v451_v17, 0.0  ;;  %v468_v24 = vmax.f32 %v366_v20, 0.0 }
 0x11c   : > { %v484_v25 = vmax.f32 %v446_v21, 0.0  ;;  %501 = vst [vmem:[%s908_s4 + $0x78] sm:$0xff] %v469_v22 }
 0x11d   : > { %517 = vst [vmem:[%s908_s4 + $0xf8] sm:$0xff] %v485_v23  ;;  %500 = vst [vmem:[%s908_s4 + $0x70] sm:$0xff] %v468_v24 }
 0x11e   : > { %516 = vst [vmem:[%s908_s4 + $0xf0] sm:$0xff] %v484_v25 }
 0x11f PF: > { %s13_s12 = sadd.s32 1, %s776_s12  }
 0x120   : > { %p10_p4 = scmp.ge.s32.totalorder %s13_s12, 8  }
 0x122   :  { %12 = sbr.rel (!%p10_p4) target bundleno = 1 (0x1), region = 62 }

// kernel: actor_forward.9
= control target key start
LH: loop header
LB: loop body
LE: loop exit
PB: predicated region body
PF: predicated region fallthrough
CT: control target
= control target key end

     0   :  { %vm376_vm0 = vcmask 1046528   ;;  %vm1037_vm1 = vcmask 1045504   ;;  %vm2858_vm2 = vcmask 130048   ;;  %vm2862_vm3 = vcmask 125952   ;;  %s5622_s0 = inlined_call_operand.vmem [shape: f32[2,24,30,16], index: 0, kind: input, shape index: {}]   ;;  %s5623_s1 = inlined_call_operand.vmem [shape: f32[2,22,28,16], index: 1, kind: output, shape index: {}]  }
   0x1   :  { %v8_v0 = vld [vmem:[%s5622_s0] sm:$0xff]  ;;  %v9_v1 = vld [vmem:[%s5622_s0 + $0x8] sm:$0xff]  ;;  %v3079_v17 = vld [vmem:[%s5622_s0 + $0x10] sm:$0xff] }
   0x2   :  { %v12_v2 = vld [vmem:[%s5622_s0 + $0x20] sm:$0xff]  ;;  %v3062_v3 = vld [vmem:[%s5622_s0 + $0x28] sm:$0xff]  ;;  %v377_v6 = vrot.slane %v8_v0, 1  ;;  %v378_v7 = vrot.slane %v9_v1, 1  ;;  %v1038_v12 = vrot.slane %v8_v0, 2  ;;  %v1039_v14 = vrot.slane %v9_v1, 2 }
   0x3   :  { %v16_v4 = vld [vmem:[%s5622_s0 + $0x40] sm:$0xff]  ;;  %v3070_v5 = vld [vmem:[%s5622_s0 + $0x48] sm:$0xff]  ;;  %v384_v8 = vrot.slane %v12_v2, 1  ;;  %v385_v9 = vrot.slane %v3062_v3, 1  ;;  %v1045_v15 = vrot.slane %v12_v2, 2  ;;  %v1046_v16 = vrot.slane %v3062_v3, 2 }
   0x4   :  { %v391_v10 = vrot.slane %v16_v4, 1  ;;  %v392_v11 = vrot.slane %v3070_v5, 1  ;;  %v379_v13 = vsel %vm376_vm0, %v377_v6, %v378_v7  ;;  %v3084_v18 = vld [vmem:[%s5622_s0 + $0x30] sm:$0xff]  ;;  %v1052_v22 = vrot.slane %v16_v4, 2  ;;  %v11_v44 = vld [vmem:[%s5622_s0 + $0x18] sm:$0x3f] }
   0x5   :  { %v386_v19 = vsel %vm376_vm0, %v384_v8, %v385_v9  ;;  %v861_v21 = vmax.f32 %v8_v0, %v379_v13  ;;  %v3093_v23 = vld [vmem:[%s5622_s0 + $0x50] sm:$0xff]  ;;  %v1040_v26 = vsel %vm1037_vm1, %v1038_v12, %v1039_v14  ;;  %v1047_v27 = vsel %vm1037_vm1, %v1045_v15, %v1046_v16  ;;  %v3121_v45 = vld [vmem:[%s5622_s0 + $0x60] sm:$0xff]  ;;  %v3130_v50 = vld [vmem:[%s5622_s0 + $0x38] sm:$0x3f] }
   0x6   :  { %v3088_v20 = vsel %vm376_vm0, %v391_v10, %v392_v11  ;;  %v865_v24 = vmax.f32 %v12_v2, %v386_v19  ;;  %v1053_v28 = vrot.slane %v3070_v5, 2  ;;  %v380_v30 = vrot.slane %v3079_v17, 1  ;;  %v3135_v51 = vld [vmem:[%s5622_s0 + $0x58] sm:$0x3f] }
   0x7   :  { %v869_v25 = vmax.f32 %v16_v4, %v3088_v20  ;;  %v1522_v29 = vmax.f32 %v861_v21, %v1040_v26  ;;  %v387_v31 = vrot.slane %v3084_v18, 1  ;;  %v394_v33 = vrot.slane %v3093_v23, 1 }
   0x8   :  { %v1526_v32 = vmax.f32 %v865_v24, %v1047_v27  ;;  %v1041_v34 = vrot.slane %v3079_v17, 2  ;;  %v1048_v35 = vrot.slane %v3084_v18, 2  ;;  %v3105_v36 = vsel %vm1037_vm1, %v1052_v22, %v1053_v28 }
   0x9   :  { %v1698_v37 = vmax.f32 %v1522_v29, %v12_v2  ;;  %v381_v38 = vsel %vm376_vm0, %v378_v7, %v380_v30  ;;  %v388_v39 = vsel %vm376_vm0, %v385_v9, %v387_v31  ;;  %v3110_v40 = vmax.f32 %v869_v25, %v3105_v36  ;;  %v3163_v7 = vld [vmem:[%s5622_s0 + $0x68] sm:$0xff] }
   0xa   :  { %v1702_v41 = vmax.f32 %v1526_v32, %v16_v4  ;;  %v3113_v42 = vsel %vm376_vm0, %v392_v11, %v394_v33  ;;  %v862_v43 = vmax.f32 %v9_v1, %v381_v38  ;;  %v866_v47 = vmax.f32 %v3062_v3, %v388_v39 }
   0xb   :  { %v1904_v46 = vmax.f32 %v1698_v37, %v386_v19  ;;  %v870_v48 = vmax.f32 %v3070_v5, %v3113_v42  ;;  %v1042_v49 = vsel %vm1037_vm1, %v1039_v14, %v1041_v34  ;;  %v1706_v52 = vmax.f32 %v3110_v40, %v3121_v45 }
   0xc   :  { %v3140_v53 = vmax.f32 %v1702_v41, %v3088_v20  ;;  %v1049_v54 = vsel %vm1037_vm1, %v1046_v16, %v1048_v35  ;;  %v1055_v55 = vrot.slane %v3093_v23, 2  ;;  %v1523_v57 = vmax.f32 %v862_v43, %v1042_v49 }
   0xd   :  { %v2102_v56 = vmax.f32 %v1904_v46, %v1047_v27  ;;  %v1527_v58 = vmax.f32 %v866_v47, %v1049_v54  ;;  %v382_v59 = vrot.slane %v11_v44, 1  ;;  %v3150_v62 = vrot.slane %v3130_v50, 1 }
   0xe   :  { %v2106_v60 = vmax.f32 %v3140_v53, %v3105_v36  ;;  %v3147_v61 = vsel %vm1037_vm1, %v1053_v28, %v1055_v55  ;;  %v3153_v63 = vrot.slane %v3135_v51, 1  ;;  %v1699_v2 = vmax.f32 %v1523_v57, %v3062_v3 }
   0xf   :  { %v2278_v0 = vmax.f32 %v2102_v56, %v16_v4  ;;  %v3156_v1 = vmax.f32 %v870_v48, %v3147_v61  ;;  %v1703_v6 = vmax.f32 %v1527_v58, %v3070_v5  ;;  %v383_v8 = vsel %vm376_vm0, %v380_v30, %v382_v59 }
  0x10   :  { %v390_v9 = vsel %vm376_vm0, %v387_v31, %v3150_v62  ;;  %v3170_v4 = vsel %vm376_vm0, %v394_v33, %v3153_v63  ;;  %v1043_v10 = vrot.slane %v11_v44, 2  ;;  %v1905_v12 = vmax.f32 %v1699_v2, %v388_v39  ;;  %v3231_v2 = vld [vmem:[%s5622_s0 + $0x78] sm:$0x3f] }
  0x11   :  { %v2484_v11 = vmax.f32 %v2278_v0, %v3088_v20  ;;  %v1707_v3 = vmax.f32 %v3156_v1, %v3163_v7  ;;  %v1909_v13 = vmax.f32 %v1703_v6, %v3113_v42  ;;  %v863_v14 = vmax.f32 %v3079_v17, %v383_v8 }
  0x12   :  { %v867_v15 = vmax.f32 %v3084_v18, %v390_v9  ;;  %v871_v16 = vmax.f32 %v3093_v23, %v3170_v4  ;;  %v1044_v19 = vsel %vm1037_vm1, %v1041_v34, %v1043_v10  ;;  %v2103_v22 = vmax.f32 %v1905_v12, %v1049_v54 }
  0x13   :  { %v2682_v21 = vmax.f32 %v2484_v11, %v3105_v36  ;;  %v2107_v20 = vmax.f32 %v1909_v13, %v3147_v61  ;;  %v3184_v24 = vrot.slane %v3130_v50, 2  ;;  %v3187_v25 = vrot.slane %v3135_v51, 2 }
  0x14   :  { %v1524_v26 = vmax.f32 %v863_v14, %v1044_v19  ;;  %v864_v17 = vmax.f32 %v11_v44, %v382_v59  ;;  %v398_v27 = vrot.slane %v3121_v45, 1  ;;  %v2279_v28 = vmax.f32 %v2103_v22, %v3070_v5 }
  0x15   :  { %2859 = vst.msk [vmem:[%s5623_s1] sm:$0xff] %vm2858_vm2, %v2682_v21  ;;  %v1051_v29 = vsel %vm1037_vm1, %v1048_v35, %v3184_v24  ;;  %v399_v30 = vrot.slane %v3163_v7, 1  ;;  %v1059_v31 = vrot.slane %v3121_v45, 2  ;;  %v1058_v32 = vsel %vm1037_vm1, %v1055_v55, %v3187_v25  ;;  %v22_v35 = vld [vmem:[%s5622_s0 + $0x70] sm:$0xff]  ;;  %v3222_v55 = vld [vmem:[%s5622_s0 + $0x80] sm:$0xff] }
  0x16   :  { %v1528_v33 = vmax.f32 %v867_v15, %v1051_v29  ;;  %v1700_v34 = vmax.f32 %v1524_v26, %v3084_v18  ;;  %v1525_v36 = vmax.f32 %v864_v17, %v1043_v10  ;;  %v2485_v37 = vmax.f32 %v2279_v28, %v3113_v42 }
  0x17   :  { %v1532_v38 = vmax.f32 %v871_v16, %v1058_v32  ;;  %v400_v39 = vsel %vm376_vm0, %v398_v27, %v399_v30  ;;  %v1060_v5 = vrot.slane %v3163_v7, 2  ;;  %v2282_v57 = vmax.f32 %v2106_v60, %v3121_v45 }
  0x18   :  { %v1704_v40 = vmax.f32 %v1528_v33, %v3093_v23  ;;  %v1906_v41 = vmax.f32 %v1700_v34, %v390_v9  ;;  %v1701_v43 = vmax.f32 %v1525_v36, %v3130_v50  ;;  %v873_v44 = vmax.f32 %v3121_v45, %v400_v39  ;;  %v26_v34 = vld [vmem:[%s5622_s0 + $0x90] sm:$0xff] }
  0x19   :  { %v2683_v18 = vmax.f32 %v2485_v37, %v3147_v61  ;;  %v1708_v46 = vmax.f32 %v1532_v38, %v22_v35  ;;  %v1061_v42 = vsel %vm1037_vm1, %v1059_v31, %v1060_v5  ;;  %v1912_v47 = vmax.f32 %v1706_v52, %v400_v39 }
  0x1a   :  { %v1910_v48 = vmax.f32 %v1704_v40, %v3170_v4  ;;  %v2104_v49 = vmax.f32 %v1906_v41, %v1051_v29  ;;  %v1907_v53 = vmax.f32 %v1701_v43, %v3150_v62  ;;  %v1534_v54 = vmax.f32 %v873_v44, %v1061_v42  ;;  %v3283_v40 = vld [vmem:[%s5622_s0 + $0x98] sm:$0x3f] }
  0x1b   :  { %2860 = vst.msk [vmem:[%s5623_s1 + $0x8] sm:$0xff] %vm2858_vm2, %v2683_v18  ;;  %v2110_v56 = vmax.f32 %v1912_v47, %v1061_v42  ;;  %v401_v52 = vrot.slane %v22_v35, 1  ;;  %v1062_v58 = vrot.slane %v22_v35, 2  ;;  %v2488_v6 = vmax.f32 %v2282_v57, %v400_v39 }
  0x1c   :  { %v2108_v59 = vmax.f32 %v1910_v48, %v1058_v32  ;;  %v2280_v61 = vmax.f32 %v2104_v49, %v3093_v23  ;;  %v2105_v0 = vmax.f32 %v1907_v53, %v3184_v24  ;;  %v1710_v1 = vmax.f32 %v1534_v54, %v3222_v55 }
  0x1d   :  { %v402_v8 = vsel %vm376_vm0, %v399_v30, %v401_v52  ;;  %v1063_v9 = vsel %vm1037_vm1, %v1060_v5, %v1062_v58  ;;  %v2283_v45 = vmax.f32 %v2107_v20, %v3163_v7  ;;  %v2686_v12 = vmax.f32 %v2488_v6, %v1061_v42 }
  0x1e   :  { %v2486_v60 = vmax.f32 %v2280_v61, %v3170_v4  ;;  %v2281_v23 = vmax.f32 %v2105_v0, %v3135_v51  ;;  %v874_v10 = vmax.f32 %v3163_v7, %v402_v8  ;;  %v1913_v11 = vmax.f32 %v1707_v3, %v402_v8  ;;  %v25_v4 = vld [vmem:[%s5622_s0 + $0x88] sm:$0xff] }
  0x1f   :  { %v2489_v13 = vmax.f32 %v2283_v45, %v402_v8  ;;  %v3240_v14 = vrot.slane %v3231_v2, 1  ;;  %v3243_v15 = vrot.slane %v3231_v2, 2  ;;  %2864 = vst.msk [vmem:[%s5623_s1 + $0x20] sm:$0xff] %vm2858_vm2, %v2686_v12  ;;  %v2284_v26 = vmax.f32 %v2108_v59, %v22_v35 }
  0x20   :  { %v2684_v16 = vmax.f32 %v2486_v60, %v1058_v32  ;;  %v2487_v19 = vmax.f32 %v2281_v23, %v3153_v63  ;;  %v1535_v21 = vmax.f32 %v874_v10, %v1063_v9  ;;  %v2111_v22 = vmax.f32 %v1913_v11, %v1063_v9  ;;  %v29_v60 = vld [vmem:[%s5622_s0 + $0xa8] sm:$0xff] }
  0x21   :  { %v2687_v7 = vmax.f32 %v2489_v13, %v1063_v9  ;;  %v404_v3 = vsel %vm376_vm0, %v401_v52, %v3240_v14  ;;  %v1065_v20 = vsel %vm1037_vm1, %v1062_v58, %v3243_v15  ;;  %v868_v31 = vmax.f32 %v3130_v50, %v3150_v62 }
  0x22   :  { %2861 = vst.msk [vmem:[%s5623_s1 + $0x10] sm:$0xff] %vm2858_vm2, %v2684_v16  ;;  %v2685_v17 = vmax.f32 %v2487_v19, %v3187_v25  ;;  %v1711_v27 = vmax.f32 %v1535_v21, %v25_v4  ;;  %v875_v28 = vmax.f32 %v22_v35, %v404_v3  ;;  %v1914_v29 = vmax.f32 %v1708_v46, %v404_v3 }
  0x23   :  { %2865 = vst.msk [vmem:[%s5623_s1 + $0x28] sm:$0xff] %vm2858_vm2, %v2687_v7  ;;  %v2490_v30 = vmax.f32 %v2284_v26, %v404_v3  ;;  %v405_v32 = vrot.slane %v3222_v55, 1  ;;  %v406_v33 = vrot.slane %v25_v4, 1  ;;  %v1066_v38 = vrot.slane %v3222_v55, 2 }
  0x24   :  { %2863 = vst.msk [vmem:[%s5623_s1 + $0x18] sm:$0xf] %vm2862_vm3, %v2685_v17  ;;  %v1536_v36 = vmax.f32 %v875_v28, %v1065_v20  ;;  %v2112_v37 = vmax.f32 %v1914_v29, %v1065_v20  ;;  %v1067_v39 = vrot.slane %v25_v4, 2  ;;  %v1529_v50 = vmax.f32 %v868_v31, %v3184_v24 }
  0x25   :  { %v2688_v5 = vmax.f32 %v2490_v30, %v1065_v20  ;;  %v407_v62 = vsel %vm376_vm0, %v405_v32, %v406_v33  ;;  %v2286_v35 = vmax.f32 %v2110_v56, %v3222_v55  ;;  %v408_v42 = vrot.slane %v26_v34, 1  ;;  %v28_v56 = vld [vmem:[%s5622_s0 + $0xa0] sm:$0xff] }
  0x26   :  { %v1712_v41 = vmax.f32 %v1536_v36, %v26_v34  ;;  %v877_v43 = vmax.f32 %v3222_v55, %v407_v62  ;;  %v1068_v44 = vsel %vm1037_vm1, %v1066_v38, %v1067_v39  ;;  %v1916_v18 = vmax.f32 %v1710_v1, %v407_v62 }
  0x27   :  { %2866 = vst.msk [vmem:[%s5623_s1 + $0x30] sm:$0xff] %vm2858_vm2, %v2688_v5  ;;  %v1705_v24 = vmax.f32 %v1529_v50, %v3135_v51  ;;  %v2492_v46 = vmax.f32 %v2286_v35, %v407_v62  ;;  %v1069_v47 = vrot.slane %v26_v34, 2  ;;  %v2287_v53 = vmax.f32 %v2111_v22, %v25_v4  ;;  %v30_v22 = vld [vmem:[%s5622_s0 + $0xb0] sm:$0xff]  ;;  %v3344_v35 = vld [vmem:[%s5622_s0 + $0xb8] sm:$0x3f] }
  0x28   :  { %v1538_v48 = vmax.f32 %v877_v43, %v1068_v44  ;;  %v2114_v49 = vmax.f32 %v1916_v18, %v1068_v44  ;;  %v3293_v54 = vrot.slane %v3283_v40, 1  ;;  %v409_v52 = vsel %vm376_vm0, %v406_v33, %v408_v42 }
  0x29   :  { %v1911_v55 = vmax.f32 %v1705_v24, %v3153_v63  ;;  %v2690_v57 = vmax.f32 %v2492_v46, %v1068_v44  ;;  %v1070_v58 = vsel %vm1037_vm1, %v1067_v39, %v1069_v47  ;;  %v878_v61 = vmax.f32 %v25_v4, %v409_v52  ;;  %v32_v24 = vld [vmem:[%s5622_s0 + $0xc0] sm:$0xff] }
  0x2a   :  { %v1714_v59 = vmax.f32 %v1538_v48, %v28_v56  ;;  %v1917_v0 = vmax.f32 %v1711_v27, %v409_v52  ;;  %v2493_v1 = vmax.f32 %v2287_v53, %v409_v52  ;;  %v411_v8 = vsel %vm376_vm0, %v408_v42, %v3293_v54 }
  0x2b   :  { %v2109_v6 = vmax.f32 %v1911_v55, %v3187_v25  ;;  %2868 = vst.msk [vmem:[%s5623_s1 + $0x40] sm:$0xff] %vm2858_vm2, %v2690_v57  ;;  %v3309_v9 = vrot.slane %v3283_v40, 2  ;;  %v2288_v45 = vmax.f32 %v2112_v37, %v26_v34  ;;  %v1539_v23 = vmax.f32 %v878_v61, %v1070_v58  ;;  %v33_v57 = vld [vmem:[%s5622_s0 + $0xc8] sm:$0xff] }
  0x2c   :  { %v2115_v10 = vmax.f32 %v1917_v0, %v1070_v58  ;;  %v2691_v11 = vmax.f32 %v2493_v1, %v1070_v58  ;;  %v879_v12 = vmax.f32 %v26_v34, %v411_v8  ;;  %v1918_v19 = vmax.f32 %v1712_v41, %v411_v8 }
  0x2d   :  { %v2285_v13 = vmax.f32 %v2109_v6, %v3231_v2  ;;  %v1072_v16 = vsel %vm1037_vm1, %v1069_v47, %v3309_v9  ;;  %v2494_v4 = vmax.f32 %v2288_v45, %v411_v8  ;;  %v1715_v21 = vmax.f32 %v1539_v23, %v29_v60 }
  0x2e   :  { %2869 = vst.msk [vmem:[%s5623_s1 + $0x48] sm:$0xff] %vm2858_vm2, %v2691_v11  ;;  %v1540_v7 = vmax.f32 %v879_v12, %v1072_v16  ;;  %v872_v3 = vmax.f32 %v3135_v51, %v3153_v63  ;;  %v412_v20 = vrot.slane %v28_v56, 1  ;;  %v2116_v17 = vmax.f32 %v1918_v19, %v1072_v16 }
  0x2f   :  { %v2491_v26 = vmax.f32 %v2285_v13, %v3240_v14  ;;  %v2692_v27 = vmax.f32 %v2494_v4, %v1072_v16  ;;  %v413_v28 = vrot.slane %v29_v60, 1  ;;  %v1073_v31 = vrot.slane %v28_v56, 2 }
  0x30   :  { %v1716_v29 = vmax.f32 %v1540_v7, %v30_v22  ;;  %v1533_v30 = vmax.f32 %v872_v3, %v3187_v25  ;;  %v1074_v32 = vrot.slane %v29_v60, 2  ;;  %v2290_v63 = vmax.f32 %v2114_v49, %v28_v56 }
  0x31   :  { %v2689_v33 = vmax.f32 %v2491_v26, %v3243_v15  ;;  %2870 = vst.msk [vmem:[%s5623_s1 + $0x50] sm:$0xff] %vm2858_vm2, %v2692_v27  ;;  %v414_v51 = vsel %vm376_vm0, %v412_v20, %v413_v28  ;;  %v415_v34 = vrot.slane %v30_v22, 1  ;;  %v1076_v50 = vrot.slane %v30_v22, 2 }
  0x32   :  { %v1709_v36 = vmax.f32 %v1533_v30, %v3231_v2  ;;  %v881_v37 = vmax.f32 %v28_v56, %v414_v51  ;;  %v1075_v38 = vsel %vm1037_vm1, %v1073_v31, %v1074_v32  ;;  %v1920_v39 = vmax.f32 %v1714_v59, %v414_v51 }
  0x33   :  { %2867 = vst.msk [vmem:[%s5623_s1 + $0x38] sm:$0xf] %vm2862_vm3, %v2689_v33  ;;  %v2496_v25 = vmax.f32 %v2290_v63, %v414_v51  ;;  %v416_v5 = vsel %vm376_vm0, %v413_v28, %v415_v34  ;;  %v2291_v62 = vmax.f32 %v2115_v10, %v29_v60  ;;  %v1077_v42 = vsel %vm1037_vm1, %v1074_v32, %v1076_v50  ;;  %v3391_v28 = vld [vmem:[%s5622_s0 + $0xd8] sm:$0x3f] }
  0x34   :  { %v1915_v41 = vmax.f32 %v1709_v36, %v3240_v14  ;;  %v1542_v43 = vmax.f32 %v881_v37, %v1075_v38  ;;  %v2118_v44 = vmax.f32 %v1920_v39, %v1075_v38  ;;  %v882_v18 = vmax.f32 %v29_v60, %v416_v5  ;;  %v36_v37 = vld [vmem:[%s5622_s0 + $0xe0] sm:$0xff] }
  0x35   :  { %v2694_v46 = vmax.f32 %v2496_v25, %v1075_v38  ;;  %v1921_v47 = vmax.f32 %v1715_v21, %v416_v5  ;;  %v2497_v48 = vmax.f32 %v2291_v62, %v416_v5  ;;  %v3353_v56 = vrot.slane %v3344_v35, 1 }
  0x36   :  { %v2113_v49 = vmax.f32 %v1915_v41, %v3243_v15  ;;  %v1718_v53 = vmax.f32 %v1542_v43, %v32_v24  ;;  %v1543_v55 = vmax.f32 %v882_v18, %v1077_v42  ;;  %v3363_v59 = vrot.slane %v3344_v35, 2 }
  0x37   :  { %2872 = vst.msk [vmem:[%s5623_s1 + $0x60] sm:$0xff] %vm2858_vm2, %v2694_v46  ;;  %v2119_v52 = vmax.f32 %v1921_v47, %v1077_v42  ;;  %v2695_v58 = vmax.f32 %v2497_v48, %v1077_v42  ;;  %v2292_v61 = vmax.f32 %v2116_v17, %v30_v22  ;;  %v418_v6 = vsel %vm376_vm0, %v415_v34, %v3353_v56  ;;  %v37_v46 = vld [vmem:[%s5622_s0 + $0xe8] sm:$0xff] }
  0x38   :  { %v2289_v0 = vmax.f32 %v2113_v49, %v3283_v40  ;;  %v1719_v1 = vmax.f32 %v1543_v55, %v33_v57  ;;  %v876_v8 = vmax.f32 %v3231_v2, %v3240_v14  ;;  %v883_v45 = vmax.f32 %v30_v22, %v418_v6  ;;  %v34_v2 = vld [vmem:[%s5622_s0 + $0xd0] sm:$0xff] }
  0x39   :  { %2873 = vst.msk [vmem:[%s5623_s1 + $0x68] sm:$0xff] %vm2858_vm2, %v2695_v58  ;;  %v1079_v60 = vsel %vm1037_vm1, %v1076_v50, %v3363_v59  ;;  %v1922_v23 = vmax.f32 %v1716_v29, %v418_v6  ;;  %v2498_v10 = vmax.f32 %v2292_v61, %v418_v6  ;;  %v419_v13 = vrot.slane %v32_v24, 1  ;;  %v38_v61 = vld [vmem:[%s5622_s0 + $0xf0] sm:$0xff] }
  0x3a   :  { %v2495_v11 = vmax.f32 %v2289_v0, %v3293_v54  ;;  %v1537_v12 = vmax.f32 %v876_v8, %v3243_v15  ;;  %v420_v16 = vrot.slane %v33_v57, 1  ;;  %v1544_v14 = vmax.f32 %v883_v45, %v1079_v60 }
  0x3b   :  { %v2120_v19 = vmax.f32 %v1922_v23, %v1079_v60  ;;  %v2696_v4 = vmax.f32 %v2498_v10, %v1079_v60  ;;  %v1080_v21 = vrot.slane %v32_v24, 2  ;;  %v1081_v20 = vrot.slane %v33_v57, 2 }
  0x3c   :  { %v2693_v22 = vmax.f32 %v2495_v11, %v3309_v9  ;;  %v1713_v7 = vmax.f32 %v1537_v12, %v3283_v40  ;;  %v421_v3 = vsel %vm376_vm0, %v419_v13, %v420_v16  ;;  %v1720_v26 = vmax.f32 %v1544_v14, %v34_v2 }
  0x3d   :  { %2874 = vst.msk [vmem:[%s5623_s1 + $0x70] sm:$0xff] %vm2858_vm2, %v2696_v4  ;;  %v885_v15 = vmax.f32 %v32_v24, %v421_v3  ;;  %v1924_v17 = vmax.f32 %v1718_v53, %v421_v3  ;;  %v2294_v27 = vmax.f32 %v2118_v44, %v32_v24  ;;  %v1082_v30 = vsel %vm1037_vm1, %v1080_v21, %v1081_v20 }
  0x3e   :  { %2871 = vst.msk [vmem:[%s5623_s1 + $0x58] sm:$0xf] %vm2862_vm3, %v2693_v22  ;;  %v1919_v29 = vmax.f32 %v1713_v7, %v3293_v54  ;;  %v422_v31 = vrot.slane %v34_v2, 1  ;;  %v1083_v32 = vrot.slane %v34_v2, 2  ;;  %v2295_v34 = vmax.f32 %v2119_v52, %v33_v57 }
  0x3f   :  { %v1546_v33 = vmax.f32 %v885_v15, %v1082_v30  ;;  %v2122_v51 = vmax.f32 %v1924_v17, %v1082_v30  ;;  %v2500_v63 = vmax.f32 %v2294_v27, %v421_v3  ;;  %v3406_v25 = vrot.slane %v3391_v28, 1 }
  0x40   :  { %v2117_v36 = vmax.f32 %v1919_v29, %v3309_v9  ;;  %v423_v38 = vsel %vm376_vm0, %v420_v16, %v422_v31  ;;  %v1084_v39 = vsel %vm1037_vm1, %v1081_v20, %v1083_v32  ;;  %v3412_v24 = vrot.slane %v3391_v28, 2  ;;  %v3450_v20 = vld [vmem:[%s5622_s0 + $0xf8] sm:$0x3f]  ;;  %v40_v29 = vld [vmem:[%s5622_s0 + $0x100] sm:$0xff] }
  0x41   :  { %v1722_v5 = vmax.f32 %v1546_v33, %v36_v37  ;;  %v2698_v50 = vmax.f32 %v2500_v63, %v1082_v30  ;;  %v886_v62 = vmax.f32 %v33_v57, %v423_v38  ;;  %v1925_v41 = vmax.f32 %v1719_v1, %v423_v38 }
  0x42   :  { %v2293_v43 = vmax.f32 %v2117_v36, %v3344_v35  ;;  %v2501_v44 = vmax.f32 %v2295_v34, %v423_v38  ;;  %v425_v18 = vsel %vm376_vm0, %v422_v31, %v3406_v25  ;;  %v1086_v57 = vsel %vm1037_vm1, %v1083_v32, %v3412_v24 }
  0x43   :  { %2876 = vst.msk [vmem:[%s5623_s1 + $0x80] sm:$0xff] %vm2858_vm2, %v2698_v50  ;;  %v1547_v42 = vmax.f32 %v886_v62, %v1084_v39  ;;  %v2123_v47 = vmax.f32 %v1925_v41, %v1084_v39  ;;  %v887_v48 = vmax.f32 %v34_v2, %v425_v18  ;;  %v1926_v49 = vmax.f32 %v1720_v26, %v425_v18 }
  0x44   :  { %v2499_v53 = vmax.f32 %v2293_v43, %v3353_v56  ;;  %v2699_v55 = vmax.f32 %v2501_v44, %v1084_v39  ;;  %v2296_v52 = vmax.f32 %v2120_v19, %v34_v2  ;;  %v880_v6 = vmax.f32 %v3283_v40, %v3293_v54 }
  0x45   :  { %v1723_v58 = vmax.f32 %v1547_v42, %v37_v46  ;;  %v1548_v0 = vmax.f32 %v887_v48, %v1086_v57  ;;  %v2124_v1 = vmax.f32 %v1926_v49, %v1086_v57  ;;  %v426_v60 = vrot.slane %v36_v37, 1 }
  0x46   :  { %v2697_v8 = vmax.f32 %v2499_v53, %v3363_v59  ;;  %2877 = vst.msk [vmem:[%s5623_s1 + $0x88] sm:$0xff] %vm2858_vm2, %v2699_v55  ;;  %v2502_v45 = vmax.f32 %v2296_v52, %v425_v18  ;;  %v427_v23 = vrot.slane %v37_v46, 1  ;;  %v1541_v11 = vmax.f32 %v880_v6, %v3309_v9 }
  0x47   :  { %v1724_v10 = vmax.f32 %v1548_v0, %v38_v61  ;;  %v1087_v12 = vrot.slane %v36_v37, 2  ;;  %v1088_v13 = vrot.slane %v37_v46, 2  ;;  %v2298_v16 = vmax.f32 %v2122_v51, %v36_v37 }
  0x48   :  { %2875 = vst.msk [vmem:[%s5623_s1 + $0x78] sm:$0xf] %vm2862_vm3, %v2697_v8  ;;  %v2700_v40 = vmax.f32 %v2502_v45, %v1086_v57  ;;  %v428_v54 = vsel %vm376_vm0, %v426_v60, %v427_v23  ;;  %v429_v2 = vrot.slane %v38_v61, 1  ;;  %v1717_v14 = vmax.f32 %v1541_v11, %v3344_v35 }
  0x49   :  { %v889_v19 = vmax.f32 %v36_v37, %v428_v54  ;;  %v1089_v4 = vsel %vm1037_vm1, %v1087_v12, %v1088_v13  ;;  %v1928_v21 = vmax.f32 %v1722_v5, %v428_v54  ;;  %v2504_v9 = vmax.f32 %v2298_v16, %v428_v54  ;;  %v41_v37 = vld [vmem:[%s5622_s0 + $0x108] sm:$0xff] }
  0x4a   :  { %2878 = vst.msk [vmem:[%s5623_s1 + $0x90] sm:$0xff] %vm2858_vm2, %v2700_v40  ;;  %v430_v22 = vsel %vm376_vm0, %v427_v23, %v429_v2  ;;  %v1090_v7 = vrot.slane %v38_v61, 2  ;;  %v2299_v3 = vmax.f32 %v2123_v47, %v37_v46  ;;  %v1923_v26 = vmax.f32 %v1717_v14, %v3353_v56  ;;  %v3497_v23 = vld [vmem:[%s5622_s0 + $0x118] sm:$0x3f] }
  0x4b   :  { %v1550_v15 = vmax.f32 %v889_v19, %v1089_v4  ;;  %v2126_v17 = vmax.f32 %v1928_v21, %v1089_v4  ;;  %v890_v27 = vmax.f32 %v37_v46, %v430_v22  ;;  %v2702_v30 = vmax.f32 %v2504_v9, %v1089_v4  ;;  %v44_v19 = vld [vmem:[%s5622_s0 + $0x120] sm:$0xff] }
  0x4c   :  { %v1091_v31 = vsel %vm1037_vm1, %v1088_v13, %v1090_v7  ;;  %v1929_v32 = vmax.f32 %v1723_v58, %v430_v22  ;;  %v2505_v33 = vmax.f32 %v2299_v3, %v430_v22  ;;  %v2121_v51 = vmax.f32 %v1923_v26, %v3363_v59 }
  0x4d   :  { %v1726_v63 = vmax.f32 %v1550_v15, %v40_v29  ;;  %v1551_v34 = vmax.f32 %v890_v27, %v1091_v31  ;;  %v3459_v36 = vrot.slane %v3450_v20, 1  ;;  %2880 = vst.msk [vmem:[%s5623_s1 + $0xa0] sm:$0xff] %vm2858_vm2, %v2702_v30  ;;  %v3469_v5 = vrot.slane %v3450_v20, 2  ;;  %v45_v30 = vld [vmem:[%s5622_s0 + $0x128] sm:$0xff] }
  0x4e   :  { %v2127_v38 = vmax.f32 %v1929_v32, %v1091_v31  ;;  %v2703_v39 = vmax.f32 %v2505_v33, %v1091_v31  ;;  %v2300_v50 = vmax.f32 %v2124_v1, %v38_v61  ;;  %v2297_v62 = vmax.f32 %v2121_v51, %v3391_v28 }
  0x4f   :  { %v1727_v41 = vmax.f32 %v1551_v34, %v41_v37  ;;  %v432_v43 = vsel %vm376_vm0, %v429_v2, %v3459_v36  ;;  %v884_v44 = vmax.f32 %v3344_v35, %v3353_v56  ;;  %v1093_v46 = vsel %vm1037_vm1, %v1090_v7, %v3469_v5  ;;  %v42_v35 = vld [vmem:[%s5622_s0 + $0x110] sm:$0xff] }
  0x50   :  { %2881 = vst.msk [vmem:[%s5623_s1 + $0xa8] sm:$0xff] %vm2858_vm2, %v2703_v39  ;;  %v891_v18 = vmax.f32 %v38_v61, %v432_v43  ;;  %v1930_v42 = vmax.f32 %v1724_v10, %v432_v43  ;;  %v2506_v47 = vmax.f32 %v2300_v50, %v432_v43  ;;  %v2503_v48 = vmax.f32 %v2297_v62, %v3406_v25  ;;  %v46_v50 = vld [vmem:[%s5622_s0 + $0x130] sm:$0xff] }
  0x51   :  { %v1545_v49 = vmax.f32 %v884_v44, %v3363_v59  ;;  %v433_v53 = vrot.slane %v40_v29, 1  ;;  %v434_v55 = vrot.slane %v41_v37, 1  ;;  %v1094_v58 = vrot.slane %v40_v29, 2 }
  0x52   :  { %v1552_v56 = vmax.f32 %v891_v18, %v1093_v46  ;;  %v2128_v57 = vmax.f32 %v1930_v42, %v1093_v46  ;;  %v2704_v52 = vmax.f32 %v2506_v47, %v1093_v46  ;;  %v2701_v61 = vmax.f32 %v2503_v48, %v3412_v24 }
  0x53   :  { %v1721_v0 = vmax.f32 %v1545_v49, %v3391_v28  ;;  %v435_v1 = vsel %vm376_vm0, %v433_v53, %v434_v55  ;;  %v1095_v6 = vrot.slane %v41_v37, 2  ;;  %v2302_v60 = vmax.f32 %v2126_v17, %v40_v29 }
  0x54   :  { %v1728_v8 = vmax.f32 %v1552_v56, %v42_v35  ;;  %2882 = vst.msk [vmem:[%s5623_s1 + $0xb0] sm:$0xff] %vm2858_vm2, %v2704_v52  ;;  %v893_v59 = vmax.f32 %v40_v29, %v435_v1  ;;  %v1932_v45 = vmax.f32 %v1726_v63, %v435_v1  ;;  %v436_v12 = vrot.slane %v42_v35, 1 }
  0x55   :  { %2879 = vst.msk [vmem:[%s5623_s1 + $0x98] sm:$0xf] %vm2862_vm3, %v2701_v61  ;;  %v1927_v10 = vmax.f32 %v1721_v0, %v3406_v25  ;;  %v1096_v11 = vsel %vm1037_vm1, %v1094_v58, %v1095_v6  ;;  %v1097_v13 = vrot.slane %v42_v35, 2  ;;  %v2508_v16 = vmax.f32 %v2302_v60, %v435_v1 }
  0x56   :  { %v1554_v40 = vmax.f32 %v893_v59, %v1096_v11  ;;  %v2130_v54 = vmax.f32 %v1932_v45, %v1096_v11  ;;  %v2303_v2 = vmax.f32 %v2127_v38, %v41_v37  ;;  %v437_v4 = vsel %vm376_vm0, %v434_v55, %v436_v12 }
  0x57   :  { %v2125_v14 = vmax.f32 %v1927_v10, %v3412_v24  ;;  %v1098_v21 = vsel %vm1037_vm1, %v1095_v6, %v1097_v13  ;;  %v3512_v9 = vrot.slane %v3497_v23, 1  ;;  %v2706_v7 = vmax.f32 %v2508_v16, %v1096_v11  ;;  %v3556_v6 = vld [vmem:[%s5622_s0 + $0x138] sm:$0x3f]  ;;  %v48_v10 = vld [vmem:[%s5622_s0 + $0x140] sm:$0xff] }
  0x58   :  { %v1730_v22 = vmax.f32 %v1554_v40, %v44_v19  ;;  %v894_v3 = vmax.f32 %v41_v37, %v437_v4  ;;  %v1933_v26 = vmax.f32 %v1727_v41, %v437_v4  ;;  %v2509_v17 = vmax.f32 %v2303_v2, %v437_v4 }
  0x59   :  { %v2301_v15 = vmax.f32 %v2125_v14, %v3450_v20  ;;  %v439_v27 = vsel %vm376_vm0, %v436_v12, %v3512_v9  ;;  %v3518_v29 = vrot.slane %v3497_v23, 2  ;;  %2884 = vst.msk [vmem:[%s5623_s1 + $0xc0] sm:$0xff] %vm2858_vm2, %v2706_v7  ;;  %v2304_v38 = vmax.f32 %v2128_v57, %v42_v35 }
  0x5a   :  { %v1555_v31 = vmax.f32 %v894_v3, %v1098_v21  ;;  %v2131_v32 = vmax.f32 %v1933_v26, %v1098_v21  ;;  %v895_v33 = vmax.f32 %v42_v35, %v439_v27  ;;  %v1934_v51 = vmax.f32 %v1728_v8, %v439_v27 }
  0x5b   :  { %v2507_v63 = vmax.f32 %v2301_v15, %v3459_v36  ;;  %v2707_v34 = vmax.f32 %v2509_v17, %v1098_v21  ;;  %v1100_v37 = vsel %vm1037_vm1, %v1097_v13, %v3518_v29  ;;  %v888_v43 = vmax.f32 %v3391_v28, %v3406_v25 }
  0x5c   :  { %v1731_v39 = vmax.f32 %v1555_v31, %v45_v30  ;;  %v1556_v62 = vmax.f32 %v895_v33, %v1100_v37  ;;  %v2132_v41 = vmax.f32 %v1934_v51, %v1100_v37  ;;  %v2510_v18 = vmax.f32 %v2304_v38, %v439_v27 }
  0x5d   :  { %v2705_v44 = vmax.f32 %v2507_v63, %v3469_v5  ;;  %2885 = vst.msk [vmem:[%s5623_s1 + $0xc8] sm:$0xff] %vm2858_vm2, %v2707_v34  ;;  %v440_v46 = vrot.slane %v44_v19, 1  ;;  %v441_v42 = vrot.slane %v45_v30, 1  ;;  %v1549_v48 = vmax.f32 %v888_v43, %v3412_v24 }
  0x5e   :  { %v1732_v47 = vmax.f32 %v1556_v62, %v46_v50  ;;  %v1101_v49 = vrot.slane %v44_v19, 2  ;;  %v1102_v53 = vrot.slane %v45_v30, 2  ;;  %v2708_v28 = vmax.f32 %v2510_v18, %v1100_v37 }
  0x5f   :  { %2883 = vst.msk [vmem:[%s5623_s1 + $0xb8] sm:$0xf] %vm2862_vm3, %v2705_v44  ;;  %v442_v25 = vsel %vm376_vm0, %v440_v46, %v441_v42  ;;  %v2306_v55 = vmax.f32 %v2130_v54, %v44_v19  ;;  %v443_v35 = vrot.slane %v46_v50, 1  ;;  %v1725_v56 = vmax.f32 %v1549_v48, %v3450_v20 }
  0x60   :  { %v897_v57 = vmax.f32 %v44_v19, %v442_v25  ;;  %v1103_v52 = vsel %vm1037_vm1, %v1101_v49, %v1102_v53  ;;  %v1936_v58 = vmax.f32 %v1730_v22, %v442_v25  ;;  %2886 = vst.msk [vmem:[%s5623_s1 + $0xd0] sm:$0xff] %vm2858_vm2, %v2708_v28  ;;  %v1104_v0 = vrot.slane %v46_v50, 2  ;;  %v49_v19 = vld [vmem:[%s5622_s0 + $0x148] sm:$0xff] }
  0x61   :  { %v2512_v24 = vmax.f32 %v2306_v55, %v442_v25  ;;  %v444_v61 = vsel %vm376_vm0, %v441_v42, %v443_v35  ;;  %v2307_v1 = vmax.f32 %v2131_v32, %v45_v30  ;;  %v1931_v8 = vmax.f32 %v1725_v56, %v3459_v36  ;;  %v3603_v42 = vld [vmem:[%s5622_s0 + $0x158] sm:$0x3f] }
  0x62   :  { %v1558_v59 = vmax.f32 %v897_v57, %v1103_v52  ;;  %v2134_v45 = vmax.f32 %v1936_v58, %v1103_v52  ;;  %v898_v60 = vmax.f32 %v45_v30, %v444_v61  ;;  %v1105_v12 = vsel %vm1037_vm1, %v1102_v53, %v1104_v0  ;;  %v52_v57 = vld [vmem:[%s5622_s0 + $0x160] sm:$0xff] }
  0x63   :  { %v2710_v11 = vmax.f32 %v2512_v24, %v1103_v52  ;;  %v1937_v13 = vmax.f32 %v1731_v39, %v444_v61  ;;  %v2513_v40 = vmax.f32 %v2307_v1, %v444_v61  ;;  %v2129_v54 = vmax.f32 %v1931_v8, %v3469_v5 }
  0x64   :  { %v1734_v16 = vmax.f32 %v1558_v59, %v48_v10  ;;  %v1559_v2 = vmax.f32 %v898_v60, %v1105_v12  ;;  %v3565_v14 = vrot.slane %v3556_v6, 1  ;;  %v3575_v22 = vrot.slane %v3556_v6, 2 }
  0x65   :  { %2888 = vst.msk [vmem:[%s5623_s1 + $0xe0] sm:$0xff] %vm2858_vm2, %v2710_v11  ;;  %v2135_v4 = vmax.f32 %v1937_v13, %v1105_v12  ;;  %v2711_v21 = vmax.f32 %v2513_v40, %v1105_v12  ;;  %v2308_v7 = vmax.f32 %v2132_v41, %v46_v50  ;;  %v2305_v3 = vmax.f32 %v2129_v54, %v3497_v23  ;;  %v53_v11 = vld [vmem:[%s5622_s0 + $0x168] sm:$0xff] }
  0x66   :  { %v1735_v26 = vmax.f32 %v1559_v2, %v49_v19  ;;  %v446_v15 = vsel %vm376_vm0, %v443_v35, %v3565_v14  ;;  %v892_v17 = vmax.f32 %v3450_v20, %v3459_v36  ;;  %v1107_v30 = vsel %vm1037_vm1, %v1104_v0, %v3575_v22  ;;  %v50_v20 = vld [vmem:[%s5622_s0 + $0x150] sm:$0xff] }
  0x67   :  { %2889 = vst.msk [vmem:[%s5623_s1 + $0xe8] sm:$0xff] %vm2858_vm2, %v2711_v21  ;;  %v899_v27 = vmax.f32 %v46_v50, %v446_v15  ;;  %v1938_v31 = vmax.f32 %v1732_v47, %v446_v15  ;;  %v2514_v32 = vmax.f32 %v2308_v7, %v446_v15  ;;  %v2511_v33 = vmax.f32 %v2305_v3, %v3512_v9  ;;  %v54_v7 = vld [vmem:[%s5622_s0 + $0x170] sm:$0xff] }
  0x68   :  { %v1553_v51 = vmax.f32 %v892_v17, %v3469_v5  ;;  %v447_v63 = vrot.slane %v48_v10, 1  ;;  %v448_v34 = vrot.slane %v49_v19, 1  ;;  %v1108_v39 = vrot.slane %v48_v10, 2 }
  0x69   :  { %v1560_v36 = vmax.f32 %v899_v27, %v1107_v30  ;;  %v2136_v37 = vmax.f32 %v1938_v31, %v1107_v30  ;;  %v2712_v38 = vmax.f32 %v2514_v32, %v1107_v30  ;;  %v2709_v50 = vmax.f32 %v2511_v33, %v3518_v29 }
  0x6a   :  { %v1729_v62 = vmax.f32 %v1553_v51, %v3497_v23  ;;  %v449_v41 = vsel %vm376_vm0, %v447_v63, %v448_v34  ;;  %v1109_v43 = vrot.slane %v49_v19, 2  ;;  %v2310_v46 = vmax.f32 %v2134_v45, %v48_v10 }
  0x6b   :  { %v1736_v44 = vmax.f32 %v1560_v36, %v50_v20  ;;  %2890 = vst.msk [vmem:[%s5623_s1 + $0xf0] sm:$0xff] %vm2858_vm2, %v2712_v38  ;;  %v901_v5 = vmax.f32 %v48_v10, %v449_v41  ;;  %v1940_v18 = vmax.f32 %v1734_v16, %v449_v41  ;;  %v450_v49 = vrot.slane %v50_v20, 1 }
  0x6c   :  { %2887 = vst.msk [vmem:[%s5623_s1 + $0xd8] sm:$0xf] %vm2862_vm3, %v2709_v50  ;;  %v1935_v47 = vmax.f32 %v1729_v62, %v3512_v9  ;;  %v1110_v48 = vsel %vm1037_vm1, %v1108_v39, %v1109_v43  ;;  %v1111_v53 = vrot.slane %v50_v20, 2  ;;  %v2516_v55 = vmax.f32 %v2310_v46, %v449_v41 }
  0x6d   :  { %v1562_v28 = vmax.f32 %v901_v5, %v1110_v48  ;;  %v2138_v25 = vmax.f32 %v1940_v18, %v1110_v48  ;;  %v2311_v35 = vmax.f32 %v2135_v4, %v49_v19  ;;  %v451_v52 = vsel %vm376_vm0, %v448_v34, %v450_v49 }
  0x6e   :  { %v2133_v56 = vmax.f32 %v1935_v47, %v3518_v29  ;;  %v1112_v58 = vsel %vm1037_vm1, %v1109_v43, %v1111_v53  ;;  %v3618_v24 = vrot.slane %v3603_v42, 1  ;;  %v2714_v0 = vmax.f32 %v2516_v55, %v1110_v48  ;;  %v3662_v43 = vld [vmem:[%s5622_s0 + $0x178] sm:$0x3f]  ;;  %v56_v47 = vld [vmem:[%s5622_s0 + $0x180] sm:$0xff] }
  0x6f   :  { %v1738_v61 = vmax.f32 %v1562_v28, %v52_v57  ;;  %v902_v1 = vmax.f32 %v49_v19, %v451_v52  ;;  %v1941_v8 = vmax.f32 %v1735_v26, %v451_v52  ;;  %v2517_v45 = vmax.f32 %v2311_v35, %v451_v52 }
  0x70   :  { %v2309_v59 = vmax.f32 %v2133_v56, %v3556_v6  ;;  %v453_v60 = vsel %vm376_vm0, %v450_v49, %v3618_v24  ;;  %v3624_v10 = vrot.slane %v3603_v42, 2  ;;  %2892 = vst.msk [vmem:[%s5623_s1 + $0x100] sm:$0xff] %vm2858_vm2, %v2714_v0  ;;  %v2312_v4 = vmax.f32 %v2136_v37, %v50_v20 }
  0x71   :  { %v1563_v12 = vmax.f32 %v902_v1, %v1112_v58  ;;  %v2139_v13 = vmax.f32 %v1941_v8, %v1112_v58  ;;  %v903_v40 = vmax.f32 %v50_v20, %v453_v60  ;;  %v1942_v54 = vmax.f32 %v1736_v44, %v453_v60 }
  0x72   :  { %v2515_v16 = vmax.f32 %v2309_v59, %v3565_v14  ;;  %v2715_v2 = vmax.f32 %v2517_v45, %v1112_v58  ;;  %v1114_v19 = vsel %vm1037_vm1, %v1111_v53, %v3624_v10  ;;  %v896_v15 = vmax.f32 %v3497_v23, %v3512_v9 }
  0x73   :  { %v1739_v21 = vmax.f32 %v1563_v12, %v53_v11  ;;  %v1564_v3 = vmax.f32 %v903_v40, %v1114_v19  ;;  %v2140_v26 = vmax.f32 %v1942_v54, %v1114_v19  ;;  %v2518_v27 = vmax.f32 %v2312_v4, %v453_v60 }
  0x74   :  { %v2713_v17 = vmax.f32 %v2515_v16, %v3575_v22  ;;  %2893 = vst.msk [vmem:[%s5623_s1 + $0x108] sm:$0xff] %vm2858_vm2, %v2715_v2  ;;  %v454_v30 = vrot.slane %v52_v57, 1  ;;  %v455_v31 = vrot.slane %v53_v11, 1  ;;  %v1557_v33 = vmax.f32 %v896_v15, %v3518_v29 }
  0x75   :  { %v1740_v32 = vmax.f32 %v1564_v3, %v54_v7  ;;  %v1115_v51 = vrot.slane %v52_v57, 2  ;;  %v1116_v63 = vrot.slane %v53_v11, 2  ;;  %v2716_v23 = vmax.f32 %v2518_v27, %v1114_v19 }
  0x76   :  { %2891 = vst.msk [vmem:[%s5623_s1 + $0xf8] sm:$0xf] %vm2862_vm3, %v2713_v17  ;;  %v456_v9 = vsel %vm376_vm0, %v454_v30, %v455_v31  ;;  %v2314_v34 = vmax.f32 %v2138_v25, %v52_v57  ;;  %v457_v20 = vrot.slane %v54_v7, 1  ;;  %v1733_v36 = vmax.f32 %v1557_v33, %v3556_v6 }
  0x77   :  { %v905_v37 = vmax.f32 %v52_v57, %v456_v9  ;;  %v1117_v38 = vsel %vm1037_vm1, %v1115_v51, %v1116_v63  ;;  %v1944_v39 = vmax.f32 %v1738_v61, %v456_v9  ;;  %2894 = vst.msk [vmem:[%s5623_s1 + $0x110] sm:$0xff] %vm2858_vm2, %v2716_v23  ;;  %v1118_v62 = vrot.slane %v54_v7, 2  ;;  %v57_v57 = vld [vmem:[%s5622_s0 + $0x188] sm:$0xff] }
  0x78   :  { %v2520_v29 = vmax.f32 %v2314_v34, %v456_v9  ;;  %v458_v50 = vsel %vm376_vm0, %v455_v31, %v457_v20  ;;  %v2315_v41 = vmax.f32 %v2139_v13, %v53_v11  ;;  %v1939_v44 = vmax.f32 %v1733_v36, %v3565_v14  ;;  %v3709_v31 = vld [vmem:[%s5622_s0 + $0x198] sm:$0x3f] }
  0x79   :  { %v1566_v5 = vmax.f32 %v905_v37, %v1117_v38  ;;  %v2142_v18 = vmax.f32 %v1944_v39, %v1117_v38  ;;  %v906_v46 = vmax.f32 %v53_v11, %v458_v50  ;;  %v1119_v49 = vsel %vm1037_vm1, %v1116_v63, %v1118_v62  ;;  %v60_v37 = vld [vmem:[%s5622_s0 + $0x1a0] sm:$0xff] }
  0x7a   :  { %v2718_v48 = vmax.f32 %v2520_v29, %v1117_v38  ;;  %v1945_v53 = vmax.f32 %v1739_v21, %v458_v50  ;;  %v2521_v28 = vmax.f32 %v2315_v41, %v458_v50  ;;  %v2137_v25 = vmax.f32 %v1939_v44, %v3575_v22 }
  0x7b   :  { %v1742_v55 = vmax.f32 %v1566_v5, %v56_v47  ;;  %v1567_v35 = vmax.f32 %v906_v46, %v1119_v49  ;;  %v3671_v56 = vrot.slane %v3662_v43, 1  ;;  %v3681_v61 = vrot.slane %v3662_v43, 2 }
  0x7c   :  { %2896 = vst.msk [vmem:[%s5623_s1 + $0x120] sm:$0xff] %vm2858_vm2, %v2718_v48  ;;  %v2143_v52 = vmax.f32 %v1945_v53, %v1119_v49  ;;  %v2719_v58 = vmax.f32 %v2521_v28, %v1119_v49  ;;  %v2316_v0 = vmax.f32 %v2140_v26, %v54_v7  ;;  %v2313_v1 = vmax.f32 %v2137_v25, %v3603_v42  ;;  %v61_v48 = vld [vmem:[%s5622_s0 + $0x1a8] sm:$0xff] }
  0x7d   :  { %v1743_v8 = vmax.f32 %v1567_v35, %v57_v57  ;;  %v460_v59 = vsel %vm376_vm0, %v457_v20, %v3671_v56  ;;  %v900_v45 = vmax.f32 %v3556_v6, %v3565_v14  ;;  %v1121_v11 = vsel %vm1037_vm1, %v1118_v62, %v3681_v61  ;;  %v58_v6 = vld [vmem:[%s5622_s0 + $0x190] sm:$0xff] }
  0x7e   :  { %2897 = vst.msk [vmem:[%s5623_s1 + $0x128] sm:$0xff] %vm2858_vm2, %v2719_v58  ;;  %v907_v60 = vmax.f32 %v54_v7, %v460_v59  ;;  %v1946_v12 = vmax.f32 %v1740_v32, %v460_v59  ;;  %v2522_v13 = vmax.f32 %v2316_v0, %v460_v59  ;;  %v2519_v40 = vmax.f32 %v2313_v1, %v3618_v24  ;;  %v62_v0 = vld [vmem:[%s5622_s0 + $0x1b0] sm:$0xff] }
  0x7f   :  { %v1561_v54 = vmax.f32 %v900_v45, %v3575_v22  ;;  %v461_v16 = vrot.slane %v56_v47, 1  ;;  %v462_v2 = vrot.slane %v57_v57, 1  ;;  %v1122_v21 = vrot.slane %v56_v47, 2 }
  0x80   :  { %v1568_v14 = vmax.f32 %v907_v60, %v1121_v11  ;;  %v2144_v19 = vmax.f32 %v1946_v12, %v1121_v11  ;;  %v2720_v4 = vmax.f32 %v2522_v13, %v1121_v11  ;;  %v2717_v7 = vmax.f32 %v2519_v40, %v3624_v10 }
  0x81   :  { %v1737_v3 = vmax.f32 %v1561_v54, %v3603_v42  ;;  %v463_v26 = vsel %vm376_vm0, %v461_v16, %v462_v2  ;;  %v1123_v15 = vrot.slane %v57_v57, 2  ;;  %v2318_v30 = vmax.f32 %v2142_v18, %v56_v47 }
  0x82   :  { %v1744_v17 = vmax.f32 %v1568_v14, %v58_v6  ;;  %2898 = vst.msk [vmem:[%s5623_s1 + $0x130] sm:$0xff] %vm2858_vm2, %v2720_v4  ;;  %v909_v22 = vmax.f32 %v56_v47, %v463_v26  ;;  %v1948_v27 = vmax.f32 %v1742_v55, %v463_v26  ;;  %v464_v51 = vrot.slane %v58_v6, 1 }
  0x83   :  { %2895 = vst.msk [vmem:[%s5623_s1 + $0x118] sm:$0xf] %vm2862_vm3, %v2717_v7  ;;  %v1943_v32 = vmax.f32 %v1737_v3, %v3618_v24  ;;  %v1124_v33 = vsel %vm1037_vm1, %v1122_v21, %v1123_v15  ;;  %v1125_v63 = vrot.slane %v58_v6, 2  ;;  %v2524_v34 = vmax.f32 %v2318_v30, %v463_v26 }
  0x84   :  { %v1570_v23 = vmax.f32 %v909_v22, %v1124_v33  ;;  %v2146_v9 = vmax.f32 %v1948_v27, %v1124_v33  ;;  %v2319_v20 = vmax.f32 %v2143_v52, %v57_v57  ;;  %v465_v38 = vsel %vm376_vm0, %v462_v2, %v464_v51 }
  0x85   :  { %v2141_v36 = vmax.f32 %v1943_v32, %v3624_v10  ;;  %v1126_v39 = vsel %vm1037_vm1, %v1123_v15, %v1125_v63  ;;  %v3724_v29 = vrot.slane %v3709_v31, 1  ;;  %v2722_v62 = vmax.f32 %v2524_v34, %v1124_v33  ;;  %v3768_v15 = vld [vmem:[%s5622_s0 + $0x1b8] sm:$0x3f]  ;;  %v64_v32 = vld [vmem:[%s5622_s0 + $0x1c0] sm:$0xff] }
  0x86   :  { %v1746_v50 = vmax.f32 %v1570_v23, %v60_v37  ;;  %v910_v41 = vmax.f32 %v57_v57, %v465_v38  ;;  %v1949_v44 = vmax.f32 %v1743_v8, %v465_v38  ;;  %v2525_v18 = vmax.f32 %v2319_v20, %v465_v38 }
  0x87   :  { %v2317_v5 = vmax.f32 %v2141_v36, %v3662_v43  ;;  %v467_v46 = vsel %vm376_vm0, %v464_v51, %v3724_v29  ;;  %v3730_v47 = vrot.slane %v3709_v31, 2  ;;  %2900 = vst.msk [vmem:[%s5623_s1 + $0x140] sm:$0xff] %vm2858_vm2, %v2722_v62  ;;  %v2320_v52 = vmax.f32 %v2144_v19, %v58_v6 }
  0x88   :  { %v1571_v49 = vmax.f32 %v910_v41, %v1126_v39  ;;  %v2147_v53 = vmax.f32 %v1949_v44, %v1126_v39  ;;  %v911_v28 = vmax.f32 %v58_v6, %v467_v46  ;;  %v1950_v25 = vmax.f32 %v1744_v17, %v467_v46 }
  0x89   :  { %v2523_v55 = vmax.f32 %v2317_v5, %v3671_v56  ;;  %v2723_v35 = vmax.f32 %v2525_v18, %v1126_v39  ;;  %v1128_v57 = vsel %vm1037_vm1, %v1125_v63, %v3730_v47  ;;  %v904_v59 = vmax.f32 %v3603_v42, %v3618_v24 }
  0x8a   :  { %v1747_v58 = vmax.f32 %v1571_v49, %v61_v48  ;;  %v1572_v1 = vmax.f32 %v911_v28, %v1128_v57  ;;  %v2148_v8 = vmax.f32 %v1950_v25, %v1128_v57  ;;  %v2526_v60 = vmax.f32 %v2320_v52, %v467_v46 }
  0x8b   :  { %v2721_v45 = vmax.f32 %v2523_v55, %v3681_v61  ;;  %2901 = vst.msk [vmem:[%s5623_s1 + $0x148] sm:$0xff] %vm2858_vm2, %v2723_v35  ;;  %v468_v11 = vrot.slane %v60_v37, 1  ;;  %v469_v12 = vrot.slane %v61_v48, 1  ;;  %v1565_v40 = vmax.f32 %v904_v59, %v3624_v10 }
  0x8c   :  { %v1748_v13 = vmax.f32 %v1572_v1, %v62_v0  ;;  %v1129_v54 = vrot.slane %v60_v37, 2  ;;  %v1130_v16 = vrot.slane %v61_v48, 2  ;;  %v2724_v42 = vmax.f32 %v2526_v60, %v1128_v57 }
  0x8d   :  { %2899 = vst.msk [vmem:[%s5623_s1 + $0x138] sm:$0xf] %vm2862_vm3, %v2721_v45  ;;  %v470_v24 = vsel %vm376_vm0, %v468_v11, %v469_v12  ;;  %v2322_v2 = vmax.f32 %v2146_v9, %v60_v37  ;;  %v471_v6 = vrot.slane %v62_v0, 1  ;;  %v1741_v14 = vmax.f32 %v1565_v40, %v3662_v43 }
  0x8e   :  { %v913_v19 = vmax.f32 %v60_v37, %v470_v24  ;;  %v1131_v4 = vsel %vm1037_vm1, %v1129_v54, %v1130_v16  ;;  %v1952_v21 = vmax.f32 %v1746_v50, %v470_v24  ;;  %2902 = vst.msk [vmem:[%s5623_s1 + $0x150] sm:$0xff] %vm2858_vm2, %v2724_v42  ;;  %v1132_v3 = vrot.slane %v62_v0, 2  ;;  %v65_v37 = vld [vmem:[%s5622_s0 + $0x1c8] sm:$0xff] }
  0x8f   :  { %v2528_v10 = vmax.f32 %v2322_v2, %v470_v24  ;;  %v472_v7 = vsel %vm376_vm0, %v469_v12, %v471_v6  ;;  %v2323_v26 = vmax.f32 %v2147_v53, %v61_v48  ;;  %v1947_v17 = vmax.f32 %v1741_v14, %v3671_v56  ;;  %v3815_v12 = vld [vmem:[%s5622_s0 + $0x1d8] sm:$0x3f] }
  0x90   :  { %v1574_v22 = vmax.f32 %v913_v19, %v1131_v4  ;;  %v2150_v27 = vmax.f32 %v1952_v21, %v1131_v4  ;;  %v914_v30 = vmax.f32 %v61_v48, %v472_v7  ;;  %v1133_v51 = vsel %vm1037_vm1, %v1130_v16, %v1132_v3  ;;  %v68_v19 = vld [vmem:[%s5622_s0 + $0x1e0] sm:$0xff] }
  0x91   :  { %v2726_v33 = vmax.f32 %v2528_v10, %v1131_v4  ;;  %v1953_v63 = vmax.f32 %v1747_v58, %v472_v7  ;;  %v2529_v23 = vmax.f32 %v2323_v26, %v472_v7  ;;  %v2145_v9 = vmax.f32 %v1947_v17, %v3681_v61 }
  0x92   :  { %v1750_v34 = vmax.f32 %v1574_v22, %v64_v32  ;;  %v1575_v20 = vmax.f32 %v914_v30, %v1133_v51  ;;  %v3777_v36 = vrot.slane %v3768_v15, 1  ;;  %v3787_v50 = vrot.slane %v3768_v15, 2 }
  0x93   :  { %2904 = vst.msk [vmem:[%s5623_s1 + $0x160] sm:$0xff] %vm2858_vm2, %v2726_v33  ;;  %v2151_v38 = vmax.f32 %v1953_v63, %v1133_v51  ;;  %v2727_v39 = vmax.f32 %v2529_v23, %v1133_v51  ;;  %v2324_v62 = vmax.f32 %v2148_v8, %v62_v0  ;;  %v2321_v41 = vmax.f32 %v2145_v9, %v3709_v31  ;;  %v69_v33 = vld [vmem:[%s5622_s0 + $0x1e8] sm:$0xff] }
  0x94   :  { %v1751_v44 = vmax.f32 %v1575_v20, %v65_v37  ;;  %v474_v5 = vsel %vm376_vm0, %v471_v6, %v3777_v36  ;;  %v908_v18 = vmax.f32 %v3662_v43, %v3671_v56  ;;  %v1135_v48 = vsel %vm1037_vm1, %v1132_v3, %v3787_v50  ;;  %v66_v43 = vld [vmem:[%s5622_s0 + $0x1d0] sm:$0xff] }
  0x95   :  { %2905 = vst.msk [vmem:[%s5623_s1 + $0x168] sm:$0xff] %vm2858_vm2, %v2727_v39  ;;  %v915_v46 = vmax.f32 %v62_v0, %v474_v5  ;;  %v1954_v49 = vmax.f32 %v1748_v13, %v474_v5  ;;  %v2530_v53 = vmax.f32 %v2324_v62, %v474_v5  ;;  %v2527_v28 = vmax.f32 %v2321_v41, %v3724_v29  ;;  %v70_v62 = vld [vmem:[%s5622_s0 + $0x1f0] sm:$0xff] }
  0x96   :  { %v1569_v25 = vmax.f32 %v908_v18, %v3681_v61  ;;  %v475_v55 = vrot.slane %v64_v32, 1  ;;  %v476_v35 = vrot.slane %v65_v37, 1  ;;  %v1136_v58 = vrot.slane %v64_v32, 2 }
  0x97   :  { %v1576_v56 = vmax.f32 %v915_v46, %v1135_v48  ;;  %v2152_v57 = vmax.f32 %v1954_v49, %v1135_v48  ;;  %v2728_v52 = vmax.f32 %v2530_v53, %v1135_v48  ;;  %v2725_v0 = vmax.f32 %v2527_v28, %v3730_v47 }
  0x98   :  { %v1745_v1 = vmax.f32 %v1569_v25, %v3709_v31  ;;  %v477_v8 = vsel %vm376_vm0, %v475_v55, %v476_v35  ;;  %v1137_v59 = vrot.slane %v65_v37, 2  ;;  %v2326_v11 = vmax.f32 %v2150_v27, %v64_v32 }
  0x99   :  { %v1752_v45 = vmax.f32 %v1576_v56, %v66_v43  ;;  %2906 = vst.msk [vmem:[%s5623_s1 + $0x170] sm:$0xff] %vm2858_vm2, %v2728_v52  ;;  %v917_v61 = vmax.f32 %v64_v32, %v477_v8  ;;  %v1956_v60 = vmax.f32 %v1750_v34, %v477_v8  ;;  %v478_v54 = vrot.slane %v66_v43, 1 }
  0x9a   :  { %2903 = vst.msk [vmem:[%s5623_s1 + $0x158] sm:$0xf] %vm2862_vm3, %v2725_v0  ;;  %v1951_v13 = vmax.f32 %v1745_v1, %v3724_v29  ;;  %v1138_v40 = vsel %vm1037_vm1, %v1136_v58, %v1137_v59  ;;  %v1139_v16 = vrot.slane %v66_v43, 2  ;;  %v2532_v2 = vmax.f32 %v2326_v11, %v477_v8 }
  0x9b   :  { %v1578_v42 = vmax.f32 %v917_v61, %v1138_v40  ;;  %v2154_v24 = vmax.f32 %v1956_v60, %v1138_v40  ;;  %v2327_v6 = vmax.f32 %v2151_v38, %v65_v37  ;;  %v479_v4 = vsel %vm376_vm0, %v476_v35, %v478_v54 }
  0x9c   :  { %v2149_v14 = vmax.f32 %v1951_v13, %v3730_v47  ;;  %v1140_v21 = vsel %vm1037_vm1, %v1137_v59, %v1139_v16  ;;  %v3830_v10 = vrot.slane %v3815_v12, 1  ;;  %v2730_v3 = vmax.f32 %v2532_v2, %v1138_v40  ;;  %v3874_v59 = vld [vmem:[%s5622_s0 + $0x1f8] sm:$0x3f]  ;;  %v72_v13 = vld [vmem:[%s5622_s0 + $0x200] sm:$0xff] }
  0x9d   :  { %v1754_v7 = vmax.f32 %v1578_v42, %v68_v19  ;;  %v918_v26 = vmax.f32 %v65_v37, %v479_v4  ;;  %v1957_v17 = vmax.f32 %v1751_v44, %v479_v4  ;;  %v2533_v27 = vmax.f32 %v2327_v6, %v479_v4 }
  0x9e   :  { %v2325_v22 = vmax.f32 %v2149_v14, %v3768_v15  ;;  %v481_v30 = vsel %vm376_vm0, %v478_v54, %v3830_v10  ;;  %v3836_v32 = vrot.slane %v3815_v12, 2  ;;  %2908 = vst.msk [vmem:[%s5623_s1 + $0x180] sm:$0xff] %vm2858_vm2, %v2730_v3  ;;  %v2328_v38 = vmax.f32 %v2152_v57, %v66_v43 }
  0x9f   :  { %v1579_v51 = vmax.f32 %v918_v26, %v1140_v21  ;;  %v2155_v63 = vmax.f32 %v1957_v17, %v1140_v21  ;;  %v919_v23 = vmax.f32 %v66_v43, %v481_v30  ;;  %v1958_v9 = vmax.f32 %v1752_v45, %v481_v30 }
  0xa0   :  { %v2531_v34 = vmax.f32 %v2325_v22, %v3777_v36  ;;  %v2731_v20 = vmax.f32 %v2533_v27, %v1140_v21  ;;  %v1142_v37 = vsel %vm1037_vm1, %v1139_v16, %v3836_v32  ;;  %v912_v5 = vmax.f32 %v3709_v31, %v3724_v29 }
  0xa1   :  { %v1755_v39 = vmax.f32 %v1579_v51, %v69_v33  ;;  %v1580_v41 = vmax.f32 %v919_v23, %v1142_v37  ;;  %v2156_v44 = vmax.f32 %v1958_v9, %v1142_v37  ;;  %v2534_v46 = vmax.f32 %v2328_v38, %v481_v30 }
  0xa2   :  { %v2729_v18 = vmax.f32 %v2531_v34, %v3787_v50  ;;  %2909 = vst.msk [vmem:[%s5623_s1 + $0x188] sm:$0xff] %vm2858_vm2, %v2731_v20  ;;  %v482_v48 = vrot.slane %v68_v19, 1  ;;  %v483_v49 = vrot.slane %v69_v33, 1  ;;  %v1573_v28 = vmax.f32 %v912_v5, %v3730_v47 }
  0xa3   :  { %v1756_v53 = vmax.f32 %v1580_v41, %v70_v62  ;;  %v1143_v25 = vrot.slane %v68_v19, 2  ;;  %v1144_v55 = vrot.slane %v69_v33, 2  ;;  %v2732_v31 = vmax.f32 %v2534_v46, %v1142_v37 }
  0xa4   :  { %2907 = vst.msk [vmem:[%s5623_s1 + $0x178] sm:$0xf] %vm2862_vm3, %v2729_v18  ;;  %v484_v29 = vsel %vm376_vm0, %v482_v48, %v483_v49  ;;  %v2330_v35 = vmax.f32 %v2154_v24, %v68_v19  ;;  %v485_v43 = vrot.slane %v70_v62, 1  ;;  %v1749_v56 = vmax.f32 %v1573_v28, %v3768_v15 }
  0xa5   :  { %v921_v57 = vmax.f32 %v68_v19, %v484_v29  ;;  %v1145_v52 = vsel %vm1037_vm1, %v1143_v25, %v1144_v55  ;;  %v1960_v58 = vmax.f32 %v1754_v7, %v484_v29  ;;  %2910 = vst.msk [vmem:[%s5623_s1 + $0x190] sm:$0xff] %vm2858_vm2, %v2732_v31  ;;  %v1146_v1 = vrot.slane %v70_v62, 2  ;;  %v73_v19 = vld [vmem:[%s5622_s0 + $0x208] sm:$0xff] }
  0xa6   :  { %v2536_v47 = vmax.f32 %v2330_v35, %v484_v29  ;;  %v486_v0 = vsel %vm376_vm0, %v483_v49, %v485_v43  ;;  %v2331_v8 = vmax.f32 %v2155_v63, %v69_v33  ;;  %v1955_v45 = vmax.f32 %v1749_v56, %v3777_v36  ;;  %v3921_v49 = vld [vmem:[%s5622_s0 + $0x218] sm:$0x3f] }
  0xa7   :  { %v1582_v61 = vmax.f32 %v921_v57, %v1145_v52  ;;  %v2158_v60 = vmax.f32 %v1960_v58, %v1145_v52  ;;  %v922_v11 = vmax.f32 %v69_v33, %v486_v0  ;;  %v1147_v54 = vsel %vm1037_vm1, %v1144_v55, %v1146_v1  ;;  %v76_v57 = vld [vmem:[%s5622_s0 + $0x220] sm:$0xff] }
  0xa8   :  { %v2734_v40 = vmax.f32 %v2536_v47, %v1145_v52  ;;  %v1961_v16 = vmax.f32 %v1755_v39, %v486_v0  ;;  %v2537_v42 = vmax.f32 %v2331_v8, %v486_v0  ;;  %v2153_v24 = vmax.f32 %v1955_v45, %v3787_v50 }
  0xa9   :  { %v1758_v2 = vmax.f32 %v1582_v61, %v72_v13  ;;  %v1583_v6 = vmax.f32 %v922_v11, %v1147_v54  ;;  %v3883_v14 = vrot.slane %v3874_v59, 1  ;;  %v3893_v7 = vrot.slane %v3874_v59, 2 }
  0xaa   :  { %2912 = vst.msk [vmem:[%s5623_s1 + $0x1a0] sm:$0xff] %vm2858_vm2, %v2734_v40  ;;  %v2159_v4 = vmax.f32 %v1961_v16, %v1147_v54  ;;  %v2735_v21 = vmax.f32 %v2537_v42, %v1147_v54  ;;  %v2332_v3 = vmax.f32 %v2156_v44, %v70_v62  ;;  %v2329_v26 = vmax.f32 %v2153_v24, %v3815_v12  ;;  %v77_v40 = vld [vmem:[%s5622_s0 + $0x228] sm:$0xff] }
  0xab   :  { %v1759_v17 = vmax.f32 %v1583_v6, %v73_v19  ;;  %v488_v22 = vsel %vm376_vm0, %v485_v43, %v3883_v14  ;;  %v916_v27 = vmax.f32 %v3768_v15, %v3777_v36  ;;  %v1149_v33 = vsel %vm1037_vm1, %v1146_v1, %v3893_v7  ;;  %v74_v15 = vld [vmem:[%s5622_s0 + $0x210] sm:$0xff] }
  0xac   :  { %2913 = vst.msk [vmem:[%s5623_s1 + $0x1a8] sm:$0xff] %vm2858_vm2, %v2735_v21  ;;  %v923_v30 = vmax.f32 %v70_v62, %v488_v22  ;;  %v1962_v51 = vmax.f32 %v1756_v53, %v488_v22  ;;  %v2538_v63 = vmax.f32 %v2332_v3, %v488_v22  ;;  %v2535_v23 = vmax.f32 %v2329_v26, %v3830_v10  ;;  %v78_v3 = vld [vmem:[%s5622_s0 + $0x230] sm:$0xff] }
  0xad   :  { %v1577_v9 = vmax.f32 %v916_v27, %v3787_v50  ;;  %v489_v34 = vrot.slane %v72_v13, 1  ;;  %v490_v20 = vrot.slane %v73_v19, 1  ;;  %v1150_v39 = vrot.slane %v72_v13, 2 }
  0xae   :  { %v1584_v36 = vmax.f32 %v923_v30, %v1149_v33  ;;  %v2160_v37 = vmax.f32 %v1962_v51, %v1149_v33  ;;  %v2736_v38 = vmax.f32 %v2538_v63, %v1149_v33  ;;  %v2733_v62 = vmax.f32 %v2535_v23, %v3836_v32 }
  0xaf   :  { %v1753_v41 = vmax.f32 %v1577_v9, %v3815_v12  ;;  %v491_v44 = vsel %vm376_vm0, %v489_v34, %v490_v20  ;;  %v1151_v5 = vrot.slane %v73_v19, 2  ;;  %v2334_v48 = vmax.f32 %v2158_v60, %v72_v13 }
  0xb0   :  { %v1760_v18 = vmax.f32 %v1584_v36, %v74_v15  ;;  %2914 = vst.msk [vmem:[%s5623_s1 + $0x1b0] sm:$0xff] %vm2858_vm2, %v2736_v38  ;;  %v925_v50 = vmax.f32 %v72_v13, %v491_v44  ;;  %v1964_v46 = vmax.f32 %v1758_v2, %v491_v44  ;;  %v492_v25 = vrot.slane %v74_v15, 1 }
  0xb1   :  { %2911 = vst.msk [vmem:[%s5623_s1 + $0x198] sm:$0xf] %vm2862_vm3, %v2733_v62  ;;  %v1959_v53 = vmax.f32 %v1753_v41, %v3830_v10  ;;  %v1152_v28 = vsel %vm1037_vm1, %v1150_v39, %v1151_v5  ;;  %v1153_v55 = vrot.slane %v74_v15, 2  ;;  %v2540_v35 = vmax.f32 %v2334_v48, %v491_v44 }
  0xb2   :  { %v1586_v31 = vmax.f32 %v925_v50, %v1152_v28  ;;  %v2162_v29 = vmax.f32 %v1964_v46, %v1152_v28  ;;  %v2335_v43 = vmax.f32 %v2159_v4, %v73_v19  ;;  %v493_v52 = vsel %vm376_vm0, %v490_v20, %v492_v25 }
  0xb3   :  { %v2157_v56 = vmax.f32 %v1959_v53, %v3836_v32  ;;  %v1154_v58 = vsel %vm1037_vm1, %v1151_v5, %v1153_v55  ;;  %v3936_v47 = vrot.slane %v3921_v49, 1  ;;  %v2738_v1 = vmax.f32 %v2540_v35, %v1152_v28  ;;  %v3980_v5 = vld [vmem:[%s5622_s0 + $0x238] sm:$0x3f]  ;;  %v80_v53 = vld [vmem:[%s5622_s0 + $0x240] sm:$0xff] }
  0xb4   :  { %v1762_v0 = vmax.f32 %v1586_v31, %v76_v57  ;;  %v926_v8 = vmax.f32 %v73_v19, %v493_v52  ;;  %v1965_v45 = vmax.f32 %v1759_v17, %v493_v52  ;;  %v2541_v60 = vmax.f32 %v2335_v43, %v493_v52 }
  0xb5   :  { %v2333_v61 = vmax.f32 %v2157_v56, %v3874_v59  ;;  %v495_v11 = vsel %vm376_vm0, %v492_v25, %v3936_v47  ;;  %v3942_v13 = vrot.slane %v3921_v49, 2  ;;  %2916 = vst.msk [vmem:[%s5623_s1 + $0x1c0] sm:$0xff] %vm2858_vm2, %v2738_v1  ;;  %v2336_v4 = vmax.f32 %v2160_v37, %v74_v15 }
  0xb6   :  { %v1587_v54 = vmax.f32 %v926_v8, %v1154_v58  ;;  %v2163_v16 = vmax.f32 %v1965_v45, %v1154_v58  ;;  %v927_v42 = vmax.f32 %v74_v15, %v495_v11  ;;  %v1966_v24 = vmax.f32 %v1760_v18, %v495_v11 }
  0xb7   :  { %v2539_v2 = vmax.f32 %v2333_v61, %v3883_v14  ;;  %v2739_v6 = vmax.f32 %v2541_v60, %v1154_v58  ;;  %v1156_v19 = vsel %vm1037_vm1, %v1153_v55, %v3942_v13  ;;  %v920_v22 = vmax.f32 %v3815_v12, %v3830_v10 }
  0xb8   :  { %v1763_v21 = vmax.f32 %v1587_v54, %v77_v40  ;;  %v1588_v26 = vmax.f32 %v927_v42, %v1156_v19  ;;  %v2164_v17 = vmax.f32 %v1966_v24, %v1156_v19  ;;  %v2542_v30 = vmax.f32 %v2336_v4, %v495_v11 }
  0xb9   :  { %v2737_v27 = vmax.f32 %v2539_v2, %v3893_v7  ;;  %2917 = vst.msk [vmem:[%s5623_s1 + $0x1c8] sm:$0xff] %vm2858_vm2, %v2739_v6  ;;  %v496_v33 = vrot.slane %v76_v57, 1  ;;  %v497_v51 = vrot.slane %v77_v40, 1  ;;  %v1581_v23 = vmax.f32 %v920_v22, %v3836_v32 }
  0xba   :  { %v1764_v63 = vmax.f32 %v1588_v26, %v78_v3  ;;  %v1157_v9 = vrot.slane %v76_v57, 2  ;;  %v1158_v34 = vrot.slane %v77_v40, 2  ;;  %v2740_v12 = vmax.f32 %v2542_v30, %v1156_v19 }
  0xbb   :  { %2915 = vst.msk [vmem:[%s5623_s1 + $0x1b8] sm:$0xf] %vm2862_vm3, %v2737_v27  ;;  %v498_v10 = vsel %vm376_vm0, %v496_v33, %v497_v51  ;;  %v2338_v20 = vmax.f32 %v2162_v29, %v76_v57  ;;  %v499_v15 = vrot.slane %v78_v3, 1  ;;  %v1757_v36 = vmax.f32 %v1581_v23, %v3874_v59 }
  0xbc   :  { %v929_v37 = vmax.f32 %v76_v57, %v498_v10  ;;  %v1159_v38 = vsel %vm1037_vm1, %v1157_v9, %v1158_v34  ;;  %v1968_v39 = vmax.f32 %v1762_v0, %v498_v10  ;;  %2918 = vst.msk [vmem:[%s5623_s1 + $0x1d0] sm:$0xff] %vm2858_vm2, %v2740_v12  ;;  %v1160_v41 = vrot.slane %v78_v3, 2  ;;  %v81_v57 = vld [vmem:[%s5622_s0 + $0x248] sm:$0xff] }
  0xbd   :  { %v2544_v32 = vmax.f32 %v2338_v20, %v498_v10  ;;  %v500_v62 = vsel %vm376_vm0, %v497_v51, %v499_v15  ;;  %v2339_v44 = vmax.f32 %v2163_v16, %v77_v40  ;;  %v1963_v18 = vmax.f32 %v1757_v36, %v3883_v14  ;;  %v4027_v51 = vld [vmem:[%s5622_s0 + $0x258] sm:$0x3f] }
  0xbe   :  { %v1590_v50 = vmax.f32 %v929_v37, %v1159_v38  ;;  %v2166_v46 = vmax.f32 %v1968_v39, %v1159_v38  ;;  %v930_v48 = vmax.f32 %v77_v40, %v500_v62  ;;  %v1161_v25 = vsel %vm1037_vm1, %v1158_v34, %v1160_v41  ;;  %v84_v37 = vld [vmem:[%s5622_s0 + $0x260] sm:$0xff] }
  0xbf   :  { %v2742_v28 = vmax.f32 %v2544_v32, %v1159_v38  ;;  %v1969_v55 = vmax.f32 %v1763_v21, %v500_v62  ;;  %v2545_v31 = vmax.f32 %v2339_v44, %v500_v62  ;;  %v2161_v29 = vmax.f32 %v1963_v18, %v3893_v7 }
  0xc0   :  { %v1766_v35 = vmax.f32 %v1590_v50, %v80_v53  ;;  %v1591_v43 = vmax.f32 %v930_v48, %v1161_v25  ;;  %v3989_v56 = vrot.slane %v3980_v5, 1  ;;  %v3999_v0 = vrot.slane %v3980_v5, 2 }
  0xc1   :  { %2920 = vst.msk [vmem:[%s5623_s1 + $0x1e0] sm:$0xff] %vm2858_vm2, %v2742_v28  ;;  %v2167_v52 = vmax.f32 %v1969_v55, %v1161_v25  ;;  %v2743_v58 = vmax.f32 %v2545_v31, %v1161_v25  ;;  %v2340_v1 = vmax.f32 %v2164_v17, %v78_v3  ;;  %v2337_v8 = vmax.f32 %v2161_v29, %v3921_v49  ;;  %v85_v28 = vld [vmem:[%s5622_s0 + $0x268] sm:$0xff] }
  0xc2   :  { %v1767_v45 = vmax.f32 %v1591_v43, %v81_v57  ;;  %v502_v61 = vsel %vm376_vm0, %v499_v15, %v3989_v56  ;;  %v924_v60 = vmax.f32 %v3874_v59, %v3883_v14  ;;  %v1163_v40 = vsel %vm1037_vm1, %v1160_v41, %v3999_v0  ;;  %v82_v59 = vld [vmem:[%s5622_s0 + $0x250] sm:$0xff] }
  0xc3   :  { %2921 = vst.msk [vmem:[%s5623_s1 + $0x1e8] sm:$0xff] %vm2858_vm2, %v2743_v58  ;;  %v931_v11 = vmax.f32 %v78_v3, %v502_v61  ;;  %v1970_v54 = vmax.f32 %v1764_v63, %v502_v61  ;;  %v2546_v16 = vmax.f32 %v2340_v1, %v502_v61  ;;  %v2543_v42 = vmax.f32 %v2337_v8, %v3936_v47  ;;  %v86_v1 = vld [vmem:[%s5622_s0 + $0x270] sm:$0xff] }
  0xc4   :  { %v1585_v24 = vmax.f32 %v924_v60, %v3893_v7  ;;  %v503_v2 = vrot.slane %v80_v53, 1  ;;  %v504_v6 = vrot.slane %v81_v57, 1  ;;  %v1164_v21 = vrot.slane %v80_v53, 2 }
  0xc5   :  { %v1592_v14 = vmax.f32 %v931_v11, %v1163_v40  ;;  %v2168_v19 = vmax.f32 %v1970_v54, %v1163_v40  ;;  %v2744_v4 = vmax.f32 %v2546_v16, %v1163_v40  ;;  %v2741_v3 = vmax.f32 %v2543_v42, %v3942_v13 }
  0xc6   :  { %v1761_v26 = vmax.f32 %v1585_v24, %v3921_v49  ;;  %v505_v17 = vsel %vm376_vm0, %v503_v2, %v504_v6  ;;  %v1165_v22 = vrot.slane %v81_v57, 2  ;;  %v2342_v33 = vmax.f32 %v2166_v46, %v80_v53 }
  0xc7   :  { %v1768_v27 = vmax.f32 %v1592_v14, %v82_v59  ;;  %2922 = vst.msk [vmem:[%s5623_s1 + $0x1f0] sm:$0xff] %vm2858_vm2, %v2744_v4  ;;  %v933_v7 = vmax.f32 %v80_v53, %v505_v17  ;;  %v1972_v30 = vmax.f32 %v1766_v35, %v505_v17  ;;  %v506_v9 = vrot.slane %v82_v59, 1 }
  0xc8   :  { %2919 = vst.msk [vmem:[%s5623_s1 + $0x1d8] sm:$0xf] %vm2862_vm3, %v2741_v3  ;;  %v1967_v63 = vmax.f32 %v1761_v26, %v3936_v47  ;;  %v1166_v23 = vsel %vm1037_vm1, %v1164_v21, %v1165_v22  ;;  %v1167_v34 = vrot.slane %v82_v59, 2  ;;  %v2548_v20 = vmax.f32 %v2342_v33, %v505_v17 }
  0xc9   :  { %v1594_v12 = vmax.f32 %v933_v7, %v1166_v23  ;;  %v2170_v10 = vmax.f32 %v1972_v30, %v1166_v23  ;;  %v2343_v15 = vmax.f32 %v2167_v52, %v81_v57  ;;  %v507_v38 = vsel %vm376_vm0, %v504_v6, %v506_v9 }
  0xca   :  { %v2165_v36 = vmax.f32 %v1967_v63, %v3942_v13  ;;  %v1168_v39 = vsel %vm1037_vm1, %v1165_v22, %v1167_v34  ;;  %v4042_v32 = vrot.slane %v4027_v51, 1  ;;  %v2746_v41 = vmax.f32 %v2548_v20, %v1166_v23  ;;  %v4086_v22 = vld [vmem:[%s5622_s0 + $0x278] sm:$0x3f]  ;;  %v88_v63 = vld [vmem:[%s5622_s0 + $0x280] sm:$0xff] }
  0xcb   :  { %v1770_v62 = vmax.f32 %v1594_v12, %v84_v37  ;;  %v934_v44 = vmax.f32 %v81_v57, %v507_v38  ;;  %v1973_v18 = vmax.f32 %v1767_v45, %v507_v38  ;;  %v2549_v46 = vmax.f32 %v2343_v15, %v507_v38 }
  0xcc   :  { %v2341_v50 = vmax.f32 %v2165_v36, %v3980_v5  ;;  %v509_v48 = vsel %vm376_vm0, %v506_v9, %v4042_v32  ;;  %v4048_v53 = vrot.slane %v4027_v51, 2  ;;  %2924 = vst.msk [vmem:[%s5623_s1 + $0x200] sm:$0xff] %vm2858_vm2, %v2746_v41  ;;  %v2344_v52 = vmax.f32 %v2168_v19, %v82_v59 }
  0xcd   :  { %v1595_v25 = vmax.f32 %v934_v44, %v1168_v39  ;;  %v2171_v55 = vmax.f32 %v1973_v18, %v1168_v39  ;;  %v935_v31 = vmax.f32 %v82_v59, %v509_v48  ;;  %v1974_v29 = vmax.f32 %v1768_v27, %v509_v48 }
  0xce   :  { %v2547_v35 = vmax.f32 %v2341_v50, %v3989_v56  ;;  %v2747_v43 = vmax.f32 %v2549_v46, %v1168_v39  ;;  %v1170_v57 = vsel %vm1037_vm1, %v1167_v34, %v4048_v53  ;;  %v928_v61 = vmax.f32 %v3921_v49, %v3936_v47 }
  0xcf   :  { %v1771_v58 = vmax.f32 %v1595_v25, %v85_v28  ;;  %v1596_v8 = vmax.f32 %v935_v31, %v1170_v57  ;;  %v2172_v45 = vmax.f32 %v1974_v29, %v1170_v57  ;;  %v2550_v11 = vmax.f32 %v2344_v52, %v509_v48 }
  0xd0   :  { %v2745_v60 = vmax.f32 %v2547_v35, %v3999_v0  ;;  %2925 = vst.msk [vmem:[%s5623_s1 + $0x208] sm:$0xff] %vm2858_vm2, %v2747_v43  ;;  %v510_v40 = vrot.slane %v84_v37, 1  ;;  %v511_v54 = vrot.slane %v85_v28, 1  ;;  %v1589_v42 = vmax.f32 %v928_v61, %v3942_v13 }
  0xd1   :  { %v1772_v16 = vmax.f32 %v1596_v8, %v86_v1  ;;  %v1171_v24 = vrot.slane %v84_v37, 2  ;;  %v1172_v2 = vrot.slane %v85_v28, 2  ;;  %v2748_v49 = vmax.f32 %v2550_v11, %v1170_v57 }
  0xd2   :  { %2923 = vst.msk [vmem:[%s5623_s1 + $0x1f8] sm:$0xf] %vm2862_vm3, %v2745_v60  ;;  %v512_v47 = vsel %vm376_vm0, %v510_v40, %v511_v54  ;;  %v2346_v6 = vmax.f32 %v2170_v10, %v84_v37  ;;  %v513_v59 = vrot.slane %v86_v1, 1  ;;  %v1765_v14 = vmax.f32 %v1589_v42, %v3980_v5 }
  0xd3   :  { %v937_v19 = vmax.f32 %v84_v37, %v512_v47  ;;  %v1173_v4 = vsel %vm1037_vm1, %v1171_v24, %v1172_v2  ;;  %v1976_v21 = vmax.f32 %v1770_v62, %v512_v47  ;;  %2926 = vst.msk [vmem:[%s5623_s1 + $0x210] sm:$0xff] %vm2858_vm2, %v2748_v49  ;;  %v1174_v26 = vrot.slane %v86_v1, 2  ;;  %v89_v37 = vld [vmem:[%s5622_s0 + $0x288] sm:$0xff] }
  0xd4   :  { %v2552_v13 = vmax.f32 %v2346_v6, %v512_v47  ;;  %v514_v3 = vsel %vm376_vm0, %v511_v54, %v513_v59  ;;  %v2347_v17 = vmax.f32 %v2171_v55, %v85_v28  ;;  %v1971_v27 = vmax.f32 %v1765_v14, %v3989_v56  ;;  %v4133_v54 = vld [vmem:[%s5622_s0 + $0x298] sm:$0x3f] }
  0xd5   :  { %v1598_v7 = vmax.f32 %v937_v19, %v1173_v4  ;;  %v2174_v30 = vmax.f32 %v1976_v21, %v1173_v4  ;;  %v938_v33 = vmax.f32 %v85_v28, %v514_v3  ;;  %v1175_v9 = vsel %vm1037_vm1, %v1172_v2, %v1174_v26  ;;  %v92_v19 = vld [vmem:[%s5622_s0 + $0x2a0] sm:$0xff] }
  0xd6   :  { %v2750_v23 = vmax.f32 %v2552_v13, %v1173_v4  ;;  %v1977_v34 = vmax.f32 %v1771_v58, %v514_v3  ;;  %v2553_v12 = vmax.f32 %v2347_v17, %v514_v3  ;;  %v2169_v10 = vmax.f32 %v1971_v27, %v3999_v0 }
  0xd7   :  { %v1774_v20 = vmax.f32 %v1598_v7, %v88_v63  ;;  %v1599_v15 = vmax.f32 %v938_v33, %v1175_v9  ;;  %v4095_v36 = vrot.slane %v4086_v22, 1  ;;  %v4105_v62 = vrot.slane %v4086_v22, 2 }
  0xd8   :  { %2928 = vst.msk [vmem:[%s5623_s1 + $0x220] sm:$0xff] %vm2858_vm2, %v2750_v23  ;;  %v2175_v38 = vmax.f32 %v1977_v34, %v1175_v9  ;;  %v2751_v39 = vmax.f32 %v2553_v12, %v1175_v9  ;;  %v2348_v41 = vmax.f32 %v2172_v45, %v86_v1  ;;  %v2345_v44 = vmax.f32 %v2169_v10, %v4027_v51  ;;  %v93_v23 = vld [vmem:[%s5622_s0 + $0x2a8] sm:$0xff] }
  0xd9   :  { %v1775_v18 = vmax.f32 %v1599_v15, %v89_v37  ;;  %v516_v50 = vsel %vm376_vm0, %v513_v59, %v4095_v36  ;;  %v932_v46 = vmax.f32 %v3980_v5, %v3989_v56  ;;  %v1177_v28 = vsel %vm1037_vm1, %v1174_v26, %v4105_v62  ;;  %v90_v5 = vld [vmem:[%s5622_s0 + $0x290] sm:$0xff] }
  0xda   :  { %2929 = vst.msk [vmem:[%s5623_s1 + $0x228] sm:$0xff] %vm2858_vm2, %v2751_v39  ;;  %v939_v48 = vmax.f32 %v86_v1, %v516_v50  ;;  %v1978_v25 = vmax.f32 %v1772_v16, %v516_v50  ;;  %v2554_v55 = vmax.f32 %v2348_v41, %v516_v50  ;;  %v2551_v31 = vmax.f32 %v2345_v44, %v4042_v32  ;;  %v94_v41 = vld [vmem:[%s5622_s0 + $0x2b0] sm:$0xff] }
  0xdb   :  { %v1593_v29 = vmax.f32 %v932_v46, %v3999_v0  ;;  %v517_v35 = vrot.slane %v88_v63, 1  ;;  %v518_v43 = vrot.slane %v89_v37, 1  ;;  %v1178_v58 = vrot.slane %v88_v63, 2 }
  0xdc   :  { %v1600_v56 = vmax.f32 %v939_v48, %v1177_v28  ;;  %v2176_v57 = vmax.f32 %v1978_v25, %v1177_v28  ;;  %v2752_v52 = vmax.f32 %v2554_v55, %v1177_v28  ;;  %v2749_v1 = vmax.f32 %v2551_v31, %v4048_v53 }
  0xdd   :  { %v1769_v8 = vmax.f32 %v1593_v29, %v4027_v51  ;;  %v519_v45 = vsel %vm376_vm0, %v517_v35, %v518_v43  ;;  %v1179_v61 = vrot.slane %v89_v37, 2  ;;  %v2350_v40 = vmax.f32 %v2174_v30, %v88_v63 }
  0xde   :  { %v1776_v60 = vmax.f32 %v1600_v56, %v90_v5  ;;  %2930 = vst.msk [vmem:[%s5623_s1 + $0x230] sm:$0xff] %vm2858_vm2, %v2752_v52  ;;  %v941_v0 = vmax.f32 %v88_v63, %v519_v45  ;;  %v1980_v11 = vmax.f32 %v1774_v20, %v519_v45  ;;  %v520_v24 = vrot.slane %v90_v5, 1 }
  0xdf   :  { %2927 = vst.msk [vmem:[%s5623_s1 + $0x218] sm:$0xf] %vm2862_vm3, %v2749_v1  ;;  %v1975_v16 = vmax.f32 %v1769_v8, %v4042_v32  ;;  %v1180_v42 = vsel %vm1037_vm1, %v1178_v58, %v1179_v61  ;;  %v1181_v2 = vrot.slane %v90_v5, 2  ;;  %v2556_v6 = vmax.f32 %v2350_v40, %v519_v45 }
  0xe0   :  { %v1602_v49 = vmax.f32 %v941_v0, %v1180_v42  ;;  %v2178_v47 = vmax.f32 %v1980_v11, %v1180_v42  ;;  %v2351_v59 = vmax.f32 %v2175_v38, %v89_v37  ;;  %v521_v4 = vsel %vm376_vm0, %v518_v43, %v520_v24 }
  0xe1   :  { %v2173_v14 = vmax.f32 %v1975_v16, %v4048_v53  ;;  %v1182_v21 = vsel %vm1037_vm1, %v1179_v61, %v1181_v2  ;;  %v4148_v13 = vrot.slane %v4133_v54, 1  ;;  %v2754_v26 = vmax.f32 %v2556_v6, %v1180_v42  ;;  %v4192_v61 = vld [vmem:[%s5622_s0 + $0x2b8] sm:$0x3f] }
  0xe2   :  { %v1778_v3 = vmax.f32 %v1602_v49, %v92_v19  ;;  %v942_v17 = vmax.f32 %v89_v37, %v521_v4  ;;  %v1981_v27 = vmax.f32 %v1775_v18, %v521_v4  ;;  %v2557_v30 = vmax.f32 %v2351_v59, %v521_v4  ;;  %v96_v49 = vld [vmem:[%s5622_s0 + $0x2c0] sm:$0xff] }
  0xe3   :  { %v2349_v7 = vmax.f32 %v2173_v14, %v4086_v22  ;;  %v523_v33 = vsel %vm376_vm0, %v520_v24, %v4148_v13  ;;  %v4154_v63 = vrot.slane %v4133_v54, 2  ;;  %2932 = vst.msk [vmem:[%s5623_s1 + $0x240] sm:$0xff] %vm2858_vm2, %v2754_v26  ;;  %v2352_v38 = vmax.f32 %v2176_v57, %v90_v5  ;;  %v97_v26 = vld [vmem:[%s5622_s0 + $0x2c8] sm:$0xff] }
  0xe4   :  { %v1603_v9 = vmax.f32 %v942_v17, %v1182_v21  ;;  %v2179_v34 = vmax.f32 %v1981_v27, %v1182_v21  ;;  %v943_v12 = vmax.f32 %v90_v5, %v523_v33  ;;  %v1982_v10 = vmax.f32 %v1776_v60, %v523_v33 }
  0xe5   :  { %v2555_v20 = vmax.f32 %v2349_v7, %v4095_v36  ;;  %v2755_v15 = vmax.f32 %v2557_v30, %v1182_v21  ;;  %v1184_v37 = vsel %vm1037_vm1, %v1181_v2, %v4154_v63  ;;  %v936_v50 = vmax.f32 %v4027_v51, %v4042_v32 }
  0xe6   :  { %v1779_v39 = vmax.f32 %v1603_v9, %v93_v23  ;;  %v1604_v44 = vmax.f32 %v943_v12, %v1184_v37  ;;  %v2180_v18 = vmax.f32 %v1982_v10, %v1184_v37  ;;  %v2558_v48 = vmax.f32 %v2352_v38, %v523_v33 }
  0xe7   :  { %v2753_v46 = vmax.f32 %v2555_v20, %v4105_v62  ;;  %2933 = vst.msk [vmem:[%s5623_s1 + $0x248] sm:$0xff] %vm2858_vm2, %v2755_v15  ;;  %v524_v28 = vrot.slane %v92_v19, 1  ;;  %v525_v25 = vrot.slane %v93_v23, 1  ;;  %v1597_v31 = vmax.f32 %v936_v50, %v4048_v53  ;;  %v98_v20 = vld [vmem:[%s5622_s0 + $0x2d0] sm:$0xff] }
  0xe8   :  { %v1780_v55 = vmax.f32 %v1604_v44, %v94_v41  ;;  %v1185_v29 = vrot.slane %v92_v19, 2  ;;  %v1186_v35 = vrot.slane %v93_v23, 2  ;;  %v2756_v51 = vmax.f32 %v2558_v48, %v1184_v37 }
  0xe9   :  { %2931 = vst.msk [vmem:[%s5623_s1 + $0x238] sm:$0xf] %vm2862_vm3, %v2753_v46  ;;  %v526_v32 = vsel %vm376_vm0, %v524_v28, %v525_v25  ;;  %v2354_v43 = vmax.f32 %v2178_v47, %v92_v19  ;;  %v527_v5 = vrot.slane %v94_v41, 1  ;;  %v1773_v56 = vmax.f32 %v1597_v31, %v4086_v22 }
  0xea   :  { %v945_v57 = vmax.f32 %v92_v19, %v526_v32  ;;  %v1187_v52 = vsel %vm1037_vm1, %v1185_v29, %v1186_v35  ;;  %v1984_v58 = vmax.f32 %v1778_v3, %v526_v32  ;;  %2934 = vst.msk [vmem:[%s5623_s1 + $0x250] sm:$0xff] %vm2858_vm2, %v2756_v51  ;;  %v1188_v8 = vrot.slane %v94_v41, 2 }
  0xeb   :  { %v2560_v53 = vmax.f32 %v2354_v43, %v526_v32  ;;  %v528_v1 = vsel %vm376_vm0, %v525_v25, %v527_v5  ;;  %v2355_v45 = vmax.f32 %v2179_v34, %v93_v23  ;;  %v1979_v60 = vmax.f32 %v1773_v56, %v4095_v36  ;;  %v100_v56 = vld [vmem:[%s5622_s0 + $0x2e0] sm:$0xff] }
  0xec   :  { %v1606_v0 = vmax.f32 %v945_v57, %v1187_v52  ;;  %v2182_v11 = vmax.f32 %v1984_v58, %v1187_v52  ;;  %v946_v40 = vmax.f32 %v93_v23, %v528_v1  ;;  %v1189_v42 = vsel %vm1037_vm1, %v1186_v35, %v1188_v8  ;;  %v4245_v35 = vld [vmem:[%s5622_s0 + $0x2d8] sm:$0x3f] }
  0xed   :  { %v2758_v16 = vmax.f32 %v2560_v53, %v1187_v52  ;;  %v1985_v24 = vmax.f32 %v1779_v39, %v528_v1  ;;  %v2561_v2 = vmax.f32 %v2355_v45, %v528_v1  ;;  %v2177_v47 = vmax.f32 %v1979_v60, %v4105_v62 }
  0xee   :  { %v1607_v6 = vmax.f32 %v946_v40, %v1189_v42  ;;  %v4201_v59 = vrot.slane %v4192_v61, 1  ;;  %v4204_v14 = vrot.slane %v4192_v61, 2  ;;  %v2356_v21 = vmax.f32 %v2180_v18, %v94_v41 }
  0xef   :  { %2936 = vst.msk [vmem:[%s5623_s1 + $0x260] sm:$0xff] %vm2858_vm2, %v2758_v16  ;;  %v2183_v19 = vmax.f32 %v1985_v24, %v1189_v42  ;;  %v2759_v4 = vmax.f32 %v2561_v2, %v1189_v42  ;;  %v940_v3 = vmax.f32 %v4086_v22, %v4095_v36  ;;  %v2353_v17 = vmax.f32 %v2177_v47, %v4133_v54 }
  0xf0   :  { %v530_v27 = vsel %vm376_vm0, %v527_v5, %v4201_v59  ;;  %v1191_v7 = vsel %vm1037_vm1, %v1188_v8, %v4204_v14  ;;  %v1782_v30 = vmax.f32 %v1606_v0, %v96_v49  ;;  %v1882_v34 = vrot.slane %v96_v49, 1  ;;  %v101_v0 = vld [vmem:[%s5622_s0 + $0x2e8] sm:$0xff] }
  0xf1   :  { %2937 = vst.msk [vmem:[%s5623_s1 + $0x268] sm:$0xff] %vm2858_vm2, %v2759_v4  ;;  %v947_v33 = vmax.f32 %v94_v41, %v530_v27  ;;  %v1986_v22 = vmax.f32 %v1780_v55, %v530_v27  ;;  %v2562_v36 = vmax.f32 %v2356_v21, %v530_v27  ;;  %v1601_v23 = vmax.f32 %v940_v3, %v4105_v62  ;;  %v4286_v27 = vld [vmem:[%s5622_s0 + $0x2f8] sm:$0x3f] }
  0xf2   :  { %v2559_v9 = vmax.f32 %v2353_v17, %v4148_v13  ;;  %v1883_v12 = vrot.slane %v97_v26, 1  ;;  %v2080_v10 = vrot.slane %v96_v49, 2  ;;  %v2081_v18 = vrot.slane %v97_v26, 2 }
  0xf3   :  { %v1608_v15 = vmax.f32 %v947_v33, %v1191_v7  ;;  %v2184_v37 = vmax.f32 %v1986_v22, %v1191_v7  ;;  %v2760_v38 = vmax.f32 %v2562_v36, %v1191_v7  ;;  %v1777_v39 = vmax.f32 %v1601_v23, %v4133_v54 }
  0xf4   :  { %v2757_v41 = vmax.f32 %v2559_v9, %v4154_v63  ;;  %v1884_v44 = vsel %vm376_vm0, %v1882_v34, %v1883_v12  ;;  %v2358_v62 = vmax.f32 %v2182_v11, %v96_v49  ;;  %v1783_v48 = vmax.f32 %v1607_v6, %v97_v26 }
  0xf5   :  { %2938 = vst.msk [vmem:[%s5623_s1 + $0x270] sm:$0xff] %vm2858_vm2, %v2760_v38  ;;  %v1983_v50 = vmax.f32 %v1777_v39, %v4148_v13  ;;  %v1988_v46 = vmax.f32 %v1782_v30, %v1884_v44  ;;  %v1885_v28 = vrot.slane %v98_v20, 1  ;;  %v2082_v25 = vsel %vm1037_vm1, %v2080_v10, %v2081_v18 }
  0xf6   :  { %2935 = vst.msk [vmem:[%s5623_s1 + $0x258] sm:$0xf] %vm2862_vm3, %v2757_v41  ;;  %v2564_v55 = vmax.f32 %v2358_v62, %v1884_v44  ;;  %v2083_v31 = vrot.slane %v98_v20, 2  ;;  %v2359_v29 = vmax.f32 %v2183_v19, %v97_v26  ;;  %v1784_v5 = vmax.f32 %v1608_v15, %v98_v20  ;;  %v104_v15 = vld [vmem:[%s5622_s0 + $0x300] sm:$0xff]  ;;  %v4320_v62 = vld [vmem:[%s5622_s0 + $0x328] sm:$0xff] }
  0xf7   :  { %v2181_v51 = vmax.f32 %v1983_v50, %v4154_v63  ;;  %v2186_v32 = vmax.f32 %v1988_v46, %v2082_v25  ;;  %v1886_v43 = vsel %vm376_vm0, %v1883_v12, %v1885_v28  ;;  %v4255_v8 = vrot.slane %v4245_v35, 1 }
  0xf8   :  { %v2762_v57 = vmax.f32 %v2564_v55, %v2082_v25  ;;  %v1989_v52 = vmax.f32 %v1783_v48, %v1886_v43  ;;  %v2084_v58 = vsel %vm1037_vm1, %v2081_v18, %v2083_v31  ;;  %v2565_v53 = vmax.f32 %v2359_v29, %v1886_v43  ;;  %v108_v18 = vld [vmem:[%s5622_s0 + $0x320] sm:$0xff]  ;;  %v4342_v55 = vld [vmem:[%s5622_s0 + $0x348] sm:$0xff] }
  0xf9   :  { %v2357_v1 = vmax.f32 %v2181_v51, %v4192_v61  ;;  %v4258_v45 = vrot.slane %v4245_v35, 2  ;;  %v2360_v60 = vmax.f32 %v2184_v37, %v98_v20  ;;  %v944_v16 = vmax.f32 %v4133_v54, %v4148_v13  ;;  %v102_v13 = vld [vmem:[%s5622_s0 + $0x2f0] sm:$0xff]  ;;  %v4308_v37 = vld [vmem:[%s5622_s0 + $0x308] sm:$0xff] }
  0xfa   :  { %2940 = vst.msk [vmem:[%s5623_s1 + $0x280] sm:$0xff] %vm2858_vm2, %v2762_v57  ;;  %v2187_v11 = vmax.f32 %v1989_v52, %v2084_v58  ;;  %v2763_v40 = vmax.f32 %v2565_v53, %v2084_v58  ;;  %v2362_v42 = vmax.f32 %v2186_v32, %v100_v56  ;;  %v1888_v2 = vsel %vm376_vm0, %v1885_v28, %v4255_v8 }
  0xfb   :  { %v2563_v24 = vmax.f32 %v2357_v1, %v4201_v59  ;;  %v2086_v49 = vsel %vm1037_vm1, %v2083_v31, %v4258_v45  ;;  %v2462_v47 = vrot.slane %v100_v56, 1  ;;  %v1990_v6 = vmax.f32 %v1784_v5, %v1888_v2 }
  0xfc   :  { %2941 = vst.msk [vmem:[%s5623_s1 + $0x288] sm:$0xff] %vm2858_vm2, %v2763_v40  ;;  %v2566_v19 = vmax.f32 %v2360_v60, %v1888_v2  ;;  %v1605_v4 = vmax.f32 %v944_v16, %v4154_v63  ;;  %v2463_v54 = vrot.slane %v101_v0, 1  ;;  %v2660_v3 = vrot.slane %v100_v56, 2  ;;  %v4366_v16 = vld [vmem:[%s5622_s0 + $0x310] sm:$0xff] }
  0xfd   :  { %v2761_v21 = vmax.f32 %v2563_v24, %v4204_v14  ;;  %v2661_v26 = vrot.slane %v101_v0, 2  ;;  %v2363_v17 = vmax.f32 %v2187_v11, %v101_v0  ;;  %v2188_v7 = vmax.f32 %v1990_v6, %v2086_v49 }
  0xfe   :  { %v2764_v30 = vmax.f32 %v2566_v19, %v2086_v49  ;;  %v1781_v33 = vmax.f32 %v1605_v4, %v4192_v61  ;;  %v2464_v63 = vsel %vm376_vm0, %v2462_v47, %v2463_v54  ;;  %v2465_v23 = vrot.slane %v102_v13, 1  ;;  %v4381_v47 = vld [vmem:[%s5622_s0 + $0x350] sm:$0xff] }
  0xff   :  { %2939 = vst.msk [vmem:[%s5623_s1 + $0x278] sm:$0xf] %vm2862_vm3, %v2761_v21  ;;  %v2568_v22 = vmax.f32 %v2362_v42, %v2464_v63  ;;  %v2662_v36 = vsel %vm1037_vm1, %v2660_v3, %v2661_v26  ;;  %v2663_v9 = vrot.slane %v102_v13, 2  ;;  %v2364_v12 = vmax.f32 %v2188_v7, %v102_v13 }
 0x100   :  { %2942 = vst.msk [vmem:[%s5623_s1 + $0x290] sm:$0xff] %vm2858_vm2, %v2764_v30  ;;  %v1987_v34 = vmax.f32 %v1781_v33, %v4201_v59  ;;  %v2467_v10 = vrot.slane %v4286_v27, 1  ;;  %v2665_v20 = vrot.slane %v4286_v27, 2  ;;  %v2466_v39 = vsel %vm376_vm0, %v2463_v54, %v2465_v23 }
 0x101   :  { %v2766_v38 = vmax.f32 %v2568_v22, %v2662_v36  ;;  %v2664_v41 = vsel %vm1037_vm1, %v2661_v26, %v2663_v9  ;;  %v948_v44 = vmax.f32 %v4192_v61, %v4201_v59  ;;  %v2569_v46 = vmax.f32 %v2363_v17, %v2466_v39  ;;  %v4332_v59 = vld [vmem:[%s5622_s0 + $0x340] sm:$0xff] }
 0x102   :  { %v2185_v50 = vmax.f32 %v1987_v34, %v4204_v14  ;;  %v2468_v48 = vsel %vm376_vm0, %v2465_v23, %v2467_v10  ;;  %v2666_v61 = vsel %vm1037_vm1, %v2663_v9, %v2665_v20  ;;  %v531_v31 = vrot.slane %v104_v15, 1 }
 0x103   :  { %2944 = vst.msk [vmem:[%s5623_s1 + $0x2a0] sm:$0xff] %vm2858_vm2, %v2766_v38  ;;  %v2570_v28 = vmax.f32 %v2364_v12, %v2468_v48  ;;  %v1609_v25 = vmax.f32 %v948_v44, %v4204_v14  ;;  %v532_v29 = vrot.slane %v4308_v37, 1  ;;  %v2767_v32 = vmax.f32 %v2569_v46, %v2664_v41  ;;  %v107_v44 = vld [vmem:[%s5622_s0 + $0x318] sm:$0x3f] }
 0x104   :  { %v2361_v51 = vmax.f32 %v2185_v50, %v4245_v35  ;;  %v538_v43 = vrot.slane %v108_v18, 1  ;;  %v539_v5 = vrot.slane %v4320_v62, 1  ;;  %v545_v14 = vrot.slane %v4332_v59, 1 }
 0x105   :  { %v2768_v56 = vmax.f32 %v2570_v28, %v2666_v61  ;;  %v1785_v57 = vmax.f32 %v1609_v25, %v4245_v35  ;;  %v533_v52 = vsel %vm376_vm0, %v531_v31, %v532_v29  ;;  %2945 = vst.msk [vmem:[%s5623_s1 + $0x2a8] sm:$0xff] %vm2858_vm2, %v2767_v32  ;;  %v546_v1 = vrot.slane %v4342_v55, 1  ;;  %v4440_v61 = vld [vmem:[%s5622_s0 + $0x358] sm:$0x3f] }
 0x106   :  { %v2567_v58 = vmax.f32 %v2361_v51, %v4255_v8  ;;  %v540_v53 = vsel %vm376_vm0, %v538_v43, %v539_v5  ;;  %v949_v60 = vmax.f32 %v104_v15, %v533_v52  ;;  %v1192_v11 = vrot.slane %v104_v15, 2  ;;  %v4413_v15 = vld [vmem:[%s5622_s0 + $0x360] sm:$0xff] }
 0x107   :  { %2946 = vst.msk [vmem:[%s5623_s1 + $0x2b0] sm:$0xff] %vm2858_vm2, %v2768_v56  ;;  %v1991_v35 = vmax.f32 %v1785_v57, %v4255_v8  ;;  %v953_v0 = vmax.f32 %v108_v18, %v540_v53  ;;  %v1193_v40 = vrot.slane %v4308_v37, 2  ;;  %v4370_v24 = vsel %vm376_vm0, %v545_v14, %v546_v1  ;;  %v4376_v8 = vld [vmem:[%s5622_s0 + $0x330] sm:$0xff] }
 0x108   :  { %v2765_v42 = vmax.f32 %v2567_v58, %v4258_v45  ;;  %v1199_v2 = vrot.slane %v108_v18, 2  ;;  %v1200_v49 = vrot.slane %v4320_v62, 2  ;;  %v957_v19 = vmax.f32 %v4332_v59, %v4370_v24 }
 0x109   :  { %v2189_v6 = vmax.f32 %v1991_v35, %v4258_v45  ;;  %v1194_v4 = vsel %vm1037_vm1, %v1192_v11, %v1193_v40  ;;  %v1206_v54 = vrot.slane %v4332_v59, 2  ;;  %v1207_v21 = vrot.slane %v4342_v55, 2 }
 0x10a   :  { %2943 = vst.msk [vmem:[%s5623_s1 + $0x298] sm:$0xf] %vm2862_vm3, %v2765_v42  ;;  %v1201_v13 = vsel %vm1037_vm1, %v1199_v2, %v1200_v49  ;;  %v1610_v3 = vmax.f32 %v949_v60, %v1194_v4  ;;  %v534_v26 = vrot.slane %v4366_v16, 1  ;;  %v541_v7 = vrot.slane %v4376_v8, 1 }
 0x10b   :  { %v2365_v45 = vmax.f32 %v2189_v6, %v4286_v27  ;;  %v1614_v17 = vmax.f32 %v953_v0, %v1201_v13  ;;  %v548_v30 = vrot.slane %v4381_v47, 1  ;;  %v4399_v33 = vsel %vm1037_vm1, %v1206_v54, %v1207_v21 }
 0x10c   :  { %v1786_v63 = vmax.f32 %v1610_v3, %v108_v18  ;;  %v535_v22 = vsel %vm376_vm0, %v532_v29, %v534_v26  ;;  %v1195_v36 = vrot.slane %v4366_v16, 2  ;;  %v4406_v9 = vmax.f32 %v957_v19, %v4399_v33  ;;  %v4426_v18 = vld [vmem:[%s5622_s0 + $0x338] sm:$0x3f] }
 0x10d   :  { %v2571_v23 = vmax.f32 %v2365_v45, %v2467_v10  ;;  %v1790_v34 = vmax.f32 %v1614_v17, %v4332_v59  ;;  %v542_v12 = vsel %vm376_vm0, %v539_v5, %v541_v7  ;;  %v4416_v39 = vsel %vm376_vm0, %v546_v1, %v548_v30 }
 0x10e   :  { %v1992_v38 = vmax.f32 %v1786_v63, %v540_v53  ;;  %v950_v41 = vmax.f32 %v4308_v37, %v535_v22  ;;  %v954_v10 = vmax.f32 %v4320_v62, %v542_v12  ;;  %v1794_v46 = vmax.f32 %v4406_v9, %v4413_v15  ;;  %v118_v9 = vld [vmem:[%s5622_s0 + $0x370] sm:$0xff] }
 0x10f   :  { %v2769_v50 = vmax.f32 %v2571_v23, %v2665_v20  ;;  %v4433_v48 = vmax.f32 %v1790_v34, %v4370_v24  ;;  %v958_v37 = vmax.f32 %v4342_v55, %v4416_v39  ;;  %v1196_v25 = vsel %vm1037_vm1, %v1193_v40, %v1195_v36 }
 0x110   :  { %v2190_v28 = vmax.f32 %v1992_v38, %v1201_v13  ;;  %v1202_v27 = vrot.slane %v4376_v8, 2  ;;  %v1209_v20 = vrot.slane %v4381_v47, 2  ;;  %v1611_v29 = vmax.f32 %v950_v41, %v1196_v25 }
 0x111   :  { %2947 = vst.msk [vmem:[%s5623_s1 + $0x2b8] sm:$0xf] %vm2862_vm3, %v2769_v50  ;;  %v2194_v31 = vmax.f32 %v4433_v48, %v4399_v33  ;;  %v536_v51 = vrot.slane %v107_v44, 1  ;;  %v4452_v32 = vrot.slane %v4426_v18, 1  ;;  %v4460_v57 = vrot.slane %v4440_v61, 1 }
 0x112   :  { %v2366_v43 = vmax.f32 %v2190_v28, %v4332_v59  ;;  %v1203_v5 = vsel %vm1037_vm1, %v1200_v49, %v1202_v27  ;;  %v4457_v56 = vsel %vm1037_vm1, %v1207_v21, %v1209_v20  ;;  %v1787_v58 = vmax.f32 %v1611_v29, %v4320_v62  ;;  %v4471_v59 = vld [vmem:[%s5622_s0 + $0x368] sm:$0xff] }
 0x113   :  { %v1615_v52 = vmax.f32 %v954_v10, %v1203_v5  ;;  %v4463_v14 = vmax.f32 %v958_v37, %v4457_v56  ;;  %v537_v53 = vsel %vm376_vm0, %v534_v26, %v536_v51  ;;  %v544_v60 = vsel %vm376_vm0, %v541_v7, %v4452_v32 }
 0x114   :  { %v2572_v1 = vmax.f32 %v2366_v43, %v4370_v24  ;;  %v4477_v35 = vsel %vm376_vm0, %v548_v30, %v4460_v57  ;;  %v951_v0 = vmax.f32 %v4366_v16, %v537_v53  ;;  %v1993_v40 = vmax.f32 %v1787_v58, %v542_v12 }
 0x115   :  { %v1791_v62 = vmax.f32 %v1615_v52, %v4342_v55  ;;  %v1795_v11 = vmax.f32 %v4463_v14, %v4471_v59  ;;  %v955_v42 = vmax.f32 %v4376_v8, %v544_v60  ;;  %v959_v2 = vmax.f32 %v4381_v47, %v4477_v35  ;;  %v4535_v52 = vld [vmem:[%s5622_s0 + $0x378] sm:$0x3f] }
 0x116   :  { %v2770_v24 = vmax.f32 %v2572_v1, %v4399_v33  ;;  %v1197_v49 = vrot.slane %v107_v44, 2  ;;  %v4488_v6 = vrot.slane %v4426_v18, 2  ;;  %v2191_v16 = vmax.f32 %v1993_v40, %v1203_v5 }
 0x117   :  { %v1997_v19 = vmax.f32 %v1791_v62, %v4416_v39  ;;  %v4492_v4 = vrot.slane %v4440_v61, 2  ;;  %v952_v54 = vmax.f32 %v107_v44, %v536_v51  ;;  %v552_v3 = vrot.slane %v4413_v15, 1 }
 0x118   :  { %2948 = vst.msk [vmem:[%s5623_s1 + $0x2c0] sm:$0xff] %vm2858_vm2, %v2770_v24  ;;  %v1198_v13 = vsel %vm1037_vm1, %v1195_v36, %v1197_v49  ;;  %v1205_v21 = vsel %vm1037_vm1, %v1202_v27, %v4488_v6  ;;  %v553_v26 = vrot.slane %v4471_v59, 1  ;;  %v2367_v17 = vmax.f32 %v2191_v16, %v4342_v55 }
 0x119   :  { %v2195_v45 = vmax.f32 %v1997_v19, %v4457_v56  ;;  %v1212_v7 = vsel %vm1037_vm1, %v1209_v20, %v4492_v4  ;;  %v1612_v30 = vmax.f32 %v951_v0, %v1198_v13  ;;  %v1616_v33 = vmax.f32 %v955_v42, %v1205_v21 }
 0x11a   :  { %v1620_v63 = vmax.f32 %v959_v2, %v1212_v7  ;;  %v1613_v22 = vmax.f32 %v952_v54, %v1197_v49  ;;  %v554_v36 = vsel %vm376_vm0, %v552_v3, %v553_v26  ;;  %v2573_v23 = vmax.f32 %v2367_v17, %v4416_v39 }
 0x11b   :  { %v1788_v34 = vmax.f32 %v1612_v30, %v4376_v8  ;;  %v961_v12 = vmax.f32 %v4413_v15, %v554_v36  ;;  %v1213_v55 = vrot.slane %v4413_v15, 2  ;;  %v1792_v38 = vmax.f32 %v1616_v33, %v4381_v47 }
 0x11c   :  { %v1796_v41 = vmax.f32 %v1620_v63, %v118_v9  ;;  %v1789_v10 = vmax.f32 %v1613_v22, %v4426_v18  ;;  %v1214_v44 = vrot.slane %v4471_v59, 2  ;;  %v2771_v50 = vmax.f32 %v2573_v23, %v4457_v56  ;;  %v122_v22 = vld [vmem:[%s5622_s0 + $0x390] sm:$0xff] }
 0x11d   :  { %v1994_v39 = vmax.f32 %v1788_v34, %v544_v60  ;;  %v2000_v48 = vmax.f32 %v1794_v46, %v554_v36  ;;  %v2370_v37 = vmax.f32 %v2194_v31, %v4413_v15  ;;  %v1998_v28 = vmax.f32 %v1792_v38, %v4477_v35  ;;  %v120_v15 = vld [vmem:[%s5622_s0 + $0x380] sm:$0xff]  ;;  %v4584_v38 = vld [vmem:[%s5622_s0 + $0x398] sm:$0x3f] }
 0x11e   :  { %v1995_v8 = vmax.f32 %v1789_v10, %v4452_v32  ;;  %v1215_v25 = vsel %vm1037_vm1, %v1213_v55, %v1214_v44  ;;  %v555_v27 = vrot.slane %v118_v9, 1  ;;  %2949 = vst.msk [vmem:[%s5623_s1 + $0x2c8] sm:$0xff] %vm2858_vm2, %v2771_v50  ;;  %v1216_v56 = vrot.slane %v118_v9, 2 }
 0x11f   :  { %v2192_v20 = vmax.f32 %v1994_v39, %v1205_v21  ;;  %v1622_v29 = vmax.f32 %v961_v12, %v1215_v25  ;;  %v2198_v51 = vmax.f32 %v2000_v48, %v1215_v25  ;;  %v2576_v43 = vmax.f32 %v2370_v37, %v554_v36 }
 0x120   :  { %v2196_v5 = vmax.f32 %v1998_v28, %v1212_v7  ;;  %v2193_v46 = vmax.f32 %v1995_v8, %v4488_v6  ;;  %v556_v31 = vsel %vm376_vm0, %v553_v26, %v555_v27  ;;  %v1217_v0 = vsel %vm1037_vm1, %v1214_v44, %v1216_v56 }
 0x121   :  { %v2368_v14 = vmax.f32 %v2192_v20, %v4381_v47  ;;  %v1798_v58 = vmax.f32 %v1622_v29, %v120_v15  ;;  %v2774_v53 = vmax.f32 %v2576_v43, %v1215_v25  ;;  %v962_v1 = vmax.f32 %v4471_v59, %v556_v31  ;;  %v124_v29 = vld [vmem:[%s5622_s0 + $0x3a0] sm:$0xff] }
 0x122   :  { %v2369_v60 = vmax.f32 %v2193_v46, %v4440_v61  ;;  %v2001_v62 = vmax.f32 %v1795_v11, %v556_v31  ;;  %v2371_v40 = vmax.f32 %v2195_v45, %v4471_v59  ;;  %v4548_v47 = vrot.slane %v4535_v52, 1  ;;  %v121_v59 = vld [vmem:[%s5622_s0 + $0x388] sm:$0xff] }
 0x123   :  { %v2574_v42 = vmax.f32 %v2368_v14, %v4477_v35  ;;  %2952 = vst.msk [vmem:[%s5623_s1 + $0x2e0] sm:$0xff] %vm2858_vm2, %v2774_v53  ;;  %v1623_v24 = vmax.f32 %v962_v1, %v1217_v0  ;;  %v4551_v2 = vrot.slane %v4535_v52, 2  ;;  %v2372_v19 = vmax.f32 %v2196_v5, %v118_v9 }
 0x124   :  { %v2575_v49 = vmax.f32 %v2369_v60, %v4460_v57  ;;  %v2199_v11 = vmax.f32 %v2001_v62, %v1217_v0  ;;  %v2577_v35 = vmax.f32 %v2371_v40, %v556_v31  ;;  %v558_v13 = vsel %vm376_vm0, %v555_v27, %v4548_v47  ;;  %v125_v60 = vld [vmem:[%s5622_s0 + $0x3a8] sm:$0xff] }
 0x125   :  { %v2772_v16 = vmax.f32 %v2574_v42, %v1212_v7  ;;  %v1799_v54 = vmax.f32 %v1623_v24, %v121_v59  ;;  %v1219_v21 = vsel %vm1037_vm1, %v1216_v56, %v4551_v2  ;;  %v963_v45 = vmax.f32 %v118_v9, %v558_v13 }
 0x126   :  { %v2773_v3 = vmax.f32 %v2575_v49, %v4492_v4  ;;  %v2775_v26 = vmax.f32 %v2577_v35, %v1217_v0  ;;  %v2002_v17 = vmax.f32 %v1796_v41, %v558_v13  ;;  %v2578_v30 = vmax.f32 %v2372_v19, %v558_v13  ;;  %v126_v19 = vld [vmem:[%s5622_s0 + $0x3b0] sm:$0xff] }
 0x127   :  { %2950 = vst.msk [vmem:[%s5623_s1 + $0x2d0] sm:$0xff] %vm2858_vm2, %v2772_v16  ;;  %v956_v7 = vmax.f32 %v4426_v18, %v4452_v32  ;;  %v559_v33 = vrot.slane %v120_v15, 1  ;;  %v560_v63 = vrot.slane %v121_v59, 1  ;;  %v1624_v36 = vmax.f32 %v963_v45, %v1219_v21 }
 0x128   :  { %2951 = vst.msk [vmem:[%s5623_s1 + $0x2d8] sm:$0xf] %vm2862_vm3, %v2773_v3  ;;  %v2200_v23 = vmax.f32 %v2002_v17, %v1219_v21  ;;  %v1220_v9 = vrot.slane %v120_v15, 2  ;;  %v1221_v18 = vrot.slane %v121_v59, 2  ;;  %v2776_v32 = vmax.f32 %v2578_v30, %v1219_v21 }
 0x129   :  { %2953 = vst.msk [vmem:[%s5623_s1 + $0x2e8] sm:$0xff] %vm2858_vm2, %v2775_v26  ;;  %v1617_v34 = vmax.f32 %v956_v7, %v4488_v6  ;;  %v561_v12 = vsel %vm376_vm0, %v559_v33, %v560_v63  ;;  %v2374_v55 = vmax.f32 %v2198_v51, %v120_v15  ;;  %v1800_v41 = vmax.f32 %v1624_v36, %v122_v22 }
 0x12a   :  { %v965_v10 = vmax.f32 %v120_v15, %v561_v12  ;;  %v1222_v44 = vsel %vm1037_vm1, %v1220_v9, %v1221_v18  ;;  %v2004_v50 = vmax.f32 %v1798_v58, %v561_v12  ;;  %2954 = vst.msk [vmem:[%s5623_s1 + $0x2f0] sm:$0xff] %vm2858_vm2, %v2776_v32  ;;  %v562_v48 = vrot.slane %v122_v22, 1 }
 0x12b   :  { %v1793_v6 = vmax.f32 %v1617_v34, %v4440_v61  ;;  %v2580_v39 = vmax.f32 %v2374_v55, %v561_v12  ;;  %v1223_v37 = vrot.slane %v122_v22, 2  ;;  %v2375_v25 = vmax.f32 %v2199_v11, %v121_v59  ;;  %v4644_v55 = vld [vmem:[%s5622_s0 + $0x3b8] sm:$0x3f] }
 0x12c   :  { %v1626_v28 = vmax.f32 %v965_v10, %v1222_v44  ;;  %v2202_v8 = vmax.f32 %v2004_v50, %v1222_v44  ;;  %v4593_v27 = vrot.slane %v4584_v38, 1  ;;  %v563_v43 = vsel %vm376_vm0, %v560_v63, %v562_v48 }
 0x12d   :  { %v1999_v20 = vmax.f32 %v1793_v6, %v4460_v57  ;;  %v2778_v51 = vmax.f32 %v2580_v39, %v1222_v44  ;;  %v1224_v5 = vsel %vm1037_vm1, %v1221_v18, %v1223_v37  ;;  %v966_v15 = vmax.f32 %v121_v59, %v563_v43  ;;  %v128_v6 = vld [vmem:[%s5622_s0 + $0x3c0] sm:$0xff] }
 0x12e   :  { %v1802_v46 = vmax.f32 %v1626_v28, %v124_v29  ;;  %v2005_v31 = vmax.f32 %v1799_v54, %v563_v43  ;;  %v2581_v56 = vmax.f32 %v2375_v25, %v563_v43  ;;  %v565_v58 = vsel %vm376_vm0, %v562_v48, %v4593_v27 }
 0x12f   :  { %v2197_v14 = vmax.f32 %v1999_v20, %v4492_v4  ;;  %2956 = vst.msk [vmem:[%s5623_s1 + $0x300] sm:$0xff] %vm2858_vm2, %v2778_v51  ;;  %v4609_v53 = vrot.slane %v4584_v38, 2  ;;  %v2376_v1 = vmax.f32 %v2200_v23, %v122_v22  ;;  %v1627_v0 = vmax.f32 %v966_v15, %v1224_v5  ;;  %v129_v51 = vld [vmem:[%s5622_s0 + $0x3c8] sm:$0xff] }
 0x130   :  { %v2203_v62 = vmax.f32 %v2005_v31, %v1224_v5  ;;  %v2779_v40 = vmax.f32 %v2581_v56, %v1224_v5  ;;  %v967_v42 = vmax.f32 %v122_v22, %v565_v58  ;;  %v2006_v59 = vmax.f32 %v1800_v41, %v565_v58 }
 0x131   :  { %v2373_v24 = vmax.f32 %v2197_v14, %v4535_v52  ;;  %v1226_v49 = vsel %vm1037_vm1, %v1223_v37, %v4609_v53  ;;  %v2582_v11 = vmax.f32 %v2376_v1, %v565_v58  ;;  %v1803_v35 = vmax.f32 %v1627_v0, %v125_v60 }
 0x132   :  { %2957 = vst.msk [vmem:[%s5623_s1 + $0x308] sm:$0xff] %vm2858_vm2, %v2779_v40  ;;  %v1628_v16 = vmax.f32 %v967_v42, %v1226_v49  ;;  %v960_v54 = vmax.f32 %v4440_v61, %v4460_v57  ;;  %v566_v13 = vrot.slane %v124_v29, 1  ;;  %v2204_v3 = vmax.f32 %v2006_v59, %v1226_v49 }
 0x133   :  { %v2579_v21 = vmax.f32 %v2373_v24, %v4548_v47  ;;  %v2780_v26 = vmax.f32 %v2582_v11, %v1226_v49  ;;  %v567_v45 = vrot.slane %v125_v60, 1  ;;  %v1227_v7 = vrot.slane %v124_v29, 2 }
 0x134   :  { %v1804_v17 = vmax.f32 %v1628_v16, %v126_v19  ;;  %v1621_v30 = vmax.f32 %v960_v54, %v4492_v4  ;;  %v1228_v33 = vrot.slane %v125_v60, 2  ;;  %v2378_v57 = vmax.f32 %v2202_v8, %v124_v29 }
 0x135   :  { %v2777_v63 = vmax.f32 %v2579_v21, %v4551_v2  ;;  %2958 = vst.msk [vmem:[%s5623_s1 + $0x310] sm:$0xff] %vm2858_vm2, %v2780_v26  ;;  %v568_v61 = vsel %vm376_vm0, %v566_v13, %v567_v45  ;;  %v569_v22 = vrot.slane %v126_v19, 1  ;;  %v1230_v34 = vrot.slane %v126_v19, 2 }
 0x136   :  { %v1797_v36 = vmax.f32 %v1621_v30, %v4535_v52  ;;  %v969_v23 = vmax.f32 %v124_v29, %v568_v61  ;;  %v1229_v9 = vsel %vm1037_vm1, %v1227_v7, %v1228_v33  ;;  %v2008_v18 = vmax.f32 %v1802_v46, %v568_v61 }
 0x137   :  { %2955 = vst.msk [vmem:[%s5623_s1 + $0x2f8] sm:$0xf] %vm2862_vm3, %v2777_v63  ;;  %v2584_v4 = vmax.f32 %v2378_v57, %v568_v61  ;;  %v570_v32 = vsel %vm376_vm0, %v567_v45, %v569_v22  ;;  %v2379_v12 = vmax.f32 %v2203_v62, %v125_v60  ;;  %v1231_v48 = vsel %vm1037_vm1, %v1228_v33, %v1230_v34  ;;  %v4691_v45 = vld [vmem:[%s5622_s0 + $0x3d8] sm:$0x3f] }
 0x138   :  { %v2003_v41 = vmax.f32 %v1797_v36, %v4548_v47  ;;  %v1630_v10 = vmax.f32 %v969_v23, %v1229_v9  ;;  %v2206_v44 = vmax.f32 %v2008_v18, %v1229_v9  ;;  %v970_v50 = vmax.f32 %v125_v60, %v570_v32  ;;  %v132_v23 = vld [vmem:[%s5622_s0 + $0x3e0] sm:$0xff] }
 0x139   :  { %v2782_v39 = vmax.f32 %v2584_v4, %v1229_v9  ;;  %v2009_v37 = vmax.f32 %v1803_v35, %v570_v32  ;;  %v2585_v28 = vmax.f32 %v2379_v12, %v570_v32  ;;  %v4653_v29 = vrot.slane %v4644_v55, 1 }
 0x13a   :  { %v2201_v8 = vmax.f32 %v2003_v41, %v4551_v2  ;;  %v1806_v25 = vmax.f32 %v1630_v10, %v128_v6  ;;  %v1631_v20 = vmax.f32 %v970_v50, %v1231_v48  ;;  %v4663_v46 = vrot.slane %v4644_v55, 2 }
 0x13b   :  { %2960 = vst.msk [vmem:[%s5623_s1 + $0x320] sm:$0xff] %vm2858_vm2, %v2782_v39  ;;  %v2207_v43 = vmax.f32 %v2009_v37, %v1231_v48  ;;  %v2783_v5 = vmax.f32 %v2585_v28, %v1231_v48  ;;  %v2380_v15 = vmax.f32 %v2204_v3, %v126_v19  ;;  %v572_v14 = vsel %vm376_vm0, %v569_v22, %v4653_v29  ;;  %v133_v39 = vld [vmem:[%s5622_s0 + $0x3e8] sm:$0xff] }
 0x13c   :  { %v2377_v31 = vmax.f32 %v2201_v8, %v4584_v38  ;;  %v1807_v56 = vmax.f32 %v1631_v20, %v129_v51  ;;  %v964_v58 = vmax.f32 %v4535_v52, %v4548_v47  ;;  %v971_v1 = vmax.f32 %v126_v19, %v572_v14  ;;  %v130_v52 = vld [vmem:[%s5622_s0 + $0x3d0] sm:$0xff] }
 0x13d   :  { %2961 = vst.msk [vmem:[%s5623_s1 + $0x328] sm:$0xff] %vm2858_vm2, %v2783_v5  ;;  %v1233_v60 = vsel %vm1037_vm1, %v1230_v34, %v4663_v46  ;;  %v2010_v0 = vmax.f32 %v1804_v17, %v572_v14  ;;  %v2586_v62 = vmax.f32 %v2380_v15, %v572_v14  ;;  %v573_v24 = vrot.slane %v128_v6, 1  ;;  %v134_v15 = vld [vmem:[%s5622_s0 + $0x3f0] sm:$0xff] }
 0x13e   :  { %v2583_v40 = vmax.f32 %v2377_v31, %v4593_v27  ;;  %v1625_v42 = vmax.f32 %v964_v58, %v4551_v2  ;;  %v574_v49 = vrot.slane %v129_v51, 1  ;;  %v1632_v47 = vmax.f32 %v971_v1, %v1233_v60 }
 0x13f   :  { %v2208_v59 = vmax.f32 %v2010_v0, %v1233_v60  ;;  %v2784_v11 = vmax.f32 %v2586_v62, %v1233_v60  ;;  %v1234_v35 = vrot.slane %v128_v6, 2  ;;  %v1235_v13 = vrot.slane %v129_v51, 2 }
 0x140   :  { %v2781_v19 = vmax.f32 %v2583_v40, %v4609_v53  ;;  %v1801_v16 = vmax.f32 %v1625_v42, %v4584_v38  ;;  %v575_v54 = vsel %vm376_vm0, %v573_v24, %v574_v49  ;;  %v1808_v21 = vmax.f32 %v1632_v47, %v130_v52 }
 0x141   :  { %2962 = vst.msk [vmem:[%s5623_s1 + $0x330] sm:$0xff] %vm2858_vm2, %v2784_v11  ;;  %v973_v2 = vmax.f32 %v128_v6, %v575_v54  ;;  %v2012_v3 = vmax.f32 %v1806_v25, %v575_v54  ;;  %v2382_v26 = vmax.f32 %v2206_v44, %v128_v6  ;;  %v1236_v30 = vsel %vm1037_vm1, %v1234_v35, %v1235_v13 }
 0x142   :  { %2959 = vst.msk [vmem:[%s5623_s1 + $0x318] sm:$0xf] %vm2862_vm3, %v2781_v19  ;;  %v2007_v17 = vmax.f32 %v1801_v16, %v4593_v27  ;;  %v576_v7 = vrot.slane %v130_v52, 1  ;;  %v1237_v33 = vrot.slane %v130_v52, 2  ;;  %v2383_v22 = vmax.f32 %v2207_v43, %v129_v51 }
 0x143   :  { %v1634_v63 = vmax.f32 %v973_v2, %v1236_v30  ;;  %v2210_v61 = vmax.f32 %v2012_v3, %v1236_v30  ;;  %v2588_v57 = vmax.f32 %v2382_v26, %v575_v54  ;;  %v4706_v4 = vrot.slane %v4691_v45, 1 }
 0x144   :  { %v2205_v36 = vmax.f32 %v2007_v17, %v4609_v53  ;;  %v577_v9 = vsel %vm376_vm0, %v574_v49, %v576_v7  ;;  %v1238_v18 = vsel %vm1037_vm1, %v1235_v13, %v1237_v33  ;;  %v4712_v6 = vrot.slane %v4691_v45, 2  ;;  %v4750_v13 = vld [vmem:[%s5622_s0 + $0x3f8] sm:$0x3f]  ;;  %v136_v17 = vld [vmem:[%s5622_s0 + $0x400] sm:$0xff] }
 0x145   :  { %v1810_v32 = vmax.f32 %v1634_v63, %v132_v23  ;;  %v2786_v34 = vmax.f32 %v2588_v57, %v1236_v30  ;;  %v974_v12 = vmax.f32 %v129_v51, %v577_v9  ;;  %v2013_v41 = vmax.f32 %v1807_v56, %v577_v9 }
 0x146   :  { %v2381_v10 = vmax.f32 %v2205_v36, %v4644_v55  ;;  %v2589_v44 = vmax.f32 %v2383_v22, %v577_v9  ;;  %v579_v50 = vsel %vm376_vm0, %v576_v7, %v4706_v4  ;;  %v1240_v51 = vsel %vm1037_vm1, %v1237_v33, %v4712_v6 }
 0x147   :  { %2964 = vst.msk [vmem:[%s5623_s1 + $0x340] sm:$0xff] %vm2858_vm2, %v2786_v34  ;;  %v1635_v48 = vmax.f32 %v974_v12, %v1238_v18  ;;  %v2211_v37 = vmax.f32 %v2013_v41, %v1238_v18  ;;  %v975_v28 = vmax.f32 %v130_v52, %v579_v50  ;;  %v2014_v8 = vmax.f32 %v1808_v21, %v579_v50 }
 0x148   :  { %v2587_v25 = vmax.f32 %v2381_v10, %v4653_v29  ;;  %v2787_v20 = vmax.f32 %v2589_v44, %v1238_v18  ;;  %v2384_v43 = vmax.f32 %v2208_v59, %v130_v52  ;;  %v968_v14 = vmax.f32 %v4584_v38, %v4593_v27 }
 0x149   :  { %v1811_v5 = vmax.f32 %v1635_v48, %v133_v39  ;;  %v1636_v31 = vmax.f32 %v975_v28, %v1240_v51  ;;  %v2212_v56 = vmax.f32 %v2014_v8, %v1240_v51  ;;  %v580_v60 = vrot.slane %v132_v23, 1 }
 0x14a   :  { %v2785_v58 = vmax.f32 %v2587_v25, %v4663_v46  ;;  %2965 = vst.msk [vmem:[%s5623_s1 + $0x348] sm:$0xff] %vm2858_vm2, %v2787_v20  ;;  %v2590_v1 = vmax.f32 %v2384_v43, %v579_v50  ;;  %v581_v0 = vrot.slane %v133_v39, 1  ;;  %v1629_v40 = vmax.f32 %v968_v14, %v4609_v53 }
 0x14b   :  { %v1812_v62 = vmax.f32 %v1636_v31, %v134_v15  ;;  %v1241_v42 = vrot.slane %v132_v23, 2  ;;  %v1242_v24 = vrot.slane %v133_v39, 2  ;;  %v2386_v49 = vmax.f32 %v2210_v61, %v132_v23 }
 0x14c   :  { %2963 = vst.msk [vmem:[%s5623_s1 + $0x338] sm:$0xf] %vm2862_vm3, %v2785_v58  ;;  %v2788_v38 = vmax.f32 %v2590_v1, %v1240_v51  ;;  %v582_v27 = vsel %vm376_vm0, %v580_v60, %v581_v0  ;;  %v583_v52 = vrot.slane %v134_v15, 1  ;;  %v1805_v47 = vmax.f32 %v1629_v40, %v4644_v55 }
 0x14d   :  { %v977_v59 = vmax.f32 %v132_v23, %v582_v27  ;;  %v1243_v11 = vsel %vm1037_vm1, %v1241_v42, %v1242_v24  ;;  %v2016_v35 = vmax.f32 %v1810_v32, %v582_v27  ;;  %v2592_v53 = vmax.f32 %v2386_v49, %v582_v27  ;;  %v137_v23 = vld [vmem:[%s5622_s0 + $0x408] sm:$0xff] }
 0x14e   :  { %2966 = vst.msk [vmem:[%s5623_s1 + $0x350] sm:$0xff] %vm2858_vm2, %v2788_v38  ;;  %v584_v19 = vsel %vm376_vm0, %v581_v0, %v583_v52  ;;  %v1244_v16 = vrot.slane %v134_v15, 2  ;;  %v2387_v54 = vmax.f32 %v2211_v37, %v133_v39  ;;  %v2011_v21 = vmax.f32 %v1805_v47, %v4653_v29  ;;  %v4797_v0 = vld [vmem:[%s5622_s0 + $0x418] sm:$0x3f] }
 0x14f   :  { %v1638_v2 = vmax.f32 %v977_v59, %v1243_v11  ;;  %v2214_v3 = vmax.f32 %v2016_v35, %v1243_v11  ;;  %v978_v26 = vmax.f32 %v133_v39, %v584_v19  ;;  %v2790_v30 = vmax.f32 %v2592_v53, %v1243_v11  ;;  %v140_v59 = vld [vmem:[%s5622_s0 + $0x420] sm:$0xff] }
 0x150   :  { %v1245_v7 = vsel %vm1037_vm1, %v1242_v24, %v1244_v16  ;;  %v2017_v33 = vmax.f32 %v1811_v5, %v584_v19  ;;  %v2593_v63 = vmax.f32 %v2387_v54, %v584_v19  ;;  %v2209_v61 = vmax.f32 %v2011_v21, %v4663_v46 }
 0x151   :  { %v1814_v57 = vmax.f32 %v1638_v2, %v136_v17  ;;  %v1639_v22 = vmax.f32 %v978_v26, %v1245_v7  ;;  %v4759_v36 = vrot.slane %v4750_v13, 1  ;;  %2968 = vst.msk [vmem:[%s5623_s1 + $0x360] sm:$0xff] %vm2858_vm2, %v2790_v30  ;;  %v4769_v32 = vrot.slane %v4750_v13, 2  ;;  %v141_v30 = vld [vmem:[%s5622_s0 + $0x428] sm:$0xff] }
 0x152   :  { %v2215_v9 = vmax.f32 %v2017_v33, %v1245_v7  ;;  %v2791_v18 = vmax.f32 %v2593_v63, %v1245_v7  ;;  %v2388_v34 = vmax.f32 %v2212_v56, %v134_v15  ;;  %v2385_v12 = vmax.f32 %v2209_v61, %v4691_v45 }
 0x153   :  { %v1815_v41 = vmax.f32 %v1639_v22, %v137_v23  ;;  %v586_v10 = vsel %vm376_vm0, %v583_v52, %v4759_v36  ;;  %v972_v44 = vmax.f32 %v4644_v55, %v4653_v29  ;;  %v1247_v39 = vsel %vm1037_vm1, %v1244_v16, %v4769_v32  ;;  %v138_v55 = vld [vmem:[%s5622_s0 + $0x410] sm:$0xff] }
 0x154   :  { %2969 = vst.msk [vmem:[%s5623_s1 + $0x368] sm:$0xff] %vm2858_vm2, %v2791_v18  ;;  %v979_v50 = vmax.f32 %v134_v15, %v586_v10  ;;  %v2018_v48 = vmax.f32 %v1812_v62, %v586_v10  ;;  %v2594_v37 = vmax.f32 %v2388_v34, %v586_v10  ;;  %v2591_v28 = vmax.f32 %v2385_v12, %v4706_v4  ;;  %v142_v34 = vld [vmem:[%s5622_s0 + $0x430] sm:$0xff] }
 0x155   :  { %v1633_v8 = vmax.f32 %v972_v44, %v4663_v46  ;;  %v587_v25 = vrot.slane %v136_v17, 1  ;;  %v588_v20 = vrot.slane %v137_v23, 1  ;;  %v1248_v5 = vrot.slane %v136_v17, 2 }
 0x156   :  { %v1640_v29 = vmax.f32 %v979_v50, %v1247_v39  ;;  %v2216_v51 = vmax.f32 %v2018_v48, %v1247_v39  ;;  %v2792_v43 = vmax.f32 %v2594_v37, %v1247_v39  ;;  %v2789_v15 = vmax.f32 %v2591_v28, %v4712_v6 }
 0x157   :  { %v1809_v31 = vmax.f32 %v1633_v8, %v4691_v45  ;;  %v589_v56 = vsel %vm376_vm0, %v587_v25, %v588_v20  ;;  %v1249_v14 = vrot.slane %v137_v23, 2  ;;  %v2390_v60 = vmax.f32 %v2214_v3, %v136_v17 }
 0x158   :  { %v1816_v58 = vmax.f32 %v1640_v29, %v138_v55  ;;  %2970 = vst.msk [vmem:[%s5623_s1 + $0x370] sm:$0xff] %vm2858_vm2, %v2792_v43  ;;  %v981_v46 = vmax.f32 %v136_v17, %v589_v56  ;;  %v2020_v1 = vmax.f32 %v1814_v57, %v589_v56  ;;  %v590_v42 = vrot.slane %v138_v55, 1 }
 0x159   :  { %2967 = vst.msk [vmem:[%s5623_s1 + $0x358] sm:$0xf] %vm2862_vm3, %v2789_v15  ;;  %v2015_v62 = vmax.f32 %v1809_v31, %v4706_v4  ;;  %v1250_v40 = vsel %vm1037_vm1, %v1248_v5, %v1249_v14  ;;  %v1251_v24 = vrot.slane %v138_v55, 2  ;;  %v2596_v49 = vmax.f32 %v2390_v60, %v589_v56 }
 0x15a   :  { %v1642_v38 = vmax.f32 %v981_v46, %v1250_v40  ;;  %v2218_v27 = vmax.f32 %v2020_v1, %v1250_v40  ;;  %v2391_v52 = vmax.f32 %v2215_v9, %v137_v23  ;;  %v591_v11 = vsel %vm376_vm0, %v588_v20, %v590_v42 }
 0x15b   :  { %v2213_v47 = vmax.f32 %v2015_v62, %v4712_v6  ;;  %v1252_v35 = vsel %vm1037_vm1, %v1249_v14, %v1251_v24  ;;  %v4812_v53 = vrot.slane %v4797_v0, 1  ;;  %v2794_v16 = vmax.f32 %v2596_v49, %v1250_v40  ;;  %v4856_v14 = vld [vmem:[%s5622_s0 + $0x438] sm:$0x3f]  ;;  %v144_v62 = vld [vmem:[%s5622_s0 + $0x440] sm:$0xff] }
 0x15c   :  { %v1818_v19 = vmax.f32 %v1642_v38, %v140_v59  ;;  %v982_v54 = vmax.f32 %v137_v23, %v591_v11  ;;  %v2021_v21 = vmax.f32 %v1815_v41, %v591_v11  ;;  %v2597_v3 = vmax.f32 %v2391_v52, %v591_v11 }
 0x15d   :  { %v2389_v2 = vmax.f32 %v2213_v47, %v4750_v13  ;;  %v593_v26 = vsel %vm376_vm0, %v590_v42, %v4812_v53  ;;  %v4818_v17 = vrot.slane %v4797_v0, 2  ;;  %2972 = vst.msk [vmem:[%s5623_s1 + $0x380] sm:$0xff] %vm2858_vm2, %v2794_v16  ;;  %v2392_v9 = vmax.f32 %v2216_v51, %v138_v55 }
 0x15e   :  { %v1643_v7 = vmax.f32 %v982_v54, %v1252_v35  ;;  %v2219_v33 = vmax.f32 %v2021_v21, %v1252_v35  ;;  %v983_v63 = vmax.f32 %v138_v55, %v593_v26  ;;  %v2022_v61 = vmax.f32 %v1816_v58, %v593_v26 }
 0x15f   :  { %v2595_v57 = vmax.f32 %v2389_v2, %v4759_v36  ;;  %v2795_v22 = vmax.f32 %v2597_v3, %v1252_v35  ;;  %v1254_v23 = vsel %vm1037_vm1, %v1251_v24, %v4818_v17  ;;  %v976_v10 = vmax.f32 %v4691_v45, %v4706_v4 }
 0x160   :  { %v1819_v18 = vmax.f32 %v1643_v7, %v141_v30  ;;  %v1644_v12 = vmax.f32 %v983_v63, %v1254_v23  ;;  %v2220_v41 = vmax.f32 %v2022_v61, %v1254_v23  ;;  %v2598_v50 = vmax.f32 %v2392_v9, %v593_v26 }
 0x161   :  { %v2793_v44 = vmax.f32 %v2595_v57, %v4769_v32  ;;  %2973 = vst.msk [vmem:[%s5623_s1 + $0x388] sm:$0xff] %vm2858_vm2, %v2795_v22  ;;  %v594_v39 = vrot.slane %v140_v59, 1  ;;  %v595_v48 = vrot.slane %v141_v30, 1  ;;  %v1637_v28 = vmax.f32 %v976_v10, %v4712_v6 }
 0x162   :  { %v1820_v37 = vmax.f32 %v1644_v12, %v142_v34  ;;  %v1255_v8 = vrot.slane %v140_v59, 2  ;;  %v1256_v25 = vrot.slane %v141_v30, 2  ;;  %v2796_v45 = vmax.f32 %v2598_v50, %v1254_v23 }
 0x163   :  { %2971 = vst.msk [vmem:[%s5623_s1 + $0x378] sm:$0xf] %vm2862_vm3, %v2793_v44  ;;  %v596_v4 = vsel %vm376_vm0, %v594_v39, %v595_v48  ;;  %v2394_v20 = vmax.f32 %v2218_v27, %v140_v59  ;;  %v597_v55 = vrot.slane %v142_v34, 1  ;;  %v1813_v29 = vmax.f32 %v1637_v28, %v4750_v13 }
 0x164   :  { %v985_v51 = vmax.f32 %v140_v59, %v596_v4  ;;  %v1257_v43 = vsel %vm1037_vm1, %v1255_v8, %v1256_v25  ;;  %v2024_v5 = vmax.f32 %v1818_v19, %v596_v4  ;;  %2974 = vst.msk [vmem:[%s5623_s1 + $0x390] sm:$0xff] %vm2858_vm2, %v2796_v45  ;;  %v1258_v31 = vrot.slane %v142_v34, 2  ;;  %v145_v59 = vld [vmem:[%s5622_s0 + $0x448] sm:$0xff] }
 0x165   :  { %v2600_v6 = vmax.f32 %v2394_v20, %v596_v4  ;;  %v598_v15 = vsel %vm376_vm0, %v595_v48, %v597_v55  ;;  %v2395_v56 = vmax.f32 %v2219_v33, %v141_v30  ;;  %v2019_v58 = vmax.f32 %v1813_v29, %v4759_v36  ;;  %v4903_v48 = vld [vmem:[%s5622_s0 + $0x458] sm:$0x3f] }
 0x166   :  { %v1646_v46 = vmax.f32 %v985_v51, %v1257_v43  ;;  %v2222_v1 = vmax.f32 %v2024_v5, %v1257_v43  ;;  %v986_v60 = vmax.f32 %v141_v30, %v598_v15  ;;  %v1259_v42 = vsel %vm1037_vm1, %v1256_v25, %v1258_v31  ;;  %v148_v51 = vld [vmem:[%s5622_s0 + $0x460] sm:$0xff] }
 0x167   :  { %v2798_v40 = vmax.f32 %v2600_v6, %v1257_v43  ;;  %v2025_v24 = vmax.f32 %v1819_v18, %v598_v15  ;;  %v2601_v38 = vmax.f32 %v2395_v56, %v598_v15  ;;  %v2217_v27 = vmax.f32 %v2019_v58, %v4769_v32 }
 0x168   :  { %v1822_v49 = vmax.f32 %v1646_v46, %v144_v62  ;;  %v1647_v52 = vmax.f32 %v986_v60, %v1259_v42  ;;  %v4865_v47 = vrot.slane %v4856_v14, 1  ;;  %v4875_v19 = vrot.slane %v4856_v14, 2 }
 0x169   :  { %2976 = vst.msk [vmem:[%s5623_s1 + $0x3a0] sm:$0xff] %vm2858_vm2, %v2798_v40  ;;  %v2223_v11 = vmax.f32 %v2025_v24, %v1259_v42  ;;  %v2799_v35 = vmax.f32 %v2601_v38, %v1259_v42  ;;  %v2396_v16 = vmax.f32 %v2220_v41, %v142_v34  ;;  %v2393_v54 = vmax.f32 %v2217_v27, %v4797_v0  ;;  %v149_v40 = vld [vmem:[%s5622_s0 + $0x468] sm:$0xff] }
 0x16a   :  { %v1823_v21 = vmax.f32 %v1647_v52, %v145_v59  ;;  %v600_v2 = vsel %vm376_vm0, %v597_v55, %v4865_v47  ;;  %v980_v3 = vmax.f32 %v4750_v13, %v4759_v36  ;;  %v1261_v30 = vsel %vm1037_vm1, %v1258_v31, %v4875_v19  ;;  %v146_v13 = vld [vmem:[%s5622_s0 + $0x450] sm:$0xff] }
 0x16b   :  { %2977 = vst.msk [vmem:[%s5623_s1 + $0x3a8] sm:$0xff] %vm2858_vm2, %v2799_v35  ;;  %v987_v26 = vmax.f32 %v142_v34, %v600_v2  ;;  %v2026_v7 = vmax.f32 %v1820_v37, %v600_v2  ;;  %v2602_v33 = vmax.f32 %v2396_v16, %v600_v2  ;;  %v2599_v63 = vmax.f32 %v2393_v54, %v4812_v53  ;;  %v150_v16 = vld [vmem:[%s5622_s0 + $0x470] sm:$0xff] }
 0x16c   :  { %v1641_v61 = vmax.f32 %v980_v3, %v4769_v32  ;;  %v601_v57 = vrot.slane %v144_v62, 1  ;;  %v602_v22 = vrot.slane %v145_v59, 1  ;;  %v1262_v18 = vrot.slane %v144_v62, 2 }
 0x16d   :  { %v1648_v36 = vmax.f32 %v987_v26, %v1261_v30  ;;  %v2224_v23 = vmax.f32 %v2026_v7, %v1261_v30  ;;  %v2800_v9 = vmax.f32 %v2602_v33, %v1261_v30  ;;  %v2797_v34 = vmax.f32 %v2599_v63, %v4818_v17 }
 0x16e   :  { %v1817_v12 = vmax.f32 %v1641_v61, %v4797_v0  ;;  %v603_v41 = vsel %vm376_vm0, %v601_v57, %v602_v22  ;;  %v1263_v10 = vrot.slane %v145_v59, 2  ;;  %v2398_v39 = vmax.f32 %v2222_v1, %v144_v62 }
 0x16f   :  { %v1824_v44 = vmax.f32 %v1648_v36, %v146_v13  ;;  %2978 = vst.msk [vmem:[%s5623_s1 + $0x3b0] sm:$0xff] %vm2858_vm2, %v2800_v9  ;;  %v989_v32 = vmax.f32 %v144_v62, %v603_v41  ;;  %v2028_v50 = vmax.f32 %v1822_v49, %v603_v41  ;;  %v604_v8 = vrot.slane %v146_v13, 1 }
 0x170   :  { %2975 = vst.msk [vmem:[%s5623_s1 + $0x398] sm:$0xf] %vm2862_vm3, %v2797_v34  ;;  %v2023_v37 = vmax.f32 %v1817_v12, %v4812_v53  ;;  %v1264_v28 = vsel %vm1037_vm1, %v1262_v18, %v1263_v10  ;;  %v1265_v25 = vrot.slane %v146_v13, 2  ;;  %v2604_v20 = vmax.f32 %v2398_v39, %v603_v41 }
 0x171   :  { %v1650_v45 = vmax.f32 %v989_v32, %v1264_v28  ;;  %v2226_v4 = vmax.f32 %v2028_v50, %v1264_v28  ;;  %v2399_v55 = vmax.f32 %v2223_v11, %v145_v59  ;;  %v605_v43 = vsel %vm376_vm0, %v602_v22, %v604_v8 }
 0x172   :  { %v2221_v29 = vmax.f32 %v2023_v37, %v4818_v17  ;;  %v1266_v5 = vsel %vm1037_vm1, %v1263_v10, %v1265_v25  ;;  %v4918_v6 = vrot.slane %v4903_v48, 1  ;;  %v2802_v31 = vmax.f32 %v2604_v20, %v1264_v28  ;;  %v4962_v10 = vld [vmem:[%s5622_s0 + $0x478] sm:$0x3f]  ;;  %v152_v37 = vld [vmem:[%s5622_s0 + $0x480] sm:$0xff] }
 0x173   :  { %v1826_v15 = vmax.f32 %v1650_v45, %v148_v51  ;;  %v990_v56 = vmax.f32 %v145_v59, %v605_v43  ;;  %v2029_v58 = vmax.f32 %v1823_v21, %v605_v43  ;;  %v2605_v1 = vmax.f32 %v2399_v55, %v605_v43 }
 0x174   :  { %v2397_v46 = vmax.f32 %v2221_v29, %v4856_v14  ;;  %v607_v60 = vsel %vm376_vm0, %v604_v8, %v4918_v6  ;;  %v4924_v62 = vrot.slane %v4903_v48, 2  ;;  %2980 = vst.msk [vmem:[%s5623_s1 + $0x3c0] sm:$0xff] %vm2858_vm2, %v2802_v31  ;;  %v2400_v11 = vmax.f32 %v2224_v23, %v146_v13 }
 0x175   :  { %v1651_v42 = vmax.f32 %v990_v56, %v1266_v5  ;;  %v2227_v24 = vmax.f32 %v2029_v58, %v1266_v5  ;;  %v991_v38 = vmax.f32 %v146_v13, %v607_v60  ;;  %v2030_v27 = vmax.f32 %v1824_v44, %v607_v60 }
 0x176   :  { %v2603_v49 = vmax.f32 %v2397_v46, %v4865_v47  ;;  %v2803_v52 = vmax.f32 %v2605_v1, %v1266_v5  ;;  %v1268_v59 = vsel %vm1037_vm1, %v1265_v25, %v4924_v62  ;;  %v984_v2 = vmax.f32 %v4797_v0, %v4812_v53 }
 0x177   :  { %v1827_v35 = vmax.f32 %v1651_v42, %v149_v40  ;;  %v1652_v54 = vmax.f32 %v991_v38, %v1268_v59  ;;  %v2228_v21 = vmax.f32 %v2030_v27, %v1268_v59  ;;  %v2606_v26 = vmax.f32 %v2400_v11, %v607_v60 }
 0x178   :  { %v2801_v3 = vmax.f32 %v2603_v49, %v4875_v19  ;;  %2981 = vst.msk [vmem:[%s5623_s1 + $0x3c8] sm:$0xff] %vm2858_vm2, %v2803_v52  ;;  %v608_v30 = vrot.slane %v148_v51, 1  ;;  %v609_v7 = vrot.slane %v149_v40, 1  ;;  %v1645_v63 = vmax.f32 %v984_v2, %v4818_v17 }
 0x179   :  { %v1828_v33 = vmax.f32 %v1652_v54, %v150_v16  ;;  %v1269_v61 = vrot.slane %v148_v51, 2  ;;  %v1270_v57 = vrot.slane %v149_v40, 2  ;;  %v2804_v0 = vmax.f32 %v2606_v26, %v1268_v59 }
 0x17a   :  { %2979 = vst.msk [vmem:[%s5623_s1 + $0x3b8] sm:$0xf] %vm2862_vm3, %v2801_v3  ;;  %v610_v53 = vsel %vm376_vm0, %v608_v30, %v609_v7  ;;  %v2402_v22 = vmax.f32 %v2226_v4, %v148_v51  ;;  %v611_v13 = vrot.slane %v150_v16, 1  ;;  %v1821_v36 = vmax.f32 %v1645_v63, %v4856_v14 }
 0x17b   :  { %v993_v23 = vmax.f32 %v148_v51, %v610_v53  ;;  %v1271_v9 = vsel %vm1037_vm1, %v1269_v61, %v1270_v57  ;;  %v2032_v18 = vmax.f32 %v1826_v15, %v610_v53  ;;  %2982 = vst.msk [vmem:[%s5623_s1 + $0x3d0] sm:$0xff] %vm2858_vm2, %v2804_v0  ;;  %v1272_v12 = vrot.slane %v150_v16, 2  ;;  %v153_v51 = vld [vmem:[%s5622_s0 + $0x488] sm:$0xff] }
 0x17c   :  { %v2608_v17 = vmax.f32 %v2402_v22, %v610_v53  ;;  %v612_v34 = vsel %vm376_vm0, %v609_v7, %v611_v13  ;;  %v2403_v41 = vmax.f32 %v2227_v24, %v149_v40  ;;  %v2027_v44 = vmax.f32 %v1821_v36, %v4865_v47  ;;  %v5009_v7 = vld [vmem:[%s5622_s0 + $0x498] sm:$0x3f] }
 0x17d   :  { %v1654_v32 = vmax.f32 %v993_v23, %v1271_v9  ;;  %v2230_v50 = vmax.f32 %v2032_v18, %v1271_v9  ;;  %v994_v39 = vmax.f32 %v149_v40, %v612_v34  ;;  %v1273_v8 = vsel %vm1037_vm1, %v1270_v57, %v1272_v12  ;;  %v156_v23 = vld [vmem:[%s5622_s0 + $0x4a0] sm:$0xff] }
 0x17e   :  { %v2806_v28 = vmax.f32 %v2608_v17, %v1271_v9  ;;  %v2033_v25 = vmax.f32 %v1827_v35, %v612_v34  ;;  %v2609_v45 = vmax.f32 %v2403_v41, %v612_v34  ;;  %v2225_v4 = vmax.f32 %v2027_v44, %v4875_v19 }
 0x17f   :  { %v1830_v20 = vmax.f32 %v1654_v32, %v152_v37  ;;  %v1655_v55 = vmax.f32 %v994_v39, %v1273_v8  ;;  %v4971_v29 = vrot.slane %v4962_v10, 1  ;;  %v4981_v15 = vrot.slane %v4962_v10, 2 }
 0x180   :  { %2984 = vst.msk [vmem:[%s5623_s1 + $0x3e0] sm:$0xff] %vm2858_vm2, %v2806_v28  ;;  %v2231_v43 = vmax.f32 %v2033_v25, %v1273_v8  ;;  %v2807_v5 = vmax.f32 %v2609_v45, %v1273_v8  ;;  %v2404_v31 = vmax.f32 %v2228_v21, %v150_v16  ;;  %v2401_v56 = vmax.f32 %v2225_v4, %v4903_v48  ;;  %v157_v28 = vld [vmem:[%s5622_s0 + $0x4a8] sm:$0xff] }
 0x181   :  { %v1831_v58 = vmax.f32 %v1655_v55, %v153_v51  ;;  %v614_v46 = vsel %vm376_vm0, %v611_v13, %v4971_v29  ;;  %v988_v1 = vmax.f32 %v4856_v14, %v4865_v47  ;;  %v1275_v40 = vsel %vm1037_vm1, %v1272_v12, %v4981_v15  ;;  %v154_v14 = vld [vmem:[%s5622_s0 + $0x490] sm:$0xff] }
 0x182   :  { %2985 = vst.msk [vmem:[%s5623_s1 + $0x3e8] sm:$0xff] %vm2858_vm2, %v2807_v5  ;;  %v995_v60 = vmax.f32 %v150_v16, %v614_v46  ;;  %v2034_v42 = vmax.f32 %v1828_v33, %v614_v46  ;;  %v2610_v24 = vmax.f32 %v2404_v31, %v614_v46  ;;  %v2607_v38 = vmax.f32 %v2401_v56, %v4918_v6  ;;  %v158_v31 = vld [vmem:[%s5622_s0 + $0x4b0] sm:$0xff] }
 0x183   :  { %v1649_v27 = vmax.f32 %v988_v1, %v4875_v19  ;;  %v615_v49 = vrot.slane %v152_v37, 1  ;;  %v616_v52 = vrot.slane %v153_v51, 1  ;;  %v1276_v35 = vrot.slane %v152_v37, 2 }
 0x184   :  { %v1656_v47 = vmax.f32 %v995_v60, %v1275_v40  ;;  %v2232_v59 = vmax.f32 %v2034_v42, %v1275_v40  ;;  %v2808_v11 = vmax.f32 %v2610_v24, %v1275_v40  ;;  %v2805_v16 = vmax.f32 %v2607_v38, %v4924_v62 }
 0x185   :  { %v1825_v54 = vmax.f32 %v1649_v27, %v4903_v48  ;;  %v617_v21 = vsel %vm376_vm0, %v615_v49, %v616_v52  ;;  %v1277_v2 = vrot.slane %v153_v51, 2  ;;  %v2406_v30 = vmax.f32 %v2230_v50, %v152_v37 }
 0x186   :  { %v1832_v3 = vmax.f32 %v1656_v47, %v154_v14  ;;  %2986 = vst.msk [vmem:[%s5623_s1 + $0x3f0] sm:$0xff] %vm2858_vm2, %v2808_v11  ;;  %v997_v19 = vmax.f32 %v152_v37, %v617_v21  ;;  %v2036_v26 = vmax.f32 %v1830_v20, %v617_v21  ;;  %v618_v61 = vrot.slane %v154_v14, 1 }
 0x187   :  { %2983 = vst.msk [vmem:[%s5623_s1 + $0x3d8] sm:$0xf] %vm2862_vm3, %v2805_v16  ;;  %v2031_v33 = vmax.f32 %v1825_v54, %v4918_v6  ;;  %v1278_v63 = vsel %vm1037_vm1, %v1276_v35, %v1277_v2  ;;  %v1279_v57 = vrot.slane %v154_v14, 2  ;;  %v2612_v22 = vmax.f32 %v2406_v30, %v617_v21 }
 0x188   :  { %v1658_v0 = vmax.f32 %v997_v19, %v1278_v63  ;;  %v2234_v53 = vmax.f32 %v2036_v26, %v1278_v63  ;;  %v2407_v13 = vmax.f32 %v2231_v43, %v153_v51  ;;  %v619_v9 = vsel %vm376_vm0, %v616_v52, %v618_v61 }
 0x189   :  { %v2229_v36 = vmax.f32 %v2031_v33, %v4924_v62  ;;  %v1280_v18 = vsel %vm1037_vm1, %v1277_v2, %v1279_v57  ;;  %v5024_v17 = vrot.slane %v5009_v7, 1  ;;  %v2810_v12 = vmax.f32 %v2612_v22, %v1278_v63  ;;  %v5068_v2 = vld [vmem:[%s5622_s0 + $0x4b8] sm:$0x3f]  ;;  %v160_v33 = vld [vmem:[%s5622_s0 + $0x4c0] sm:$0xff] }
 0x18a   :  { %v1834_v34 = vmax.f32 %v1658_v0, %v156_v23  ;;  %v998_v41 = vmax.f32 %v153_v51, %v619_v9  ;;  %v2037_v44 = vmax.f32 %v1831_v58, %v619_v9  ;;  %v2613_v50 = vmax.f32 %v2407_v13, %v619_v9 }
 0x18b   :  { %v2405_v32 = vmax.f32 %v2229_v36, %v4962_v10  ;;  %v621_v39 = vsel %vm376_vm0, %v618_v61, %v5024_v17  ;;  %v5030_v37 = vrot.slane %v5009_v7, 2  ;;  %2988 = vst.msk [vmem:[%s5623_s1 + $0x400] sm:$0xff] %vm2858_vm2, %v2810_v12  ;;  %v2408_v43 = vmax.f32 %v2232_v59, %v154_v14 }
 0x18c   :  { %v1659_v8 = vmax.f32 %v998_v41, %v1280_v18  ;;  %v2235_v25 = vmax.f32 %v2037_v44, %v1280_v18  ;;  %v999_v45 = vmax.f32 %v154_v14, %v621_v39  ;;  %v2038_v4 = vmax.f32 %v1832_v3, %v621_v39 }
 0x18d   :  { %v2611_v20 = vmax.f32 %v2405_v32, %v4971_v29  ;;  %v2811_v55 = vmax.f32 %v2613_v50, %v1280_v18  ;;  %v1282_v51 = vsel %vm1037_vm1, %v1279_v57, %v5030_v37  ;;  %v992_v46 = vmax.f32 %v4903_v48, %v4918_v6 }
 0x18e   :  { %v1835_v5 = vmax.f32 %v1659_v8, %v157_v28  ;;  %v1660_v56 = vmax.f32 %v999_v45, %v1282_v51  ;;  %v2236_v58 = vmax.f32 %v2038_v4, %v1282_v51  ;;  %v2614_v60 = vmax.f32 %v2408_v43, %v621_v39 }
 0x18f   :  { %v2809_v1 = vmax.f32 %v2611_v20, %v4981_v15  ;;  %2989 = vst.msk [vmem:[%s5623_s1 + $0x408] sm:$0xff] %vm2858_vm2, %v2811_v55  ;;  %v622_v40 = vrot.slane %v156_v23, 1  ;;  %v623_v42 = vrot.slane %v157_v28, 1  ;;  %v1653_v38 = vmax.f32 %v992_v46, %v4924_v62 }
 0x190   :  { %v1836_v24 = vmax.f32 %v1660_v56, %v158_v31  ;;  %v1283_v27 = vrot.slane %v156_v23, 2  ;;  %v1284_v49 = vrot.slane %v157_v28, 2  ;;  %v2812_v48 = vmax.f32 %v2614_v60, %v1282_v51 }
 0x191   :  { %2987 = vst.msk [vmem:[%s5623_s1 + $0x3f8] sm:$0xf] %vm2862_vm3, %v2809_v1  ;;  %v624_v6 = vsel %vm376_vm0, %v622_v40, %v623_v42  ;;  %v2410_v52 = vmax.f32 %v2234_v53, %v156_v23  ;;  %v625_v14 = vrot.slane %v158_v31, 1  ;;  %v1829_v47 = vmax.f32 %v1653_v38, %v4962_v10 }
 0x192   :  { %v1001_v59 = vmax.f32 %v156_v23, %v624_v6  ;;  %v1285_v11 = vsel %vm1037_vm1, %v1283_v27, %v1284_v49  ;;  %v2040_v35 = vmax.f32 %v1834_v34, %v624_v6  ;;  %2990 = vst.msk [vmem:[%s5623_s1 + $0x410] sm:$0xff] %vm2858_vm2, %v2812_v48  ;;  %v1286_v54 = vrot.slane %v158_v31, 2  ;;  %v161_v23 = vld [vmem:[%s5622_s0 + $0x4c8] sm:$0xff] }
 0x193   :  { %v2616_v62 = vmax.f32 %v2410_v52, %v624_v6  ;;  %v626_v16 = vsel %vm376_vm0, %v623_v42, %v625_v14  ;;  %v2411_v21 = vmax.f32 %v2235_v25, %v157_v28  ;;  %v2035_v3 = vmax.f32 %v1829_v47, %v4971_v29  ;;  %v5115_v42 = vld [vmem:[%s5622_s0 + $0x4d8] sm:$0x3f] }
 0x194   :  { %v1662_v19 = vmax.f32 %v1001_v59, %v1285_v11  ;;  %v2238_v26 = vmax.f32 %v2040_v35, %v1285_v11  ;;  %v1002_v30 = vmax.f32 %v157_v28, %v626_v16  ;;  %v1287_v61 = vsel %vm1037_vm1, %v1284_v49, %v1286_v54  ;;  %v164_v59 = vld [vmem:[%s5622_s0 + $0x4e0] sm:$0xff] }
 0x195   :  { %v2814_v63 = vmax.f32 %v2616_v62, %v1285_v11  ;;  %v2041_v57 = vmax.f32 %v1835_v5, %v626_v16  ;;  %v2617_v0 = vmax.f32 %v2411_v21, %v626_v16  ;;  %v2233_v53 = vmax.f32 %v2035_v3, %v4981_v15 }
 0x196   :  { %v1838_v22 = vmax.f32 %v1662_v19, %v160_v33  ;;  %v1663_v13 = vmax.f32 %v1002_v30, %v1287_v61  ;;  %v5077_v36 = vrot.slane %v5068_v2, 1  ;;  %v5087_v34 = vrot.slane %v5068_v2, 2 }
 0x197   :  { %2992 = vst.msk [vmem:[%s5623_s1 + $0x420] sm:$0xff] %vm2858_vm2, %v2814_v63  ;;  %v2239_v9 = vmax.f32 %v2041_v57, %v1287_v61  ;;  %v2815_v18 = vmax.f32 %v2617_v0, %v1287_v61  ;;  %v2412_v12 = vmax.f32 %v2236_v58, %v158_v31  ;;  %v2409_v41 = vmax.f32 %v2233_v53, %v5009_v7  ;;  %v165_v63 = vld [vmem:[%s5622_s0 + $0x4e8] sm:$0xff] }
 0x198   :  { %v1839_v44 = vmax.f32 %v1663_v13, %v161_v23  ;;  %v628_v32 = vsel %vm376_vm0, %v625_v14, %v5077_v36  ;;  %v996_v50 = vmax.f32 %v4962_v10, %v4971_v29  ;;  %v1289_v28 = vsel %vm1037_vm1, %v1286_v54, %v5087_v34  ;;  %v162_v10 = vld [vmem:[%s5622_s0 + $0x4d0] sm:$0xff] }
 0x199   :  { %2993 = vst.msk [vmem:[%s5623_s1 + $0x428] sm:$0xff] %vm2858_vm2, %v2815_v18  ;;  %v1003_v39 = vmax.f32 %v158_v31, %v628_v32  ;;  %v2042_v8 = vmax.f32 %v1836_v24, %v628_v32  ;;  %v2618_v25 = vmax.f32 %v2412_v12, %v628_v32  ;;  %v2615_v45 = vmax.f32 %v2409_v41, %v5024_v17  ;;  %v166_v12 = vld [vmem:[%s5622_s0 + $0x4f0] sm:$0xff] }
 0x19a   :  { %v1657_v4 = vmax.f32 %v996_v50, %v4981_v15  ;;  %v629_v20 = vrot.slane %v160_v33, 1  ;;  %v630_v55 = vrot.slane %v161_v23, 1  ;;  %v1290_v5 = vrot.slane %v160_v33, 2 }
 0x19b   :  { %v1664_v29 = vmax.f32 %v1003_v39, %v1289_v28  ;;  %v2240_v51 = vmax.f32 %v2042_v8, %v1289_v28  ;;  %v2816_v43 = vmax.f32 %v2618_v25, %v1289_v28  ;;  %v2813_v31 = vmax.f32 %v2615_v45, %v5030_v37 }
 0x19c   :  { %v1833_v56 = vmax.f32 %v1657_v4, %v5009_v7  ;;  %v631_v58 = vsel %vm376_vm0, %v629_v20, %v630_v55  ;;  %v1291_v46 = vrot.slane %v161_v23, 2  ;;  %v2414_v40 = vmax.f32 %v2238_v26, %v160_v33 }
 0x19d   :  { %v1840_v1 = vmax.f32 %v1664_v29, %v162_v10  ;;  %2994 = vst.msk [vmem:[%s5623_s1 + $0x430] sm:$0xff] %vm2858_vm2, %v2816_v43  ;;  %v1005_v15 = vmax.f32 %v160_v33, %v631_v58  ;;  %v2044_v60 = vmax.f32 %v1838_v22, %v631_v58  ;;  %v632_v27 = vrot.slane %v162_v10, 1 }
 0x19e   :  { %2991 = vst.msk [vmem:[%s5623_s1 + $0x418] sm:$0xf] %vm2862_vm3, %v2813_v31  ;;  %v2039_v24 = vmax.f32 %v1833_v56, %v5024_v17  ;;  %v1292_v38 = vsel %vm1037_vm1, %v1290_v5, %v1291_v46  ;;  %v1293_v49 = vrot.slane %v162_v10, 2  ;;  %v2620_v52 = vmax.f32 %v2414_v40, %v631_v58 }
 0x19f   :  { %v1666_v48 = vmax.f32 %v1005_v15, %v1292_v38  ;;  %v2242_v6 = vmax.f32 %v2044_v60, %v1292_v38  ;;  %v2415_v14 = vmax.f32 %v2239_v9, %v161_v23  ;;  %v633_v11 = vsel %vm376_vm0, %v630_v55, %v632_v27 }
 0x1a0   :  { %v2237_v47 = vmax.f32 %v2039_v24, %v5030_v37  ;;  %v1294_v35 = vsel %vm1037_vm1, %v1291_v46, %v1293_v49  ;;  %v5130_v62 = vrot.slane %v5115_v42, 1  ;;  %v2818_v54 = vmax.f32 %v2620_v52, %v1292_v38  ;;  %v5174_v46 = vld [vmem:[%s5622_s0 + $0x4f8] sm:$0x3f]  ;;  %v168_v24 = vld [vmem:[%s5622_s0 + $0x500] sm:$0xff] }
 0x1a1   :  { %v1842_v16 = vmax.f32 %v1666_v48, %v164_v59  ;;  %v1006_v21 = vmax.f32 %v161_v23, %v633_v11  ;;  %v2045_v3 = vmax.f32 %v1839_v44, %v633_v11  ;;  %v2621_v26 = vmax.f32 %v2415_v14, %v633_v11 }
 0x1a2   :  { %v2413_v19 = vmax.f32 %v2237_v47, %v5068_v2  ;;  %v635_v30 = vsel %vm376_vm0, %v632_v27, %v5130_v62  ;;  %v5136_v33 = vrot.slane %v5115_v42, 2  ;;  %2996 = vst.msk [vmem:[%s5623_s1 + $0x440] sm:$0xff] %vm2858_vm2, %v2818_v54  ;;  %v2416_v9 = vmax.f32 %v2240_v51, %v162_v10 }
 0x1a3   :  { %v1667_v61 = vmax.f32 %v1006_v21, %v1294_v35  ;;  %v2243_v57 = vmax.f32 %v2045_v3, %v1294_v35  ;;  %v1007_v0 = vmax.f32 %v162_v10, %v635_v30  ;;  %v2046_v53 = vmax.f32 %v1840_v1, %v635_v30 }
 0x1a4   :  { %v2619_v22 = vmax.f32 %v2413_v19, %v5077_v36  ;;  %v2819_v13 = vmax.f32 %v2621_v26, %v1294_v35  ;;  %v1296_v23 = vsel %vm1037_vm1, %v1293_v49, %v5136_v33  ;;  %v1000_v32 = vmax.f32 %v5009_v7, %v5024_v17 }
 0x1a5   :  { %v1843_v18 = vmax.f32 %v1667_v61, %v165_v63  ;;  %v1668_v41 = vmax.f32 %v1007_v0, %v1296_v23  ;;  %v2244_v44 = vmax.f32 %v2046_v53, %v1296_v23  ;;  %v2622_v39 = vmax.f32 %v2416_v9, %v635_v30 }
 0x1a6   :  { %v2817_v50 = vmax.f32 %v2619_v22, %v5087_v34  ;;  %2997 = vst.msk [vmem:[%s5623_s1 + $0x448] sm:$0xff] %vm2858_vm2, %v2819_v13  ;;  %v636_v28 = vrot.slane %v164_v59, 1  ;;  %v637_v8 = vrot.slane %v165_v63, 1  ;;  %v1661_v45 = vmax.f32 %v1000_v32, %v5030_v37 }
 0x1a7   :  { %v1844_v25 = vmax.f32 %v1668_v41, %v166_v12  ;;  %v1297_v4 = vrot.slane %v164_v59, 2  ;;  %v1298_v20 = vrot.slane %v165_v63, 2  ;;  %v2820_v7 = vmax.f32 %v2622_v39, %v1296_v23 }
 0x1a8   :  { %2995 = vst.msk [vmem:[%s5623_s1 + $0x438] sm:$0xf] %vm2862_vm3, %v2817_v50  ;;  %v638_v17 = vsel %vm376_vm0, %v636_v28, %v637_v8  ;;  %v2418_v55 = vmax.f32 %v2242_v6, %v164_v59  ;;  %v639_v10 = vrot.slane %v166_v12, 1  ;;  %v1837_v29 = vmax.f32 %v1661_v45, %v5068_v2 }
 0x1a9   :  { %v1009_v51 = vmax.f32 %v164_v59, %v638_v17  ;;  %v1299_v43 = vsel %vm1037_vm1, %v1297_v4, %v1298_v20  ;;  %v2048_v5 = vmax.f32 %v1842_v16, %v638_v17  ;;  %2998 = vst.msk [vmem:[%s5623_s1 + $0x450] sm:$0xff] %vm2858_vm2, %v2820_v7  ;;  %v1300_v56 = vrot.slane %v166_v12, 2  ;;  %v169_v59 = vld [vmem:[%s5622_s0 + $0x508] sm:$0xff] }
 0x1aa   :  { %v2624_v37 = vmax.f32 %v2418_v55, %v638_v17  ;;  %v640_v31 = vsel %vm376_vm0, %v637_v8, %v639_v10  ;;  %v2419_v58 = vmax.f32 %v2243_v57, %v165_v63  ;;  %v2043_v1 = vmax.f32 %v1837_v29, %v5077_v36  ;;  %v5221_v8 = vld [vmem:[%s5622_s0 + $0x518] sm:$0x3f] }
 0x1ab   :  { %v1670_v15 = vmax.f32 %v1009_v51, %v1299_v43  ;;  %v2246_v60 = vmax.f32 %v2048_v5, %v1299_v43  ;;  %v1010_v40 = vmax.f32 %v165_v63, %v640_v31  ;;  %v1301_v27 = vsel %vm1037_vm1, %v1298_v20, %v1300_v56  ;;  %v172_v51 = vld [vmem:[%s5622_s0 + $0x520] sm:$0xff] }
 0x1ac   :  { %v2822_v38 = vmax.f32 %v2624_v37, %v1299_v43  ;;  %v2049_v49 = vmax.f32 %v1843_v18, %v640_v31  ;;  %v2625_v48 = vmax.f32 %v2419_v58, %v640_v31  ;;  %v2241_v6 = vmax.f32 %v2043_v1, %v5087_v34 }
 0x1ad   :  { %v1846_v52 = vmax.f32 %v1670_v15, %v168_v24  ;;  %v1671_v14 = vmax.f32 %v1010_v40, %v1301_v27  ;;  %v5183_v47 = vrot.slane %v5174_v46, 1  ;;  %v5193_v16 = vrot.slane %v5174_v46, 2 }
 0x1ae   :  { %3000 = vst.msk [vmem:[%s5623_s1 + $0x460] sm:$0xff] %vm2858_vm2, %v2822_v38  ;;  %v2247_v11 = vmax.f32 %v2049_v49, %v1301_v27  ;;  %v2823_v35 = vmax.f32 %v2625_v48, %v1301_v27  ;;  %v2420_v54 = vmax.f32 %v2244_v44, %v166_v12  ;;  %v2417_v21 = vmax.f32 %v2241_v6, %v5115_v42  ;;  %v173_v38 = vld [vmem:[%s5622_s0 + $0x528] sm:$0xff] }
 0x1af   :  { %v1847_v3 = vmax.f32 %v1671_v14, %v169_v59  ;;  %v642_v19 = vsel %vm376_vm0, %v639_v10, %v5183_v47  ;;  %v1004_v26 = vmax.f32 %v5068_v2, %v5077_v36  ;;  %v1303_v63 = vsel %vm1037_vm1, %v1300_v56, %v5193_v16  ;;  %v170_v2 = vld [vmem:[%s5622_s0 + $0x510] sm:$0xff] }
 0x1b0   :  { %3001 = vst.msk [vmem:[%s5623_s1 + $0x468] sm:$0xff] %vm2858_vm2, %v2823_v35  ;;  %v1011_v30 = vmax.f32 %v166_v12, %v642_v19  ;;  %v2050_v61 = vmax.f32 %v1844_v25, %v642_v19  ;;  %v2626_v57 = vmax.f32 %v2420_v54, %v642_v19  ;;  %v2623_v0 = vmax.f32 %v2417_v21, %v5130_v62  ;;  %v174_v54 = vld [vmem:[%s5622_s0 + $0x530] sm:$0xff] }
 0x1b1   :  { %v1665_v53 = vmax.f32 %v1004_v26, %v5087_v34  ;;  %v643_v22 = vrot.slane %v168_v24, 1  ;;  %v644_v13 = vrot.slane %v169_v59, 1  ;;  %v1304_v18 = vrot.slane %v168_v24, 2 }
 0x1b2   :  { %v1672_v36 = vmax.f32 %v1011_v30, %v1303_v63  ;;  %v2248_v23 = vmax.f32 %v2050_v61, %v1303_v63  ;;  %v2824_v9 = vmax.f32 %v2626_v57, %v1303_v63  ;;  %v2821_v12 = vmax.f32 %v2623_v0, %v5136_v33 }
 0x1b3   :  { %v1841_v41 = vmax.f32 %v1665_v53, %v5115_v42  ;;  %v645_v44 = vsel %vm376_vm0, %v643_v22, %v644_v13  ;;  %v1305_v32 = vrot.slane %v169_v59, 2  ;;  %v2422_v28 = vmax.f32 %v2246_v60, %v168_v24 }
 0x1b4   :  { %v1848_v50 = vmax.f32 %v1672_v36, %v170_v2  ;;  %3002 = vst.msk [vmem:[%s5623_s1 + $0x470] sm:$0xff] %vm2858_vm2, %v2824_v9  ;;  %v1013_v34 = vmax.f32 %v168_v24, %v645_v44  ;;  %v2052_v39 = vmax.f32 %v1846_v52, %v645_v44  ;;  %v646_v4 = vrot.slane %v170_v2, 1 }
 0x1b5   :  { %2999 = vst.msk [vmem:[%s5623_s1 + $0x458] sm:$0xf] %vm2862_vm3, %v2821_v12  ;;  %v2047_v25 = vmax.f32 %v1841_v41, %v5130_v62  ;;  %v1306_v45 = vsel %vm1037_vm1, %v1304_v18, %v1305_v32  ;;  %v1307_v20 = vrot.slane %v170_v2, 2  ;;  %v2628_v55 = vmax.f32 %v2422_v28, %v645_v44 }
 0x1b6   :  { %v1674_v7 = vmax.f32 %v1013_v34, %v1306_v45  ;;  %v2250_v17 = vmax.f32 %v2052_v39, %v1306_v45  ;;  %v2423_v10 = vmax.f32 %v2247_v11, %v169_v59  ;;  %v647_v43 = vsel %vm376_vm0, %v644_v13, %v646_v4 }
 0x1b7   :  { %v2245_v29 = vmax.f32 %v2047_v25, %v5136_v33  ;;  %v1308_v5 = vsel %vm1037_vm1, %v1305_v32, %v1307_v20  ;;  %v5236_v37 = vrot.slane %v5221_v8, 1  ;;  %v2826_v56 = vmax.f32 %v2628_v55, %v1306_v45  ;;  %v5280_v32 = vld [vmem:[%s5622_s0 + $0x538] sm:$0x3f]  ;;  %v176_v25 = vld [vmem:[%s5622_s0 + $0x540] sm:$0xff] }
 0x1b8   :  { %v1850_v31 = vmax.f32 %v1674_v7, %v172_v51  ;;  %v1014_v58 = vmax.f32 %v169_v59, %v647_v43  ;;  %v2053_v1 = vmax.f32 %v1847_v3, %v647_v43  ;;  %v2629_v60 = vmax.f32 %v2423_v10, %v647_v43 }
 0x1b9   :  { %v2421_v15 = vmax.f32 %v2245_v29, %v5174_v46  ;;  %v649_v40 = vsel %vm376_vm0, %v646_v4, %v5236_v37  ;;  %v5242_v24 = vrot.slane %v5221_v8, 2  ;;  %3004 = vst.msk [vmem:[%s5623_s1 + $0x480] sm:$0xff] %vm2858_vm2, %v2826_v56  ;;  %v2424_v11 = vmax.f32 %v2248_v23, %v170_v2 }
 0x1ba   :  { %v1675_v27 = vmax.f32 %v1014_v58, %v1308_v5  ;;  %v2251_v49 = vmax.f32 %v2053_v1, %v1308_v5  ;;  %v1015_v48 = vmax.f32 %v170_v2, %v649_v40  ;;  %v2054_v6 = vmax.f32 %v1848_v50, %v649_v40 }
 0x1bb   :  { %v2627_v52 = vmax.f32 %v2421_v15, %v5183_v47  ;;  %v2827_v14 = vmax.f32 %v2629_v60, %v1308_v5  ;;  %v1310_v59 = vsel %vm1037_vm1, %v1307_v20, %v5242_v24  ;;  %v1008_v19 = vmax.f32 %v5115_v42, %v5130_v62 }
 0x1bc   :  { %v1851_v35 = vmax.f32 %v1675_v27, %v173_v38  ;;  %v1676_v21 = vmax.f32 %v1015_v48, %v1310_v59  ;;  %v2252_v3 = vmax.f32 %v2054_v6, %v1310_v59  ;;  %v2630_v30 = vmax.f32 %v2424_v11, %v649_v40 }
 0x1bd   :  { %v2825_v26 = vmax.f32 %v2627_v52, %v5193_v16  ;;  %3005 = vst.msk [vmem:[%s5623_s1 + $0x488] sm:$0xff] %vm2858_vm2, %v2827_v14  ;;  %v650_v63 = vrot.slane %v172_v51, 1  ;;  %v651_v61 = vrot.slane %v173_v38, 1  ;;  %v1669_v0 = vmax.f32 %v1008_v19, %v5136_v33 }
 0x1be   :  { %v1852_v57 = vmax.f32 %v1676_v21, %v174_v54  ;;  %v1311_v53 = vrot.slane %v172_v51, 2  ;;  %v1312_v22 = vrot.slane %v173_v38, 2  ;;  %v2828_v42 = vmax.f32 %v2630_v30, %v1310_v59 }
 0x1bf   :  { %3003 = vst.msk [vmem:[%s5623_s1 + $0x478] sm:$0xf] %vm2862_vm3, %v2825_v26  ;;  %v652_v62 = vsel %vm376_vm0, %v650_v63, %v651_v61  ;;  %v2426_v13 = vmax.f32 %v2250_v17, %v172_v51  ;;  %v653_v2 = vrot.slane %v174_v54, 1  ;;  %v1845_v36 = vmax.f32 %v1669_v0, %v5174_v46 }
 0x1c0   :  { %v1017_v23 = vmax.f32 %v172_v51, %v652_v62  ;;  %v1313_v9 = vsel %vm1037_vm1, %v1311_v53, %v1312_v22  ;;  %v2056_v18 = vmax.f32 %v1850_v31, %v652_v62  ;;  %3006 = vst.msk [vmem:[%s5623_s1 + $0x490] sm:$0xff] %vm2858_vm2, %v2828_v42  ;;  %v1314_v41 = vrot.slane %v174_v54, 2  ;;  %v177_v51 = vld [vmem:[%s5622_s0 + $0x548] sm:$0xff] }
 0x1c1   :  { %v2632_v33 = vmax.f32 %v2426_v13, %v652_v62  ;;  %v654_v12 = vsel %vm376_vm0, %v651_v61, %v653_v2  ;;  %v2427_v44 = vmax.f32 %v2251_v49, %v173_v38  ;;  %v2051_v50 = vmax.f32 %v1845_v36, %v5183_v47  ;;  %v5327_v61 = vld [vmem:[%s5622_s0 + $0x558] sm:$0x3f] }
 0x1c2   :  { %v1678_v34 = vmax.f32 %v1017_v23, %v1313_v9  ;;  %v2254_v39 = vmax.f32 %v2056_v18, %v1313_v9  ;;  %v1018_v28 = vmax.f32 %v173_v38, %v654_v12  ;;  %v1315_v4 = vsel %vm1037_vm1, %v1312_v22, %v1314_v41  ;;  %v180_v23 = vld [vmem:[%s5622_s0 + $0x560] sm:$0xff] }
 0x1c3   :  { %v2830_v45 = vmax.f32 %v2632_v33, %v1313_v9  ;;  %v2057_v20 = vmax.f32 %v1851_v35, %v654_v12  ;;  %v2633_v7 = vmax.f32 %v2427_v44, %v654_v12  ;;  %v2249_v17 = vmax.f32 %v2051_v50, %v5193_v16 }
 0x1c4   :  { %v1854_v55 = vmax.f32 %v1678_v34, %v176_v25  ;;  %v1679_v10 = vmax.f32 %v1018_v28, %v1315_v4  ;;  %v5289_v29 = vrot.slane %v5280_v32, 1  ;;  %v5299_v31 = vrot.slane %v5280_v32, 2 }
 0x1c5   :  { %3008 = vst.msk [vmem:[%s5623_s1 + $0x4a0] sm:$0xff] %vm2858_vm2, %v2830_v45  ;;  %v2255_v43 = vmax.f32 %v2057_v20, %v1315_v4  ;;  %v2831_v5 = vmax.f32 %v2633_v7, %v1315_v4  ;;  %v2428_v56 = vmax.f32 %v2252_v3, %v174_v54  ;;  %v2425_v58 = vmax.f32 %v2249_v17, %v5221_v8  ;;  %v181_v45 = vld [vmem:[%s5622_s0 + $0x568] sm:$0xff] }
 0x1c6   :  { %v1855_v1 = vmax.f32 %v1679_v10, %v177_v51  ;;  %v656_v15 = vsel %vm376_vm0, %v653_v2, %v5289_v29  ;;  %v1012_v60 = vmax.f32 %v5174_v46, %v5183_v47  ;;  %v1317_v38 = vsel %vm1037_vm1, %v1314_v41, %v5299_v31  ;;  %v178_v46 = vld [vmem:[%s5622_s0 + $0x550] sm:$0xff] }
 0x1c7   :  { %3009 = vst.msk [vmem:[%s5623_s1 + $0x4a8] sm:$0xff] %vm2858_vm2, %v2831_v5  ;;  %v1019_v40 = vmax.f32 %v174_v54, %v656_v15  ;;  %v2058_v27 = vmax.f32 %v1852_v57, %v656_v15  ;;  %v2634_v49 = vmax.f32 %v2428_v56, %v656_v15  ;;  %v2631_v48 = vmax.f32 %v2425_v58, %v5236_v37  ;;  %v182_v56 = vld [vmem:[%s5622_s0 + $0x570] sm:$0xff] }
 0x1c8   :  { %v1673_v6 = vmax.f32 %v1012_v60, %v5193_v16  ;;  %v657_v52 = vrot.slane %v176_v25, 1  ;;  %v658_v14 = vrot.slane %v177_v51, 1  ;;  %v1318_v35 = vrot.slane %v176_v25, 2 }
 0x1c9   :  { %v1680_v47 = vmax.f32 %v1019_v40, %v1317_v38  ;;  %v2256_v59 = vmax.f32 %v2058_v27, %v1317_v38  ;;  %v2832_v11 = vmax.f32 %v2634_v49, %v1317_v38  ;;  %v2829_v54 = vmax.f32 %v2631_v48, %v5242_v24 }
 0x1ca   :  { %v1849_v21 = vmax.f32 %v1673_v6, %v5221_v8  ;;  %v659_v3 = vsel %vm376_vm0, %v657_v52, %v658_v14  ;;  %v1319_v19 = vrot.slane %v177_v51, 2  ;;  %v2430_v63 = vmax.f32 %v2254_v39, %v176_v25 }
 0x1cb   :  { %v1856_v26 = vmax.f32 %v1680_v47, %v178_v46  ;;  %3010 = vst.msk [vmem:[%s5623_s1 + $0x4b0] sm:$0xff] %vm2858_vm2, %v2832_v11  ;;  %v1021_v16 = vmax.f32 %v176_v25, %v659_v3  ;;  %v2060_v30 = vmax.f32 %v1854_v55, %v659_v3  ;;  %v660_v53 = vrot.slane %v178_v46, 1 }
 0x1cc   :  { %3007 = vst.msk [vmem:[%s5623_s1 + $0x498] sm:$0xf] %vm2862_vm3, %v2829_v54  ;;  %v2055_v57 = vmax.f32 %v1849_v21, %v5236_v37  ;;  %v1320_v0 = vsel %vm1037_vm1, %v1318_v35, %v1319_v19  ;;  %v1321_v22 = vrot.slane %v178_v46, 2  ;;  %v2636_v13 = vmax.f32 %v2430_v63, %v659_v3 }
 0x1cd   :  { %v1682_v42 = vmax.f32 %v1021_v16, %v1320_v0  ;;  %v2258_v62 = vmax.f32 %v2060_v30, %v1320_v0  ;;  %v2431_v2 = vmax.f32 %v2255_v43, %v177_v51  ;;  %v661_v9 = vsel %vm376_vm0, %v658_v14, %v660_v53 }
 0x1ce   :  { %v2253_v36 = vmax.f32 %v2055_v57, %v5242_v24  ;;  %v1322_v18 = vsel %vm1037_vm1, %v1319_v19, %v1321_v22  ;;  %v5342_v33 = vrot.slane %v5327_v61, 1  ;;  %v2834_v41 = vmax.f32 %v2636_v13, %v1320_v0  ;;  %v5386_v19 = vld [vmem:[%s5622_s0 + $0x578] sm:$0x3f]  ;;  %v184_v57 = vld [vmem:[%s5622_s0 + $0x580] sm:$0xff] }
 0x1cf   :  { %v1858_v12 = vmax.f32 %v1682_v42, %v180_v23  ;;  %v1022_v44 = vmax.f32 %v177_v51, %v661_v9  ;;  %v2061_v50 = vmax.f32 %v1855_v1, %v661_v9  ;;  %v2637_v39 = vmax.f32 %v2431_v2, %v661_v9 }
 0x1d0   :  { %v2429_v34 = vmax.f32 %v2253_v36, %v5280_v32  ;;  %v663_v28 = vsel %vm376_vm0, %v660_v53, %v5342_v33  ;;  %v5348_v25 = vrot.slane %v5327_v61, 2  ;;  %3012 = vst.msk [vmem:[%s5623_s1 + $0x4c0] sm:$0xff] %vm2858_vm2, %v2834_v41  ;;  %v2432_v43 = vmax.f32 %v2256_v59, %v178_v46 }
 0x1d1   :  { %v1683_v4 = vmax.f32 %v1022_v44, %v1322_v18  ;;  %v2259_v20 = vmax.f32 %v2061_v50, %v1322_v18  ;;  %v1023_v7 = vmax.f32 %v178_v46, %v663_v28  ;;  %v2062_v17 = vmax.f32 %v1856_v26, %v663_v28 }
 0x1d2   :  { %v2635_v55 = vmax.f32 %v2429_v34, %v5289_v29  ;;  %v2835_v10 = vmax.f32 %v2637_v39, %v1322_v18  ;;  %v1324_v51 = vsel %vm1037_vm1, %v1321_v22, %v5348_v25  ;;  %v1016_v15 = vmax.f32 %v5221_v8, %v5236_v37 }
 0x1d3   :  { %v1859_v5 = vmax.f32 %v1683_v4, %v181_v45  ;;  %v1684_v58 = vmax.f32 %v1023_v7, %v1324_v51  ;;  %v2260_v1 = vmax.f32 %v2062_v17, %v1324_v51  ;;  %v2638_v40 = vmax.f32 %v2432_v43, %v663_v28 }
 0x1d4   :  { %v2833_v60 = vmax.f32 %v2635_v55, %v5299_v31  ;;  %3013 = vst.msk [vmem:[%s5623_s1 + $0x4c8] sm:$0xff] %vm2858_vm2, %v2835_v10  ;;  %v664_v38 = vrot.slane %v180_v23, 1  ;;  %v665_v27 = vrot.slane %v181_v45, 1  ;;  %v1677_v48 = vmax.f32 %v1016_v15, %v5242_v24 }
 0x1d5   :  { %v1860_v49 = vmax.f32 %v1684_v58, %v182_v56  ;;  %v1325_v6 = vrot.slane %v180_v23, 2  ;;  %v1326_v52 = vrot.slane %v181_v45, 2  ;;  %v2836_v8 = vmax.f32 %v2638_v40, %v1324_v51 }
 0x1d6   :  { %3011 = vst.msk [vmem:[%s5623_s1 + $0x4b8] sm:$0xf] %vm2862_vm3, %v2833_v60  ;;  %v666_v37 = vsel %vm376_vm0, %v664_v38, %v665_v27  ;;  %v2434_v14 = vmax.f32 %v2258_v62, %v180_v23  ;;  %v667_v46 = vrot.slane %v182_v56, 1  ;;  %v1853_v47 = vmax.f32 %v1677_v48, %v5280_v32 }
 0x1d7   :  { %v1025_v59 = vmax.f32 %v180_v23, %v666_v37  ;;  %v1327_v11 = vsel %vm1037_vm1, %v1325_v6, %v1326_v52  ;;  %v2064_v35 = vmax.f32 %v1858_v12, %v666_v37  ;;  %3014 = vst.msk [vmem:[%s5623_s1 + $0x4d0] sm:$0xff] %vm2858_vm2, %v2836_v8  ;;  %v1328_v21 = vrot.slane %v182_v56, 2  ;;  %v185_v23 = vld [vmem:[%s5622_s0 + $0x588] sm:$0xff] }
 0x1d8   :  { %v2640_v24 = vmax.f32 %v2434_v14, %v666_v37  ;;  %v668_v54 = vsel %vm376_vm0, %v665_v27, %v667_v46  ;;  %v2435_v3 = vmax.f32 %v2259_v20, %v181_v45  ;;  %v2059_v26 = vmax.f32 %v1853_v47, %v5289_v29  ;;  %v5433_v27 = vld [vmem:[%s5622_s0 + $0x598] sm:$0x3f] }
 0x1d9   :  { %v1686_v16 = vmax.f32 %v1025_v59, %v1327_v11  ;;  %v2262_v30 = vmax.f32 %v2064_v35, %v1327_v11  ;;  %v1026_v63 = vmax.f32 %v181_v45, %v668_v54  ;;  %v1329_v53 = vsel %vm1037_vm1, %v1326_v52, %v1328_v21  ;;  %v188_v59 = vld [vmem:[%s5622_s0 + $0x5a0] sm:$0xff] }
 0x1da   :  { %v2838_v0 = vmax.f32 %v2640_v24, %v1327_v11  ;;  %v2065_v22 = vmax.f32 %v1859_v5, %v668_v54  ;;  %v2641_v42 = vmax.f32 %v2435_v3, %v668_v54  ;;  %v2257_v62 = vmax.f32 %v2059_v26, %v5299_v31 }
 0x1db   :  { %v1862_v13 = vmax.f32 %v1686_v16, %v184_v57  ;;  %v1687_v2 = vmax.f32 %v1026_v63, %v1329_v53  ;;  %v5395_v36 = vrot.slane %v5386_v19, 1  ;;  %v5405_v12 = vrot.slane %v5386_v19, 2 }
 0x1dc   :  { %3016 = vst.msk [vmem:[%s5623_s1 + $0x4e0] sm:$0xff] %vm2858_vm2, %v2838_v0  ;;  %v2263_v9 = vmax.f32 %v2065_v22, %v1329_v53  ;;  %v2839_v18 = vmax.f32 %v2641_v42, %v1329_v53  ;;  %v2436_v41 = vmax.f32 %v2260_v1, %v182_v56  ;;  %v2433_v44 = vmax.f32 %v2257_v62, %v5327_v61  ;;  %v189_v0 = vld [vmem:[%s5622_s0 + $0x5a8] sm:$0xff] }
 0x1dd   :  { %v1863_v50 = vmax.f32 %v1687_v2, %v185_v23  ;;  %v670_v34 = vsel %vm376_vm0, %v667_v46, %v5395_v36  ;;  %v1020_v39 = vmax.f32 %v5280_v32, %v5289_v29  ;;  %v1331_v45 = vsel %vm1037_vm1, %v1328_v21, %v5405_v12  ;;  %v186_v32 = vld [vmem:[%s5622_s0 + $0x590] sm:$0xff] }
 0x1de   :  { %3017 = vst.msk [vmem:[%s5623_s1 + $0x4e8] sm:$0xff] %vm2858_vm2, %v2839_v18  ;;  %v1027_v28 = vmax.f32 %v182_v56, %v670_v34  ;;  %v2066_v4 = vmax.f32 %v1860_v49, %v670_v34  ;;  %v2642_v20 = vmax.f32 %v2436_v41, %v670_v34  ;;  %v2639_v7 = vmax.f32 %v2433_v44, %v5342_v33  ;;  %v190_v41 = vld [vmem:[%s5622_s0 + $0x5b0] sm:$0xff] }
 0x1df   :  { %v1681_v17 = vmax.f32 %v1020_v39, %v5299_v31  ;;  %v671_v55 = vrot.slane %v184_v57, 1  ;;  %v672_v10 = vrot.slane %v185_v23, 1  ;;  %v1332_v5 = vrot.slane %v184_v57, 2 }
 0x1e0   :  { %v1688_v29 = vmax.f32 %v1027_v28, %v1331_v45  ;;  %v2264_v51 = vmax.f32 %v2066_v4, %v1331_v45  ;;  %v2840_v43 = vmax.f32 %v2642_v20, %v1331_v45  ;;  %v2837_v56 = vmax.f32 %v2639_v7, %v5348_v25 }
 0x1e1   :  { %v1857_v58 = vmax.f32 %v1681_v17, %v5327_v61  ;;  %v673_v1 = vsel %vm376_vm0, %v671_v55, %v672_v10  ;;  %v1333_v15 = vrot.slane %v185_v23, 2  ;;  %v2438_v38 = vmax.f32 %v2262_v30, %v184_v57 }
 0x1e2   :  { %v1864_v60 = vmax.f32 %v1688_v29, %v186_v32  ;;  %3018 = vst.msk [vmem:[%s5623_s1 + $0x4f0] sm:$0xff] %vm2858_vm2, %v2840_v43  ;;  %v1029_v31 = vmax.f32 %v184_v57, %v673_v1  ;;  %v2068_v40 = vmax.f32 %v1862_v13, %v673_v1  ;;  %v674_v6 = vrot.slane %v186_v32, 1 }
 0x1e3   :  { %3015 = vst.msk [vmem:[%s5623_s1 + $0x4d8] sm:$0xf] %vm2862_vm3, %v2837_v56  ;;  %v2063_v49 = vmax.f32 %v1857_v58, %v5342_v33  ;;  %v1334_v48 = vsel %vm1037_vm1, %v1332_v5, %v1333_v15  ;;  %v1335_v52 = vrot.slane %v186_v32, 2  ;;  %v2644_v14 = vmax.f32 %v2438_v38, %v673_v1 }
 0x1e4   :  { %v1690_v8 = vmax.f32 %v1029_v31, %v1334_v48  ;;  %v2266_v37 = vmax.f32 %v2068_v40, %v1334_v48  ;;  %v2439_v46 = vmax.f32 %v2263_v9, %v185_v23  ;;  %v675_v11 = vsel %vm376_vm0, %v672_v10, %v674_v6 }
 0x1e5   :  { %v2261_v47 = vmax.f32 %v2063_v49, %v5348_v25  ;;  %v1336_v35 = vsel %vm1037_vm1, %v1333_v15, %v1335_v52  ;;  %v5448_v24 = vrot.slane %v5433_v27, 1  ;;  %v2842_v21 = vmax.f32 %v2644_v14, %v1334_v48  ;;  %v5492_v15 = vld [vmem:[%s5622_s0 + $0x5b8] sm:$0x3f] }
 0x1e6   :  { %v1866_v54 = vmax.f32 %v1690_v8, %v188_v59  ;;  %v1030_v3 = vmax.f32 %v185_v23, %v675_v11  ;;  %v2069_v26 = vmax.f32 %v1863_v50, %v675_v11  ;;  %v2645_v30 = vmax.f32 %v2439_v46, %v675_v11  ;;  %v192_v8 = vld [vmem:[%s5622_s0 + $0x5c0] sm:$0xff] }
 0x1e7   :  { %v2437_v16 = vmax.f32 %v2261_v47, %v5386_v19  ;;  %v677_v63 = vsel %vm376_vm0, %v674_v6, %v5448_v24  ;;  %v5454_v57 = vrot.slane %v5433_v27, 2  ;;  %3020 = vst.msk [vmem:[%s5623_s1 + $0x500] sm:$0xff] %vm2858_vm2, %v2842_v21  ;;  %v2440_v9 = vmax.f32 %v2264_v51, %v186_v32  ;;  %v193_v21 = vld [vmem:[%s5622_s0 + $0x5c8] sm:$0xff] }
 0x1e8   :  { %v1691_v53 = vmax.f32 %v1030_v3, %v1336_v35  ;;  %v2267_v22 = vmax.f32 %v2069_v26, %v1336_v35  ;;  %v1031_v42 = vmax.f32 %v186_v32, %v677_v63  ;;  %v2070_v62 = vmax.f32 %v1864_v60, %v677_v63 }
 0x1e9   :  { %v2643_v13 = vmax.f32 %v2437_v16, %v5395_v36  ;;  %v2843_v2 = vmax.f32 %v2645_v30, %v1336_v35  ;;  %v1338_v23 = vsel %vm1037_vm1, %v1335_v52, %v5454_v57  ;;  %v1024_v34 = vmax.f32 %v5327_v61, %v5342_v33 }
 0x1ea   :  { %v1867_v18 = vmax.f32 %v1691_v53, %v189_v0  ;;  %v1692_v44 = vmax.f32 %v1031_v42, %v1338_v23  ;;  %v2268_v50 = vmax.f32 %v2070_v62, %v1338_v23  ;;  %v2646_v28 = vmax.f32 %v2440_v9, %v677_v63 }
 0x1eb   :  { %v2841_v39 = vmax.f32 %v2643_v13, %v5405_v12  ;;  %3021 = vst.msk [vmem:[%s5623_s1 + $0x508] sm:$0xff] %vm2858_vm2, %v2843_v2  ;;  %v678_v45 = vrot.slane %v188_v59, 1  ;;  %v679_v4 = vrot.slane %v189_v0, 1  ;;  %v1685_v7 = vmax.f32 %v1024_v34, %v5348_v25  ;;  %v194_v13 = vld [vmem:[%s5622_s0 + $0x5d0] sm:$0xff] }
 0x1ec   :  { %v1868_v20 = vmax.f32 %v1692_v44, %v190_v41  ;;  %v1339_v17 = vrot.slane %v188_v59, 2  ;;  %v1340_v55 = vrot.slane %v189_v0, 2  ;;  %v2844_v61 = vmax.f32 %v2646_v28, %v1338_v23 }
 0x1ed   :  { %3019 = vst.msk [vmem:[%s5623_s1 + $0x4f8] sm:$0xf] %vm2862_vm3, %v2841_v39  ;;  %v680_v33 = vsel %vm376_vm0, %v678_v45, %v679_v4  ;;  %v2442_v10 = vmax.f32 %v2266_v37, %v188_v59  ;;  %v681_v32 = vrot.slane %v190_v41, 1  ;;  %v1861_v29 = vmax.f32 %v1685_v7, %v5386_v19 }
 0x1ee   :  { %v1033_v51 = vmax.f32 %v188_v59, %v680_v33  ;;  %v1341_v43 = vsel %vm1037_vm1, %v1339_v17, %v1340_v55  ;;  %v2072_v5 = vmax.f32 %v1866_v54, %v680_v33  ;;  %3022 = vst.msk [vmem:[%s5623_s1 + $0x510] sm:$0xff] %vm2858_vm2, %v2844_v61  ;;  %v1342_v58 = vrot.slane %v190_v41, 2 }
 0x1ef   :  { %v2648_v25 = vmax.f32 %v2442_v10, %v680_v33  ;;  %v682_v56 = vsel %vm376_vm0, %v679_v4, %v681_v32  ;;  %v2443_v1 = vmax.f32 %v2267_v22, %v189_v0  ;;  %v2067_v60 = vmax.f32 %v1861_v29, %v5395_v36  ;;  %v196_v29 = vld [vmem:[%s5622_s0 + $0x5e0] sm:$0xff] }
 0x1f0   :  { %v1694_v31 = vmax.f32 %v1033_v51, %v1341_v43  ;;  %v2270_v40 = vmax.f32 %v2072_v5, %v1341_v43  ;;  %v1034_v38 = vmax.f32 %v189_v0, %v682_v56  ;;  %v1343_v48 = vsel %vm1037_vm1, %v1340_v55, %v1342_v58  ;;  %v5545_v55 = vld [vmem:[%s5622_s0 + $0x5d8] sm:$0x3f] }
 0x1f1   :  { %v2846_v49 = vmax.f32 %v2648_v25, %v1341_v43  ;;  %v2073_v6 = vmax.f32 %v1867_v18, %v682_v56  ;;  %v2649_v52 = vmax.f32 %v2443_v1, %v682_v56  ;;  %v2265_v37 = vmax.f32 %v2067_v60, %v5405_v12 }
 0x1f2   :  { %v1695_v14 = vmax.f32 %v1034_v38, %v1343_v48  ;;  %v5501_v46 = vrot.slane %v5492_v15, 1  ;;  %v5504_v47 = vrot.slane %v5492_v15, 2  ;;  %v2444_v35 = vmax.f32 %v2268_v50, %v190_v41 }
 0x1f3   :  { %3024 = vst.msk [vmem:[%s5623_s1 + $0x520] sm:$0xff] %vm2858_vm2, %v2846_v49  ;;  %v2271_v59 = vmax.f32 %v2073_v6, %v1343_v48  ;;  %v2847_v11 = vmax.f32 %v2649_v52, %v1343_v48  ;;  %v1028_v54 = vmax.f32 %v5386_v19, %v5395_v36  ;;  %v2441_v3 = vmax.f32 %v2265_v37, %v5433_v27 }
 0x1f4   :  { %v684_v26 = vsel %vm376_vm0, %v681_v32, %v5501_v46  ;;  %v1345_v16 = vsel %vm1037_vm1, %v1342_v58, %v5504_v47  ;;  %v1870_v30 = vmax.f32 %v1694_v31, %v192_v8  ;;  %v1889_v22 = vrot.slane %v192_v8, 1  ;;  %v197_v31 = vld [vmem:[%s5622_s0 + $0x5e8] sm:$0xff] }
 0x1f5   :  { %3025 = vst.msk [vmem:[%s5623_s1 + $0x528] sm:$0xff] %vm2858_vm2, %v2847_v11  ;;  %v1035_v63 = vmax.f32 %v190_v41, %v684_v26  ;;  %v2074_v19 = vmax.f32 %v1868_v20, %v684_v26  ;;  %v2650_v36 = vmax.f32 %v2444_v35, %v684_v26  ;;  %v1689_v0 = vmax.f32 %v1028_v54, %v5405_v12  ;;  %v199_v26 = vld [vmem:[%s5622_s0 + $0x5f8] sm:$0x3f] }
 0x1f6   :  { %v2647_v53 = vmax.f32 %v2441_v3, %v5448_v24  ;;  %v1890_v42 = vrot.slane %v193_v21, 1  ;;  %v2087_v62 = vrot.slane %v192_v8, 2  ;;  %v2088_v50 = vrot.slane %v193_v21, 2 }
 0x1f7   :  { %v1696_v2 = vmax.f32 %v1035_v63, %v1345_v16  ;;  %v2272_v23 = vmax.f32 %v2074_v19, %v1345_v16  ;;  %v2848_v9 = vmax.f32 %v2650_v36, %v1345_v16  ;;  %v1865_v18 = vmax.f32 %v1689_v0, %v5433_v27 }
 0x1f8   :  { %v2845_v41 = vmax.f32 %v2647_v53, %v5454_v57  ;;  %v1891_v44 = vsel %vm376_vm0, %v1889_v22, %v1890_v42  ;;  %v2446_v12 = vmax.f32 %v2270_v40, %v192_v8  ;;  %v1871_v28 = vmax.f32 %v1695_v14, %v193_v21 }
 0x1f9   :  { %3026 = vst.msk [vmem:[%s5623_s1 + $0x530] sm:$0xff] %vm2858_vm2, %v2848_v9  ;;  %v2071_v34 = vmax.f32 %v1865_v18, %v5448_v24  ;;  %v2076_v39 = vmax.f32 %v1870_v30, %v1891_v44  ;;  %v1892_v45 = vrot.slane %v194_v13, 1  ;;  %v2089_v4 = vsel %vm1037_vm1, %v2087_v62, %v2088_v50 }
 0x1fa   :  { %3023 = vst.msk [vmem:[%s5623_s1 + $0x518] sm:$0xf] %vm2862_vm3, %v2845_v41  ;;  %v2652_v20 = vmax.f32 %v2446_v12, %v1891_v44  ;;  %v2090_v7 = vrot.slane %v194_v13, 2  ;;  %v2447_v17 = vmax.f32 %v2271_v59, %v193_v21  ;;  %v1872_v32 = vmax.f32 %v1696_v2, %v194_v13 }
 0x1fb   :  { %v2269_v61 = vmax.f32 %v2071_v34, %v5454_v57  ;;  %v2274_v33 = vmax.f32 %v2076_v39, %v2089_v4  ;;  %v1893_v10 = vsel %vm376_vm0, %v1890_v42, %v1892_v45  ;;  %v1894_v58 = vrot.slane %v5545_v55, 1 }
 0x1fc   :  { %v2850_v51 = vmax.f32 %v2652_v20, %v2089_v4  ;;  %v2077_v43 = vmax.f32 %v1871_v28, %v1893_v10  ;;  %v2091_v5 = vsel %vm1037_vm1, %v2088_v50, %v2090_v7  ;;  %v2653_v25 = vmax.f32 %v2447_v17, %v1893_v10 }
 0x1fd   :  { %v2445_v56 = vmax.f32 %v2269_v61, %v5492_v15  ;;  %v2092_v1 = vrot.slane %v5545_v55, 2  ;;  %v2448_v60 = vmax.f32 %v2272_v23, %v194_v13  ;;  %v1032_v49 = vmax.f32 %v5433_v27, %v5448_v24  ;;  %v198_v27 = vld [vmem:[%s5622_s0 + $0x5f0] sm:$0xff] }
 0x1fe   :  { %3028 = vst.msk [vmem:[%s5623_s1 + $0x540] sm:$0xff] %vm2858_vm2, %v2850_v51  ;;  %v2275_v40 = vmax.f32 %v2077_v43, %v2091_v5  ;;  %v2851_v38 = vmax.f32 %v2653_v25, %v2091_v5  ;;  %v2450_v48 = vmax.f32 %v2274_v33, %v196_v29  ;;  %v1895_v52 = vsel %vm376_vm0, %v1892_v45, %v1894_v58 }
 0x1ff   :  { %v2651_v6 = vmax.f32 %v2445_v56, %v5501_v46  ;;  %v2093_v8 = vsel %vm1037_vm1, %v2090_v7, %v2092_v1  ;;  %v2469_v37 = vrot.slane %v196_v29, 1  ;;  %v2078_v14 = vmax.f32 %v1872_v32, %v1895_v52 }
 0x200   :  { %3029 = vst.msk [vmem:[%s5623_s1 + $0x548] sm:$0xff] %vm2858_vm2, %v2851_v38  ;;  %v2654_v59 = vmax.f32 %v2448_v60, %v1895_v52  ;;  %v1693_v11 = vmax.f32 %v1032_v49, %v5454_v57  ;;  %v2470_v35 = vrot.slane %v197_v31, 1  ;;  %v2667_v54 = vrot.slane %v196_v29, 2 }
 0x201   :  { %v2849_v24 = vmax.f32 %v2651_v6, %v5504_v47  ;;  %v2668_v21 = vrot.slane %v197_v31, 2  ;;  %v2451_v3 = vmax.f32 %v2275_v40, %v197_v31  ;;  %v2276_v16 = vmax.f32 %v2078_v14, %v2093_v8 }
 0x202   :  { %v2852_v30 = vmax.f32 %v2654_v59, %v2093_v8  ;;  %v1869_v63 = vmax.f32 %v1693_v11, %v5492_v15  ;;  %v2471_v57 = vsel %vm376_vm0, %v2469_v37, %v2470_v35  ;;  %v2472_v0 = vrot.slane %v198_v27, 1 }
 0x203   :  { %3027 = vst.msk [vmem:[%s5623_s1 + $0x538] sm:$0xf] %vm2862_vm3, %v2849_v24  ;;  %v2656_v19 = vmax.f32 %v2450_v48, %v2471_v57  ;;  %v2669_v36 = vsel %vm1037_vm1, %v2667_v54, %v2668_v21  ;;  %v2670_v53 = vrot.slane %v198_v27, 2  ;;  %v2452_v42 = vmax.f32 %v2276_v16, %v198_v27 }
 0x204   :  { %3030 = vst.msk [vmem:[%s5623_s1 + $0x550] sm:$0xff] %vm2858_vm2, %v2852_v30  ;;  %v2075_v22 = vmax.f32 %v1869_v63, %v5501_v46  ;;  %v2474_v62 = vrot.slane %v199_v26, 1  ;;  %v2672_v13 = vrot.slane %v199_v26, 2  ;;  %v2473_v23 = vsel %vm376_vm0, %v2470_v35, %v2472_v0 }
 0x205   :  { %v2854_v2 = vmax.f32 %v2656_v19, %v2669_v36  ;;  %v2671_v9 = vsel %vm1037_vm1, %v2668_v21, %v2670_v53  ;;  %v1036_v18 = vmax.f32 %v5492_v15, %v5501_v46  ;;  %v2657_v44 = vmax.f32 %v2451_v3, %v2473_v23 }
 0x206   :  { %v2273_v41 = vmax.f32 %v2075_v22, %v5504_v47  ;;  %v2475_v50 = vsel %vm376_vm0, %v2472_v0, %v2474_v62  ;;  %v2673_v12 = vsel %vm1037_vm1, %v2670_v53, %v2672_v13 }
 0x207   :  { %3032 = vst.msk [vmem:[%s5623_s1 + $0x560] sm:$0xff] %vm2858_vm2, %v2854_v2  ;;  %v2658_v34 = vmax.f32 %v2452_v42, %v2475_v50  ;;  %v1697_v39 = vmax.f32 %v1036_v18, %v5504_v47  ;;  %v2855_v45 = vmax.f32 %v2657_v44, %v2671_v9 }
 0x208   :  { %v2449_v28 = vmax.f32 %v2273_v41, %v5545_v55 }
 0x209   :  { %v2856_v4 = vmax.f32 %v2658_v34, %v2673_v12  ;;  %v1873_v15 = vmax.f32 %v1697_v39, %v5545_v55  ;;  %3033 = vst.msk [vmem:[%s5623_s1 + $0x568] sm:$0xff] %vm2858_vm2, %v2855_v45 }
 0x20a   :  { %v2655_v46 = vmax.f32 %v2449_v28, %v1894_v58 }
 0x20b   :  { %3034 = vst.msk [vmem:[%s5623_s1 + $0x570] sm:$0xff] %vm2858_vm2, %v2856_v4  ;;  %v2079_v20 = vmax.f32 %v1873_v15, %v1894_v58 }
 0x20c   :  { %v2853_v7 = vmax.f32 %v2655_v46, %v2092_v1 }
 0x20d   :  { %v2277_v47 = vmax.f32 %v2079_v20, %v2092_v1 }
 0x20e   :  { %3031 = vst.msk [vmem:[%s5623_s1 + $0x558] sm:$0xf] %vm2862_vm3, %v2853_v7 }
 0x20f   :  { %v2453_v17 = vmax.f32 %v2277_v47, %v199_v26 }
 0x211   :  { %v2659_v55 = vmax.f32 %v2453_v17, %v2474_v62 }
 0x213   :  { %v2857_v61 = vmax.f32 %v2659_v55, %v2672_v13 }
 0x215   :  { %3035 = vst.msk [vmem:[%s5623_s1 + $0x578] sm:$0xf] %vm2862_vm3, %v2857_v61 }

// kernel: actor_forward.10
= control target key start
LH: loop header
LB: loop body
LE: loop exit
PB: predicated region body
PF: predicated region fallthrough
CT: control target
= control target key end

     0   :  { %s757_s12 = smov 0   ;;  %s1043_s0 = inlined_call_operand.vmem [shape: f32[1280,256], index: 0, kind: input, shape index: {}]   ;;  %s1044_s1 = inlined_call_operand.vmem [shape: f32[256,128], index: 1, kind: input, shape index: {}]   ;;  %s1045_s2 = inlined_call_operand.vmem [shape: f32[1,128], index: 2, kind: input, shape index: {}]   ;;  %s1046_s3 = inlined_call_operand.vmem [shape: f32[1280,128], index: 3, kind: output, shape index: {}]  }
   0x1 LB: > { %s625_s13 = sadd.s32 4294967295, %s734_s12   ;;  %p629_p0 = scmp.ge.s32.totalorder %s734_s12, 1  ;;  %s734_s12 = sphi %s757_s12, %s13_s12  }
   0x2   : > { %p139_p1 = scmp.lt.s32.totalorder %s734_s12, 6 }
   0x4   : > { %p140_p2 = pnand %p629_p0, %p139_p1 }
   0x5   : > { %v241_v0 = vld [vmem:[%s1044_s1] sm:$0xff] (!%p140_p2)  ;;  %v242_v1 = vld [vmem:[%s1044_s1 + $0x8] sm:$0xff] (!%p140_p2)  ;;  %v243_v2 = vld [vmem:[%s1044_s1 + $0x10] sm:$0xff] (!%p140_p2)  ;;  %s630_s20 = sshll.u32 (!%p140_p2), %s625_s13, 5  ;;  %v736_v3 = vmov (!%p140_p2), 0.0|0.0  }
   0x6   : > { %143 = sbr.rel (%p140_p2) target bundleno = 348 (0x15c), region = 32  ;;  %639 = vmatprep.subr.bf16.mxu0 (!%p140_p2), %v736_v3  ;;  %687 = vmatprep.subr.bf16.mxu1 (!%p140_p2), %v736_v3  ;;  %v640_v4 = vpack.c.bf16 (!%p140_p2), %v242_v1, %v241_v0  ;;  %v244_v5 = vld [vmem:[%s1044_s1 + $0x18] sm:$0xff] (!%p140_p2)  ;;  %p165_p3 = scmp.lt.s32.totalorder (!%p140_p2), %s630_s20, 159  ;;  %v245_v7 = vld [vmem:[%s1044_s1 + $0x20] sm:$0xff] (!%p140_p2)  ;;  %v246_v8 = vld [vmem:[%s1044_s1 + $0x28] sm:$0xff] (!%p140_p2) }
   0x7   : > { %v643_v6 = vpack.c.bf16 (!%p140_p2), %v244_v5, %v243_v2  ;;  %v646_v9 = vpack.c.bf16 (!%p140_p2), %v246_v8, %v245_v7  ;;  %v247_v10 = vld [vmem:[%s1044_s1 + $0x30] sm:$0xff] (!%p140_p2)  ;;  %v248_v11 = vld [vmem:[%s1044_s1 + $0x38] sm:$0xff] (!%p140_p2)  ;;  %v249_v15 = vld [vmem:[%s1044_s1 + $0x40] sm:$0xff] (!%p140_p2) }
   0x8   : > { %641 = vmatpush1.bf16.msra.mxu0 (!%p140_p2), %v640_v4  ;;  %703 = vmatpush1.bf16.msra.mxu1 (!%p140_p2), %v640_v4  ;;  %v649_v13 = vpack.c.bf16 (!%p140_p2), %v248_v11, %v247_v10  ;;  %v250_v16 = vld [vmem:[%s1044_s1 + $0x48] sm:$0xff] (!%p140_p2)  ;;  %v251_v18 = vld [vmem:[%s1044_s1 + $0x50] sm:$0xff] (!%p140_p2)  ;;  %v252_v19 = vld [vmem:[%s1044_s1 + $0x58] sm:$0xff] (!%p140_p2) }
   0x9   : > { %642 = vmatprep.subr.bf16.mxu0 (!%p140_p2), %v736_v3  ;;  %688 = vmatprep.subr.bf16.mxu1 (!%p140_p2), %v736_v3  ;;  %v652_v17 = vpack.c.bf16 (!%p140_p2), %v250_v16, %v249_v15  ;;  %v655_v20 = vpack.c.bf16 (!%p140_p2), %v252_v19, %v251_v18  ;;  %v253_v21 = vld [vmem:[%s1044_s1 + $0x60] sm:$0xff] (!%p140_p2)  ;;  %v254_v22 = vld [vmem:[%s1044_s1 + $0x68] sm:$0xff] (!%p140_p2)  ;;  %v255_v24 = vld [vmem:[%s1044_s1 + $0x70] sm:$0xff] (!%p140_p2) }
   0xa   : > { %v658_v23 = vpack.c.bf16 (!%p140_p2), %v254_v22, %v253_v21  ;;  %v256_v25 = vld [vmem:[%s1044_s1 + $0x78] sm:$0xff] (!%p140_p2)  ;;  %v257_v27 = vld [vmem:[%s1044_s1 + $0x80] sm:$0xff] (!%p140_p2)  ;;  %v258_v28 = vld [vmem:[%s1044_s1 + $0x88] sm:$0xff] (!%p140_p2) }
   0xb   : > { %v661_v26 = vpack.c.bf16 (!%p140_p2), %v256_v25, %v255_v24  ;;  %v664_v29 = vpack.c.bf16 (!%p140_p2), %v258_v28, %v257_v27  ;;  %v259_v30 = vld [vmem:[%s1044_s1 + $0x90] sm:$0xff] (!%p140_p2)  ;;  %v260_v31 = vld [vmem:[%s1044_s1 + $0x98] sm:$0xff] (!%p140_p2)  ;;  %v261_v33 = vld [vmem:[%s1044_s1 + $0xa0] sm:$0xff] (!%p140_p2) }
   0xc   : > { %644 = vmatpush1.bf16.msra.mxu0 (!%p140_p2), %v643_v6  ;;  %704 = vmatpush1.bf16.msra.mxu1 (!%p140_p2), %v643_v6  ;;  %v667_v32 = vpack.c.bf16 (!%p140_p2), %v260_v31, %v259_v30  ;;  %v262_v34 = vld [vmem:[%s1044_s1 + $0xa8] sm:$0xff] (!%p140_p2)  ;;  %v263_v36 = vld [vmem:[%s1044_s1 + $0xb0] sm:$0xff] (!%p140_p2)  ;;  %v264_v37 = vld [vmem:[%s1044_s1 + $0xb8] sm:$0xff] (!%p140_p2) }
   0xd   : > { %s1048_s20 = smov (!%p165_p3, %s630_s20), 159  ;;  %645 = vmatprep.subr.bf16.mxu0 %v736_v3  ;;  %689 = vmatprep.subr.bf16.mxu1 %v736_v3  ;;  %v670_v35 = vpack.c.bf16 %v262_v34, %v261_v33  ;;  %v673_v38 = vpack.c.bf16 %v264_v37, %v263_v36  ;;  %v265_v39 = vld [vmem:[%s1044_s1 + $0xc0] sm:$0xff]  ;;  %v266_v40 = vld [vmem:[%s1044_s1 + $0xc8] sm:$0xff]  ;;  %v267_v42 = vld [vmem:[%s1044_s1 + $0xd0] sm:$0xff] }
   0xe   : > { %s638_s27 = sshll.u32 %s1048_s20, 4  ;;  %v676_v41 = vpack.c.bf16 %v266_v40, %v265_v39  ;;  %v268_v43 = vld [vmem:[%s1044_s1 + $0xd8] sm:$0xff]  ;;  %v269_v45 = vld [vmem:[%s1044_s1 + $0xe0] sm:$0xff]  ;;  %v270_v46 = vld [vmem:[%s1044_s1 + $0xe8] sm:$0xff]  ;;  %s634_s10 = sshll.u32 %s1048_s20, 3 }
   0xf   : > { %s793_s30 = scalar_lea.vmem %s1043_s0, %s638_s27  ;;  %v679_v44 = vpack.c.bf16 %v268_v43, %v267_v42  ;;  %v682_v47 = vpack.c.bf16 %v270_v46, %v269_v45  ;;  %v271_v48 = vld [vmem:[%s1044_s1 + $0xf0] sm:$0xff]  ;;  %v272_v49 = vld [vmem:[%s1044_s1 + $0xf8] sm:$0xff] }
  0x10   : > { %v178_v12 = vld [vmem:[%s793_s30 + $0x8] sm:$0xff]  ;;  %647 = vmatpush1.bf16.msra.mxu0 %v646_v9  ;;  %705 = vmatpush1.bf16.msra.mxu1 %v646_v9  ;;  %v685_v50 = vpack.c.bf16 %v272_v49, %v271_v48  ;;  %v177_v51 = vld [vmem:[%s793_s30] sm:$0xff]  ;;  %v180_v53 = vld [vmem:[%s793_s30 + $0x18] sm:$0xff] }
  0x11   : > { %v210_v14 = vld [vmem:[%s793_s30 + $0x108] sm:$0xff]  ;;  %648 = vmatprep.subr.bf16.mxu0 %v736_v3  ;;  %690 = vmatprep.subr.bf16.mxu1 %v736_v3  ;;  %v209_v52 = vld [vmem:[%s793_s30 + $0x100] sm:$0xff]  ;;  %v212_v54 = vld [vmem:[%s793_s30 + $0x118] sm:$0xff] }
  0x12   : > { %344 = vmatprep.mubr.f32.mxu0 %v178_v12  ;;  %424 = vmatprep.mubr.f32.mxu1 %v210_v14  ;;  %v179_v55 = vld [vmem:[%s793_s30 + $0x10] sm:$0xff]  ;;  %v182_v57 = vld [vmem:[%s793_s30 + $0x28] sm:$0xff]  ;;  %v181_v59 = vld [vmem:[%s793_s30 + $0x20] sm:$0xff] }
  0x13   : > { %v211_v56 = vld [vmem:[%s793_s30 + $0x110] sm:$0xff]  ;;  %v214_v58 = vld [vmem:[%s793_s30 + $0x128] sm:$0xff]  ;;  %v213_v60 = vld [vmem:[%s793_s30 + $0x120] sm:$0xff] }
  0x14   : > { %650 = vmatpush1.bf16.msra.mxu0 %v649_v13  ;;  %706 = vmatpush1.bf16.msra.mxu1 %v649_v13  ;;  %v184_v61 = vld [vmem:[%s793_s30 + $0x38] sm:$0xff]  ;;  %v183_v63 = vld [vmem:[%s793_s30 + $0x30] sm:$0xff]  ;;  %v186_v1 = vld [vmem:[%s793_s30 + $0x48] sm:$0xff] }
  0x15   : > { %651 = vmatprep.subr.bf16.mxu0 %v736_v3  ;;  %691 = vmatprep.subr.bf16.mxu1 %v736_v3  ;;  %v216_v62 = vld [vmem:[%s793_s30 + $0x138] sm:$0xff]  ;;  %v215_v0 = vld [vmem:[%s793_s30 + $0x130] sm:$0xff]  ;;  %v218_v2 = vld [vmem:[%s793_s30 + $0x148] sm:$0xff] }
  0x16   : > { %v217_v4 = vld [vmem:[%s793_s30 + $0x140] sm:$0xff]  ;;  %v188_v5 = vld [vmem:[%s793_s30 + $0x58] sm:$0xff]  ;;  %v187_v7 = vld [vmem:[%s793_s30 + $0x50] sm:$0xff] }
  0x17   : > { %v220_v6 = vld [vmem:[%s793_s30 + $0x158] sm:$0xff]  ;;  %v219_v8 = vld [vmem:[%s793_s30 + $0x150] sm:$0xff]  ;;  %v190_v9 = vld [vmem:[%s793_s30 + $0x68] sm:$0xff] }
  0x18   : > { %653 = vmatpush1.bf16.msra.mxu0 %v652_v17  ;;  %707 = vmatpush1.bf16.msra.mxu1 %v652_v17  ;;  %v222_v10 = vld [vmem:[%s793_s30 + $0x168] sm:$0xff]  ;;  %v189_v11 = vld [vmem:[%s793_s30 + $0x60] sm:$0xff]  ;;  %v192_v13 = vld [vmem:[%s793_s30 + $0x78] sm:$0xff] }
  0x19   : > { %654 = vmatprep.subr.bf16.mxu0 %v736_v3  ;;  %692 = vmatprep.subr.bf16.mxu1 %v736_v3  ;;  %v221_v12 = vld [vmem:[%s793_s30 + $0x160] sm:$0xff]  ;;  %v224_v14 = vld [vmem:[%s793_s30 + $0x178] sm:$0xff]  ;;  %v191_v15 = vld [vmem:[%s793_s30 + $0x70] sm:$0xff] }
  0x1a   : > { %v223_v16 = vld [vmem:[%s793_s30 + $0x170] sm:$0xff]  ;;  %v194_v17 = vld [vmem:[%s793_s30 + $0x88] sm:$0xff]  ;;  %v193_v19 = vld [vmem:[%s793_s30 + $0x80] sm:$0xff] }
  0x1b   : > { %v226_v18 = vld [vmem:[%s793_s30 + $0x188] sm:$0xff]  ;;  %v196_v21 = vld [vmem:[%s793_s30 + $0x98] sm:$0xff]  ;;  %v227_v24 = vld [vmem:[%s793_s30 + $0x190] sm:$0xff] }
  0x1c   : > { %656 = vmatpush1.bf16.msra.mxu0 %v655_v20  ;;  %708 = vmatpush1.bf16.msra.mxu1 %v655_v20  ;;  %v225_v20 = vld [vmem:[%s793_s30 + $0x180] sm:$0xff]  ;;  %v228_v22 = vld [vmem:[%s793_s30 + $0x198] sm:$0xff]  ;;  %v198_v25 = vld [vmem:[%s793_s30 + $0xa8] sm:$0xff] }
  0x1d   : > { %657 = vmatprep.subr.bf16.mxu0 %v736_v3  ;;  %693 = vmatprep.subr.bf16.mxu1 %v736_v3  ;;  %v197_v27 = vld [vmem:[%s793_s30 + $0xa0] sm:$0xff]  ;;  %v232_v30 = vld [vmem:[%s793_s30 + $0x1b8] sm:$0xff]  ;;  %v199_v31 = vld [vmem:[%s793_s30 + $0xb0] sm:$0xff] }
  0x1e   : > { %v229_v28 = vld [vmem:[%s793_s30 + $0x1a0] sm:$0xff]  ;;  %v202_v33 = vld [vmem:[%s793_s30 + $0xc8] sm:$0xff]  ;;  %v204_v37 = vld [vmem:[%s793_s30 + $0xd8] sm:$0xff] }
  0x1f   : > { %v234_v34 = vld [vmem:[%s793_s30 + $0x1c8] sm:$0xff]  ;;  %v233_v36 = vld [vmem:[%s793_s30 + $0x1c0] sm:$0xff]  ;;  %v203_v39 = vld [vmem:[%s793_s30 + $0xd0] sm:$0xff] }
  0x20   : > { %659 = vmatpush1.bf16.msra.mxu0 %v658_v23  ;;  %709 = vmatpush1.bf16.msra.mxu1 %v658_v23  ;;  %v195_v23 = vld [vmem:[%s793_s30 + $0x90] sm:$0xff]  ;;  %v238_v42 = vld [vmem:[%s793_s30 + $0x1e8] sm:$0xff]  ;;  %v205_v43 = vld [vmem:[%s793_s30 + $0xe0] sm:$0xff] }
  0x21   : > { %660 = vmatprep.subr.bf16.mxu0 %v736_v3  ;;  %694 = vmatprep.subr.bf16.mxu1 %v736_v3  ;;  %v235_v40 = vld [vmem:[%s793_s30 + $0x1d0] sm:$0xff]  ;;  %v208_v45 = vld [vmem:[%s793_s30 + $0xf8] sm:$0xff]  ;;  %v968_v49 = vld [vmem:[%s1045_s2] ss:$0 sm:$0xff] }
  0x22   : > { %v240_v46 = vld [vmem:[%s793_s30 + $0x1f8] sm:$0xff]  ;;  %v239_v48 = vld [vmem:[%s793_s30 + $0x1f0] sm:$0xff] }
  0x24   : > { %662 = vmatpush1.bf16.msra.mxu0 %v661_v26  ;;  %710 = vmatpush1.bf16.msra.mxu1 %v661_v26  ;;  %v230_v26 = vld [vmem:[%s793_s30 + $0x1a8] sm:$0xff] }
  0x25   : > { %663 = vmatprep.subr.bf16.mxu0 %v736_v3  ;;  %695 = vmatprep.subr.bf16.mxu1 %v736_v3 }
  0x28   : > { %665 = vmatpush1.bf16.msra.mxu0 %v664_v29  ;;  %711 = vmatpush1.bf16.msra.mxu1 %v664_v29  ;;  %v200_v29 = vld [vmem:[%s793_s30 + $0xb8] sm:$0xff] }
  0x29   : > { %666 = vmatprep.subr.bf16.mxu0 %v736_v3  ;;  %696 = vmatprep.subr.bf16.mxu1 %v736_v3 }
  0x2c   : > { %668 = vmatpush1.bf16.msra.mxu0 %v667_v32  ;;  %712 = vmatpush1.bf16.msra.mxu1 %v667_v32  ;;  %v231_v32 = vld [vmem:[%s793_s30 + $0x1b0] sm:$0xff] }
  0x2d   : > { %669 = vmatprep.subr.bf16.mxu0 %v736_v3  ;;  %697 = vmatprep.subr.bf16.mxu1 %v736_v3 }
  0x30   : > { %671 = vmatpush1.bf16.msra.mxu0 %v670_v35  ;;  %713 = vmatpush1.bf16.msra.mxu1 %v670_v35  ;;  %v201_v35 = vld [vmem:[%s793_s30 + $0xc0] sm:$0xff] }
  0x31   : > { %672 = vmatprep.subr.bf16.mxu0 %v736_v3  ;;  %698 = vmatprep.subr.bf16.mxu1 %v736_v3 }
  0x34   : > { %674 = vmatpush1.bf16.msra.mxu0 %v673_v38  ;;  %714 = vmatpush1.bf16.msra.mxu1 %v673_v38  ;;  %v236_v38 = vld [vmem:[%s793_s30 + $0x1d8] sm:$0xff] }
  0x35   : > { %675 = vmatprep.subr.bf16.mxu0 %v736_v3  ;;  %699 = vmatprep.subr.bf16.mxu1 %v736_v3 }
  0x38   : > { %677 = vmatpush1.bf16.msra.mxu0 %v676_v41  ;;  %715 = vmatpush1.bf16.msra.mxu1 %v676_v41  ;;  %v206_v41 = vld [vmem:[%s793_s30 + $0xe8] sm:$0xff] }
  0x39   : > { %678 = vmatprep.subr.bf16.mxu0 %v736_v3  ;;  %700 = vmatprep.subr.bf16.mxu1 %v736_v3 }
  0x3c   : > { %680 = vmatpush1.bf16.msra.mxu0 %v679_v44  ;;  %716 = vmatpush1.bf16.msra.mxu1 %v679_v44  ;;  %v237_v44 = vld [vmem:[%s793_s30 + $0x1e0] sm:$0xff] }
  0x3d   : > { %681 = vmatprep.subr.bf16.mxu0 %v736_v3  ;;  %701 = vmatprep.subr.bf16.mxu1 %v736_v3 }
  0x40   : > { %683 = vmatpush1.bf16.msra.mxu0 %v682_v47  ;;  %717 = vmatpush1.bf16.msra.mxu1 %v682_v47  ;;  %v207_v47 = vld [vmem:[%s793_s30 + $0xf0] sm:$0xff] }
  0x41   : > { %684 = vmatprep.subr.bf16.mxu0 %v736_v3  ;;  %702 = vmatprep.subr.bf16.mxu1 %v736_v3  ;;  %v185_v3 = vld [vmem:[%s793_s30 + $0x40] sm:$0xff]  ;;  %s976_s30 = scalar_lea.vmem %s1046_s3, %s634_s10 }
  0x44   : > { %686 = vmatpush1.bf16.msra.mxu0 %v685_v50  ;;  %718 = vmatpush1.bf16.msra.mxu1 %v685_v50 }
  0x47   : > { %345 = vmatmul.mubr.f32.vlgmr.msra.gmra.mrb[0].mxu0 %v177_v51  ;;  %425 = vmatmul.mubr.f32.vlgmr.msra.gmra.mrb[0].mxu1 %v209_v52 }
  0x48   : > { %349 = vmatprep.mubr.f32.mxu0 %v180_v53  ;;  %429 = vmatprep.mubr.f32.mxu1 %v212_v54 }
  0x4b   : > { %350 = vmatmul.mubr.f32.gmra.mrb[2].mxu0 %v179_v55  ;;  %430 = vmatmul.mubr.f32.gmra.mrb[2].mxu1 %v211_v56 }
  0x4c   : > { %354 = vmatprep.mubr.f32.mxu0 %v182_v57  ;;  %434 = vmatprep.mubr.f32.mxu1 %v214_v58 }
  0x4f   : > { %355 = vmatmul.mubr.f32.gmra.mrb[4].mxu0 %v181_v59  ;;  %435 = vmatmul.mubr.f32.gmra.mrb[4].mxu1 %v213_v60 }
  0x50   : > { %359 = vmatprep.mubr.f32.mxu0 %v184_v61  ;;  %439 = vmatprep.mubr.f32.mxu1 %v216_v62 }
  0x53   : > { %360 = vmatmul.mubr.f32.gmra.mrb[6].mxu0 %v183_v63  ;;  %440 = vmatmul.mubr.f32.gmra.mrb[6].mxu1 %v215_v0 }
  0x54   : > { %364 = vmatprep.mubr.f32.mxu0 %v186_v1  ;;  %444 = vmatprep.mubr.f32.mxu1 %v218_v2 }
  0x57   : > { %365 = vmatmul.mubr.f32.gmra.mrb[8].mxu0 %v185_v3  ;;  %445 = vmatmul.mubr.f32.gmra.mrb[8].mxu1 %v217_v4 }
  0x58   : > { %369 = vmatprep.mubr.f32.mxu0 %v188_v5  ;;  %449 = vmatprep.mubr.f32.mxu1 %v220_v6 }
  0x5b   : > { %370 = vmatmul.mubr.f32.gmra.mrb[10].mxu0 %v187_v7  ;;  %450 = vmatmul.mubr.f32.gmra.mrb[10].mxu1 %v219_v8 }
  0x5c   : > { %374 = vmatprep.mubr.f32.mxu0 %v190_v9  ;;  %454 = vmatprep.mubr.f32.mxu1 %v222_v10 }
  0x5f   : > { %375 = vmatmul.mubr.f32.gmra.mrb[12].mxu0 %v189_v11  ;;  %455 = vmatmul.mubr.f32.gmra.mrb[12].mxu1 %v221_v12 }
  0x60   : > { %379 = vmatprep.mubr.f32.mxu0 %v192_v13  ;;  %459 = vmatprep.mubr.f32.mxu1 %v224_v14 }
  0x63   : > { %380 = vmatmul.mubr.f32.gmra.mrb[14].mxu0 %v191_v15  ;;  %460 = vmatmul.mubr.f32.gmra.mrb[14].mxu1 %v223_v16 }
  0x64   : > { %384 = vmatprep.mubr.f32.mxu0 %v194_v17  ;;  %464 = vmatprep.mubr.f32.mxu1 %v226_v18 }
  0x67   : > { %385 = vmatmul.mubr.f32.gmra.mrb[16].mxu0 %v193_v19  ;;  %465 = vmatmul.mubr.f32.gmra.mrb[16].mxu1 %v225_v20 }
  0x68   : > { %389 = vmatprep.mubr.f32.mxu0 %v196_v21  ;;  %469 = vmatprep.mubr.f32.mxu1 %v228_v22 }
  0x6b   : > { %390 = vmatmul.mubr.f32.gmra.mrb[18].mxu0 %v195_v23  ;;  %470 = vmatmul.mubr.f32.gmra.mrb[18].mxu1 %v227_v24 }
  0x6c   : > { %394 = vmatprep.mubr.f32.mxu0 %v198_v25  ;;  %474 = vmatprep.mubr.f32.mxu1 %v230_v26 }
  0x6f   : > { %395 = vmatmul.mubr.f32.gmra.mrb[20].mxu0 %v197_v27  ;;  %475 = vmatmul.mubr.f32.gmra.mrb[20].mxu1 %v229_v28 }
  0x70   : > { %399 = vmatprep.mubr.f32.mxu0 %v200_v29  ;;  %479 = vmatprep.mubr.f32.mxu1 %v232_v30 }
  0x73   : > { %400 = vmatmul.mubr.f32.gmra.mrb[22].mxu0 %v199_v31  ;;  %480 = vmatmul.mubr.f32.gmra.mrb[22].mxu1 %v231_v32 }
  0x74   : > { %404 = vmatprep.mubr.f32.mxu0 %v202_v33  ;;  %484 = vmatprep.mubr.f32.mxu1 %v234_v34 }
  0x77   : > { %405 = vmatmul.mubr.f32.gmra.mrb[24].mxu0 %v201_v35  ;;  %485 = vmatmul.mubr.f32.gmra.mrb[24].mxu1 %v233_v36 }
  0x78   : > { %409 = vmatprep.mubr.f32.mxu0 %v204_v37  ;;  %489 = vmatprep.mubr.f32.mxu1 %v236_v38 }
  0x7b   : > { %410 = vmatmul.mubr.f32.gmra.mrb[26].mxu0 %v203_v39  ;;  %490 = vmatmul.mubr.f32.gmra.mrb[26].mxu1 %v235_v40 }
  0x7c   : > { %414 = vmatprep.mubr.f32.mxu0 %v206_v41  ;;  %494 = vmatprep.mubr.f32.mxu1 %v238_v42 }
  0x7f   : > { %415 = vmatmul.mubr.f32.gmra.mrb[28].mxu0 %v205_v43  ;;  %495 = vmatmul.mubr.f32.gmra.mrb[28].mxu1 %v237_v44 }
  0x80   : > { %419 = vmatprep.mubr.f32.mxu0 %v208_v45  ;;  %499 = vmatprep.mubr.f32.mxu1 %v240_v46 }
  0x83   : > { %420 = vmatmul.mubr.f32.gmra.mrb[30].mxu0 %v207_v47  ;;  %500 = vmatmul.mubr.f32.gmra.mrb[30].mxu1 %v239_v48 }
 0x11a   : > { %v346_v50 = vpop.f32.mrb[0].mxu0  ;;  %v426_v51 = vpop.f32.mrb[0].mxu1 }
 0x11b   : > { %v347_v52 = vadd.f32 %v968_v49, %v346_v50  ;;  %v427_v53 = vadd.f32 %v968_v49, %v426_v51  ;;  %v348_v54 = vpop.f32.mrb[1].mxu0  ;;  %v428_v55 = vpop.f32.mrb[1].mxu1 }
 0x11d   : > { %v505_v56 = vmax.f32 %v347_v52, 0.0  ;;  %v521_v57 = vmax.f32 %v427_v53, 0.0 }
 0x11e   : > { %v351_v58 = vpop.f32.mrb[2].mxu0  ;;  %v431_v59 = vpop.f32.mrb[2].mxu1 }
 0x11f   : > { %537 = vst [vmem:[%s976_s30] sm:$0xff] %v505_v56  ;;  %553 = vst [vmem:[%s976_s30 + $0x80] sm:$0xff] %v521_v57  ;;  %v352_v60 = vadd.f32 %v968_v49, %v351_v58  ;;  %v432_v61 = vadd.f32 %v968_v49, %v431_v59  ;;  %v353_v62 = vpop.f32.mrb[3].mxu0  ;;  %v433_v63 = vpop.f32.mrb[3].mxu1 }
 0x121   : > { %v506_v0 = vmax.f32 %v352_v60, 0.0  ;;  %v522_v1 = vmax.f32 %v432_v61, 0.0 }
 0x122   : > { %v356_v2 = vpop.f32.mrb[4].mxu0  ;;  %v436_v3 = vpop.f32.mrb[4].mxu1 }
 0x123   : > { %538 = vst [vmem:[%s976_s30 + $0x8] sm:$0xff] %v506_v0  ;;  %554 = vst [vmem:[%s976_s30 + $0x88] sm:$0xff] %v522_v1  ;;  %v357_v4 = vadd.f32 %v968_v49, %v356_v2  ;;  %v437_v5 = vadd.f32 %v968_v49, %v436_v3  ;;  %v358_v6 = vpop.f32.mrb[5].mxu0  ;;  %v438_v7 = vpop.f32.mrb[5].mxu1 }
 0x125   : > { %v507_v8 = vmax.f32 %v357_v4, 0.0  ;;  %v523_v9 = vmax.f32 %v437_v5, 0.0 }
 0x126   : > { %v361_v10 = vpop.f32.mrb[6].mxu0  ;;  %v441_v11 = vpop.f32.mrb[6].mxu1 }
 0x127   : > { %539 = vst [vmem:[%s976_s30 + $0x10] sm:$0xff] %v507_v8  ;;  %555 = vst [vmem:[%s976_s30 + $0x90] sm:$0xff] %v523_v9  ;;  %v362_v12 = vadd.f32 %v968_v49, %v361_v10  ;;  %v442_v13 = vadd.f32 %v968_v49, %v441_v11  ;;  %v363_v14 = vpop.f32.mrb[7].mxu0  ;;  %v443_v15 = vpop.f32.mrb[7].mxu1 }
 0x129   : > { %v508_v16 = vmax.f32 %v362_v12, 0.0  ;;  %v524_v17 = vmax.f32 %v442_v13, 0.0 }
 0x12a   : > { %v366_v18 = vpop.f32.mrb[8].mxu0  ;;  %v446_v19 = vpop.f32.mrb[8].mxu1 }
 0x12b   : > { %540 = vst [vmem:[%s976_s30 + $0x18] sm:$0xff] %v508_v16  ;;  %556 = vst [vmem:[%s976_s30 + $0x98] sm:$0xff] %v524_v17  ;;  %v367_v20 = vadd.f32 %v968_v49, %v366_v18  ;;  %v447_v21 = vadd.f32 %v968_v49, %v446_v19  ;;  %v368_v22 = vpop.f32.mrb[9].mxu0  ;;  %v448_v23 = vpop.f32.mrb[9].mxu1 }
 0x12d   : > { %v509_v24 = vmax.f32 %v367_v20, 0.0  ;;  %v525_v25 = vmax.f32 %v447_v21, 0.0 }
 0x12e   : > { %v371_v26 = vpop.f32.mrb[10].mxu0  ;;  %v451_v27 = vpop.f32.mrb[10].mxu1 }
 0x12f   : > { %541 = vst [vmem:[%s976_s30 + $0x20] sm:$0xff] %v509_v24  ;;  %557 = vst [vmem:[%s976_s30 + $0xa0] sm:$0xff] %v525_v25  ;;  %v372_v28 = vadd.f32 %v968_v49, %v371_v26  ;;  %v452_v29 = vadd.f32 %v968_v49, %v451_v27  ;;  %v373_v30 = vpop.f32.mrb[11].mxu0  ;;  %v453_v31 = vpop.f32.mrb[11].mxu1 }
 0x131   : > { %v510_v32 = vmax.f32 %v372_v28, 0.0  ;;  %v526_v33 = vmax.f32 %v452_v29, 0.0 }
 0x132   : > { %v376_v34 = vpop.f32.mrb[12].mxu0  ;;  %v456_v35 = vpop.f32.mrb[12].mxu1 }
 0x133   : > { %542 = vst [vmem:[%s976_s30 + $0x28] sm:$0xff] %v510_v32  ;;  %558 = vst [vmem:[%s976_s30 + $0xa8] sm:$0xff] %v526_v33  ;;  %v377_v36 = vadd.f32 %v968_v49, %v376_v34  ;;  %v457_v37 = vadd.f32 %v968_v49, %v456_v35  ;;  %v378_v38 = vpop.f32.mrb[13].mxu0  ;;  %v458_v39 = vpop.f32.mrb[13].mxu1 }
 0x135   : > { %v511_v40 = vmax.f32 %v377_v36, 0.0  ;;  %v527_v41 = vmax.f32 %v457_v37, 0.0 }
 0x136   : > { %v381_v42 = vpop.f32.mrb[14].mxu0  ;;  %v461_v43 = vpop.f32.mrb[14].mxu1 }
 0x137   : > { %543 = vst [vmem:[%s976_s30 + $0x30] sm:$0xff] %v511_v40  ;;  %559 = vst [vmem:[%s976_s30 + $0xb0] sm:$0xff] %v527_v41  ;;  %v382_v44 = vadd.f32 %v968_v49, %v381_v42  ;;  %v462_v45 = vadd.f32 %v968_v49, %v461_v43  ;;  %v383_v46 = vpop.f32.mrb[15].mxu0  ;;  %v463_v47 = vpop.f32.mrb[15].mxu1 }
 0x139   : > { %v512_v48 = vmax.f32 %v382_v44, 0.0  ;;  %v528_v50 = vmax.f32 %v462_v45, 0.0 }
 0x13a   : > { %v386_v51 = vpop.f32.mrb[16].mxu0  ;;  %v466_v52 = vpop.f32.mrb[16].mxu1 }
 0x13b   : > { %544 = vst [vmem:[%s976_s30 + $0x38] sm:$0xff] %v512_v48  ;;  %560 = vst [vmem:[%s976_s30 + $0xb8] sm:$0xff] %v528_v50  ;;  %v387_v53 = vadd.f32 %v968_v49, %v386_v51  ;;  %v467_v54 = vadd.f32 %v968_v49, %v466_v52  ;;  %v388_v55 = vpop.f32.mrb[17].mxu0  ;;  %v468_v56 = vpop.f32.mrb[17].mxu1 }
 0x13d   : > { %v513_v57 = vmax.f32 %v387_v53, 0.0  ;;  %v529_v58 = vmax.f32 %v467_v54, 0.0 }
 0x13e   : > { %v391_v59 = vpop.f32.mrb[18].mxu0  ;;  %v471_v60 = vpop.f32.mrb[18].mxu1 }
 0x13f   : > { %545 = vst [vmem:[%s976_s30 + $0x40] sm:$0xff] %v513_v57  ;;  %561 = vst [vmem:[%s976_s30 + $0xc0] sm:$0xff] %v529_v58  ;;  %v392_v61 = vadd.f32 %v968_v49, %v391_v59  ;;  %v472_v62 = vadd.f32 %v968_v49, %v471_v60  ;;  %v393_v63 = vpop.f32.mrb[19].mxu0  ;;  %v473_v0 = vpop.f32.mrb[19].mxu1 }
 0x141   : > { %v514_v1 = vmax.f32 %v392_v61, 0.0  ;;  %v530_v2 = vmax.f32 %v472_v62, 0.0 }
 0x142   : > { %v396_v3 = vpop.f32.mrb[20].mxu0  ;;  %v476_v4 = vpop.f32.mrb[20].mxu1 }
 0x143   : > { %546 = vst [vmem:[%s976_s30 + $0x48] sm:$0xff] %v514_v1  ;;  %562 = vst [vmem:[%s976_s30 + $0xc8] sm:$0xff] %v530_v2  ;;  %v397_v5 = vadd.f32 %v968_v49, %v396_v3  ;;  %v477_v6 = vadd.f32 %v968_v49, %v476_v4  ;;  %v398_v7 = vpop.f32.mrb[21].mxu0  ;;  %v478_v8 = vpop.f32.mrb[21].mxu1 }
 0x145   : > { %v515_v9 = vmax.f32 %v397_v5, 0.0  ;;  %v531_v10 = vmax.f32 %v477_v6, 0.0 }
 0x146   : > { %v401_v11 = vpop.f32.mrb[22].mxu0  ;;  %v481_v12 = vpop.f32.mrb[22].mxu1 }
 0x147   : > { %547 = vst [vmem:[%s976_s30 + $0x50] sm:$0xff] %v515_v9  ;;  %563 = vst [vmem:[%s976_s30 + $0xd0] sm:$0xff] %v531_v10  ;;  %v402_v13 = vadd.f32 %v968_v49, %v401_v11  ;;  %v482_v14 = vadd.f32 %v968_v49, %v481_v12  ;;  %v403_v15 = vpop.f32.mrb[23].mxu0  ;;  %v483_v16 = vpop.f32.mrb[23].mxu1 }
 0x149   : > { %v516_v17 = vmax.f32 %v402_v13, 0.0  ;;  %v532_v18 = vmax.f32 %v482_v14, 0.0 }
 0x14a   : > { %v406_v19 = vpop.f32.mrb[24].mxu0  ;;  %v486_v20 = vpop.f32.mrb[24].mxu1 }
 0x14b   : > { %548 = vst [vmem:[%s976_s30 + $0x58] sm:$0xff] %v516_v17  ;;  %564 = vst [vmem:[%s976_s30 + $0xd8] sm:$0xff] %v532_v18  ;;  %v407_v21 = vadd.f32 %v968_v49, %v406_v19  ;;  %v487_v22 = vadd.f32 %v968_v49, %v486_v20  ;;  %v408_v23 = vpop.f32.mrb[25].mxu0  ;;  %v488_v24 = vpop.f32.mrb[25].mxu1 }
 0x14d   : > { %v517_v25 = vmax.f32 %v407_v21, 0.0  ;;  %v533_v26 = vmax.f32 %v487_v22, 0.0 }
 0x14e   : > { %v411_v27 = vpop.f32.mrb[26].mxu0  ;;  %v491_v28 = vpop.f32.mrb[26].mxu1 }
 0x14f   : > { %549 = vst [vmem:[%s976_s30 + $0x60] sm:$0xff] %v517_v25  ;;  %565 = vst [vmem:[%s976_s30 + $0xe0] sm:$0xff] %v533_v26  ;;  %v412_v29 = vadd.f32 %v968_v49, %v411_v27  ;;  %v492_v30 = vadd.f32 %v968_v49, %v491_v28  ;;  %v413_v31 = vpop.f32.mrb[27].mxu0  ;;  %v493_v32 = vpop.f32.mrb[27].mxu1 }
 0x151   : > { %v518_v33 = vmax.f32 %v412_v29, 0.0  ;;  %v534_v34 = vmax.f32 %v492_v30, 0.0 }
 0x152   : > { %v416_v35 = vpop.f32.mrb[28].mxu0  ;;  %v496_v36 = vpop.f32.mrb[28].mxu1 }
 0x153   : > { %550 = vst [vmem:[%s976_s30 + $0x68] sm:$0xff] %v518_v33  ;;  %566 = vst [vmem:[%s976_s30 + $0xe8] sm:$0xff] %v534_v34  ;;  %v417_v37 = vadd.f32 %v968_v49, %v416_v35  ;;  %v497_v38 = vadd.f32 %v968_v49, %v496_v36  ;;  %v418_v39 = vpop.f32.mrb[29].mxu0  ;;  %v498_v40 = vpop.f32.mrb[29].mxu1 }
 0x155   : > { %v519_v41 = vmax.f32 %v417_v37, 0.0  ;;  %v535_v42 = vmax.f32 %v497_v38, 0.0 }
 0x156   : > { %v421_v43 = vpop.f32.mrb[30].mxu0  ;;  %v501_v44 = vpop.f32.mrb[30].mxu1 }
 0x157   : > { %551 = vst [vmem:[%s976_s30 + $0x70] sm:$0xff] %v519_v41  ;;  %567 = vst [vmem:[%s976_s30 + $0xf0] sm:$0xff] %v535_v42  ;;  %v422_v45 = vadd.f32 %v968_v49, %v421_v43  ;;  %v502_v46 = vadd.f32 %v968_v49, %v501_v44  ;;  %v423_v47 = vpop.f32.mrb[31].mxu0  ;;  %v503_v48 = vpop.f32.mrb[31].mxu1 }
 0x159   : > { %v520_v50 = vmax.f32 %v422_v45, 0.0  ;;  %v536_v51 = vmax.f32 %v502_v46, 0.0 }
 0x15b   : > { %552 = vst [vmem:[%s976_s30 + $0x78] sm:$0xff] %v520_v50  ;;  %568 = vst [vmem:[%s976_s30 + $0xf8] sm:$0xff] %v536_v51 }
 0x15c PF: > { %s13_s12 = sadd.s32 1, %s734_s12  }
 0x15d   : > { %p10_p4 = scmp.ge.s32.totalorder %s13_s12, 7  }
 0x15f   :  { %12 = sbr.rel (!%p10_p4) target bundleno = 1 (0x1), region = 62 }

// kernel: actor_forward.11
= control target key start
LH: loop header
LB: loop body
LE: loop exit
PB: predicated region body
PF: predicated region fallthrough
CT: control target
= control target key end

     0   :  { %s2055_s12 = smov 0   ;;  %s2982_s0 = inlined_call_operand.vmem [shape: f32[768,896], index: 0, kind: input, shape index: {}]   ;;  %s2983_s1 = inlined_call_operand.vmem [shape: f32[896,128], index: 1, kind: input, shape index: {}]   ;;  %s2984_s2 = inlined_call_operand.vmem [shape: f32[1,128], index: 2, kind: input, shape index: {}]   ;;  %s2985_s3 = inlined_call_operand.vmem [shape: f32[768,128], index: 3, kind: output, shape index: {}]  }
   0x1 LB: > { %s1540_s13 = sadd.s32 4294967295, %s2032_s12   ;;  %p1544_p0 = scmp.ge.s32.totalorder %s2032_s12, 1  ;;  %s2032_s12 = sphi %s2055_s12, %s13_s12  }
   0x2   : > { %p139_p1 = scmp.lt.s32.totalorder %s2032_s12, 4 }
   0x4   : > { %p140_p2 = pnand %p1544_p0, %p139_p1 }
   0x5   : > { %v401_v0 = vld [vmem:[%s2983_s1] sm:$0xff] (!%p140_p2)  ;;  %v402_v1 = vld [vmem:[%s2983_s1 + $0x8] sm:$0xff] (!%p140_p2)  ;;  %v2034_v3 = vmov (!%p140_p2), 0.0|0.0   ;;  %v403_v6 = vld [vmem:[%s2983_s1 + $0x10] sm:$0xff] (!%p140_p2)  ;;  %s1545_s30 = sshll.u32 (!%p140_p2), %s1540_s13, 5 }
   0x6   : > { %143 = sbr.rel (%p140_p2) target bundleno = 511 (0x1ff), region = 32  ;;  %v433_v2 = vld [vmem:[%s2983_s1 + $0x100] sm:$0xff] (!%p140_p2)  ;;  %1680 = vmatprep.subr.bf16.mxu1 (!%p140_p2), %v2034_v3  ;;  %1728 = vmatprep.subr.bf16.mxu0 (!%p140_p2), %v2034_v3  ;;  %v1681_v4 = vpack.c.bf16 (!%p140_p2), %v402_v1, %v401_v0  ;;  %v434_v5 = vld [vmem:[%s2983_s1 + $0x108] sm:$0xff] (!%p140_p2)  ;;  %v404_v7 = vld [vmem:[%s2983_s1 + $0x18] sm:$0xff] (!%p140_p2)  ;;  %p165_p3 = scmp.lt.s32.totalorder (!%p140_p2), %s1545_s30, 95 }
   0x7   : > { %v2083_v8 = vpack.c.bf16 (!%p140_p2), %v434_v5, %v433_v2  ;;  %v435_v9 = vld [vmem:[%s2983_s1 + $0x110] sm:$0xff] (!%p140_p2)  ;;  %v436_v10 = vld [vmem:[%s2983_s1 + $0x118] sm:$0xff] (!%p140_p2)  ;;  %v1684_v11 = vpack.c.bf16 (!%p140_p2), %v404_v7, %v403_v6  ;;  %v405_v13 = vld [vmem:[%s2983_s1 + $0x20] sm:$0xff] (!%p140_p2) }
   0x8   : > { %1682 = vmatpush1.bf16.msra.mxu1 (!%p140_p2), %v1681_v4  ;;  %v2093_v12 = vpack.c.bf16 (!%p140_p2), %v436_v10, %v435_v9  ;;  %v406_v14 = vld [vmem:[%s2983_s1 + $0x28] sm:$0xff] (!%p140_p2)  ;;  %v437_v15 = vld [vmem:[%s2983_s1 + $0x120] sm:$0xff] (!%p140_p2)  ;;  %v407_v19 = vld [vmem:[%s2983_s1 + $0x30] sm:$0xff] (!%p140_p2) }
   0x9   : > { %1730 = vmatpush1.bf16.msra.mxu0 (!%p140_p2), %v2083_v8  ;;  %1683 = vmatprep.subr.bf16.mxu1 (!%p140_p2), %v2034_v3  ;;  %v438_v16 = vld [vmem:[%s2983_s1 + $0x128] sm:$0xff] (!%p140_p2)  ;;  %v1687_v17 = vpack.c.bf16 (!%p140_p2), %v406_v14, %v405_v13  ;;  %v408_v20 = vld [vmem:[%s2983_s1 + $0x38] sm:$0xff] (!%p140_p2)  ;;  %v439_v21 = vld [vmem:[%s2983_s1 + $0x130] sm:$0xff] (!%p140_p2) }
   0xa   : > { %1731 = vmatprep.subr.bf16.mxu0 (!%p140_p2), %v2034_v3  ;;  %v2110_v18 = vpack.c.bf16 (!%p140_p2), %v438_v16, %v437_v15  ;;  %v440_v22 = vld [vmem:[%s2983_s1 + $0x138] sm:$0xff] (!%p140_p2)  ;;  %v1690_v23 = vpack.c.bf16 (!%p140_p2), %v408_v20, %v407_v19  ;;  %v409_v25 = vld [vmem:[%s2983_s1 + $0x40] sm:$0xff] (!%p140_p2)  ;;  %v410_v26 = vld [vmem:[%s2983_s1 + $0x48] sm:$0xff] (!%p140_p2) }
   0xb   : > { %v2129_v24 = vpack.c.bf16 (!%p140_p2), %v440_v22, %v439_v21  ;;  %v441_v27 = vld [vmem:[%s2983_s1 + $0x140] sm:$0xff] (!%p140_p2)  ;;  %v442_v28 = vld [vmem:[%s2983_s1 + $0x148] sm:$0xff] (!%p140_p2)  ;;  %v1693_v29 = vpack.c.bf16 (!%p140_p2), %v410_v26, %v409_v25  ;;  %v411_v31 = vld [vmem:[%s2983_s1 + $0x50] sm:$0xff] (!%p140_p2) }
   0xc   : > { %1685 = vmatpush1.bf16.msra.mxu1 (!%p140_p2), %v1684_v11  ;;  %v2147_v30 = vpack.c.bf16 (!%p140_p2), %v442_v28, %v441_v27  ;;  %v412_v32 = vld [vmem:[%s2983_s1 + $0x58] sm:$0xff] (!%p140_p2)  ;;  %v443_v33 = vld [vmem:[%s2983_s1 + $0x150] sm:$0xff] (!%p140_p2)  ;;  %v413_v37 = vld [vmem:[%s2983_s1 + $0x60] sm:$0xff] (!%p140_p2) }
   0xd   : > { %1733 = vmatpush1.bf16.msra.mxu0 %v2093_v12  ;;  %1686 = vmatprep.subr.bf16.mxu1 %v2034_v3  ;;  %s2987_s30 = smov (!%p165_p3, %s1545_s30), 95  ;;  %v444_v34 = vld [vmem:[%s2983_s1 + $0x158] sm:$0xff]  ;;  %v1696_v35 = vpack.c.bf16 %v412_v32, %v411_v31  ;;  %v414_v38 = vld [vmem:[%s2983_s1 + $0x68] sm:$0xff]  ;;  %v445_v39 = vld [vmem:[%s2983_s1 + $0x160] sm:$0xff] }
   0xe   : > { %1734 = vmatprep.subr.bf16.mxu0 %v2034_v3  ;;  %s2016_s29 = smul.u32 56, %s2987_s30  ;;  %v2169_v36 = vpack.c.bf16 %v444_v34, %v443_v33  ;;  %v446_v40 = vld [vmem:[%s2983_s1 + $0x168] sm:$0xff]  ;;  %v1699_v43 = vpack.c.bf16 %v414_v38, %v413_v37  ;;  %v415_v45 = vld [vmem:[%s2983_s1 + $0x70] sm:$0xff]  ;;  %v416_v46 = vld [vmem:[%s2983_s1 + $0x78] sm:$0xff]  ;;  %s1548_s25 = sshll.u32 %s2987_s30, 3 }
   0xf   : > { %v2188_v44 = vpack.c.bf16 %v446_v40, %v445_v39  ;;  %v447_v47 = vld [vmem:[%s2983_s1 + $0x170] sm:$0xff]  ;;  %v448_v48 = vld [vmem:[%s2983_s1 + $0x178] sm:$0xff]  ;;  %v1702_v49 = vpack.c.bf16 %v416_v46, %v415_v45  ;;  %v417_v51 = vld [vmem:[%s2983_s1 + $0x80] sm:$0xff]  ;;  %s2887_s28 = scalar_lea.vmem %s2985_s3, %s1548_s25 }
  0x10   : > { %1688 = vmatpush1.bf16.msra.mxu1 %v1687_v17  ;;  %s2165_s15 = scalar_lea.vmem %s2982_s0, %s2016_s29  ;;  %v2205_v50 = vpack.c.bf16 %v448_v48, %v447_v47  ;;  %v418_v52 = vld [vmem:[%s2983_s1 + $0x88] sm:$0xff]  ;;  %v449_v53 = vld [vmem:[%s2983_s1 + $0x180] sm:$0xff]  ;;  %v419_v57 = vld [vmem:[%s2983_s1 + $0x90] sm:$0xff] }
  0x11   : > { %1736 = vmatpush1.bf16.msra.mxu0 %v2110_v18  ;;  %1689 = vmatprep.subr.bf16.mxu1 %v2034_v3  ;;  %v178_v41 = vld [vmem:[%s2165_s15 + $0x8] sm:$0xff]  ;;  %v180_v42 = vld [vmem:[%s2165_s15 + $0x18] sm:$0xff]  ;;  %v1705_v55 = vpack.c.bf16 %v418_v52, %v417_v51  ;;  %v451_v59 = vld [vmem:[%s2983_s1 + $0x190] sm:$0xff] }
  0x12   : > { %1737 = vmatprep.subr.bf16.mxu0 %v2034_v3  ;;  %584 = vmatprep.mubr.f32.mxu1 %v178_v41  ;;  %v450_v54 = vld [vmem:[%s2983_s1 + $0x188] sm:$0xff]  ;;  %v420_v58 = vld [vmem:[%s2983_s1 + $0x98] sm:$0xff]  ;;  %v421_v63 = vld [vmem:[%s2983_s1 + $0xa0] sm:$0xff] }
  0x13   : > { %809 = vmatprep.mubr.f32.mxu0 %v180_v42  ;;  %v2222_v56 = vpack.c.bf16 %v450_v54, %v449_v53  ;;  %v452_v60 = vld [vmem:[%s2983_s1 + $0x198] sm:$0xff]  ;;  %v1708_v61 = vpack.c.bf16 %v420_v58, %v419_v57  ;;  %v422_v0 = vld [vmem:[%s2983_s1 + $0xa8] sm:$0xff]  ;;  %v453_v1 = vld [vmem:[%s2983_s1 + $0x1a0] sm:$0xff] }
  0x14   : > { %1691 = vmatpush1.bf16.msra.mxu1 %v1690_v23  ;;  %v2239_v62 = vpack.c.bf16 %v452_v60, %v451_v59  ;;  %v454_v2 = vld [vmem:[%s2983_s1 + $0x1a8] sm:$0xff]  ;;  %v1711_v4 = vpack.c.bf16 %v422_v0, %v421_v63  ;;  %v423_v6 = vld [vmem:[%s2983_s1 + $0xb0] sm:$0xff]  ;;  %v424_v7 = vld [vmem:[%s2983_s1 + $0xb8] sm:$0xff] }
  0x15   : > { %1739 = vmatpush1.bf16.msra.mxu0 %v2129_v24  ;;  %1692 = vmatprep.subr.bf16.mxu1 %v2034_v3  ;;  %v2256_v5 = vpack.c.bf16 %v454_v2, %v453_v1  ;;  %v455_v9 = vld [vmem:[%s2983_s1 + $0x1b0] sm:$0xff]  ;;  %v456_v10 = vld [vmem:[%s2983_s1 + $0x1b8] sm:$0xff]  ;;  %v1714_v11 = vpack.c.bf16 %v424_v7, %v423_v6  ;;  %v425_v14 = vld [vmem:[%s2983_s1 + $0xc0] sm:$0xff] }
  0x16   : > { %1740 = vmatprep.subr.bf16.mxu0 %v2034_v3  ;;  %v2273_v13 = vpack.c.bf16 %v456_v10, %v455_v9  ;;  %v426_v15 = vld [vmem:[%s2983_s1 + $0xc8] sm:$0xff]  ;;  %v457_v16 = vld [vmem:[%s2983_s1 + $0x1c0] sm:$0xff]  ;;  %v427_v21 = vld [vmem:[%s2983_s1 + $0xd0] sm:$0xff] }
  0x17   : > { %v458_v17 = vld [vmem:[%s2983_s1 + $0x1c8] sm:$0xff]  ;;  %v1717_v19 = vpack.c.bf16 %v426_v15, %v425_v14  ;;  %v428_v22 = vld [vmem:[%s2983_s1 + $0xd8] sm:$0xff]  ;;  %v459_v23 = vld [vmem:[%s2983_s1 + $0x1d0] sm:$0xff] }
  0x18   : > { %1694 = vmatpush1.bf16.msra.mxu1 %v1693_v29  ;;  %v2290_v20 = vpack.c.bf16 %v458_v17, %v457_v16  ;;  %v460_v25 = vld [vmem:[%s2983_s1 + $0x1d8] sm:$0xff]  ;;  %v1720_v26 = vpack.c.bf16 %v428_v22, %v427_v21  ;;  %v429_v28 = vld [vmem:[%s2983_s1 + $0xe0] sm:$0xff]  ;;  %v430_v29 = vld [vmem:[%s2983_s1 + $0xe8] sm:$0xff] }
  0x19   : > { %1742 = vmatpush1.bf16.msra.mxu0 %v2147_v30  ;;  %1695 = vmatprep.subr.bf16.mxu1 %v2034_v3  ;;  %v2307_v27 = vpack.c.bf16 %v460_v25, %v459_v23  ;;  %v461_v31 = vld [vmem:[%s2983_s1 + $0x1e0] sm:$0xff]  ;;  %v462_v32 = vld [vmem:[%s2983_s1 + $0x1e8] sm:$0xff]  ;;  %v1723_v33 = vpack.c.bf16 %v430_v29, %v429_v28  ;;  %v432_v37 = vld [vmem:[%s2983_s1 + $0xf8] sm:$0xff] }
  0x1a   : > { %1743 = vmatprep.subr.bf16.mxu0 %v2034_v3  ;;  %v2324_v34 = vpack.c.bf16 %v462_v32, %v461_v31  ;;  %v463_v38 = vld [vmem:[%s2983_s1 + $0x1f0] sm:$0xff]  ;;  %v464_v39 = vld [vmem:[%s2983_s1 + $0x1f8] sm:$0xff]  ;;  %v465_v42 = vld [vmem:[%s2983_s1 + $0x200] sm:$0xff] }
  0x1b   : > { %v2341_v41 = vpack.c.bf16 %v464_v39, %v463_v38  ;;  %v177_v45 = vld [vmem:[%s2165_s15] sm:$0xff]  ;;  %v179_v46 = vld [vmem:[%s2165_s15 + $0x10] sm:$0xff]  ;;  %v468_v51 = vld [vmem:[%s2983_s1 + $0x218] sm:$0xff] }
  0x1c   : > { %1697 = vmatpush1.bf16.msra.mxu1 %v1696_v35  ;;  %v431_v35 = vld [vmem:[%s2983_s1 + $0xf0] sm:$0xff]  ;;  %v185_v48 = vld [vmem:[%s2165_s15 + $0x40] sm:$0xff]  ;;  %v184_v53 = vld [vmem:[%s2165_s15 + $0x38] sm:$0xff] }
  0x1d   : > { %1745 = vmatpush1.bf16.msra.mxu0 %v2169_v36  ;;  %1698 = vmatprep.subr.bf16.mxu1 %v2034_v3  ;;  %v1726_v40 = vpack.c.bf16 %v432_v37, %v431_v35  ;;  %v187_v52 = vld [vmem:[%s2165_s15 + $0x50] sm:$0xff]  ;;  %v186_v54 = vld [vmem:[%s2165_s15 + $0x48] sm:$0xff]  ;;  %v469_v59 = vld [vmem:[%s2983_s1 + $0x220] sm:$0xff] }
  0x1e   : > { %1746 = vmatprep.subr.bf16.mxu0 %v2034_v3  ;;  %v194_v58 = vld [vmem:[%s2165_s15 + $0x88] sm:$0xff]  ;;  %v191_v60 = vld [vmem:[%s2165_s15 + $0x70] sm:$0xff]  ;;  %v201_v1 = vld [vmem:[%s2165_s15 + $0xc0] sm:$0xff] }
  0x1f   : > { %v199_v63 = vld [vmem:[%s2165_s15 + $0xb0] sm:$0xff]  ;;  %v198_v6 = vld [vmem:[%s2165_s15 + $0xa8] sm:$0xff]  ;;  %v208_v10 = vld [vmem:[%s2165_s15 + $0xf8] sm:$0xff] }
  0x20   : > { %1700 = vmatpush1.bf16.msra.mxu1 %v1699_v43  ;;  %v466_v43 = vld [vmem:[%s2983_s1 + $0x208] sm:$0xff]  ;;  %v471_v2 = vld [vmem:[%s2983_s1 + $0x230] sm:$0xff]  ;;  %v205_v15 = vld [vmem:[%s2165_s15 + $0xe0] sm:$0xff] }
  0x21   : > { %1748 = vmatpush1.bf16.msra.mxu0 %v2188_v44  ;;  %1701 = vmatprep.subr.bf16.mxu1 %v2034_v3  ;;  %v1777_v47 = vpack.c.bf16 %v466_v43, %v465_v42  ;;  %v206_v7 = vld [vmem:[%s2165_s15 + $0xe8] sm:$0xff]  ;;  %v213_v16 = vld [vmem:[%s2165_s15 + $0x120] sm:$0xff]  ;;  %v475_v21 = vld [vmem:[%s2983_s1 + $0x250] sm:$0xff] }
  0x22   : > { %1749 = vmatprep.subr.bf16.mxu0 %v2034_v3  ;;  %v474_v14 = vld [vmem:[%s2983_s1 + $0x248] sm:$0xff]  ;;  %v476_v22 = vld [vmem:[%s2983_s1 + $0x258] sm:$0xff]  ;;  %v477_v29 = vld [vmem:[%s2983_s1 + $0x260] sm:$0xff] }
  0x23   : > { %v212_v23 = vld [vmem:[%s2165_s15 + $0x118] sm:$0xff]  ;;  %v214_v25 = vld [vmem:[%s2165_s15 + $0x128] sm:$0xff]  ;;  %v219_v32 = vld [vmem:[%s2165_s15 + $0x150] sm:$0xff] }
  0x24   : > { %1703 = vmatpush1.bf16.msra.mxu1 %v1702_v49  ;;  %v467_v49 = vld [vmem:[%s2983_s1 + $0x210] sm:$0xff]  ;;  %v222_v28 = vld [vmem:[%s2165_s15 + $0x168] sm:$0xff]  ;;  %v229_v37 = vld [vmem:[%s2165_s15 + $0x1a0] sm:$0xff] }
  0x25   : > { %1751 = vmatpush1.bf16.msra.mxu0 %v2205_v50  ;;  %1704 = vmatprep.subr.bf16.mxu1 %v2034_v3  ;;  %v1780_v57 = vpack.c.bf16 %v468_v51, %v467_v49  ;;  %v478_v31 = vld [vmem:[%s2983_s1 + $0x268] sm:$0xff]  ;;  %v479_v38 = vld [vmem:[%s2983_s1 + $0x270] sm:$0xff]  ;;  %v480_v39 = vld [vmem:[%s2983_s1 + $0x278] sm:$0xff] }
  0x26   : > { %1752 = vmatprep.subr.bf16.mxu0 %v2034_v3  ;;  %v1795_v35 = vpack.c.bf16 %v478_v31, %v477_v29  ;;  %v228_v42 = vld [vmem:[%s2165_s15 + $0x198] sm:$0xff]  ;;  %v1798_v43 = vpack.c.bf16 %v480_v39, %v479_v38  ;;  %v235_v49 = vld [vmem:[%s2165_s15 + $0x1d0] sm:$0xff]  ;;  %v241_v51 = vld [vmem:[%s2165_s15 + $0x200] sm:$0xff] }
  0x27   : > { %v277_v29 = vld [vmem:[%s2165_s15 + $0x320] sm:$0xff]  ;;  %v283_v31 = vld [vmem:[%s2165_s15 + $0x350] sm:$0xff]  ;;  %v498_v38 = vld [vmem:[%s2983_s1 + $0x308] sm:$0xff] }
  0x28   : > { %1706 = vmatpush1.bf16.msra.mxu1 %v1705_v55  ;;  %v192_v55 = vld [vmem:[%s2165_s15 + $0x78] sm:$0xff] }
  0x29   : > { %1754 = vmatpush1.bf16.msra.mxu0 %v2222_v56  ;;  %1707 = vmatprep.subr.bf16.mxu1 %v2034_v3  ;;  %v284_v39 = vld [vmem:[%s2165_s15 + $0x358] sm:$0xff] }
  0x2a   : > { %1755 = vmatprep.subr.bf16.mxu0 %v2034_v3 }
  0x2c   : > { %1709 = vmatpush1.bf16.msra.mxu1 %v1708_v61  ;;  %v193_v61 = vld [vmem:[%s2165_s15 + $0x80] sm:$0xff] }
  0x2d   : > { %1757 = vmatpush1.bf16.msra.mxu0 %v2239_v62  ;;  %1710 = vmatprep.subr.bf16.mxu1 %v2034_v3 }
  0x2e   : > { %1758 = vmatprep.subr.bf16.mxu0 %v2034_v3 }
  0x30   : > { %1712 = vmatpush1.bf16.msra.mxu1 %v1711_v4  ;;  %v472_v4 = vld [vmem:[%s2983_s1 + $0x238] sm:$0xff] }
  0x31   : > { %1760 = vmatpush1.bf16.msra.mxu0 %v2256_v5  ;;  %1713 = vmatprep.subr.bf16.mxu1 %v2034_v3  ;;  %v1786_v9 = vpack.c.bf16 %v472_v4, %v471_v2  ;;  %v257_v2 = vld [vmem:[%s2165_s15 + $0x280] sm:$0xff]  ;;  %v488_v4 = vld [vmem:[%s2983_s1 + $0x2b8] sm:$0xff] }
  0x32   : > { %1761 = vmatprep.subr.bf16.mxu0 %v2034_v3 }
  0x34   : > { %1715 = vmatpush1.bf16.msra.mxu1 %v1714_v11  ;;  %v473_v11 = vld [vmem:[%s2983_s1 + $0x240] sm:$0xff] }
  0x35   : > { %1763 = vmatpush1.bf16.msra.mxu0 %v2273_v13  ;;  %1716 = vmatprep.subr.bf16.mxu1 %v2034_v3  ;;  %v1789_v17 = vpack.c.bf16 %v474_v14, %v473_v11  ;;  %v490_v11 = vld [vmem:[%s2983_s1 + $0x2c8] sm:$0xff]  ;;  %v261_v14 = vld [vmem:[%s2165_s15 + $0x2a0] sm:$0xff] }
  0x36   : > { %1764 = vmatprep.subr.bf16.mxu0 %v2034_v3 }
  0x38   : > { %1718 = vmatpush1.bf16.msra.mxu1 %v1717_v19  ;;  %v215_v19 = vld [vmem:[%s2165_s15 + $0x130] sm:$0xff] }
  0x39   : > { %1766 = vmatpush1.bf16.msra.mxu0 %v2290_v20  ;;  %1719 = vmatprep.subr.bf16.mxu1 %v2034_v3 }
  0x3a   : > { %1767 = vmatprep.subr.bf16.mxu0 %v2034_v3 }
  0x3c   : > { %1721 = vmatpush1.bf16.msra.mxu1 %v1720_v26  ;;  %v1792_v26 = vpack.c.bf16 %v476_v22, %v475_v21  ;;  %v268_v21 = vld [vmem:[%s2165_s15 + $0x2d8] sm:$0xff]  ;;  %v270_v22 = vld [vmem:[%s2165_s15 + $0x2e8] sm:$0xff] }
  0x3d   : > { %1769 = vmatpush1.bf16.msra.mxu0 %v2307_v27  ;;  %1722 = vmatprep.subr.bf16.mxu1 %v2034_v3 }
  0x3e   : > { %1770 = vmatprep.subr.bf16.mxu0 %v2034_v3 }
  0x40   : > { %1724 = vmatpush1.bf16.msra.mxu1 %v1723_v33  ;;  %v221_v33 = vld [vmem:[%s2165_s15 + $0x160] sm:$0xff] }
  0x41   : > { %1772 = vmatpush1.bf16.msra.mxu0 %v2324_v34  ;;  %1725 = vmatprep.subr.bf16.mxu1 %v2034_v3 }
  0x42   : > { %1773 = vmatprep.subr.bf16.mxu0 %v2034_v3 }
  0x44   : > { %1727 = vmatpush1.bf16.msra.mxu1 %v1726_v40  ;;  %v226_v40 = vld [vmem:[%s2165_s15 + $0x188] sm:$0xff] }
  0x45   : > { %1775 = vmatpush1.bf16.msra.mxu0 %v2341_v41  ;;  %1856 = vmatprep.subr.bf16.mxu1 %v2034_v3 }
  0x46   : > { %1776 = vmatprep.subr.bf16.mxu0 %v2034_v3 }
  0x47   : > { %585 = vmatmul.mubr.f32.vlgmr.msra.gmra.mrb[0].mxu1 %v177_v45  ;;  %v236_v45 = vld [vmem:[%s2165_s15 + $0x1d8] sm:$0xff] }
  0x48   : > { %810 = vmatmul.mubr.f32.vlgmr.msra.gmra.mrb[0].mxu0 %v179_v46  ;;  %1872 = vmatpush1.bf16.msra.mxu1 %v2083_v8  ;;  %v470_v8 = vld [vmem:[%s2983_s1 + $0x228] sm:$0xff]  ;;  %v481_v46 = vld [vmem:[%s2983_s1 + $0x280] sm:$0xff] }
  0x49   : > { %1778 = vmatpush1.bf16.msra.mxu0 %v1777_v47  ;;  %589 = vmatprep.mubr.f32.mxu1 %v185_v48  ;;  %v1783_v0 = vpack.c.bf16 %v470_v8, %v469_v59  ;;  %v482_v47 = vld [vmem:[%s2983_s1 + $0x288] sm:$0xff]  ;;  %v233_v48 = vld [vmem:[%s2165_s15 + $0x1c0] sm:$0xff] }
  0x4a   : > { %814 = vmatprep.mubr.f32.mxu0 %v187_v52  ;;  %1779 = vmatprep.subr.bf16.mxu0 %v2034_v3  ;;  %v1801_v52 = vpack.c.bf16 %v482_v47, %v481_v46  ;;  %v250_v8 = vld [vmem:[%s2165_s15 + $0x248] sm:$0xff]  ;;  %v297_v46 = vld [vmem:[%s2165_s15 + $0x3c0] sm:$0xff]  ;;  %v299_v47 = vld [vmem:[%s2165_s15 + $0x3d0] sm:$0xff] }
  0x4b   : > { %590 = vmatmul.mubr.f32.gmra.mrb[2].mxu1 %v184_v53  ;;  %1857 = vmatprep.subr.bf16.mxu1 %v2034_v3  ;;  %v243_v53 = vld [vmem:[%s2165_s15 + $0x210] sm:$0xff] }
  0x4c   : > { %815 = vmatmul.mubr.f32.gmra.mrb[2].mxu0 %v186_v54  ;;  %594 = vmatprep.mubr.f32.mxu1 %v192_v55  ;;  %v484_v54 = vld [vmem:[%s2983_s1 + $0x298] sm:$0xff] }
  0x4d   : > { %819 = vmatprep.mubr.f32.mxu0 %v194_v58  ;;  %1781 = vmatpush1.bf16.msra.mxu0 %v1780_v57  ;;  %v240_v55 = vld [vmem:[%s2165_s15 + $0x1f8] sm:$0xff]  ;;  %v242_v57 = vld [vmem:[%s2165_s15 + $0x208] sm:$0xff] }
  0x4e   : > { %1873 = vmatpush1.bf16.msra.mxu1 %v2093_v12  ;;  %1782 = vmatprep.subr.bf16.mxu0 %v2034_v3  ;;  %v200_v12 = vld [vmem:[%s2165_s15 + $0xb8] sm:$0xff] }
  0x4f   : > { %595 = vmatmul.mubr.f32.gmra.mrb[4].mxu1 %v191_v60  ;;  %1858 = vmatprep.subr.bf16.mxu1 %v2034_v3  ;;  %v248_v58 = vld [vmem:[%s2165_s15 + $0x238] sm:$0xff]  ;;  %v486_v60 = vld [vmem:[%s2983_s1 + $0x2a8] sm:$0xff] }
  0x50   : > { %820 = vmatmul.mubr.f32.gmra.mrb[4].mxu0 %v193_v61  ;;  %599 = vmatprep.mubr.f32.mxu1 %v199_v63  ;;  %v247_v61 = vld [vmem:[%s2165_s15 + $0x230] sm:$0xff]  ;;  %v249_v63 = vld [vmem:[%s2165_s15 + $0x240] sm:$0xff] }
  0x51   : > { %824 = vmatprep.mubr.f32.mxu0 %v201_v1  ;;  %1784 = vmatpush1.bf16.msra.mxu0 %v1783_v0  ;;  %v255_v0 = vld [vmem:[%s2165_s15 + $0x270] sm:$0xff] }
  0x52   : > { %1874 = vmatpush1.bf16.msra.mxu1 %v2110_v18  ;;  %1785 = vmatprep.subr.bf16.mxu0 %v2034_v3  ;;  %v207_v18 = vld [vmem:[%s2165_s15 + $0xf0] sm:$0xff] }
  0x53   : > { %600 = vmatmul.mubr.f32.gmra.mrb[6].mxu1 %v198_v6  ;;  %1859 = vmatprep.subr.bf16.mxu1 %v2034_v3  ;;  %v254_v6 = vld [vmem:[%s2165_s15 + $0x268] sm:$0xff] }
  0x54   : > { %825 = vmatmul.mubr.f32.gmra.mrb[6].mxu0 %v200_v12  ;;  %604 = vmatprep.mubr.f32.mxu1 %v206_v7  ;;  %v256_v12 = vld [vmem:[%s2165_s15 + $0x278] sm:$0xff]  ;;  %v262_v7 = vld [vmem:[%s2165_s15 + $0x2a8] sm:$0xff] }
  0x55   : > { %829 = vmatprep.mubr.f32.mxu0 %v208_v10  ;;  %1787 = vmatpush1.bf16.msra.mxu0 %v1786_v9  ;;  %v264_v10 = vld [vmem:[%s2165_s15 + $0x2b8] sm:$0xff] }
  0x56   : > { %1788 = vmatprep.subr.bf16.mxu0 %v2034_v3  ;;  %1875 = vmatpush1.bf16.msra.mxu1 %v2129_v24  ;;  %v220_v24 = vld [vmem:[%s2165_s15 + $0x158] sm:$0xff] }
  0x57   : > { %605 = vmatmul.mubr.f32.gmra.mrb[8].mxu1 %v205_v15  ;;  %1860 = vmatprep.subr.bf16.mxu1 %v2034_v3  ;;  %v263_v15 = vld [vmem:[%s2165_s15 + $0x2b0] sm:$0xff] }
  0x58   : > { %830 = vmatmul.mubr.f32.gmra.mrb[8].mxu0 %v207_v18  ;;  %609 = vmatprep.mubr.f32.mxu1 %v213_v16  ;;  %v269_v18 = vld [vmem:[%s2165_s15 + $0x2e0] sm:$0xff] }
  0x59   : > { %834 = vmatprep.mubr.f32.mxu0 %v215_v19  ;;  %1790 = vmatpush1.bf16.msra.mxu0 %v1789_v17  ;;  %v271_v17 = vld [vmem:[%s2165_s15 + $0x2f0] sm:$0xff]  ;;  %v492_v19 = vld [vmem:[%s2983_s1 + $0x2d8] sm:$0xff] }
  0x5a   : > { %1791 = vmatprep.subr.bf16.mxu0 %v2034_v3  ;;  %1876 = vmatpush1.bf16.msra.mxu1 %v2147_v30  ;;  %v227_v30 = vld [vmem:[%s2165_s15 + $0x190] sm:$0xff] }
  0x5b   : > { %610 = vmatmul.mubr.f32.gmra.mrb[10].mxu1 %v212_v23  ;;  %1861 = vmatprep.subr.bf16.mxu1 %v2034_v3  ;;  %v276_v23 = vld [vmem:[%s2165_s15 + $0x318] sm:$0xff] }
  0x5c   : > { %835 = vmatmul.mubr.f32.gmra.mrb[10].mxu0 %v214_v25  ;;  %614 = vmatprep.mubr.f32.mxu1 %v220_v24  ;;  %v278_v24 = vld [vmem:[%s2165_s15 + $0x328] sm:$0xff] }
  0x5d   : > { %839 = vmatprep.mubr.f32.mxu0 %v222_v28  ;;  %1793 = vmatpush1.bf16.msra.mxu0 %v1792_v26  ;;  %v494_v26 = vld [vmem:[%s2983_s1 + $0x2e8] sm:$0xff]  ;;  %v275_v28 = vld [vmem:[%s2165_s15 + $0x310] sm:$0xff] }
  0x5e   : > { %1794 = vmatprep.subr.bf16.mxu0 %v2034_v3  ;;  %1877 = vmatpush1.bf16.msra.mxu1 %v2169_v36  ;;  %v234_v36 = vld [vmem:[%s2165_s15 + $0x1c8] sm:$0xff] }
  0x5f   : > { %615 = vmatmul.mubr.f32.gmra.mrb[12].mxu1 %v219_v32  ;;  %1862 = vmatprep.subr.bf16.mxu1 %v2034_v3 }
  0x60   : > { %840 = vmatmul.mubr.f32.gmra.mrb[12].mxu0 %v221_v33  ;;  %619 = vmatprep.mubr.f32.mxu1 %v227_v30  ;;  %v285_v33 = vld [vmem:[%s2165_s15 + $0x360] sm:$0xff]  ;;  %v496_v30 = vld [vmem:[%s2983_s1 + $0x2f8] sm:$0xff] }
  0x61   : > { %844 = vmatprep.mubr.f32.mxu0 %v229_v37  ;;  %1796 = vmatpush1.bf16.msra.mxu0 %v1795_v35  ;;  %v282_v35 = vld [vmem:[%s2165_s15 + $0x348] sm:$0xff]  ;;  %v497_v37 = vld [vmem:[%s2983_s1 + $0x300] sm:$0xff] }
  0x62   : > { %1797 = vmatprep.subr.bf16.mxu0 %v2034_v3  ;;  %1878 = vmatpush1.bf16.msra.mxu1 %v2188_v44  ;;  %v483_v44 = vld [vmem:[%s2983_s1 + $0x290] sm:$0xff] }
  0x63   : > { %620 = vmatmul.mubr.f32.gmra.mrb[14].mxu1 %v226_v40  ;;  %1863 = vmatprep.subr.bf16.mxu1 %v2034_v3  ;;  %v1804_v59 = vpack.c.bf16 %v484_v54, %v483_v44  ;;  %v310_v44 = vld [vmem:[%s2165_s15 + $0x428] sm:$0xff]  ;;  %v312_v54 = vld [vmem:[%s2165_s15 + $0x438] sm:$0xff] }
  0x64   : > { %845 = vmatmul.mubr.f32.gmra.mrb[14].mxu0 %v228_v42  ;;  %624 = vmatprep.mubr.f32.mxu1 %v234_v36  ;;  %v292_v42 = vld [vmem:[%s2165_s15 + $0x398] sm:$0xff]  ;;  %v2558_v36 = vpack.c.bf16 %v498_v38, %v497_v37  ;;  %v223_v37 = vld [vmem:[%s2165_s15 + $0x170] sm:$0xff] }
  0x65   : > { %849 = vmatprep.mubr.f32.mxu0 %v236_v45  ;;  %1799 = vmatpush1.bf16.msra.mxu0 %v1798_v43  ;;  %v289_v43 = vld [vmem:[%s2165_s15 + $0x380] sm:$0xff]  ;;  %v291_v45 = vld [vmem:[%s2165_s15 + $0x390] sm:$0xff] }
  0x66   : > { %1800 = vmatprep.subr.bf16.mxu0 %v2034_v3  ;;  %1879 = vmatpush1.bf16.msra.mxu1 %v2205_v50  ;;  %v485_v50 = vld [vmem:[%s2983_s1 + $0x2a0] sm:$0xff]  ;;  %v395_v38 = vld [vmem:[%s2165_s15 + $0x6d0] sm:$0xff] }
  0x67   : > { %625 = vmatmul.mubr.f32.gmra.mrb[16].mxu1 %v233_v48  ;;  %1864 = vmatprep.subr.bf16.mxu1 %v2034_v3  ;;  %v1807_v1 = vpack.c.bf16 %v486_v60, %v485_v50  ;;  %v304_v48 = vld [vmem:[%s2165_s15 + $0x3f8] sm:$0xff]  ;;  %v327_v50 = vld [vmem:[%s2165_s15 + $0x4b0] sm:$0xff] }
  0x68   : > { %850 = vmatmul.mubr.f32.gmra.mrb[16].mxu0 %v235_v49  ;;  %629 = vmatprep.mubr.f32.mxu1 %v241_v51  ;;  %v306_v49 = vld [vmem:[%s2165_s15 + $0x408] sm:$0xff]  ;;  %v305_v51 = vld [vmem:[%s2165_s15 + $0x400] sm:$0xff]  ;;  %v324_v60 = vld [vmem:[%s2165_s15 + $0x498] sm:$0xff] }
  0x69   : > { %854 = vmatprep.mubr.f32.mxu0 %v243_v53  ;;  %1802 = vmatpush1.bf16.msra.mxu0 %v1801_v52  ;;  %v311_v52 = vld [vmem:[%s2165_s15 + $0x430] sm:$0xff]  ;;  %v313_v53 = vld [vmem:[%s2165_s15 + $0x440] sm:$0xff] }
  0x6a   : > { %1803 = vmatprep.subr.bf16.mxu0 %v2034_v3  ;;  %1880 = vmatpush1.bf16.msra.mxu1 %v2222_v56  ;;  %v487_v56 = vld [vmem:[%s2983_s1 + $0x2b0] sm:$0xff] }
  0x6b   : > { %630 = vmatmul.mubr.f32.gmra.mrb[18].mxu1 %v240_v55  ;;  %1865 = vmatprep.subr.bf16.mxu1 %v2034_v3  ;;  %v1810_v9 = vpack.c.bf16 %v488_v4, %v487_v56  ;;  %v318_v55 = vld [vmem:[%s2165_s15 + $0x468] sm:$0xff]  ;;  %v339_v56 = vld [vmem:[%s2165_s15 + $0x510] sm:$0xff]  ;;  %v341_v4 = vld [vmem:[%s2165_s15 + $0x520] sm:$0xff] }
  0x6c   : > { %855 = vmatmul.mubr.f32.gmra.mrb[18].mxu0 %v242_v57  ;;  %634 = vmatprep.mubr.f32.mxu1 %v248_v58  ;;  %v320_v57 = vld [vmem:[%s2165_s15 + $0x478] sm:$0xff]  ;;  %v317_v58 = vld [vmem:[%s2165_s15 + $0x460] sm:$0xff] }
  0x6d   : > { %859 = vmatprep.mubr.f32.mxu0 %v250_v8  ;;  %1805 = vmatpush1.bf16.msra.mxu0 %v1804_v59  ;;  %v319_v59 = vld [vmem:[%s2165_s15 + $0x470] sm:$0xff]  ;;  %v325_v8 = vld [vmem:[%s2165_s15 + $0x4a0] sm:$0xff] }
  0x6e   : > { %1806 = vmatprep.subr.bf16.mxu0 %v2034_v3  ;;  %1881 = vmatpush1.bf16.msra.mxu1 %v2239_v62  ;;  %v489_v62 = vld [vmem:[%s2983_s1 + $0x2c0] sm:$0xff] }
  0x6f   : > { %635 = vmatmul.mubr.f32.gmra.mrb[20].mxu1 %v247_v61  ;;  %1866 = vmatprep.subr.bf16.mxu1 %v2034_v3  ;;  %v1813_v16 = vpack.c.bf16 %v490_v11, %v489_v62  ;;  %v326_v61 = vld [vmem:[%s2165_s15 + $0x4a8] sm:$0xff]  ;;  %v181_v62 = vld [vmem:[%s2165_s15 + $0x20] sm:$0xff] }
  0x70   : > { %860 = vmatmul.mubr.f32.gmra.mrb[20].mxu0 %v249_v63  ;;  %639 = vmatprep.mubr.f32.mxu1 %v255_v0  ;;  %v332_v63 = vld [vmem:[%s2165_s15 + $0x4d8] sm:$0xff]  ;;  %v334_v0 = vld [vmem:[%s2165_s15 + $0x4e8] sm:$0xff]  ;;  %v353_v11 = vld [vmem:[%s2165_s15 + $0x580] sm:$0xff] }
  0x71   : > { %864 = vmatprep.mubr.f32.mxu0 %v257_v2  ;;  %1808 = vmatpush1.bf16.msra.mxu0 %v1807_v1  ;;  %v331_v1 = vld [vmem:[%s2165_s15 + $0x4d0] sm:$0xff]  ;;  %v333_v2 = vld [vmem:[%s2165_s15 + $0x4e0] sm:$0xff] }
  0x72   : > { %1809 = vmatprep.subr.bf16.mxu0 %v2034_v3  ;;  %1882 = vmatpush1.bf16.msra.mxu1 %v2256_v5  ;;  %v491_v5 = vld [vmem:[%s2983_s1 + $0x2d0] sm:$0xff] }
  0x73   : > { %640 = vmatmul.mubr.f32.gmra.mrb[22].mxu1 %v254_v6  ;;  %1867 = vmatprep.subr.bf16.mxu1 %v2034_v3  ;;  %v1816_v25 = vpack.c.bf16 %v492_v19, %v491_v5  ;;  %v338_v6 = vld [vmem:[%s2165_s15 + $0x508] sm:$0xff]  ;;  %v359_v5 = vld [vmem:[%s2165_s15 + $0x5b0] sm:$0xff] }
  0x74   : > { %865 = vmatmul.mubr.f32.gmra.mrb[22].mxu0 %v256_v12  ;;  %644 = vmatprep.mubr.f32.mxu1 %v262_v7  ;;  %v340_v12 = vld [vmem:[%s2165_s15 + $0x518] sm:$0xff]  ;;  %v346_v7 = vld [vmem:[%s2165_s15 + $0x548] sm:$0xff]  ;;  %v195_v19 = vld [vmem:[%s2165_s15 + $0x90] sm:$0xff] }
  0x75   : > { %869 = vmatprep.mubr.f32.mxu0 %v264_v10  ;;  %1811 = vmatpush1.bf16.msra.mxu0 %v1810_v9  ;;  %v182_v9 = vld [vmem:[%s2165_s15 + $0x28] sm:$0xff]  ;;  %v345_v10 = vld [vmem:[%s2165_s15 + $0x540] sm:$0xff] }
  0x76   : > { %1812 = vmatprep.subr.bf16.mxu0 %v2034_v3  ;;  %1883 = vmatpush1.bf16.msra.mxu1 %v2273_v13  ;;  %v493_v13 = vld [vmem:[%s2983_s1 + $0x2e0] sm:$0xff] }
  0x77   : > { %645 = vmatmul.mubr.f32.gmra.mrb[24].mxu1 %v261_v14  ;;  %1868 = vmatprep.subr.bf16.mxu1 %v2034_v3  ;;  %v1819_v32 = vpack.c.bf16 %v494_v26, %v493_v13  ;;  %v189_v14 = vld [vmem:[%s2165_s15 + $0x60] sm:$0xff]  ;;  %v210_v13 = vld [vmem:[%s2165_s15 + $0x108] sm:$0xff] }
  0x78   : > { %870 = vmatmul.mubr.f32.gmra.mrb[24].mxu0 %v263_v15  ;;  %649 = vmatprep.mubr.f32.mxu1 %v269_v18  ;;  %v352_v15 = vld [vmem:[%s2165_s15 + $0x578] sm:$0xff]  ;;  %v373_v26 = vld [vmem:[%s2165_s15 + $0x620] sm:$0xff] }
  0x79   : > { %874 = vmatprep.mubr.f32.mxu0 %v271_v17  ;;  %1814 = vmatpush1.bf16.msra.mxu0 %v1813_v16  ;;  %v188_v18 = vld [vmem:[%s2165_s15 + $0x58] sm:$0xff] }
  0x7a   : > { %1815 = vmatprep.subr.bf16.mxu0 %v2034_v3  ;;  %1884 = vmatpush1.bf16.msra.mxu1 %v2290_v20  ;;  %v495_v20 = vld [vmem:[%s2983_s1 + $0x2f0] sm:$0xff]  ;;  %v360_v16 = vld [vmem:[%s2165_s15 + $0x5b8] sm:$0xff] }
  0x7b   : > { %650 = vmatmul.mubr.f32.gmra.mrb[26].mxu1 %v268_v21  ;;  %1869 = vmatprep.subr.bf16.mxu1 %v2034_v3  ;;  %v1822_v40 = vpack.c.bf16 %v496_v30, %v495_v20  ;;  %v196_v17 = vld [vmem:[%s2165_s15 + $0x98] sm:$0xff]  ;;  %v367_v21 = vld [vmem:[%s2165_s15 + $0x5f0] sm:$0xff] }
  0x7c   : > { %875 = vmatmul.mubr.f32.gmra.mrb[26].mxu0 %v270_v22  ;;  %654 = vmatprep.mubr.f32.mxu1 %v276_v23  ;;  %v203_v22 = vld [vmem:[%s2165_s15 + $0xd0] sm:$0xff]  ;;  %v366_v23 = vld [vmem:[%s2165_s15 + $0x5e8] sm:$0xff]  ;;  %v388_v20 = vld [vmem:[%s2165_s15 + $0x698] sm:$0xff] }
  0x7d   : > { %879 = vmatprep.mubr.f32.mxu0 %v278_v24  ;;  %1817 = vmatpush1.bf16.msra.mxu0 %v1816_v25  ;;  %v202_v25 = vld [vmem:[%s2165_s15 + $0xc8] sm:$0xff]  ;;  %v224_v30 = vld [vmem:[%s2165_s15 + $0x178] sm:$0xff] }
  0x7e   : > { %1818 = vmatprep.subr.bf16.mxu0 %v2034_v3  ;;  %1885 = vmatpush1.bf16.msra.mxu1 %v2307_v27  ;;  %v290_v27 = vld [vmem:[%s2165_s15 + $0x388] sm:$0xff] }
  0x7f   : > { %655 = vmatmul.mubr.f32.gmra.mrb[28].mxu1 %v275_v28  ;;  %1870 = vmatprep.subr.bf16.mxu1 %v2034_v3  ;;  %v374_v24 = vld [vmem:[%s2165_s15 + $0x628] sm:$0xff]  ;;  %v209_v28 = vld [vmem:[%s2165_s15 + $0x100] sm:$0xff] }
  0x80   : > { %880 = vmatmul.mubr.f32.gmra.mrb[28].mxu0 %v277_v29  ;;  %659 = vmatprep.mubr.f32.mxu1 %v283_v31  ;;  %v381_v29 = vld [vmem:[%s2165_s15 + $0x660] sm:$0xff] }
  0x81   : > { %884 = vmatprep.mubr.f32.mxu0 %v285_v33  ;;  %1820 = vmatpush1.bf16.msra.mxu0 %v1819_v32  ;;  %v217_v31 = vld [vmem:[%s2165_s15 + $0x140] sm:$0xff]  ;;  %v380_v32 = vld [vmem:[%s2165_s15 + $0x658] sm:$0xff] }
  0x82   : > { %1821 = vmatprep.subr.bf16.mxu0 %v2034_v3  ;;  %1886 = vmatpush1.bf16.msra.mxu1 %v2324_v34  ;;  %v298_v34 = vld [vmem:[%s2165_s15 + $0x3c8] sm:$0xff]  ;;  %v216_v33 = vld [vmem:[%s2165_s15 + $0x138] sm:$0xff] }
  0x83   : > { %660 = vmatmul.mubr.f32.gmra.mrb[30].mxu1 %v282_v35  ;;  %1871 = vmatprep.subr.bf16.mxu1 %v2034_v3  ;;  %v296_v3 = vld [vmem:[%s2165_s15 + $0x3b8] sm:$0xff]  ;;  %v387_v35 = vld [vmem:[%s2165_s15 + $0x690] sm:$0xff] }
  0x84   : > { %885 = vmatmul.mubr.f32.gmra.mrb[30].mxu0 %v284_v39  ;;  %664 = vmatprep.mubr.f32.mxu1 %v290_v27  ;;  %v231_v39 = vld [vmem:[%s2165_s15 + $0x1b0] sm:$0xff]  ;;  %v394_v27 = vld [vmem:[%s2165_s15 + $0x6c8] sm:$0xff] }
  0x85   : > { %889 = vmatprep.mubr.f32.mxu0 %v292_v42  ;;  %1823 = vmatpush1.bf16.msra.mxu0 %v1822_v40  ;;  %v230_v40 = vld [vmem:[%s2165_s15 + $0x1a8] sm:$0xff]  ;;  %v348_v42 = vld [vmem:[%s2165_s15 + $0x558] sm:$0xff] }
  0x86   : > { %1887 = vmatpush1.bf16.msra.mxu1 %v2341_v41  ;;  %v303_v41 = vld [vmem:[%s2165_s15 + $0x3f0] sm:$0xff] }
  0x87   : > { %665 = vmatmul.mubr.f32.gmra.mrb[32].mxu1 %v289_v43  ;;  %1825 = vmatprep.subr.bf16.mxu1 %v2558_v36  ;;  %v238_v43 = vld [vmem:[%s2165_s15 + $0x1e8] sm:$0xff] }
  0x88   : > { %890 = vmatmul.mubr.f32.gmra.mrb[32].mxu0 %v291_v45  ;;  %669 = vmatprep.mubr.f32.mxu1 %v297_v46  ;;  %v499_v45 = vld [vmem:[%s2983_s1 + $0x310] sm:$0xff]  ;;  %v500_v46 = vld [vmem:[%s2983_s1 + $0x318] sm:$0xff] }
  0x89   : > { %894 = vmatprep.mubr.f32.mxu0 %v299_v47  ;;  %v347_v47 = vld [vmem:[%s2165_s15 + $0x550] sm:$0xff] }
  0x8b   : > { %670 = vmatmul.mubr.f32.gmra.mrb[34].mxu1 %v296_v3  ;;  %v237_v3 = vld [vmem:[%s2165_s15 + $0x1e0] sm:$0xff] }
  0x8c   : > { %895 = vmatmul.mubr.f32.gmra.mrb[34].mxu0 %v298_v34  ;;  %674 = vmatprep.mubr.f32.mxu1 %v304_v48  ;;  %v355_v34 = vld [vmem:[%s2165_s15 + $0x590] sm:$0xff]  ;;  %v245_v48 = vld [vmem:[%s2165_s15 + $0x220] sm:$0xff] }
  0x8d   : > { %899 = vmatprep.mubr.f32.mxu0 %v306_v49  ;;  %v1828_v49 = vpack.c.bf16 %v500_v46, %v499_v45  ;;  %v315_v45 = vld [vmem:[%s2165_s15 + $0x450] sm:$0xff]  ;;  %v232_v46 = vld [vmem:[%s2165_s15 + $0x1b8] sm:$0xff] }
  0x8f   : > { %675 = vmatmul.mubr.f32.gmra.mrb[36].mxu1 %v303_v41  ;;  %v501_v41 = vld [vmem:[%s2983_s1 + $0x320] sm:$0xff] }
  0x90   : > { %900 = vmatmul.mubr.f32.gmra.mrb[36].mxu0 %v305_v51  ;;  %679 = vmatprep.mubr.f32.mxu1 %v311_v52  ;;  %v502_v51 = vld [vmem:[%s2983_s1 + $0x328] sm:$0xff] }
  0x91   : > { %904 = vmatprep.mubr.f32.mxu0 %v313_v53  ;;  %v354_v52 = vld [vmem:[%s2165_s15 + $0x588] sm:$0xff]  ;;  %v244_v53 = vld [vmem:[%s2165_s15 + $0x218] sm:$0xff] }
  0x93   : > { %680 = vmatmul.mubr.f32.gmra.mrb[38].mxu1 %v310_v44  ;;  %v362_v44 = vld [vmem:[%s2165_s15 + $0x5c8] sm:$0xff] }
  0x94   : > { %905 = vmatmul.mubr.f32.gmra.mrb[38].mxu0 %v312_v54  ;;  %684 = vmatprep.mubr.f32.mxu1 %v318_v55  ;;  %v252_v54 = vld [vmem:[%s2165_s15 + $0x258] sm:$0xff]  ;;  %v1832_v55 = vpack.c.bf16 %v502_v51, %v501_v41  ;;  %v253_v41 = vld [vmem:[%s2165_s15 + $0x260] sm:$0xff] }
  0x95   : > { %909 = vmatprep.mubr.f32.mxu0 %v320_v57  ;;  %v503_v57 = vld [vmem:[%s2983_s1 + $0x330] sm:$0xff]  ;;  %v329_v51 = vld [vmem:[%s2165_s15 + $0x4c0] sm:$0xff] }
  0x97   : > { %685 = vmatmul.mubr.f32.gmra.mrb[40].mxu1 %v317_v58  ;;  %v361_v58 = vld [vmem:[%s2165_s15 + $0x5c0] sm:$0xff] }
  0x98   : > { %910 = vmatmul.mubr.f32.gmra.mrb[40].mxu0 %v319_v59  ;;  %689 = vmatprep.mubr.f32.mxu1 %v325_v8  ;;  %v251_v59 = vld [vmem:[%s2165_s15 + $0x250] sm:$0xff]  ;;  %v369_v8 = vld [vmem:[%s2165_s15 + $0x600] sm:$0xff] }
  0x99   : > { %914 = vmatprep.mubr.f32.mxu0 %v327_v50  ;;  %v259_v50 = vld [vmem:[%s2165_s15 + $0x290] sm:$0xff] }
  0x9b   : > { %690 = vmatmul.mubr.f32.gmra.mrb[42].mxu1 %v324_v60 }
  0x9c   : > { %915 = vmatmul.mubr.f32.gmra.mrb[42].mxu0 %v326_v61  ;;  %694 = vmatprep.mubr.f32.mxu1 %v332_v63  ;;  %v505_v61 = vld [vmem:[%s2983_s1 + $0x340] sm:$0xff]  ;;  %v506_v63 = vld [vmem:[%s2983_s1 + $0x348] sm:$0xff] }
  0x9d   : > { %919 = vmatprep.mubr.f32.mxu0 %v334_v0  ;;  %v368_v0 = vld [vmem:[%s2165_s15 + $0x5f8] sm:$0xff] }
  0x9f   : > { %695 = vmatmul.mubr.f32.gmra.mrb[44].mxu1 %v331_v1  ;;  %v258_v1 = vld [vmem:[%s2165_s15 + $0x288] sm:$0xff] }
  0xa0   : > { %920 = vmatmul.mubr.f32.gmra.mrb[44].mxu0 %v333_v2  ;;  %699 = vmatprep.mubr.f32.mxu1 %v339_v56  ;;  %v376_v2 = vld [vmem:[%s2165_s15 + $0x638] sm:$0xff]  ;;  %v266_v56 = vld [vmem:[%s2165_s15 + $0x2c8] sm:$0xff] }
  0xa1   : > { %924 = vmatprep.mubr.f32.mxu0 %v341_v4  ;;  %v1840_v4 = vpack.c.bf16 %v506_v63, %v505_v61  ;;  %v302_v61 = vld [vmem:[%s2165_s15 + $0x3e8] sm:$0xff]  ;;  %v349_v63 = vld [vmem:[%s2165_s15 + $0x560] sm:$0xff] }
  0xa3   : > { %700 = vmatmul.mubr.f32.gmra.mrb[46].mxu1 %v338_v6  ;;  %v507_v6 = vld [vmem:[%s2983_s1 + $0x350] sm:$0xff] }
  0xa4   : > { %925 = vmatmul.mubr.f32.gmra.mrb[46].mxu0 %v340_v12  ;;  %704 = vmatprep.mubr.f32.mxu1 %v346_v7  ;;  %v508_v12 = vld [vmem:[%s2983_s1 + $0x358] sm:$0xff]  ;;  %v375_v7 = vld [vmem:[%s2165_s15 + $0x630] sm:$0xff] }
  0xa5   : > { %1034 = vmatprep.mubr.f32.mxu0 %v182_v9  ;;  %v265_v9 = vld [vmem:[%s2165_s15 + $0x2c0] sm:$0xff] }
  0xa7   : > { %705 = vmatmul.mubr.f32.gmra.mrb[48].mxu1 %v345_v10  ;;  %v383_v10 = vld [vmem:[%s2165_s15 + $0x670] sm:$0xff] }
  0xa8   : > { %1035 = vmatmul.mubr.f32.vlgmr.msra.gmra.mrb[0].mxu0 %v181_v62  ;;  %709 = vmatprep.mubr.f32.mxu1 %v353_v11  ;;  %v273_v62 = vld [vmem:[%s2165_s15 + $0x300] sm:$0xff]  ;;  %v1844_v11 = vpack.c.bf16 %v508_v12, %v507_v6  ;;  %v364_v6 = vld [vmem:[%s2165_s15 + $0x5d8] sm:$0xff]  ;;  %v330_v12 = vld [vmem:[%s2165_s15 + $0x4c8] sm:$0xff] }
  0xa9   : > { %1039 = vmatprep.mubr.f32.mxu0 %v189_v14  ;;  %v509_v14 = vld [vmem:[%s2983_s1 + $0x360] sm:$0xff] }
  0xab   : > { %710 = vmatmul.mubr.f32.gmra.mrb[50].mxu1 %v352_v15  ;;  %v510_v15 = vld [vmem:[%s2983_s1 + $0x368] sm:$0xff] }
  0xac   : > { %1040 = vmatmul.mubr.f32.gmra.mrb[2].mxu0 %v188_v18  ;;  %714 = vmatprep.mubr.f32.mxu1 %v360_v16  ;;  %v382_v18 = vld [vmem:[%s2165_s15 + $0x668] sm:$0xff]  ;;  %v272_v16 = vld [vmem:[%s2165_s15 + $0x2f8] sm:$0xff] }
  0xad   : > { %1044 = vmatprep.mubr.f32.mxu0 %v196_v17  ;;  %v390_v17 = vld [vmem:[%s2165_s15 + $0x6a8] sm:$0xff] }
  0xaf   : > { %715 = vmatmul.mubr.f32.gmra.mrb[52].mxu1 %v359_v5  ;;  %v280_v5 = vld [vmem:[%s2165_s15 + $0x338] sm:$0xff] }
  0xb0   : > { %1045 = vmatmul.mubr.f32.gmra.mrb[4].mxu0 %v195_v19  ;;  %719 = vmatprep.mubr.f32.mxu1 %v367_v21  ;;  %v1848_v19 = vpack.c.bf16 %v510_v15, %v509_v14  ;;  %v511_v21 = vld [vmem:[%s2983_s1 + $0x370] sm:$0xff]  ;;  %v378_v15 = vld [vmem:[%s2165_s15 + $0x648] sm:$0xff] }
  0xb1   : > { %1049 = vmatprep.mubr.f32.mxu0 %v203_v22  ;;  %v512_v22 = vld [vmem:[%s2983_s1 + $0x378] sm:$0xff]  ;;  %v351_v14 = vld [vmem:[%s2165_s15 + $0x570] sm:$0xff] }
  0xb3   : > { %720 = vmatmul.mubr.f32.gmra.mrb[54].mxu1 %v366_v23  ;;  %v389_v23 = vld [vmem:[%s2165_s15 + $0x6a0] sm:$0xff] }
  0xb4   : > { %1050 = vmatmul.mubr.f32.gmra.mrb[6].mxu0 %v202_v25  ;;  %724 = vmatprep.mubr.f32.mxu1 %v374_v24  ;;  %v279_v25 = vld [vmem:[%s2165_s15 + $0x330] sm:$0xff]  ;;  %v397_v24 = vld [vmem:[%s2165_s15 + $0x6e0] sm:$0xff] }
  0xb5   : > { %1054 = vmatprep.mubr.f32.mxu0 %v210_v13  ;;  %v287_v13 = vld [vmem:[%s2165_s15 + $0x370] sm:$0xff] }
  0xb7   : > { %725 = vmatmul.mubr.f32.gmra.mrb[56].mxu1 %v373_v26  ;;  %v1852_v26 = vpack.c.bf16 %v512_v22, %v511_v21  ;;  %v384_v21 = vld [vmem:[%s2165_s15 + $0x678] sm:$0xff]  ;;  %v379_v22 = vld [vmem:[%s2165_s15 + $0x650] sm:$0xff] }
  0xb8   : > { %1055 = vmatmul.mubr.f32.gmra.mrb[8].mxu0 %v209_v28  ;;  %729 = vmatprep.mubr.f32.mxu1 %v381_v29  ;;  %v396_v28 = vld [vmem:[%s2165_s15 + $0x6d8] sm:$0xff]  ;;  %v286_v29 = vld [vmem:[%s2165_s15 + $0x368] sm:$0xff] }
  0xb9   : > { %1059 = vmatprep.mubr.f32.mxu0 %v217_v31  ;;  %v294_v31 = vld [vmem:[%s2165_s15 + $0x3a8] sm:$0xff] }
  0xbb   : > { %730 = vmatmul.mubr.f32.gmra.mrb[58].mxu1 %v380_v32  ;;  %v183_v32 = vld [vmem:[%s2165_s15 + $0x30] sm:$0xff] }
  0xbc   : > { %1060 = vmatmul.mubr.f32.gmra.mrb[10].mxu0 %v216_v33  ;;  %734 = vmatprep.mubr.f32.mxu1 %v388_v20  ;;  %v190_v33 = vld [vmem:[%s2165_s15 + $0x68] sm:$0xff]  ;;  %v293_v20 = vld [vmem:[%s2165_s15 + $0x3a0] sm:$0xff] }
  0xbd   : > { %1064 = vmatprep.mubr.f32.mxu0 %v224_v30  ;;  %v197_v30 = vld [vmem:[%s2165_s15 + $0xa0] sm:$0xff] }
  0xbf   : > { %735 = vmatmul.mubr.f32.gmra.mrb[60].mxu1 %v387_v35  ;;  %v301_v35 = vld [vmem:[%s2165_s15 + $0x3e0] sm:$0xff] }
  0xc0   : > { %1065 = vmatmul.mubr.f32.gmra.mrb[12].mxu0 %v223_v37  ;;  %739 = vmatprep.mubr.f32.mxu1 %v395_v38  ;;  %v204_v37 = vld [vmem:[%s2165_s15 + $0xd8] sm:$0xff] }
  0xc1   : > { %1069 = vmatprep.mubr.f32.mxu0 %v231_v39  ;;  %v300_v38 = vld [vmem:[%s2165_s15 + $0x3d8] sm:$0xff]  ;;  %v211_v39 = vld [vmem:[%s2165_s15 + $0x110] sm:$0xff] }
  0xc3   : > { %740 = vmatmul.mubr.f32.gmra.mrb[62].mxu1 %v394_v27  ;;  %v308_v27 = vld [vmem:[%s2165_s15 + $0x418] sm:$0xff] }
  0xc4   : > { %1070 = vmatmul.mubr.f32.gmra.mrb[14].mxu0 %v230_v40  ;;  %929 = vmatprep.mubr.f32.mxu1 %v348_v42  ;;  %v218_v40 = vld [vmem:[%s2165_s15 + $0x148] sm:$0xff]  ;;  %v307_v42 = vld [vmem:[%s2165_s15 + $0x410] sm:$0xff] }
  0xc5   : > { %1074 = vmatprep.mubr.f32.mxu0 %v238_v43  ;;  %v225_v43 = vld [vmem:[%s2165_s15 + $0x180] sm:$0xff] }
  0xc7   : > { %930 = vmatmul.mubr.f32.vlgmr.msra.gmra.mrb[48].mxu1 %v347_v47  ;;  %v314_v47 = vld [vmem:[%s2165_s15 + $0x448] sm:$0xff] }
  0xc8   : > { %1075 = vmatmul.mubr.f32.gmra.mrb[16].mxu0 %v237_v3  ;;  %1827 = vmatpush3.bf16.msra.mxu1 %v2558_v36  ;;  %v504_v36 = vld [vmem:[%s2983_s1 + $0x338] sm:$0xff]  ;;  %v239_v3 = vld [vmem:[%s2165_s15 + $0x1f0] sm:$0xff] }
  0xc9   : > { %934 = vmatprep.mubr.f32.mxu1 %v355_v34  ;;  %1079 = vmatprep.mubr.f32.mxu0 %v245_v48  ;;  %v1836_v60 = vpack.c.bf16 %v504_v36, %v503_v57  ;;  %v322_v34 = vld [vmem:[%s2165_s15 + $0x488] sm:$0xff]  ;;  %v335_v57 = vld [vmem:[%s2165_s15 + $0x4f0] sm:$0xff]  ;;  %v281_v36 = vld [vmem:[%s2165_s15 + $0x340] sm:$0xff] }
  0xca   : > { %1829 = vmatprep.subr.bf16.mxu1 %v1828_v49  ;;  %v246_v48 = vld [vmem:[%s2165_s15 + $0x228] sm:$0xff] }
  0xcb   : > { %935 = vmatmul.mubr.f32.gmra.mrb[50].mxu1 %v354_v52  ;;  %v260_v52 = vld [vmem:[%s2165_s15 + $0x298] sm:$0xff] }
  0xcc   : > { %1080 = vmatmul.mubr.f32.gmra.mrb[18].mxu0 %v244_v53  ;;  %1831 = vmatpush3.bf16.msra.mxu1 %v1828_v49  ;;  %v321_v49 = vld [vmem:[%s2165_s15 + $0x480] sm:$0xff]  ;;  %v328_v53 = vld [vmem:[%s2165_s15 + $0x4b8] sm:$0xff] }
  0xcd   : > { %939 = vmatprep.mubr.f32.mxu1 %v362_v44  ;;  %1084 = vmatprep.mubr.f32.mxu0 %v252_v54  ;;  %v267_v44 = vld [vmem:[%s2165_s15 + $0x2d0] sm:$0xff]  ;;  %v336_v54 = vld [vmem:[%s2165_s15 + $0x4f8] sm:$0xff] }
  0xce   : > { %1833 = vmatprep.subr.bf16.mxu1 %v1832_v55 }
  0xcf   : > { %940 = vmatmul.mubr.f32.gmra.mrb[52].mxu1 %v361_v58  ;;  %v343_v58 = vld [vmem:[%s2165_s15 + $0x530] sm:$0xff] }
  0xd0   : > { %1085 = vmatmul.mubr.f32.gmra.mrb[20].mxu0 %v251_v59  ;;  %1835 = vmatpush3.bf16.msra.mxu1 %v1832_v55  ;;  %v274_v55 = vld [vmem:[%s2165_s15 + $0x308] sm:$0xff]  ;;  %v288_v59 = vld [vmem:[%s2165_s15 + $0x378] sm:$0xff] }
  0xd1   : > { %944 = vmatprep.mubr.f32.mxu1 %v369_v8  ;;  %1089 = vmatprep.mubr.f32.mxu0 %v259_v50  ;;  %v342_v8 = vld [vmem:[%s2165_s15 + $0x528] sm:$0xff]  ;;  %v295_v50 = vld [vmem:[%s2165_s15 + $0x3b0] sm:$0xff] }
  0xd2   : > { %1837 = vmatprep.subr.bf16.mxu1 %v1836_v60 }
  0xd3   : > { %945 = vmatmul.mubr.f32.gmra.mrb[54].mxu1 %v368_v0  ;;  %v309_v0 = vld [vmem:[%s2165_s15 + $0x420] sm:$0xff] }
  0xd4   : > { %1090 = vmatmul.mubr.f32.gmra.mrb[22].mxu0 %v258_v1  ;;  %1839 = vmatpush3.bf16.msra.mxu1 %v1836_v60  ;;  %v350_v60 = vld [vmem:[%s2165_s15 + $0x568] sm:$0xff]  ;;  %v357_v1 = vld [vmem:[%s2165_s15 + $0x5a0] sm:$0xff] }
  0xd5   : > { %949 = vmatprep.mubr.f32.mxu1 %v376_v2  ;;  %1094 = vmatprep.mubr.f32.mxu0 %v266_v56  ;;  %v316_v2 = vld [vmem:[%s2165_s15 + $0x458] sm:$0xff] }
  0xd6   : > { %1841 = vmatprep.subr.bf16.mxu1 %v1840_v4  ;;  %v356_v56 = vld [vmem:[%s2165_s15 + $0x598] sm:$0xff] }
  0xd7   : > { %950 = vmatmul.mubr.f32.gmra.mrb[56].mxu1 %v375_v7  ;;  %v363_v7 = vld [vmem:[%s2165_s15 + $0x5d0] sm:$0xff] }
  0xd8   : > { %1095 = vmatmul.mubr.f32.gmra.mrb[24].mxu0 %v265_v9  ;;  %1843 = vmatpush3.bf16.msra.mxu1 %v1840_v4  ;;  %v323_v4 = vld [vmem:[%s2165_s15 + $0x490] sm:$0xff]  ;;  %v337_v9 = vld [vmem:[%s2165_s15 + $0x500] sm:$0xff] }
  0xd9   : > { %954 = vmatprep.mubr.f32.mxu1 %v383_v10  ;;  %1099 = vmatprep.mubr.f32.mxu0 %v273_v62  ;;  %v371_v10 = vld [vmem:[%s2165_s15 + $0x610] sm:$0xff]  ;;  %v344_v62 = vld [vmem:[%s2165_s15 + $0x538] sm:$0xff] }
  0xda   : > { %1845 = vmatprep.subr.bf16.mxu1 %v1844_v11 }
  0xdb   : > { %955 = vmatmul.mubr.f32.gmra.mrb[58].mxu1 %v382_v18  ;;  %v358_v18 = vld [vmem:[%s2165_s15 + $0x5a8] sm:$0xff] }
  0xdc   : > { %1100 = vmatmul.mubr.f32.gmra.mrb[26].mxu0 %v272_v16  ;;  %1847 = vmatpush3.bf16.msra.mxu1 %v1844_v11  ;;  %v370_v11 = vld [vmem:[%s2165_s15 + $0x608] sm:$0xff]  ;;  %v377_v16 = vld [vmem:[%s2165_s15 + $0x640] sm:$0xff] }
  0xdd   : > { %959 = vmatprep.mubr.f32.mxu1 %v390_v17  ;;  %1104 = vmatprep.mubr.f32.mxu0 %v280_v5  ;;  %v365_v17 = vld [vmem:[%s2165_s15 + $0x5e0] sm:$0xff] }
  0xde   : > { %1849 = vmatprep.subr.bf16.mxu1 %v1848_v19  ;;  %v385_v5 = vld [vmem:[%s2165_s15 + $0x680] sm:$0xff] }
  0xdf   : > { %960 = vmatmul.mubr.f32.gmra.mrb[60].mxu1 %v389_v23 }
  0xe0   : > { %1105 = vmatmul.mubr.f32.gmra.mrb[28].mxu0 %v279_v25  ;;  %1851 = vmatpush3.bf16.msra.mxu1 %v1848_v19  ;;  %v372_v19 = vld [vmem:[%s2165_s15 + $0x618] sm:$0xff] }
  0xe1   : > { %964 = vmatprep.mubr.f32.mxu1 %v397_v24  ;;  %1109 = vmatprep.mubr.f32.mxu0 %v287_v13  ;;  %v392_v25 = vld [vmem:[%s2165_s15 + $0x6b8] sm:$0xff]  ;;  %v386_v13 = vld [vmem:[%s2165_s15 + $0x688] sm:$0xff] }
  0xe2   : > { %1853 = vmatprep.subr.bf16.mxu1 %v1852_v26 }
  0xe3   : > { %965 = vmatmul.mubr.f32.gmra.mrb[62].mxu1 %v396_v28  ;;  %v393_v28 = vld [vmem:[%s2165_s15 + $0x6c0] sm:$0xff] }
  0xe4   : > { %1110 = vmatmul.mubr.f32.gmra.mrb[30].mxu0 %v286_v29  ;;  %1855 = vmatpush3.bf16.msra.mxu1 %v1852_v26  ;;  %v391_v26 = vld [vmem:[%s2165_s15 + $0x6b0] sm:$0xff] }
  0xe5   : > { %1114 = vmatprep.mubr.f32.mxu0 %v294_v31  ;;  %1632 = vmatprep.mubr.f32.mxu1 %v183_v32  ;;  %v399_v31 = vld [vmem:[%s2165_s15 + $0x6f0] sm:$0xff] }
  0xe7   : > { %1633 = vmatmul.mubr.f32.vlgmr.msra.gmra.mrb[64].mxu1 %v190_v33  ;;  %v400_v33 = vld [vmem:[%s2165_s15 + $0x6f8] sm:$0xff] }
  0xe8   : > { %1115 = vmatmul.mubr.f32.gmra.mrb[32].mxu0 %v293_v20  ;;  %1635 = vmatprep.mubr.f32.mxu1 %v197_v30  ;;  %v398_v20 = vld [vmem:[%s2165_s15 + $0x6e8] sm:$0xff] }
  0xe9   : > { %1119 = vmatprep.mubr.f32.mxu0 %v301_v35 }
  0xeb   : > { %1636 = vmatmul.mubr.f32.gmra.mrb[66].mxu1 %v204_v37 }
  0xec   : > { %1120 = vmatmul.mubr.f32.gmra.mrb[34].mxu0 %v300_v38  ;;  %1638 = vmatprep.mubr.f32.mxu1 %v211_v39 }
  0xed   : > { %1124 = vmatprep.mubr.f32.mxu0 %v308_v27 }
  0xef   : > { %1639 = vmatmul.mubr.f32.gmra.mrb[68].mxu1 %v218_v40 }
  0xf0   : > { %1125 = vmatmul.mubr.f32.gmra.mrb[36].mxu0 %v307_v42  ;;  %1641 = vmatprep.mubr.f32.mxu1 %v225_v43 }
  0xf1   : > { %1129 = vmatprep.mubr.f32.mxu0 %v315_v45 }
  0xf3   : > { %1642 = vmatmul.mubr.f32.gmra.mrb[70].mxu1 %v232_v46 }
  0xf4   : > { %1130 = vmatmul.mubr.f32.gmra.mrb[38].mxu0 %v314_v47  ;;  %1644 = vmatprep.mubr.f32.mxu1 %v239_v3 }
  0xf5   : > { %1134 = vmatprep.mubr.f32.mxu0 %v322_v34 }
  0xf7   : > { %1645 = vmatmul.mubr.f32.gmra.mrb[72].mxu1 %v246_v48 }
  0xf8   : > { %1135 = vmatmul.mubr.f32.gmra.mrb[40].mxu0 %v321_v49  ;;  %1647 = vmatprep.mubr.f32.mxu1 %v253_v41 }
  0xf9   : > { %1139 = vmatprep.mubr.f32.mxu0 %v329_v51 }
  0xfb   : > { %1648 = vmatmul.mubr.f32.gmra.mrb[74].mxu1 %v260_v52 }
  0xfc   : > { %1140 = vmatmul.mubr.f32.gmra.mrb[42].mxu0 %v328_v53  ;;  %1650 = vmatprep.mubr.f32.mxu1 %v267_v44 }
  0xfd   : > { %1144 = vmatprep.mubr.f32.mxu0 %v336_v54 }
  0xff   : > { %1651 = vmatmul.mubr.f32.gmra.mrb[76].mxu1 %v274_v55 }
 0x100   : > { %1145 = vmatmul.mubr.f32.gmra.mrb[44].mxu0 %v335_v57  ;;  %1653 = vmatprep.mubr.f32.mxu1 %v281_v36 }
 0x101   : > { %1149 = vmatprep.mubr.f32.mxu0 %v343_v58 }
 0x103   : > { %1654 = vmatmul.mubr.f32.gmra.mrb[78].mxu1 %v288_v59 }
 0x104   : > { %1150 = vmatmul.mubr.f32.gmra.mrb[46].mxu0 %v342_v8  ;;  %1656 = vmatprep.mubr.f32.mxu1 %v295_v50 }
 0x105   : > { %1154 = vmatprep.mubr.f32.mxu0 %v350_v60 }
 0x107   : > { %1657 = vmatmul.mubr.f32.gmra.mrb[80].mxu1 %v302_v61 }
 0x108   : > { %1155 = vmatmul.mubr.f32.gmra.mrb[48].mxu0 %v349_v63  ;;  %1659 = vmatprep.mubr.f32.mxu1 %v309_v0 }
 0x109   : > { %1159 = vmatprep.mubr.f32.mxu0 %v357_v1 }
 0x10b   : > { %1660 = vmatmul.mubr.f32.gmra.mrb[82].mxu1 %v316_v2 }
 0x10c   : > { %1160 = vmatmul.mubr.f32.gmra.mrb[50].mxu0 %v356_v56  ;;  %1662 = vmatprep.mubr.f32.mxu1 %v323_v4 }
 0x10d   : > { %1164 = vmatprep.mubr.f32.mxu0 %v364_v6 }
 0x10f   : > { %1663 = vmatmul.mubr.f32.gmra.mrb[84].mxu1 %v330_v12 }
 0x110   : > { %1165 = vmatmul.mubr.f32.gmra.mrb[52].mxu0 %v363_v7  ;;  %1665 = vmatprep.mubr.f32.mxu1 %v337_v9 }
 0x111   : > { %1169 = vmatprep.mubr.f32.mxu0 %v371_v10 }
 0x113   : > { %1666 = vmatmul.mubr.f32.gmra.mrb[86].mxu1 %v344_v62 }
 0x114   : > { %1170 = vmatmul.mubr.f32.gmra.mrb[54].mxu0 %v370_v11  ;;  %1668 = vmatprep.mubr.f32.mxu1 %v351_v14  ;;  %v2802_v11 = vld [vmem:[%s2984_s2] ss:$0 sm:$0xff] }
 0x115   : > { %1174 = vmatprep.mubr.f32.mxu0 %v378_v15 }
 0x117   : > { %1669 = vmatmul.mubr.f32.gmra.mrb[88].mxu1 %v358_v18 }
 0x118   : > { %1175 = vmatmul.mubr.f32.gmra.mrb[56].mxu0 %v377_v16  ;;  %1671 = vmatprep.mubr.f32.mxu1 %v365_v17 }
 0x119   : > { %1179 = vmatprep.mubr.f32.mxu0 %v385_v5 }
 0x11a   : > { %v2756_v23 = vpop.f32.mrb[0].mxu1 }
 0x11b   : > { %1672 = vmatmul.mubr.f32.gmra.mrb[90].mxu1 %v372_v19  ;;  %v588_v24 = vpop.f32.mrb[1].mxu1  ;;  %v587_v15 = vadd.f32 %v2802_v11, %v2756_v23 }
 0x11c   : > { %1180 = vmatmul.mubr.f32.gmra.mrb[58].mxu0 %v384_v21  ;;  %1674 = vmatprep.mubr.f32.mxu1 %v379_v22 }
 0x11d   : > { %1184 = vmatprep.mubr.f32.mxu0 %v392_v25 }
 0x11e   : > { %v591_v29 = vpop.f32.mrb[2].mxu1 }
 0x11f   : > { %1675 = vmatmul.mubr.f32.gmra.mrb[92].mxu1 %v386_v13  ;;  %v593_v32 = vpop.f32.mrb[3].mxu1  ;;  %v592_v5 = vadd.f32 %v2802_v11, %v591_v29 }
 0x120   : > { %1185 = vmatmul.mubr.f32.gmra.mrb[60].mxu0 %v391_v26  ;;  %1677 = vmatprep.mubr.f32.mxu1 %v393_v28 }
 0x121   : > { %1189 = vmatprep.mubr.f32.mxu0 %v399_v31 }
 0x122   : > { %v596_v30 = vpop.f32.mrb[4].mxu1 }
 0x123   : > { %1678 = vmatmul.mubr.f32.gmra.mrb[94].mxu1 %v400_v33  ;;  %v598_v35 = vpop.f32.mrb[5].mxu1  ;;  %v597_v25 = vadd.f32 %v2802_v11, %v596_v30 }
 0x124   : > { %1190 = vmatmul.mubr.f32.gmra.mrb[62].mxu0 %v398_v20 }
 0x126   : > { %v601_v37 = vpop.f32.mrb[6].mxu1 }
 0x127   : > { %v603_v38 = vpop.f32.mrb[7].mxu1  ;;  %v602_v28 = vadd.f32 %v2802_v11, %v601_v37 }
 0x12a   : > { %v606_v39 = vpop.f32.mrb[8].mxu1 }
 0x12b   : > { %v608_v27 = vpop.f32.mrb[9].mxu1  ;;  %v607_v33 = vadd.f32 %v2802_v11, %v606_v39 }
 0x12e   : > { %v611_v40 = vpop.f32.mrb[10].mxu1 }
 0x12f   : > { %v613_v42 = vpop.f32.mrb[11].mxu1  ;;  %v612_v38 = vadd.f32 %v2802_v11, %v611_v40 }
 0x132   : > { %v616_v43 = vpop.f32.mrb[12].mxu1 }
 0x133   : > { %v618_v45 = vpop.f32.mrb[13].mxu1 }
 0x134   : > { %v617_v45 = vadd.f32 %v2802_v11, %v616_v43 }
 0x136   : > { %v2765_v46 = vpop.f32.mrb[14].mxu1 }
 0x137   : > { %v623_v47 = vpop.f32.mrb[15].mxu1 }
 0x13a   : > { %v2767_v3 = vpop.f32.mrb[16].mxu1 }
 0x13b   : > { %v628_v34 = vpop.f32.mrb[17].mxu1  ;;  %v627_v40 = vadd.f32 %v2802_v11, %v2767_v3 }
 0x13e   : > { %v2769_v48 = vpop.f32.mrb[18].mxu1 }
 0x13f   : > { %v633_v49 = vpop.f32.mrb[19].mxu1 }
 0x140   : > { %v622_v49 = vadd.f32 %v2802_v11, %v2765_v46 }
 0x142   : > { %v2771_v41 = vpop.f32.mrb[20].mxu1 }
 0x143   : > { %v638_v51 = vpop.f32.mrb[21].mxu1  ;;  %v637_v3 = vadd.f32 %v2802_v11, %v2771_v41 }
 0x146   : > { %v2773_v52 = vpop.f32.mrb[22].mxu1 }
 0x147   : > { %v643_v53 = vpop.f32.mrb[23].mxu1 }
 0x14a   : > { %v2775_v44 = vpop.f32.mrb[24].mxu1 }
 0x14b   : > { %v648_v54 = vpop.f32.mrb[25].mxu1  ;;  %v647_v41 = vadd.f32 %v2802_v11, %v2775_v44 }
 0x14e   : > { %v2777_v55 = vpop.f32.mrb[26].mxu1 }
 0x14f   : > { %v653_v57 = vpop.f32.mrb[27].mxu1 }
 0x152   : > { %v2779_v36 = vpop.f32.mrb[28].mxu1 }
 0x153   : > { %v658_v58 = vpop.f32.mrb[29].mxu1  ;;  %v657_v44 = vadd.f32 %v2802_v11, %v2779_v36 }
 0x156   : > { %v2781_v59 = vpop.f32.mrb[30].mxu1 }
 0x157   : > { %v663_v8 = vpop.f32.mrb[31].mxu1 }
 0x15a   : > { %v2783_v50 = vpop.f32.mrb[32].mxu1 }
 0x15b   : > { %v668_v60 = vpop.f32.mrb[33].mxu1  ;;  %v667_v36 = vadd.f32 %v2802_v11, %v2783_v50 }
 0x15c   : > { %v632_v60 = vadd.f32 %v2802_v11, %v2769_v48  ;;  %v642_v48 = vadd.f32 %v2802_v11, %v2773_v52  ;;  %v652_v52 = vadd.f32 %v2802_v11, %v2777_v55  ;;  %v662_v55 = vadd.f32 %v2802_v11, %v2781_v59 }
 0x15e   : > { %v2785_v61 = vpop.f32.mrb[34].mxu1 }
 0x15f   : > { %v673_v63 = vpop.f32.mrb[35].mxu1  ;;  %v672_v50 = vadd.f32 %v2802_v11, %v2785_v61 }
 0x162   : > { %v2787_v0 = vpop.f32.mrb[36].mxu1 }
 0x163   : > { %v678_v1 = vpop.f32.mrb[37].mxu1 }
 0x166   : > { %v2789_v2 = vpop.f32.mrb[38].mxu1 }
 0x167   : > { %v683_v56 = vpop.f32.mrb[39].mxu1 }
 0x16a   : > { %v2791_v4 = vpop.f32.mrb[40].mxu1 }
 0x16b   : > { %v688_v6 = vpop.f32.mrb[41].mxu1 }
 0x16e   : > { %v2793_v12 = vpop.f32.mrb[42].mxu1 }
 0x16f   : > { %v693_v7 = vpop.f32.mrb[43].mxu1 }
 0x172   : > { %v2795_v9 = vpop.f32.mrb[44].mxu1 }
 0x173   : > { %v698_v10 = vpop.f32.mrb[45].mxu1 }
 0x176   : > { %v2797_v62 = vpop.f32.mrb[46].mxu1 }
 0x177   : > { %v703_v14 = vpop.f32.mrb[47].mxu1 }
 0x17b   : > { %v1036_v18 = vpop.f32.mrb[0].mxu0 }
 0x17c   : > { %v2806_v16 = vadd.f32 %v1036_v18, %v587_v15  ;;  %v1038_v17 = vpop.f32.mrb[1].mxu0 }
 0x17f   : > { %v1041_v19 = vpop.f32.mrb[2].mxu0 }
 0x180   : > { %v2809_v21 = vadd.f32 %v1041_v19, %v592_v5  ;;  %v1043_v22 = vpop.f32.mrb[3].mxu0 }
 0x183   : > { %v1046_v24 = vpop.f32.mrb[4].mxu0 }
 0x184   : > { %v2812_v13 = vadd.f32 %v1046_v24, %v597_v25  ;;  %v1048_v26 = vpop.f32.mrb[5].mxu0 }
 0x187   : > { %v1051_v31 = vpop.f32.mrb[6].mxu0 }
 0x188   : > { %v2815_v23 = vadd.f32 %v1051_v31, %v602_v28  ;;  %v1053_v32 = vpop.f32.mrb[7].mxu0 }
 0x18b   : > { %v1056_v20 = vpop.f32.mrb[8].mxu0 }
 0x18c   : > { %v2818_v29 = vadd.f32 %v1056_v20, %v607_v33  ;;  %v1058_v35 = vpop.f32.mrb[9].mxu0 }
 0x18f   : > { %v1061_v27 = vpop.f32.mrb[10].mxu0 }
 0x190   : > { %v2821_v30 = vadd.f32 %v1061_v27, %v612_v38  ;;  %v1063_v42 = vpop.f32.mrb[11].mxu0 }
 0x193   : > { %v1066_v47 = vpop.f32.mrb[12].mxu0 }
 0x194   : > { %v2824_v37 = vadd.f32 %v1066_v47, %v617_v45  ;;  %v1068_v34 = vpop.f32.mrb[13].mxu0 }
 0x197   : > { %v1071_v39 = vpop.f32.mrb[14].mxu0 }
 0x198   : > { %v2828_v51 = vadd.f32 %v1071_v39, %v622_v49  ;;  %v1073_v53 = vpop.f32.mrb[15].mxu0 }
 0x19a   : > { %v2832_v54 = vpop.f32.mrb[48].mxu1 }
 0x19b   : > { %v1076_v57 = vpop.f32.mrb[16].mxu0  ;;  %v933_v58 = vpop.f32.mrb[49].mxu1 }
 0x19c   : > { %v2834_v8 = vadd.f32 %v1076_v57, %v627_v40  ;;  %v1078_v43 = vpop.f32.mrb[17].mxu0 }
 0x19e   : > { %v2838_v63 = vpop.f32.mrb[50].mxu1 }
 0x19f   : > { %v1081_v46 = vpop.f32.mrb[18].mxu0  ;;  %v938_v1 = vpop.f32.mrb[51].mxu1 }
 0x1a0   : > { %v2840_v56 = vadd.f32 %v1081_v46, %v632_v60  ;;  %v1083_v6 = vpop.f32.mrb[19].mxu0 }
 0x1a2   : > { %v2844_v7 = vpop.f32.mrb[52].mxu1 }
 0x1a3   : > { %v1086_v10 = vpop.f32.mrb[20].mxu0  ;;  %v943_v14 = vpop.f32.mrb[53].mxu1 }
 0x1a4   : > { %v2846_v15 = vadd.f32 %v1086_v10, %v637_v3  ;;  %v1088_v18 = vpop.f32.mrb[21].mxu0 }
 0x1a6   : > { %v2850_v17 = vpop.f32.mrb[54].mxu1 }
 0x1a7   : > { %v1091_v5 = vpop.f32.mrb[22].mxu0  ;;  %v948_v19 = vpop.f32.mrb[55].mxu1 }
 0x1a8   : > { %v2852_v22 = vadd.f32 %v1091_v5, %v642_v48  ;;  %v1093_v25 = vpop.f32.mrb[23].mxu0 }
 0x1aa   : > { %v2856_v24 = vpop.f32.mrb[56].mxu1 }
 0x1ab   : > { %v1096_v26 = vpop.f32.mrb[24].mxu0  ;;  %v953_v28 = vpop.f32.mrb[57].mxu1 }
 0x1ac   : > { %v2858_v31 = vadd.f32 %v1096_v26, %v647_v41  ;;  %v1098_v32 = vpop.f32.mrb[25].mxu0  ;;  %v677_v26 = vadd.f32 %v2802_v11, %v2787_v0 }
 0x1ae   : > { %v2862_v33 = vpop.f32.mrb[58].mxu1 }
 0x1af   : > { %v1101_v20 = vpop.f32.mrb[26].mxu0  ;;  %v958_v35 = vpop.f32.mrb[59].mxu1 }
 0x1b0   : > { %v2864_v38 = vadd.f32 %v1101_v20, %v652_v52  ;;  %v1103_v27 = vpop.f32.mrb[27].mxu0 }
 0x1b2   : > { %v2868_v42 = vpop.f32.mrb[60].mxu1 }
 0x1b3   : > { %v1106_v45 = vpop.f32.mrb[28].mxu0  ;;  %v963_v47 = vpop.f32.mrb[61].mxu1 }
 0x1b4   : > { %v2870_v34 = vadd.f32 %v1106_v45, %v657_v44  ;;  %v1108_v49 = vpop.f32.mrb[29].mxu0  ;;  %v682_v44 = vadd.f32 %v2802_v11, %v2789_v2 }
 0x1b6   : > { %v2874_v39 = vpop.f32.mrb[62].mxu1 }
 0x1b7   : > { %v1111_v53 = vpop.f32.mrb[30].mxu0  ;;  %v968_v40 = vpop.f32.mrb[63].mxu1 }
 0x1b8   : > { %v2876_v57 = vadd.f32 %v1111_v53, %v662_v55  ;;  %v1113_v58 = vpop.f32.mrb[31].mxu0 }
 0x1b9   : > { %v687_v58 = vadd.f32 %v2802_v11, %v2791_v4 }
 0x1ba   : > { %v1634_v43 = vpop.f32.mrb[64].mxu1 }
 0x1bb   : > { %v1116_v60 = vpop.f32.mrb[32].mxu0  ;;  %v1267_v46 = vadd.f32 %v2809_v21, %v1634_v43  ;;  %v1261_v1 = vpop.f32.mrb[65].mxu1 }
 0x1bc   : > { %v2882_v6 = vadd.f32 %v1116_v60, %v667_v36  ;;  %v1118_v59 = vpop.f32.mrb[33].mxu0  ;;  %v1262_v3 = vadd.f32 %v2806_v16, %v1261_v1 }
 0x1bd   : > { %v1421_v10 = vmax.f32 %v1267_v46, 0.0 }
 0x1be   : > { %v1420_v14 = vmax.f32 %v1262_v3, 0.0  ;;  %v1637_v21 = vpop.f32.mrb[66].mxu1  ;;  %v692_v3 = vadd.f32 %v2802_v11, %v2793_v12 }
 0x1bf   : > { %1453 = vst [vmem:[%s2887_s28 + $0x8] sm:$0xff] %v1421_v10  ;;  %v1121_v18 = vpop.f32.mrb[34].mxu0  ;;  %v1277_v48 = vadd.f32 %v2815_v23, %v1637_v21  ;;  %v1271_v5 = vpop.f32.mrb[67].mxu1 }
 0x1c0   : > { %1452 = vst [vmem:[%s2887_s28] sm:$0xff] %v1420_v14  ;;  %v2895_v19 = vadd.f32 %v1121_v18, %v672_v50  ;;  %v1123_v25 = vpop.f32.mrb[35].mxu0  ;;  %v1272_v41 = vadd.f32 %v2812_v13, %v1271_v5 }
 0x1c1   : > { %v1423_v16 = vmax.f32 %v1277_v48, 0.0 }
 0x1c2   : > { %v1422_v61 = vmax.f32 %v1272_v41, 0.0  ;;  %v1640_v28 = vpop.f32.mrb[68].mxu1 }
 0x1c3   : > { %1455 = vst [vmem:[%s2887_s28 + $0x18] sm:$0xff] %v1423_v16  ;;  %v1126_v32 = vpop.f32.mrb[36].mxu0  ;;  %v1287_v52 = vadd.f32 %v2821_v30, %v1640_v28  ;;  %v1281_v23 = vpop.f32.mrb[69].mxu1 }
 0x1c4   : > { %1454 = vst [vmem:[%s2887_s28 + $0x10] sm:$0xff] %v1422_v61  ;;  %v2903_v20 = vadd.f32 %v1126_v32, %v677_v26  ;;  %v1128_v35 = vpop.f32.mrb[37].mxu0  ;;  %v1282_v27 = vadd.f32 %v2818_v29, %v1281_v23 }
 0x1c5   : > { %v1425_v13 = vmax.f32 %v1287_v52, 0.0 }
 0x1c6   : > { %v1424_v0 = vmax.f32 %v1282_v27, 0.0  ;;  %v1643_v45 = vpop.f32.mrb[70].mxu1 }
 0x1c7   : > { %1457 = vst [vmem:[%s2887_s28 + $0x28] sm:$0xff] %v1425_v13  ;;  %v1131_v47 = vpop.f32.mrb[38].mxu0  ;;  %v1297_v49 = vadd.f32 %v2828_v51, %v1643_v45  ;;  %v1291_v30 = vpop.f32.mrb[71].mxu1 }
 0x1c8   : > { %1456 = vst [vmem:[%s2887_s28 + $0x20] sm:$0xff] %v1424_v0  ;;  %v2911_v55 = vadd.f32 %v1131_v47, %v682_v44  ;;  %v1133_v53 = vpop.f32.mrb[39].mxu0  ;;  %v1292_v40 = vadd.f32 %v2824_v37, %v1291_v30 }
 0x1c9   : > { %v1427_v29 = vmax.f32 %v1297_v49, 0.0 }
 0x1ca   : > { %v1426_v2 = vmax.f32 %v1292_v40, 0.0  ;;  %v1646_v36 = vpop.f32.mrb[72].mxu1 }
 0x1cb   : > { %1459 = vst [vmem:[%s2887_s28 + $0x38] sm:$0xff] %v1427_v29  ;;  %v1136_v43 = vpop.f32.mrb[40].mxu0  ;;  %v1307_v60 = vadd.f32 %v2840_v56, %v1646_v36  ;;  %v1301_v51 = vpop.f32.mrb[73].mxu1 }
 0x1cc   : > { %1458 = vst [vmem:[%s2887_s28 + $0x30] sm:$0xff] %v1426_v2  ;;  %v2919_v46 = vadd.f32 %v1136_v43, %v687_v58  ;;  %v1138_v1 = vpop.f32.mrb[41].mxu0  ;;  %v1302_v59 = vadd.f32 %v2834_v8, %v1301_v51  ;;  %v697_v8 = vadd.f32 %v2802_v11, %v2795_v9 }
 0x1cd   : > { %v1429_v37 = vmax.f32 %v1307_v60, 0.0 }
 0x1ce   : > { %v1428_v4 = vmax.f32 %v1302_v59, 0.0  ;;  %v1649_v10 = vpop.f32.mrb[74].mxu1 }
 0x1cf   : > { %1461 = vst [vmem:[%s2887_s28 + $0x48] sm:$0xff] %v1429_v37  ;;  %v1141_v50 = vpop.f32.mrb[42].mxu0  ;;  %v1317_v14 = vadd.f32 %v2852_v22, %v1649_v10  ;;  %v1311_v56 = vpop.f32.mrb[75].mxu1 }
 0x1d0   : > { %1460 = vst [vmem:[%s2887_s28 + $0x40] sm:$0xff] %v1428_v4  ;;  %v1931_v21 = vadd.f32 %v1141_v50, %v692_v3  ;;  %v1143_v18 = vpop.f32.mrb[43].mxu0  ;;  %v1312_v48 = vadd.f32 %v2846_v15, %v1311_v56  ;;  %v702_v15 = vadd.f32 %v2802_v11, %v2797_v62 }
 0x1d1   : > { %v1431_v5 = vmax.f32 %v1317_v14, 0.0 }
 0x1d2   : > { %v1430_v25 = vmax.f32 %v1312_v48, 0.0  ;;  %v1652_v12 = vpop.f32.mrb[76].mxu1 }
 0x1d3   : > { %1463 = vst [vmem:[%s2887_s28 + $0x58] sm:$0xff] %v1431_v5  ;;  %v1146_v41 = vpop.f32.mrb[44].mxu0  ;;  %v1327_v16 = vadd.f32 %v2864_v38, %v1652_v12  ;;  %v1321_v26 = vpop.f32.mrb[77].mxu1 }
 0x1d4   : > { %1462 = vst [vmem:[%s2887_s28 + $0x50] sm:$0xff] %v1430_v25  ;;  %v1933_v22 = vadd.f32 %v1146_v41, %v697_v8  ;;  %v1148_v61 = vpop.f32.mrb[45].mxu0  ;;  %v1322_v28 = vadd.f32 %v2858_v31, %v1321_v26  ;;  %v1936_v31 = vadd.f32 %v2802_v11, %v2832_v54 }
 0x1d5   : > { %v1433_v32 = vmax.f32 %v1327_v16, 0.0 }
 0x1d6   : > { %v1432_v52 = vmax.f32 %v1322_v28, 0.0  ;;  %v1655_v9 = vpop.f32.mrb[78].mxu1 }
 0x1d7   : > { %1465 = vst [vmem:[%s2887_s28 + $0x68] sm:$0xff] %v1433_v32  ;;  %v1151_v23 = vpop.f32.mrb[46].mxu0  ;;  %v1337_v35 = vadd.f32 %v2876_v57, %v1655_v9  ;;  %v1331_v27 = vpop.f32.mrb[79].mxu1 }
 0x1d8   : > { %1464 = vst [vmem:[%s2887_s28 + $0x60] sm:$0xff] %v1432_v52  ;;  %v1935_v38 = vadd.f32 %v1151_v23, %v702_v15  ;;  %v1153_v13 = vpop.f32.mrb[47].mxu0  ;;  %v1332_v44 = vadd.f32 %v2870_v34, %v1331_v27  ;;  %v1938_v34 = vadd.f32 %v2802_v11, %v2838_v63 }
 0x1d9   : > { %v1435_v0 = vmax.f32 %v1337_v35, 0.0 }
 0x1da   : > { %v1434_v45 = vmax.f32 %v1332_v44, 0.0  ;;  %v1658_v62 = vpop.f32.mrb[80].mxu1 }
 0x1db   : > { %1467 = vst [vmem:[%s2887_s28 + $0x78] sm:$0xff] %v1435_v0  ;;  %v1156_v47 = vpop.f32.mrb[48].mxu0  ;;  %v1347_v49 = vadd.f32 %v2895_v19, %v1658_v62  ;;  %v1341_v30 = vpop.f32.mrb[81].mxu1 }
 0x1dc   : > { %1466 = vst [vmem:[%s2887_s28 + $0x70] sm:$0xff] %v1434_v45  ;;  %v1937_v57 = vadd.f32 %v1936_v31, %v1156_v47  ;;  %v1158_v53 = vpop.f32.mrb[49].mxu0  ;;  %v1342_v40 = vadd.f32 %v2882_v6, %v1341_v30  ;;  %v1940_v6 = vadd.f32 %v2802_v11, %v2844_v7  ;;  %v1948_v31 = vadd.f32 %v2802_v11, %v2868_v42 }
 0x1dd   : > { %v1437_v29 = vmax.f32 %v1347_v49, 0.0 }
 0x1de   : > { %v1436_v58 = vmax.f32 %v1342_v40, 0.0  ;;  %v1661_v54 = vpop.f32.mrb[82].mxu1 }
 0x1df   : > { %1469 = vst [vmem:[%s2887_s28 + $0x88] sm:$0xff] %v1437_v29  ;;  %v1161_v2 = vpop.f32.mrb[50].mxu0  ;;  %v1357_v36 = vadd.f32 %v2911_v55, %v1661_v54  ;;  %v1351_v43 = vpop.f32.mrb[83].mxu1  ;;  %v1950_v29 = vadd.f32 %v2802_v11, %v2874_v39 }
 0x1e0   : > { %1468 = vst [vmem:[%s2887_s28 + $0x80] sm:$0xff] %v1436_v58  ;;  %v1939_v19 = vadd.f32 %v1938_v34, %v1161_v2  ;;  %v1163_v60 = vpop.f32.mrb[51].mxu0  ;;  %v1352_v51 = vadd.f32 %v2903_v20, %v1351_v43  ;;  %v1942_v20 = vadd.f32 %v2802_v11, %v2850_v17 }
 0x1e1   : > { %v1439_v1 = vmax.f32 %v1357_v36, 0.0 }
 0x1e2   : > { %v1438_v59 = vmax.f32 %v1352_v51, 0.0  ;;  %v1664_v63 = vpop.f32.mrb[84].mxu1 }
 0x1e3   : > { %1471 = vst [vmem:[%s2887_s28 + $0x98] sm:$0xff] %v1439_v1  ;;  %v1166_v37 = vpop.f32.mrb[52].mxu0  ;;  %v1367_v3 = vadd.f32 %v1931_v21, %v1664_v63  ;;  %v1361_v4 = vpop.f32.mrb[85].mxu1 }
 0x1e4   : > { %1470 = vst [vmem:[%s2887_s28 + $0x90] sm:$0xff] %v1438_v59  ;;  %v1941_v55 = vadd.f32 %v1940_v6, %v1166_v37  ;;  %v1168_v10 = vpop.f32.mrb[53].mxu0  ;;  %v1362_v50 = vadd.f32 %v2919_v46, %v1361_v4  ;;  %v1944_v46 = vadd.f32 %v2802_v11, %v2856_v24 }
 0x1e5   : > { %v1441_v14 = vmax.f32 %v1367_v3, 0.0 }
 0x1e6   : > { %v1440_v56 = vmax.f32 %v1362_v50, 0.0  ;;  %v1667_v18 = vpop.f32.mrb[86].mxu1 }
 0x1e7   : > { %1473 = vst [vmem:[%s2887_s28 + $0xa8] sm:$0xff] %v1441_v14  ;;  %v1171_v7 = vpop.f32.mrb[54].mxu0  ;;  %v1377_v48 = vadd.f32 %v1935_v38, %v1667_v18  ;;  %v1371_v5 = vpop.f32.mrb[87].mxu1 }
 0x1e8   : > { %1472 = vst [vmem:[%s2887_s28 + $0xa0] sm:$0xff] %v1440_v56  ;;  %v1943_v21 = vadd.f32 %v1942_v20, %v1171_v7  ;;  %v1173_v8 = vpop.f32.mrb[55].mxu0  ;;  %v1372_v25 = vadd.f32 %v1933_v22, %v1371_v5  ;;  %v1946_v22 = vadd.f32 %v2802_v11, %v2862_v33 }
 0x1e9   : > { %v1443_v12 = vmax.f32 %v1377_v48, 0.0 }
 0x1ea   : > { %v1442_v41 = vmax.f32 %v1372_v25, 0.0  ;;  %v1670_v16 = vpop.f32.mrb[88].mxu1 }
 0x1eb   : > { %1475 = vst [vmem:[%s2887_s28 + $0xb8] sm:$0xff] %v1443_v12  ;;  %v1176_v17 = vpop.f32.mrb[56].mxu0  ;;  %v1387_v26 = vadd.f32 %v1939_v19, %v1670_v16  ;;  %v1381_v61 = vpop.f32.mrb[89].mxu1 }
 0x1ec   : > { %1474 = vst [vmem:[%s2887_s28 + $0xb0] sm:$0xff] %v1442_v41  ;;  %v1945_v28 = vadd.f32 %v1944_v46, %v1176_v17  ;;  %v1178_v32 = vpop.f32.mrb[57].mxu0  ;;  %v1382_v15 = vadd.f32 %v1937_v57, %v1381_v61 }
 0x1ed   : > { %v1445_v52 = vmax.f32 %v1387_v26, 0.0 }
 0x1ee   : > { %v1444_v9 = vmax.f32 %v1382_v15, 0.0  ;;  %v1673_v23 = vpop.f32.mrb[90].mxu1 }
 0x1ef   : > { %1477 = vst [vmem:[%s2887_s28 + $0xc8] sm:$0xff] %v1445_v52  ;;  %v1181_v24 = vpop.f32.mrb[58].mxu0  ;;  %v1397_v35 = vadd.f32 %v1943_v21, %v1673_v23  ;;  %v1391_v27 = vpop.f32.mrb[91].mxu1 }
 0x1f0   : > { %1476 = vst [vmem:[%s2887_s28 + $0xc0] sm:$0xff] %v1444_v9  ;;  %v1947_v38 = vadd.f32 %v1946_v22, %v1181_v24  ;;  %v1183_v13 = vpop.f32.mrb[59].mxu0  ;;  %v1392_v44 = vadd.f32 %v1941_v55, %v1391_v27 }
 0x1f1   : > { %v1447_v0 = vmax.f32 %v1397_v35, 0.0 }
 0x1f2   : > { %v1446_v45 = vmax.f32 %v1392_v44, 0.0  ;;  %v1676_v62 = vpop.f32.mrb[92].mxu1 }
 0x1f3   : > { %1479 = vst [vmem:[%s2887_s28 + $0xd8] sm:$0xff] %v1447_v0  ;;  %v1186_v33 = vpop.f32.mrb[60].mxu0  ;;  %v1407_v47 = vadd.f32 %v1947_v38, %v1676_v62  ;;  %v1401_v49 = vpop.f32.mrb[93].mxu1 }
 0x1f4   : > { %1478 = vst [vmem:[%s2887_s28 + $0xd0] sm:$0xff] %v1446_v45  ;;  %v1949_v30 = vadd.f32 %v1948_v31, %v1186_v33  ;;  %v1188_v57 = vpop.f32.mrb[61].mxu0  ;;  %v1402_v53 = vadd.f32 %v1945_v28, %v1401_v49 }
 0x1f5   : > { %v1449_v40 = vmax.f32 %v1407_v47, 0.0 }
 0x1f6   : > { %v1448_v34 = vmax.f32 %v1402_v53, 0.0  ;;  %v1679_v58 = vpop.f32.mrb[94].mxu1 }
 0x1f7   : > { %1481 = vst [vmem:[%s2887_s28 + $0xe8] sm:$0xff] %v1449_v40  ;;  %v1191_v42 = vpop.f32.mrb[62].mxu0  ;;  %v1411_v54 = vpop.f32.mrb[95].mxu1 }
 0x1f8   : > { %1480 = vst [vmem:[%s2887_s28 + $0xe0] sm:$0xff] %v1448_v34  ;;  %v1951_v2 = vadd.f32 %v1950_v29, %v1191_v42  ;;  %v1193_v36 = vpop.f32.mrb[63].mxu0  ;;  %v1412_v43 = vadd.f32 %v1949_v30, %v1411_v54 }
 0x1fa   : > { %v1417_v19 = vadd.f32 %v1951_v2, %v1679_v58  ;;  %v1450_v60 = vmax.f32 %v1412_v43, 0.0 }
 0x1fc   : > { %v1451_v51 = vmax.f32 %v1417_v19, 0.0  ;;  %1482 = vst [vmem:[%s2887_s28 + $0xf0] sm:$0xff] %v1450_v60 }
 0x1fe   : > { %1483 = vst [vmem:[%s2887_s28 + $0xf8] sm:$0xff] %v1451_v51 }
 0x1ff PF: > { %s13_s12 = sadd.s32 1, %s2032_s12  }
 0x200   : > { %p10_p4 = scmp.ge.s32.totalorder %s13_s12, 5  }
 0x202   :  { %12 = sbr.rel (!%p10_p4) target bundleno = 1 (0x1), region = 62 }

// kernel: actor_forward.12
= control target key start
LH: loop header
LB: loop body
LE: loop exit
PB: predicated region body
PF: predicated region fallthrough
CT: control target
= control target key end

     0   :  { %s2024_s12 = smov 0   ;;  %s2822_s0 = inlined_call_operand.vmem [shape: f32[512,1024], index: 0, kind: input, shape index: {}]   ;;  %s2823_s1 = inlined_call_operand.vmem [shape: f32[1024,128], index: 1, kind: input, shape index: {}]   ;;  %s2824_s2 = inlined_call_operand.vmem [shape: f32[1,128], index: 2, kind: input, shape index: {}]   ;;  %s2825_s3 = inlined_call_operand.vmem [shape: f32[512,128], index: 3, kind: output, shape index: {}]  }
   0x1 LB: > { %s1588_s13 = sadd.s32 4294967295, %s2001_s12   ;;  %p1592_p0 = scmp.ge.s32.totalorder %s2001_s12, 1  ;;  %s2001_s12 = sphi %s2024_s12, %s13_s12  }
   0x2   : > { %p139_p1 = scmp.lt.s32.totalorder %s2001_s12, 3 }
   0x4   : > { %p140_p2 = pnand %p1592_p0, %p139_p1 }
   0x5   : > { %v433_v0 = vld [vmem:[%s2823_s1] sm:$0xff] (!%p140_p2)  ;;  %v434_v1 = vld [vmem:[%s2823_s1 + $0x8] sm:$0xff] (!%p140_p2)  ;;  %v2003_v3 = vmov (!%p140_p2), 0.0|0.0   ;;  %v435_v6 = vld [vmem:[%s2823_s1 + $0x10] sm:$0xff] (!%p140_p2)  ;;  %s1593_s7 = sshll.u32 (!%p140_p2), %s1588_s13, 5 }
   0x6   : > { %143 = sbr.rel (%p140_p2) target bundleno = 542 (0x21e), region = 32  ;;  %v497_v2 = vld [vmem:[%s2823_s1 + $0x200] sm:$0xff] (!%p140_p2)  ;;  %1602 = vmatprep.subr.bf16.mxu1 (!%p140_p2), %v2003_v3  ;;  %1698 = vmatprep.subr.bf16.mxu0 (!%p140_p2), %v2003_v3  ;;  %v1603_v4 = vpack.c.bf16 (!%p140_p2), %v434_v1, %v433_v0  ;;  %v498_v5 = vld [vmem:[%s2823_s1 + $0x208] sm:$0xff] (!%p140_p2)  ;;  %v436_v7 = vld [vmem:[%s2823_s1 + $0x18] sm:$0xff] (!%p140_p2)  ;;  %p165_p3 = scmp.lt.s32.totalorder (!%p140_p2), %s1593_s7, 63 }
   0x7   : > { %v1699_v8 = vpack.c.bf16 (!%p140_p2), %v498_v5, %v497_v2  ;;  %v499_v9 = vld [vmem:[%s2823_s1 + $0x210] sm:$0xff] (!%p140_p2)  ;;  %v500_v10 = vld [vmem:[%s2823_s1 + $0x218] sm:$0xff] (!%p140_p2)  ;;  %v1606_v11 = vpack.c.bf16 (!%p140_p2), %v436_v7, %v435_v6  ;;  %v437_v13 = vld [vmem:[%s2823_s1 + $0x20] sm:$0xff] (!%p140_p2) }
   0x8   : > { %1604 = vmatpush1.bf16.msra.mxu1 (!%p140_p2), %v1603_v4  ;;  %v1702_v12 = vpack.c.bf16 (!%p140_p2), %v500_v10, %v499_v9  ;;  %v438_v14 = vld [vmem:[%s2823_s1 + $0x28] sm:$0xff] (!%p140_p2)  ;;  %v501_v15 = vld [vmem:[%s2823_s1 + $0x220] sm:$0xff] (!%p140_p2)  ;;  %v439_v19 = vld [vmem:[%s2823_s1 + $0x30] sm:$0xff] (!%p140_p2) }
   0x9   : > { %1700 = vmatpush1.bf16.msra.mxu0 (!%p140_p2), %v1699_v8  ;;  %1605 = vmatprep.subr.bf16.mxu1 (!%p140_p2), %v2003_v3  ;;  %v502_v16 = vld [vmem:[%s2823_s1 + $0x228] sm:$0xff] (!%p140_p2)  ;;  %v1609_v17 = vpack.c.bf16 (!%p140_p2), %v438_v14, %v437_v13  ;;  %v440_v20 = vld [vmem:[%s2823_s1 + $0x38] sm:$0xff] (!%p140_p2)  ;;  %v503_v21 = vld [vmem:[%s2823_s1 + $0x230] sm:$0xff] (!%p140_p2) }
   0xa   : > { %1701 = vmatprep.subr.bf16.mxu0 (!%p140_p2), %v2003_v3  ;;  %v1705_v18 = vpack.c.bf16 (!%p140_p2), %v502_v16, %v501_v15  ;;  %v504_v22 = vld [vmem:[%s2823_s1 + $0x238] sm:$0xff] (!%p140_p2)  ;;  %v1612_v23 = vpack.c.bf16 (!%p140_p2), %v440_v20, %v439_v19  ;;  %v441_v25 = vld [vmem:[%s2823_s1 + $0x40] sm:$0xff] (!%p140_p2)  ;;  %v442_v26 = vld [vmem:[%s2823_s1 + $0x48] sm:$0xff] (!%p140_p2) }
   0xb   : > { %v1708_v24 = vpack.c.bf16 (!%p140_p2), %v504_v22, %v503_v21  ;;  %v505_v27 = vld [vmem:[%s2823_s1 + $0x240] sm:$0xff] (!%p140_p2)  ;;  %v506_v28 = vld [vmem:[%s2823_s1 + $0x248] sm:$0xff] (!%p140_p2)  ;;  %v1615_v29 = vpack.c.bf16 (!%p140_p2), %v442_v26, %v441_v25  ;;  %v443_v31 = vld [vmem:[%s2823_s1 + $0x50] sm:$0xff] (!%p140_p2) }
   0xc   : > { %1607 = vmatpush1.bf16.msra.mxu1 (!%p140_p2), %v1606_v11  ;;  %v1711_v30 = vpack.c.bf16 (!%p140_p2), %v506_v28, %v505_v27  ;;  %v444_v32 = vld [vmem:[%s2823_s1 + $0x58] sm:$0xff] (!%p140_p2)  ;;  %v507_v33 = vld [vmem:[%s2823_s1 + $0x250] sm:$0xff] (!%p140_p2)  ;;  %v445_v37 = vld [vmem:[%s2823_s1 + $0x60] sm:$0xff] (!%p140_p2) }
   0xd   : > { %1703 = vmatpush1.bf16.msra.mxu0 %v1702_v12  ;;  %1608 = vmatprep.subr.bf16.mxu1 %v2003_v3  ;;  %s2827_s7 = smov (!%p165_p3, %s1593_s7), 63  ;;  %v508_v34 = vld [vmem:[%s2823_s1 + $0x258] sm:$0xff]  ;;  %v1618_v35 = vpack.c.bf16 %v444_v32, %v443_v31  ;;  %v446_v38 = vld [vmem:[%s2823_s1 + $0x68] sm:$0xff]  ;;  %v509_v39 = vld [vmem:[%s2823_s1 + $0x260] sm:$0xff] }
   0xe   : > { %1704 = vmatprep.subr.bf16.mxu0 %v2003_v3  ;;  %s1601_s29 = sshll.u32 %s2827_s7, 6  ;;  %v1714_v36 = vpack.c.bf16 %v508_v34, %v507_v33  ;;  %v510_v40 = vld [vmem:[%s2823_s1 + $0x268] sm:$0xff]  ;;  %v1621_v43 = vpack.c.bf16 %v446_v38, %v445_v37  ;;  %v447_v45 = vld [vmem:[%s2823_s1 + $0x70] sm:$0xff]  ;;  %v448_v46 = vld [vmem:[%s2823_s1 + $0x78] sm:$0xff]  ;;  %s1597_s8 = sshll.u32 %s2827_s7, 3 }
   0xf   : > { %s2120_s13 = scalar_lea.vmem %s2822_s0, %s1601_s29  ;;  %v1717_v44 = vpack.c.bf16 %v510_v40, %v509_v39  ;;  %v511_v47 = vld [vmem:[%s2823_s1 + $0x270] sm:$0xff]  ;;  %v512_v48 = vld [vmem:[%s2823_s1 + $0x278] sm:$0xff]  ;;  %v1624_v49 = vpack.c.bf16 %v448_v46, %v447_v45  ;;  %v449_v51 = vld [vmem:[%s2823_s1 + $0x80] sm:$0xff]  ;;  %s2754_s11 = scalar_lea.vmem %s2825_s3, %s1597_s8 }
  0x10   : > { %1610 = vmatpush1.bf16.msra.mxu1 %v1609_v17  ;;  %v178_v41 = vld [vmem:[%s2120_s13 + $0x8] sm:$0xff]  ;;  %v1720_v50 = vpack.c.bf16 %v512_v48, %v511_v47  ;;  %v513_v53 = vld [vmem:[%s2823_s1 + $0x280] sm:$0xff]  ;;  %v451_v57 = vld [vmem:[%s2823_s1 + $0x90] sm:$0xff] }
  0x11   : > { %1706 = vmatpush1.bf16.msra.mxu0 %v1705_v18  ;;  %1611 = vmatprep.subr.bf16.mxu1 %v2003_v3  ;;  %v182_v42 = vld [vmem:[%s2120_s13 + $0x28] sm:$0xff]  ;;  %v452_v58 = vld [vmem:[%s2823_s1 + $0x98] sm:$0xff]  ;;  %v515_v59 = vld [vmem:[%s2823_s1 + $0x290] sm:$0xff] }
  0x12   : > { %1707 = vmatprep.subr.bf16.mxu0 %v2003_v3  ;;  %632 = vmatprep.mubr.f32.mxu1 %v178_v41  ;;  %v450_v52 = vld [vmem:[%s2823_s1 + $0x88] sm:$0xff]  ;;  %v516_v60 = vld [vmem:[%s2823_s1 + $0x298] sm:$0xff]  ;;  %v1630_v61 = vpack.c.bf16 %v452_v58, %v451_v57  ;;  %v453_v63 = vld [vmem:[%s2823_s1 + $0xa0] sm:$0xff] }
  0x13   : > { %1082 = vmatprep.mubr.f32.mxu0 %v182_v42  ;;  %v514_v54 = vld [vmem:[%s2823_s1 + $0x288] sm:$0xff]  ;;  %v1627_v55 = vpack.c.bf16 %v450_v52, %v449_v51  ;;  %v1726_v62 = vpack.c.bf16 %v516_v60, %v515_v59  ;;  %v517_v1 = vld [vmem:[%s2823_s1 + $0x2a0] sm:$0xff]  ;;  %v455_v6 = vld [vmem:[%s2823_s1 + $0xb0] sm:$0xff] }
  0x14   : > { %1613 = vmatpush1.bf16.msra.mxu1 %v1612_v23  ;;  %v1723_v56 = vpack.c.bf16 %v514_v54, %v513_v53  ;;  %v454_v0 = vld [vmem:[%s2823_s1 + $0xa8] sm:$0xff]  ;;  %v456_v7 = vld [vmem:[%s2823_s1 + $0xb8] sm:$0xff]  ;;  %v519_v8 = vld [vmem:[%s2823_s1 + $0x2b0] sm:$0xff] }
  0x15   : > { %1709 = vmatpush1.bf16.msra.mxu0 %v1708_v24  ;;  %1614 = vmatprep.subr.bf16.mxu1 %v2003_v3  ;;  %v518_v2 = vld [vmem:[%s2823_s1 + $0x2a8] sm:$0xff]  ;;  %v1633_v4 = vpack.c.bf16 %v454_v0, %v453_v63  ;;  %v520_v9 = vld [vmem:[%s2823_s1 + $0x2b8] sm:$0xff]  ;;  %v1636_v10 = vpack.c.bf16 %v456_v7, %v455_v6  ;;  %v457_v12 = vld [vmem:[%s2823_s1 + $0xc0] sm:$0xff] }
  0x16   : > { %1710 = vmatprep.subr.bf16.mxu0 %v2003_v3  ;;  %v1729_v5 = vpack.c.bf16 %v518_v2, %v517_v1  ;;  %v1732_v11 = vpack.c.bf16 %v520_v9, %v519_v8  ;;  %v458_v13 = vld [vmem:[%s2823_s1 + $0xc8] sm:$0xff]  ;;  %v521_v14 = vld [vmem:[%s2823_s1 + $0x2c0] sm:$0xff]  ;;  %v459_v18 = vld [vmem:[%s2823_s1 + $0xd0] sm:$0xff] }
  0x17   : > { %v522_v15 = vld [vmem:[%s2823_s1 + $0x2c8] sm:$0xff]  ;;  %v1639_v16 = vpack.c.bf16 %v458_v13, %v457_v12  ;;  %v460_v19 = vld [vmem:[%s2823_s1 + $0xd8] sm:$0xff]  ;;  %v523_v20 = vld [vmem:[%s2823_s1 + $0x2d0] sm:$0xff] }
  0x18   : > { %1616 = vmatpush1.bf16.msra.mxu1 %v1615_v29  ;;  %v1735_v17 = vpack.c.bf16 %v522_v15, %v521_v14  ;;  %v524_v21 = vld [vmem:[%s2823_s1 + $0x2d8] sm:$0xff]  ;;  %v1642_v22 = vpack.c.bf16 %v460_v19, %v459_v18  ;;  %v461_v24 = vld [vmem:[%s2823_s1 + $0xe0] sm:$0xff]  ;;  %v462_v25 = vld [vmem:[%s2823_s1 + $0xe8] sm:$0xff] }
  0x19   : > { %1712 = vmatpush1.bf16.msra.mxu0 %v1711_v30  ;;  %1617 = vmatprep.subr.bf16.mxu1 %v2003_v3  ;;  %v1738_v23 = vpack.c.bf16 %v524_v21, %v523_v20  ;;  %v525_v26 = vld [vmem:[%s2823_s1 + $0x2e0] sm:$0xff]  ;;  %v526_v27 = vld [vmem:[%s2823_s1 + $0x2e8] sm:$0xff]  ;;  %v1645_v28 = vpack.c.bf16 %v462_v25, %v461_v24  ;;  %v463_v30 = vld [vmem:[%s2823_s1 + $0xf0] sm:$0xff] }
  0x1a   : > { %1713 = vmatprep.subr.bf16.mxu0 %v2003_v3  ;;  %v1741_v29 = vpack.c.bf16 %v526_v27, %v525_v26  ;;  %v464_v31 = vld [vmem:[%s2823_s1 + $0xf8] sm:$0xff]  ;;  %v527_v32 = vld [vmem:[%s2823_s1 + $0x2f0] sm:$0xff]  ;;  %v466_v37 = vld [vmem:[%s2823_s1 + $0x108] sm:$0xff] }
  0x1b   : > { %v528_v33 = vld [vmem:[%s2823_s1 + $0x2f8] sm:$0xff]  ;;  %v1648_v34 = vpack.c.bf16 %v464_v31, %v463_v30  ;;  %v529_v38 = vld [vmem:[%s2823_s1 + $0x300] sm:$0xff]  ;;  %v530_v39 = vld [vmem:[%s2823_s1 + $0x308] sm:$0xff] }
  0x1c   : > { %1619 = vmatpush1.bf16.msra.mxu1 %v1618_v35  ;;  %v1744_v35 = vpack.c.bf16 %v528_v33, %v527_v32  ;;  %v177_v40 = vld [vmem:[%s2120_s13] sm:$0xff]  ;;  %v1747_v45 = vpack.c.bf16 %v530_v39, %v529_v38  ;;  %v467_v46 = vld [vmem:[%s2823_s1 + $0x110] sm:$0xff]  ;;  %v468_v47 = vld [vmem:[%s2823_s1 + $0x118] sm:$0xff] }
  0x1d   : > { %1715 = vmatpush1.bf16.msra.mxu0 %v1714_v36  ;;  %1620 = vmatprep.subr.bf16.mxu1 %v2003_v3  ;;  %v465_v36 = vld [vmem:[%s2823_s1 + $0x100] sm:$0xff]  ;;  %v531_v48 = vld [vmem:[%s2823_s1 + $0x310] sm:$0xff]  ;;  %v194_v52 = vld [vmem:[%s2120_s13 + $0x88] sm:$0xff]  ;;  %v1654_v53 = vpack.c.bf16 %v468_v47, %v467_v46 }
  0x1e   : > { %1716 = vmatprep.subr.bf16.mxu0 %v2003_v3  ;;  %v1651_v41 = vpack.c.bf16 %v466_v37, %v465_v36  ;;  %v181_v42 = vld [vmem:[%s2120_s13 + $0x20] sm:$0xff]  ;;  %v198_v54 = vld [vmem:[%s2120_s13 + $0xa8] sm:$0xff]  ;;  %v471_v2 = vld [vmem:[%s2823_s1 + $0x130] sm:$0xff] }
  0x1f   : > { %v189_v51 = vld [vmem:[%s2120_s13 + $0x60] sm:$0xff]  ;;  %v470_v57 = vld [vmem:[%s2823_s1 + $0x128] sm:$0xff]  ;;  %v536_v6 = vld [vmem:[%s2823_s1 + $0x338] sm:$0xff] }
  0x20   : > { %1622 = vmatpush1.bf16.msra.mxu1 %v1621_v43  ;;  %v186_v43 = vld [vmem:[%s2120_s13 + $0x48] sm:$0xff]  ;;  %v533_v58 = vld [vmem:[%s2823_s1 + $0x320] sm:$0xff]  ;;  %v476_v24 = vld [vmem:[%s2823_s1 + $0x158] sm:$0xff] }
  0x21   : > { %1718 = vmatpush1.bf16.msra.mxu0 %v1717_v44  ;;  %1623 = vmatprep.subr.bf16.mxu1 %v2003_v3  ;;  %v190_v44 = vld [vmem:[%s2120_s13 + $0x68] sm:$0xff]  ;;  %v193_v60 = vld [vmem:[%s2120_s13 + $0x80] sm:$0xff]  ;;  %v539_v25 = vld [vmem:[%s2823_s1 + $0x350] sm:$0xff] }
  0x22   : > { %1719 = vmatprep.subr.bf16.mxu0 %v2003_v3  ;;  %v534_v59 = vld [vmem:[%s2823_s1 + $0x328] sm:$0xff]  ;;  %v201_v7 = vld [vmem:[%s2120_s13 + $0xc0] sm:$0xff]  ;;  %v540_v26 = vld [vmem:[%s2823_s1 + $0x358] sm:$0xff] }
  0x23   : > { %v206_v0 = vld [vmem:[%s2120_s13 + $0xe8] sm:$0xff]  ;;  %v1753_v1 = vpack.c.bf16 %v534_v59, %v533_v58  ;;  %v205_v8 = vld [vmem:[%s2120_s13 + $0xe0] sm:$0xff]  ;;  %v1762_v32 = vpack.c.bf16 %v540_v26, %v539_v25  ;;  %v544_v46 = vld [vmem:[%s2823_s1 + $0x378] sm:$0xff] }
  0x24   : > { %1625 = vmatpush1.bf16.msra.mxu1 %v1624_v49  ;;  %v532_v49 = vld [vmem:[%s2823_s1 + $0x318] sm:$0xff]  ;;  %v210_v9 = vld [vmem:[%s2120_s13 + $0x108] sm:$0xff]  ;;  %v473_v13 = vld [vmem:[%s2823_s1 + $0x140] sm:$0xff] }
  0x25   : > { %1721 = vmatpush1.bf16.msra.mxu0 %v1720_v50  ;;  %1626 = vmatprep.subr.bf16.mxu1 %v2003_v3  ;;  %v185_v50 = vld [vmem:[%s2120_s13 + $0x40] sm:$0xff]  ;;  %v474_v14 = vld [vmem:[%s2823_s1 + $0x148] sm:$0xff] }
  0x26   : > { %1722 = vmatprep.subr.bf16.mxu0 %v2003_v3  ;;  %v537_v15 = vld [vmem:[%s2823_s1 + $0x340] sm:$0xff]  ;;  %v218_v19 = vld [vmem:[%s2120_s13 + $0x148] sm:$0xff]  ;;  %v1663_v20 = vpack.c.bf16 %v474_v14, %v473_v13 }
  0x27   : > { %v213_v18 = vld [vmem:[%s2120_s13 + $0x120] sm:$0xff]  ;;  %v222_v21 = vld [vmem:[%s2120_s13 + $0x168] sm:$0xff] }
  0x28   : > { %1628 = vmatpush1.bf16.msra.mxu1 %v1627_v55  ;;  %v1750_v55 = vpack.c.bf16 %v532_v49, %v531_v48  ;;  %v217_v27 = vld [vmem:[%s2120_s13 + $0x140] sm:$0xff]  ;;  %v230_v31 = vld [vmem:[%s2120_s13 + $0x1a8] sm:$0xff] }
  0x29   : > { %1724 = vmatpush1.bf16.msra.mxu0 %v1723_v56  ;;  %1629 = vmatprep.subr.bf16.mxu1 %v2003_v3  ;;  %v469_v56 = vld [vmem:[%s2823_s1 + $0x120] sm:$0xff]  ;;  %v542_v36 = vld [vmem:[%s2823_s1 + $0x368] sm:$0xff] }
  0x2a   : > { %1725 = vmatprep.subr.bf16.mxu0 %v2003_v3  ;;  %v1657_v63 = vpack.c.bf16 %v470_v57, %v469_v56  ;;  %v477_v33 = vld [vmem:[%s2823_s1 + $0x160] sm:$0xff]  ;;  %v234_v39 = vld [vmem:[%s2120_s13 + $0x1c8] sm:$0xff] }
  0x2b   : > { %v225_v37 = vld [vmem:[%s2120_s13 + $0x180] sm:$0xff]  ;;  %v242_v49 = vld [vmem:[%s2120_s13 + $0x208] sm:$0xff] }
  0x2c   : > { %1631 = vmatpush1.bf16.msra.mxu1 %v1630_v61  ;;  %v197_v61 = vld [vmem:[%s2120_s13 + $0xa0] sm:$0xff]  ;;  %v546_v56 = vld [vmem:[%s2823_s1 + $0x388] sm:$0xff] }
  0x2d   : > { %1727 = vmatpush1.bf16.msra.mxu0 %v1726_v62  ;;  %1632 = vmatprep.subr.bf16.mxu1 %v2003_v3  ;;  %v202_v62 = vld [vmem:[%s2120_s13 + $0xc8] sm:$0xff]  ;;  %v229_v38 = vld [vmem:[%s2120_s13 + $0x1a0] sm:$0xff] }
  0x2e   : > { %1728 = vmatprep.subr.bf16.mxu0 %v2003_v3  ;;  %v233_v47 = vld [vmem:[%s2120_s13 + $0x1c0] sm:$0xff]  ;;  %v250_v59 = vld [vmem:[%s2120_s13 + $0x248] sm:$0xff] }
  0x2f   : > { %v237_v48 = vld [vmem:[%s2120_s13 + $0x1e0] sm:$0xff]  ;;  %v550_v13 = vld [vmem:[%s2823_s1 + $0x3a8] sm:$0xff] }
  0x30   : > { %1634 = vmatpush1.bf16.msra.mxu1 %v1633_v4  ;;  %v472_v4 = vld [vmem:[%s2823_s1 + $0x138] sm:$0xff]  ;;  %v241_v57 = vld [vmem:[%s2120_s13 + $0x200] sm:$0xff]  ;;  %v274_v26 = vld [vmem:[%s2120_s13 + $0x308] sm:$0xff] }
  0x31   : > { %1730 = vmatpush1.bf16.msra.mxu0 %v1729_v5  ;;  %1635 = vmatprep.subr.bf16.mxu1 %v2003_v3  ;;  %v535_v5 = vld [vmem:[%s2823_s1 + $0x330] sm:$0xff]  ;;  %v245_v58 = vld [vmem:[%s2120_s13 + $0x220] sm:$0xff] }
  0x32   : > { %1731 = vmatprep.subr.bf16.mxu0 %v2003_v3  ;;  %v1756_v12 = vpack.c.bf16 %v536_v6, %v535_v5  ;;  %v253_v5 = vld [vmem:[%s2120_s13 + $0x260] sm:$0xff]  ;;  %v258_v6 = vld [vmem:[%s2120_s13 + $0x288] sm:$0xff] }
  0x33   : > { %v257_v14 = vld [vmem:[%s2120_s13 + $0x280] sm:$0xff] }
  0x34   : > { %1637 = vmatpush1.bf16.msra.mxu1 %v1636_v10  ;;  %v1660_v10 = vpack.c.bf16 %v472_v4, %v471_v2  ;;  %v548_v2 = vld [vmem:[%s2823_s1 + $0x398] sm:$0xff]  ;;  %v249_v4 = vld [vmem:[%s2120_s13 + $0x240] sm:$0xff] }
  0x35   : > { %1733 = vmatpush1.bf16.msra.mxu0 %v1732_v11  ;;  %1638 = vmatprep.subr.bf16.mxu1 %v2003_v3  ;;  %v214_v11 = vld [vmem:[%s2120_s13 + $0x128] sm:$0xff]  ;;  %v269_v25 = vld [vmem:[%s2120_s13 + $0x2e0] sm:$0xff] }
  0x36   : > { %1734 = vmatprep.subr.bf16.mxu0 %v2003_v3 }
  0x38   : > { %1640 = vmatpush1.bf16.msra.mxu1 %v1639_v16  ;;  %v538_v16 = vld [vmem:[%s2823_s1 + $0x348] sm:$0xff] }
  0x39   : > { %1736 = vmatpush1.bf16.msra.mxu0 %v1735_v17  ;;  %1641 = vmatprep.subr.bf16.mxu1 %v2003_v3  ;;  %v209_v17 = vld [vmem:[%s2120_s13 + $0x100] sm:$0xff] }
  0x3a   : > { %1737 = vmatprep.subr.bf16.mxu0 %v2003_v3 }
  0x3c   : > { %1643 = vmatpush1.bf16.msra.mxu1 %v1642_v22  ;;  %v1759_v22 = vpack.c.bf16 %v538_v16, %v537_v15  ;;  %v261_v15 = vld [vmem:[%s2120_s13 + $0x2a0] sm:$0xff]  ;;  %v266_v16 = vld [vmem:[%s2120_s13 + $0x2c8] sm:$0xff] }
  0x3d   : > { %1739 = vmatpush1.bf16.msra.mxu0 %v1738_v23  ;;  %1644 = vmatprep.subr.bf16.mxu1 %v2003_v3  ;;  %v475_v23 = vld [vmem:[%s2823_s1 + $0x150] sm:$0xff] }
  0x3e   : > { %1740 = vmatprep.subr.bf16.mxu0 %v2003_v3  ;;  %v1666_v30 = vpack.c.bf16 %v476_v24, %v475_v23  ;;  %v552_v23 = vld [vmem:[%s2823_s1 + $0x3b8] sm:$0xff]  ;;  %v265_v24 = vld [vmem:[%s2120_s13 + $0x2c0] sm:$0xff] }
  0x40   : > { %1646 = vmatpush1.bf16.msra.mxu1 %v1645_v28  ;;  %v221_v28 = vld [vmem:[%s2120_s13 + $0x160] sm:$0xff] }
  0x41   : > { %1742 = vmatpush1.bf16.msra.mxu0 %v1741_v29  ;;  %1647 = vmatprep.subr.bf16.mxu1 %v2003_v3  ;;  %v226_v29 = vld [vmem:[%s2120_s13 + $0x188] sm:$0xff] }
  0x42   : > { %1743 = vmatprep.subr.bf16.mxu0 %v2003_v3 }
  0x44   : > { %1649 = vmatpush1.bf16.msra.mxu1 %v1648_v34  ;;  %v478_v34 = vld [vmem:[%s2823_s1 + $0x168] sm:$0xff] }
  0x45   : > { %1745 = vmatpush1.bf16.msra.mxu0 %v1744_v35  ;;  %1650 = vmatprep.subr.bf16.mxu1 %v2003_v3  ;;  %v541_v35 = vld [vmem:[%s2823_s1 + $0x360] sm:$0xff] }
  0x46   : > { %1746 = vmatprep.subr.bf16.mxu0 %v2003_v3 }
  0x47   : > { %633 = vmatmul.mubr.f32.vlgmr.msra.gmra.mrb[0].mxu1 %v177_v40  ;;  %v1669_v40 = vpack.c.bf16 %v478_v34, %v477_v33  ;;  %v554_v33 = vld [vmem:[%s2823_s1 + $0x3c8] sm:$0xff]  ;;  %v273_v34 = vld [vmem:[%s2120_s13 + $0x300] sm:$0xff] }
  0x48   : > { %1083 = vmatmul.mubr.f32.vlgmr.msra.gmra.mrb[0].mxu0 %v181_v42  ;;  %1652 = vmatpush1.bf16.msra.mxu1 %v1651_v41  ;;  %v238_v41 = vld [vmem:[%s2120_s13 + $0x1e8] sm:$0xff]  ;;  %v1765_v42 = vpack.c.bf16 %v542_v36, %v541_v35  ;;  %v277_v35 = vld [vmem:[%s2120_s13 + $0x320] sm:$0xff] }
  0x49   : > { %637 = vmatprep.mubr.f32.mxu1 %v186_v43  ;;  %1087 = vmatprep.mubr.f32.mxu0 %v190_v44  ;;  %v479_v43 = vld [vmem:[%s2823_s1 + $0x170] sm:$0xff]  ;;  %v480_v44 = vld [vmem:[%s2823_s1 + $0x178] sm:$0xff]  ;;  %v282_v36 = vld [vmem:[%s2120_s13 + $0x348] sm:$0xff] }
  0x4a   : > { %1748 = vmatpush1.bf16.msra.mxu0 %v1747_v45  ;;  %1653 = vmatprep.subr.bf16.mxu1 %v2003_v3  ;;  %v543_v45 = vld [vmem:[%s2823_s1 + $0x370] sm:$0xff] }
  0x4b   : > { %638 = vmatmul.mubr.f32.gmra.mrb[2].mxu1 %v185_v50  ;;  %1749 = vmatprep.subr.bf16.mxu0 %v2003_v3  ;;  %v1672_v50 = vpack.c.bf16 %v480_v44, %v479_v43  ;;  %v556_v43 = vld [vmem:[%s2823_s1 + $0x3d8] sm:$0xff]  ;;  %v281_v44 = vld [vmem:[%s2120_s13 + $0x340] sm:$0xff] }
  0x4c   : > { %1088 = vmatmul.mubr.f32.gmra.mrb[2].mxu0 %v189_v51  ;;  %642 = vmatprep.mubr.f32.mxu1 %v194_v52  ;;  %v246_v51 = vld [vmem:[%s2120_s13 + $0x228] sm:$0xff]  ;;  %v1768_v52 = vpack.c.bf16 %v544_v46, %v543_v45  ;;  %v285_v45 = vld [vmem:[%s2120_s13 + $0x360] sm:$0xff] }
  0x4d   : > { %1092 = vmatprep.mubr.f32.mxu0 %v198_v54  ;;  %1655 = vmatpush1.bf16.msra.mxu1 %v1654_v53  ;;  %v481_v53 = vld [vmem:[%s2823_s1 + $0x180] sm:$0xff]  ;;  %v482_v54 = vld [vmem:[%s2823_s1 + $0x188] sm:$0xff] }
  0x4e   : > { %1751 = vmatpush1.bf16.msra.mxu0 %v1750_v55  ;;  %1656 = vmatprep.subr.bf16.mxu1 %v2003_v3  ;;  %v545_v55 = vld [vmem:[%s2823_s1 + $0x380] sm:$0xff]  ;;  %v290_v46 = vld [vmem:[%s2120_s13 + $0x388] sm:$0xff] }
  0x4f   : > { %643 = vmatmul.mubr.f32.gmra.mrb[4].mxu1 %v193_v60  ;;  %1752 = vmatprep.subr.bf16.mxu0 %v2003_v3  ;;  %v1675_v60 = vpack.c.bf16 %v482_v54, %v481_v53  ;;  %v558_v53 = vld [vmem:[%s2823_s1 + $0x3e8] sm:$0xff]  ;;  %v289_v54 = vld [vmem:[%s2120_s13 + $0x380] sm:$0xff] }
  0x50   : > { %1093 = vmatmul.mubr.f32.gmra.mrb[4].mxu0 %v197_v61  ;;  %647 = vmatprep.mubr.f32.mxu1 %v202_v62  ;;  %v254_v61 = vld [vmem:[%s2120_s13 + $0x268] sm:$0xff]  ;;  %v1771_v62 = vpack.c.bf16 %v546_v56, %v545_v55  ;;  %v293_v55 = vld [vmem:[%s2120_s13 + $0x3a0] sm:$0xff] }
  0x51   : > { %1097 = vmatprep.mubr.f32.mxu0 %v206_v0  ;;  %1658 = vmatpush1.bf16.msra.mxu1 %v1657_v63  ;;  %v483_v63 = vld [vmem:[%s2823_s1 + $0x190] sm:$0xff]  ;;  %v484_v0 = vld [vmem:[%s2823_s1 + $0x198] sm:$0xff]  ;;  %v298_v56 = vld [vmem:[%s2120_s13 + $0x3c8] sm:$0xff] }
  0x52   : > { %1754 = vmatpush1.bf16.msra.mxu0 %v1753_v1  ;;  %1659 = vmatprep.subr.bf16.mxu1 %v2003_v3  ;;  %v547_v1 = vld [vmem:[%s2823_s1 + $0x390] sm:$0xff] }
  0x53   : > { %648 = vmatmul.mubr.f32.gmra.mrb[6].mxu1 %v201_v7  ;;  %1755 = vmatprep.subr.bf16.mxu0 %v2003_v3  ;;  %v1678_v7 = vpack.c.bf16 %v484_v0, %v483_v63  ;;  %v560_v63 = vld [vmem:[%s2823_s1 + $0x3f8] sm:$0xff]  ;;  %v297_v0 = vld [vmem:[%s2120_s13 + $0x3c0] sm:$0xff] }
  0x54   : > { %1098 = vmatmul.mubr.f32.gmra.mrb[6].mxu0 %v205_v8  ;;  %652 = vmatprep.mubr.f32.mxu1 %v210_v9  ;;  %v262_v8 = vld [vmem:[%s2120_s13 + $0x2a8] sm:$0xff]  ;;  %v1774_v9 = vpack.c.bf16 %v548_v2, %v547_v1  ;;  %v301_v1 = vld [vmem:[%s2120_s13 + $0x3e0] sm:$0xff] }
  0x55   : > { %1102 = vmatprep.mubr.f32.mxu0 %v214_v11  ;;  %1661 = vmatpush1.bf16.msra.mxu1 %v1660_v10  ;;  %v485_v10 = vld [vmem:[%s2823_s1 + $0x1a0] sm:$0xff]  ;;  %v486_v11 = vld [vmem:[%s2823_s1 + $0x1a8] sm:$0xff] }
  0x56   : > { %1757 = vmatpush1.bf16.msra.mxu0 %v1756_v12  ;;  %1662 = vmatprep.subr.bf16.mxu1 %v2003_v3  ;;  %v549_v12 = vld [vmem:[%s2823_s1 + $0x3a0] sm:$0xff]  ;;  %v306_v2 = vld [vmem:[%s2120_s13 + $0x408] sm:$0xff] }
  0x57   : > { %653 = vmatmul.mubr.f32.gmra.mrb[8].mxu1 %v209_v17  ;;  %1758 = vmatprep.subr.bf16.mxu0 %v2003_v3  ;;  %v1681_v17 = vpack.c.bf16 %v486_v11, %v485_v10  ;;  %v318_v10 = vld [vmem:[%s2120_s13 + $0x468] sm:$0xff]  ;;  %v313_v11 = vld [vmem:[%s2120_s13 + $0x440] sm:$0xff] }
  0x58   : > { %1103 = vmatmul.mubr.f32.gmra.mrb[8].mxu0 %v213_v18  ;;  %657 = vmatprep.mubr.f32.mxu1 %v218_v19  ;;  %v270_v18 = vld [vmem:[%s2120_s13 + $0x2e8] sm:$0xff]  ;;  %v1777_v19 = vpack.c.bf16 %v550_v13, %v549_v12 }
  0x59   : > { %1107 = vmatprep.mubr.f32.mxu0 %v222_v21  ;;  %1664 = vmatpush1.bf16.msra.mxu1 %v1663_v20  ;;  %v487_v20 = vld [vmem:[%s2823_s1 + $0x1b0] sm:$0xff]  ;;  %v488_v21 = vld [vmem:[%s2823_s1 + $0x1b8] sm:$0xff]  ;;  %v322_v12 = vld [vmem:[%s2120_s13 + $0x488] sm:$0xff] }
  0x5a   : > { %1760 = vmatpush1.bf16.msra.mxu0 %v1759_v22  ;;  %1665 = vmatprep.subr.bf16.mxu1 %v2003_v3  ;;  %v551_v22 = vld [vmem:[%s2823_s1 + $0x3b0] sm:$0xff]  ;;  %v326_v13 = vld [vmem:[%s2120_s13 + $0x4a8] sm:$0xff] }
  0x5b   : > { %658 = vmatmul.mubr.f32.gmra.mrb[10].mxu1 %v217_v27  ;;  %1761 = vmatprep.subr.bf16.mxu0 %v2003_v3  ;;  %v1684_v27 = vpack.c.bf16 %v488_v21, %v487_v20  ;;  %v338_v20 = vld [vmem:[%s2120_s13 + $0x508] sm:$0xff] }
  0x5c   : > { %1108 = vmatmul.mubr.f32.gmra.mrb[10].mxu0 %v221_v28  ;;  %662 = vmatprep.mubr.f32.mxu1 %v226_v29  ;;  %v278_v28 = vld [vmem:[%s2120_s13 + $0x328] sm:$0xff]  ;;  %v1780_v29 = vpack.c.bf16 %v552_v23, %v551_v22  ;;  %v337_v22 = vld [vmem:[%s2120_s13 + $0x500] sm:$0xff] }
  0x5d   : > { %1112 = vmatprep.mubr.f32.mxu0 %v230_v31  ;;  %1667 = vmatpush1.bf16.msra.mxu1 %v1666_v30  ;;  %v489_v30 = vld [vmem:[%s2823_s1 + $0x1c0] sm:$0xff]  ;;  %v490_v31 = vld [vmem:[%s2823_s1 + $0x1c8] sm:$0xff] }
  0x5e   : > { %1763 = vmatpush1.bf16.msra.mxu0 %v1762_v32  ;;  %1668 = vmatprep.subr.bf16.mxu1 %v2003_v3  ;;  %v553_v32 = vld [vmem:[%s2823_s1 + $0x3c0] sm:$0xff]  ;;  %v342_v21 = vld [vmem:[%s2120_s13 + $0x528] sm:$0xff] }
  0x5f   : > { %663 = vmatmul.mubr.f32.gmra.mrb[12].mxu1 %v225_v37  ;;  %1764 = vmatprep.subr.bf16.mxu0 %v2003_v3  ;;  %v1687_v37 = vpack.c.bf16 %v490_v31, %v489_v30  ;;  %v341_v23 = vld [vmem:[%s2120_s13 + $0x520] sm:$0xff] }
  0x60   : > { %1113 = vmatmul.mubr.f32.gmra.mrb[12].mxu0 %v229_v38  ;;  %667 = vmatprep.mubr.f32.mxu1 %v234_v39  ;;  %v286_v38 = vld [vmem:[%s2120_s13 + $0x368] sm:$0xff]  ;;  %v1783_v39 = vpack.c.bf16 %v554_v33, %v553_v32  ;;  %v353_v30 = vld [vmem:[%s2120_s13 + $0x580] sm:$0xff] }
  0x61   : > { %1117 = vmatprep.mubr.f32.mxu0 %v238_v41  ;;  %1670 = vmatpush1.bf16.msra.mxu1 %v1669_v40  ;;  %v491_v40 = vld [vmem:[%s2823_s1 + $0x1d0] sm:$0xff]  ;;  %v492_v41 = vld [vmem:[%s2823_s1 + $0x1d8] sm:$0xff]  ;;  %v357_v31 = vld [vmem:[%s2120_s13 + $0x5a0] sm:$0xff] }
  0x62   : > { %1766 = vmatpush1.bf16.msra.mxu0 %v1765_v42  ;;  %1671 = vmatprep.subr.bf16.mxu1 %v2003_v3  ;;  %v555_v42 = vld [vmem:[%s2823_s1 + $0x3d0] sm:$0xff]  ;;  %v362_v32 = vld [vmem:[%s2120_s13 + $0x5c8] sm:$0xff] }
  0x63   : > { %668 = vmatmul.mubr.f32.gmra.mrb[14].mxu1 %v233_v47  ;;  %1767 = vmatprep.subr.bf16.mxu0 %v2003_v3  ;;  %v1690_v47 = vpack.c.bf16 %v492_v41, %v491_v40  ;;  %v366_v33 = vld [vmem:[%s2120_s13 + $0x5e8] sm:$0xff] }
  0x64   : > { %1118 = vmatmul.mubr.f32.gmra.mrb[14].mxu0 %v237_v48  ;;  %672 = vmatprep.mubr.f32.mxu1 %v242_v49  ;;  %v294_v48 = vld [vmem:[%s2120_s13 + $0x3a8] sm:$0xff]  ;;  %v1786_v49 = vpack.c.bf16 %v556_v43, %v555_v42  ;;  %v377_v42 = vld [vmem:[%s2120_s13 + $0x640] sm:$0xff] }
  0x65   : > { %1122 = vmatprep.mubr.f32.mxu0 %v246_v51  ;;  %1673 = vmatpush1.bf16.msra.mxu1 %v1672_v50  ;;  %v493_v50 = vld [vmem:[%s2823_s1 + $0x1e0] sm:$0xff]  ;;  %v494_v51 = vld [vmem:[%s2823_s1 + $0x1e8] sm:$0xff] }
  0x66   : > { %1769 = vmatpush1.bf16.msra.mxu0 %v1768_v52  ;;  %1674 = vmatprep.subr.bf16.mxu1 %v2003_v3  ;;  %v557_v52 = vld [vmem:[%s2823_s1 + $0x3e0] sm:$0xff]  ;;  %v378_v40 = vld [vmem:[%s2120_s13 + $0x648] sm:$0xff] }
  0x67   : > { %673 = vmatmul.mubr.f32.gmra.mrb[16].mxu1 %v241_v57  ;;  %1770 = vmatprep.subr.bf16.mxu0 %v2003_v3  ;;  %v1693_v57 = vpack.c.bf16 %v494_v51, %v493_v50  ;;  %v382_v41 = vld [vmem:[%s2120_s13 + $0x668] sm:$0xff]  ;;  %v381_v43 = vld [vmem:[%s2120_s13 + $0x660] sm:$0xff] }
  0x68   : > { %1123 = vmatmul.mubr.f32.gmra.mrb[16].mxu0 %v245_v58  ;;  %677 = vmatprep.mubr.f32.mxu1 %v250_v59  ;;  %v302_v58 = vld [vmem:[%s2120_s13 + $0x3e8] sm:$0xff]  ;;  %v1789_v59 = vpack.c.bf16 %v558_v53, %v557_v52  ;;  %v393_v50 = vld [vmem:[%s2120_s13 + $0x6c0] sm:$0xff] }
  0x69   : > { %1127 = vmatprep.mubr.f32.mxu0 %v254_v61  ;;  %1676 = vmatpush1.bf16.msra.mxu1 %v1675_v60  ;;  %v495_v60 = vld [vmem:[%s2823_s1 + $0x1f0] sm:$0xff]  ;;  %v496_v61 = vld [vmem:[%s2823_s1 + $0x1f8] sm:$0xff]  ;;  %v397_v51 = vld [vmem:[%s2120_s13 + $0x6e0] sm:$0xff] }
  0x6a   : > { %1772 = vmatpush1.bf16.msra.mxu0 %v1771_v62  ;;  %1677 = vmatprep.subr.bf16.mxu1 %v2003_v3  ;;  %v559_v62 = vld [vmem:[%s2823_s1 + $0x3f0] sm:$0xff]  ;;  %v402_v52 = vld [vmem:[%s2120_s13 + $0x708] sm:$0xff] }
  0x6b   : > { %678 = vmatmul.mubr.f32.gmra.mrb[18].mxu1 %v249_v4  ;;  %1773 = vmatprep.subr.bf16.mxu0 %v2003_v3  ;;  %v1696_v4 = vpack.c.bf16 %v496_v61, %v495_v60  ;;  %v406_v53 = vld [vmem:[%s2120_s13 + $0x728] sm:$0xff] }
  0x6c   : > { %1128 = vmatmul.mubr.f32.gmra.mrb[18].mxu0 %v253_v5  ;;  %682 = vmatprep.mubr.f32.mxu1 %v258_v6  ;;  %v310_v5 = vld [vmem:[%s2120_s13 + $0x428] sm:$0xff]  ;;  %v1792_v6 = vpack.c.bf16 %v560_v63, %v559_v62  ;;  %v417_v62 = vld [vmem:[%s2120_s13 + $0x780] sm:$0xff] }
  0x6d   : > { %1132 = vmatprep.mubr.f32.mxu0 %v262_v8  ;;  %1679 = vmatpush1.bf16.msra.mxu1 %v1678_v7  ;;  %v305_v7 = vld [vmem:[%s2120_s13 + $0x400] sm:$0xff]  ;;  %v418_v60 = vld [vmem:[%s2120_s13 + $0x788] sm:$0xff] }
  0x6e   : > { %1775 = vmatpush1.bf16.msra.mxu0 %v1774_v9  ;;  %1680 = vmatprep.subr.bf16.mxu1 %v2003_v3  ;;  %v309_v8 = vld [vmem:[%s2120_s13 + $0x420] sm:$0xff]  ;;  %v314_v9 = vld [vmem:[%s2120_s13 + $0x448] sm:$0xff] }
  0x6f   : > { %683 = vmatmul.mubr.f32.gmra.mrb[20].mxu1 %v257_v14  ;;  %1776 = vmatprep.subr.bf16.mxu0 %v2003_v3  ;;  %v321_v14 = vld [vmem:[%s2120_s13 + $0x480] sm:$0xff]  ;;  %v422_v61 = vld [vmem:[%s2120_s13 + $0x7a8] sm:$0xff] }
  0x70   : > { %1133 = vmatmul.mubr.f32.gmra.mrb[20].mxu0 %v261_v15  ;;  %687 = vmatprep.mubr.f32.mxu1 %v266_v16  ;;  %v325_v15 = vld [vmem:[%s2120_s13 + $0x4a0] sm:$0xff]  ;;  %v330_v16 = vld [vmem:[%s2120_s13 + $0x4c8] sm:$0xff] }
  0x71   : > { %1137 = vmatprep.mubr.f32.mxu0 %v270_v18  ;;  %1682 = vmatpush1.bf16.msra.mxu1 %v1681_v17  ;;  %v334_v17 = vld [vmem:[%s2120_s13 + $0x4e8] sm:$0xff]  ;;  %v329_v18 = vld [vmem:[%s2120_s13 + $0x4c0] sm:$0xff] }
  0x72   : > { %1778 = vmatpush1.bf16.msra.mxu0 %v1777_v19  ;;  %1683 = vmatprep.subr.bf16.mxu1 %v2003_v3  ;;  %v333_v19 = vld [vmem:[%s2120_s13 + $0x4e0] sm:$0xff] }
  0x73   : > { %688 = vmatmul.mubr.f32.gmra.mrb[22].mxu1 %v265_v24  ;;  %1779 = vmatprep.subr.bf16.mxu0 %v2003_v3  ;;  %v346_v24 = vld [vmem:[%s2120_s13 + $0x548] sm:$0xff]  ;;  %v421_v63 = vld [vmem:[%s2120_s13 + $0x7a0] sm:$0xff] }
  0x74   : > { %1138 = vmatmul.mubr.f32.gmra.mrb[22].mxu0 %v269_v25  ;;  %692 = vmatprep.mubr.f32.mxu1 %v274_v26  ;;  %v350_v25 = vld [vmem:[%s2120_s13 + $0x568] sm:$0xff]  ;;  %v345_v26 = vld [vmem:[%s2120_s13 + $0x540] sm:$0xff] }
  0x75   : > { %1142 = vmatprep.mubr.f32.mxu0 %v278_v28  ;;  %1685 = vmatpush1.bf16.msra.mxu1 %v1684_v27  ;;  %v349_v27 = vld [vmem:[%s2120_s13 + $0x560] sm:$0xff]  ;;  %v354_v28 = vld [vmem:[%s2120_s13 + $0x588] sm:$0xff] }
  0x76   : > { %1781 = vmatpush1.bf16.msra.mxu0 %v1780_v29  ;;  %1686 = vmatprep.subr.bf16.mxu1 %v2003_v3  ;;  %v358_v29 = vld [vmem:[%s2120_s13 + $0x5a8] sm:$0xff] }
  0x77   : > { %693 = vmatmul.mubr.f32.gmra.mrb[24].mxu1 %v273_v34  ;;  %1782 = vmatprep.subr.bf16.mxu0 %v2003_v3  ;;  %v361_v34 = vld [vmem:[%s2120_s13 + $0x5c0] sm:$0xff] }
  0x78   : > { %1143 = vmatmul.mubr.f32.gmra.mrb[24].mxu0 %v277_v35  ;;  %697 = vmatprep.mubr.f32.mxu1 %v282_v36  ;;  %v365_v35 = vld [vmem:[%s2120_s13 + $0x5e0] sm:$0xff]  ;;  %v370_v36 = vld [vmem:[%s2120_s13 + $0x608] sm:$0xff] }
  0x79   : > { %1147 = vmatprep.mubr.f32.mxu0 %v286_v38  ;;  %1688 = vmatpush1.bf16.msra.mxu1 %v1687_v37  ;;  %v374_v37 = vld [vmem:[%s2120_s13 + $0x628] sm:$0xff]  ;;  %v369_v38 = vld [vmem:[%s2120_s13 + $0x600] sm:$0xff] }
  0x7a   : > { %1784 = vmatpush1.bf16.msra.mxu0 %v1783_v39  ;;  %1689 = vmatprep.subr.bf16.mxu1 %v2003_v3  ;;  %v373_v39 = vld [vmem:[%s2120_s13 + $0x620] sm:$0xff] }
  0x7b   : > { %698 = vmatmul.mubr.f32.gmra.mrb[26].mxu1 %v281_v44  ;;  %1785 = vmatprep.subr.bf16.mxu0 %v2003_v3  ;;  %v386_v44 = vld [vmem:[%s2120_s13 + $0x688] sm:$0xff] }
  0x7c   : > { %1148 = vmatmul.mubr.f32.gmra.mrb[26].mxu0 %v285_v45  ;;  %702 = vmatprep.mubr.f32.mxu1 %v290_v46  ;;  %v390_v45 = vld [vmem:[%s2120_s13 + $0x6a8] sm:$0xff]  ;;  %v385_v46 = vld [vmem:[%s2120_s13 + $0x680] sm:$0xff] }
  0x7d   : > { %1152 = vmatprep.mubr.f32.mxu0 %v294_v48  ;;  %1691 = vmatpush1.bf16.msra.mxu1 %v1690_v47  ;;  %v389_v47 = vld [vmem:[%s2120_s13 + $0x6a0] sm:$0xff]  ;;  %v394_v48 = vld [vmem:[%s2120_s13 + $0x6c8] sm:$0xff] }
  0x7e   : > { %1787 = vmatpush1.bf16.msra.mxu0 %v1786_v49  ;;  %1692 = vmatprep.subr.bf16.mxu1 %v2003_v3  ;;  %v398_v49 = vld [vmem:[%s2120_s13 + $0x6e8] sm:$0xff] }
  0x7f   : > { %703 = vmatmul.mubr.f32.gmra.mrb[28].mxu1 %v289_v54  ;;  %1788 = vmatprep.subr.bf16.mxu0 %v2003_v3  ;;  %v401_v54 = vld [vmem:[%s2120_s13 + $0x700] sm:$0xff] }
  0x80   : > { %1153 = vmatmul.mubr.f32.gmra.mrb[28].mxu0 %v293_v55  ;;  %707 = vmatprep.mubr.f32.mxu1 %v298_v56  ;;  %v405_v55 = vld [vmem:[%s2120_s13 + $0x720] sm:$0xff]  ;;  %v410_v56 = vld [vmem:[%s2120_s13 + $0x748] sm:$0xff] }
  0x81   : > { %1157 = vmatprep.mubr.f32.mxu0 %v302_v58  ;;  %1694 = vmatpush1.bf16.msra.mxu1 %v1693_v57  ;;  %v414_v57 = vld [vmem:[%s2120_s13 + $0x768] sm:$0xff]  ;;  %v409_v58 = vld [vmem:[%s2120_s13 + $0x740] sm:$0xff] }
  0x82   : > { %1790 = vmatpush1.bf16.msra.mxu0 %v1789_v59  ;;  %1695 = vmatprep.subr.bf16.mxu1 %v2003_v3  ;;  %v413_v59 = vld [vmem:[%s2120_s13 + $0x760] sm:$0xff] }
  0x83   : > { %708 = vmatmul.mubr.f32.gmra.mrb[30].mxu1 %v297_v0  ;;  %1791 = vmatprep.subr.bf16.mxu0 %v2003_v3  ;;  %v317_v3 = vld [vmem:[%s2120_s13 + $0x460] sm:$0xff]  ;;  %v426_v0 = vld [vmem:[%s2120_s13 + $0x7c8] sm:$0xff] }
  0x84   : > { %1158 = vmatmul.mubr.f32.gmra.mrb[30].mxu0 %v301_v1  ;;  %712 = vmatprep.mubr.f32.mxu1 %v306_v2  ;;  %v430_v1 = vld [vmem:[%s2120_s13 + $0x7e8] sm:$0xff]  ;;  %v425_v2 = vld [vmem:[%s2120_s13 + $0x7c0] sm:$0xff] }
  0x85   : > { %1162 = vmatprep.mubr.f32.mxu0 %v310_v5  ;;  %1697 = vmatpush1.bf16.msra.mxu1 %v1696_v4  ;;  %v429_v4 = vld [vmem:[%s2120_s13 + $0x7e0] sm:$0xff]  ;;  %v180_v5 = vld [vmem:[%s2120_s13 + $0x18] sm:$0xff] }
  0x86   : > { %1793 = vmatpush1.bf16.msra.mxu0 %v1792_v6  ;;  %v184_v6 = vld [vmem:[%s2120_s13 + $0x38] sm:$0xff] }
  0x87   : > { %713 = vmatmul.mubr.f32.gmra.mrb[32].mxu1 %v305_v7  ;;  %v179_v7 = vld [vmem:[%s2120_s13 + $0x10] sm:$0xff] }
  0x88   : > { %1163 = vmatmul.mubr.f32.gmra.mrb[32].mxu0 %v309_v8  ;;  %717 = vmatprep.mubr.f32.mxu1 %v314_v9  ;;  %v183_v8 = vld [vmem:[%s2120_s13 + $0x30] sm:$0xff]  ;;  %v188_v9 = vld [vmem:[%s2120_s13 + $0x58] sm:$0xff] }
  0x89   : > { %1167 = vmatprep.mubr.f32.mxu0 %v318_v10  ;;  %v192_v10 = vld [vmem:[%s2120_s13 + $0x78] sm:$0xff] }
  0x8b   : > { %718 = vmatmul.mubr.f32.gmra.mrb[34].mxu1 %v313_v11  ;;  %v187_v11 = vld [vmem:[%s2120_s13 + $0x50] sm:$0xff] }
  0x8c   : > { %1168 = vmatmul.mubr.f32.gmra.mrb[34].mxu0 %v317_v3  ;;  %722 = vmatprep.mubr.f32.mxu1 %v322_v12  ;;  %v191_v3 = vld [vmem:[%s2120_s13 + $0x70] sm:$0xff]  ;;  %v196_v12 = vld [vmem:[%s2120_s13 + $0x98] sm:$0xff] }
  0x8d   : > { %1172 = vmatprep.mubr.f32.mxu0 %v326_v13  ;;  %v200_v13 = vld [vmem:[%s2120_s13 + $0xb8] sm:$0xff] }
  0x8f   : > { %723 = vmatmul.mubr.f32.gmra.mrb[36].mxu1 %v321_v14  ;;  %v195_v14 = vld [vmem:[%s2120_s13 + $0x90] sm:$0xff] }
  0x90   : > { %1173 = vmatmul.mubr.f32.gmra.mrb[36].mxu0 %v325_v15  ;;  %727 = vmatprep.mubr.f32.mxu1 %v330_v16  ;;  %v199_v15 = vld [vmem:[%s2120_s13 + $0xb0] sm:$0xff]  ;;  %v204_v16 = vld [vmem:[%s2120_s13 + $0xd8] sm:$0xff] }
  0x91   : > { %1177 = vmatprep.mubr.f32.mxu0 %v334_v17  ;;  %v208_v17 = vld [vmem:[%s2120_s13 + $0xf8] sm:$0xff] }
  0x93   : > { %728 = vmatmul.mubr.f32.gmra.mrb[38].mxu1 %v329_v18  ;;  %v203_v18 = vld [vmem:[%s2120_s13 + $0xd0] sm:$0xff] }
  0x94   : > { %1178 = vmatmul.mubr.f32.gmra.mrb[38].mxu0 %v333_v19  ;;  %732 = vmatprep.mubr.f32.mxu1 %v338_v20  ;;  %v207_v19 = vld [vmem:[%s2120_s13 + $0xf0] sm:$0xff]  ;;  %v212_v20 = vld [vmem:[%s2120_s13 + $0x118] sm:$0xff] }
  0x95   : > { %1182 = vmatprep.mubr.f32.mxu0 %v342_v21  ;;  %v216_v21 = vld [vmem:[%s2120_s13 + $0x138] sm:$0xff] }
  0x97   : > { %733 = vmatmul.mubr.f32.gmra.mrb[40].mxu1 %v337_v22  ;;  %v211_v22 = vld [vmem:[%s2120_s13 + $0x110] sm:$0xff] }
  0x98   : > { %1183 = vmatmul.mubr.f32.gmra.mrb[40].mxu0 %v341_v23  ;;  %737 = vmatprep.mubr.f32.mxu1 %v346_v24  ;;  %v215_v23 = vld [vmem:[%s2120_s13 + $0x130] sm:$0xff]  ;;  %v220_v24 = vld [vmem:[%s2120_s13 + $0x158] sm:$0xff] }
  0x99   : > { %1187 = vmatprep.mubr.f32.mxu0 %v350_v25  ;;  %v224_v25 = vld [vmem:[%s2120_s13 + $0x178] sm:$0xff] }
  0x9b   : > { %738 = vmatmul.mubr.f32.gmra.mrb[42].mxu1 %v345_v26  ;;  %v219_v26 = vld [vmem:[%s2120_s13 + $0x150] sm:$0xff] }
  0x9c   : > { %1188 = vmatmul.mubr.f32.gmra.mrb[42].mxu0 %v349_v27  ;;  %742 = vmatprep.mubr.f32.mxu1 %v354_v28  ;;  %v223_v27 = vld [vmem:[%s2120_s13 + $0x170] sm:$0xff]  ;;  %v228_v28 = vld [vmem:[%s2120_s13 + $0x198] sm:$0xff] }
  0x9d   : > { %1192 = vmatprep.mubr.f32.mxu0 %v358_v29  ;;  %v232_v29 = vld [vmem:[%s2120_s13 + $0x1b8] sm:$0xff] }
  0x9f   : > { %743 = vmatmul.mubr.f32.gmra.mrb[44].mxu1 %v353_v30  ;;  %v227_v30 = vld [vmem:[%s2120_s13 + $0x190] sm:$0xff] }
  0xa0   : > { %1193 = vmatmul.mubr.f32.gmra.mrb[44].mxu0 %v357_v31  ;;  %747 = vmatprep.mubr.f32.mxu1 %v362_v32  ;;  %v231_v31 = vld [vmem:[%s2120_s13 + $0x1b0] sm:$0xff]  ;;  %v236_v32 = vld [vmem:[%s2120_s13 + $0x1d8] sm:$0xff] }
  0xa1   : > { %1197 = vmatprep.mubr.f32.mxu0 %v366_v33  ;;  %v240_v33 = vld [vmem:[%s2120_s13 + $0x1f8] sm:$0xff] }
  0xa3   : > { %748 = vmatmul.mubr.f32.gmra.mrb[46].mxu1 %v361_v34  ;;  %v235_v34 = vld [vmem:[%s2120_s13 + $0x1d0] sm:$0xff] }
  0xa4   : > { %1198 = vmatmul.mubr.f32.gmra.mrb[46].mxu0 %v365_v35  ;;  %752 = vmatprep.mubr.f32.mxu1 %v370_v36  ;;  %v239_v35 = vld [vmem:[%s2120_s13 + $0x1f0] sm:$0xff]  ;;  %v244_v36 = vld [vmem:[%s2120_s13 + $0x218] sm:$0xff] }
  0xa5   : > { %1202 = vmatprep.mubr.f32.mxu0 %v374_v37  ;;  %v248_v37 = vld [vmem:[%s2120_s13 + $0x238] sm:$0xff] }
  0xa7   : > { %753 = vmatmul.mubr.f32.gmra.mrb[48].mxu1 %v369_v38  ;;  %v243_v38 = vld [vmem:[%s2120_s13 + $0x210] sm:$0xff] }
  0xa8   : > { %1203 = vmatmul.mubr.f32.gmra.mrb[48].mxu0 %v373_v39  ;;  %757 = vmatprep.mubr.f32.mxu1 %v378_v40  ;;  %v247_v39 = vld [vmem:[%s2120_s13 + $0x230] sm:$0xff]  ;;  %v252_v40 = vld [vmem:[%s2120_s13 + $0x258] sm:$0xff] }
  0xa9   : > { %1207 = vmatprep.mubr.f32.mxu0 %v382_v41  ;;  %v256_v41 = vld [vmem:[%s2120_s13 + $0x278] sm:$0xff] }
  0xab   : > { %758 = vmatmul.mubr.f32.gmra.mrb[50].mxu1 %v377_v42  ;;  %v251_v42 = vld [vmem:[%s2120_s13 + $0x250] sm:$0xff] }
  0xac   : > { %1208 = vmatmul.mubr.f32.gmra.mrb[50].mxu0 %v381_v43  ;;  %762 = vmatprep.mubr.f32.mxu1 %v386_v44  ;;  %v255_v43 = vld [vmem:[%s2120_s13 + $0x270] sm:$0xff]  ;;  %v260_v44 = vld [vmem:[%s2120_s13 + $0x298] sm:$0xff] }
  0xad   : > { %1212 = vmatprep.mubr.f32.mxu0 %v390_v45  ;;  %v264_v45 = vld [vmem:[%s2120_s13 + $0x2b8] sm:$0xff] }
  0xaf   : > { %763 = vmatmul.mubr.f32.gmra.mrb[52].mxu1 %v385_v46  ;;  %v259_v46 = vld [vmem:[%s2120_s13 + $0x290] sm:$0xff] }
  0xb0   : > { %1213 = vmatmul.mubr.f32.gmra.mrb[52].mxu0 %v389_v47  ;;  %767 = vmatprep.mubr.f32.mxu1 %v394_v48  ;;  %v263_v47 = vld [vmem:[%s2120_s13 + $0x2b0] sm:$0xff]  ;;  %v268_v48 = vld [vmem:[%s2120_s13 + $0x2d8] sm:$0xff] }
  0xb1   : > { %1217 = vmatprep.mubr.f32.mxu0 %v398_v49  ;;  %v272_v49 = vld [vmem:[%s2120_s13 + $0x2f8] sm:$0xff] }
  0xb3   : > { %768 = vmatmul.mubr.f32.gmra.mrb[54].mxu1 %v393_v50  ;;  %v267_v50 = vld [vmem:[%s2120_s13 + $0x2d0] sm:$0xff] }
  0xb4   : > { %1218 = vmatmul.mubr.f32.gmra.mrb[54].mxu0 %v397_v51  ;;  %772 = vmatprep.mubr.f32.mxu1 %v402_v52  ;;  %v271_v51 = vld [vmem:[%s2120_s13 + $0x2f0] sm:$0xff]  ;;  %v276_v52 = vld [vmem:[%s2120_s13 + $0x318] sm:$0xff] }
  0xb5   : > { %1222 = vmatprep.mubr.f32.mxu0 %v406_v53  ;;  %v280_v53 = vld [vmem:[%s2120_s13 + $0x338] sm:$0xff] }
  0xb7   : > { %773 = vmatmul.mubr.f32.gmra.mrb[56].mxu1 %v401_v54  ;;  %v275_v54 = vld [vmem:[%s2120_s13 + $0x310] sm:$0xff] }
  0xb8   : > { %1223 = vmatmul.mubr.f32.gmra.mrb[56].mxu0 %v405_v55  ;;  %777 = vmatprep.mubr.f32.mxu1 %v410_v56  ;;  %v279_v55 = vld [vmem:[%s2120_s13 + $0x330] sm:$0xff]  ;;  %v284_v56 = vld [vmem:[%s2120_s13 + $0x358] sm:$0xff] }
  0xb9   : > { %1227 = vmatprep.mubr.f32.mxu0 %v414_v57  ;;  %v288_v57 = vld [vmem:[%s2120_s13 + $0x378] sm:$0xff] }
  0xbb   : > { %778 = vmatmul.mubr.f32.gmra.mrb[58].mxu1 %v409_v58  ;;  %v283_v58 = vld [vmem:[%s2120_s13 + $0x350] sm:$0xff] }
  0xbc   : > { %1228 = vmatmul.mubr.f32.gmra.mrb[58].mxu0 %v413_v59  ;;  %782 = vmatprep.mubr.f32.mxu1 %v418_v60  ;;  %v287_v59 = vld [vmem:[%s2120_s13 + $0x370] sm:$0xff]  ;;  %v292_v60 = vld [vmem:[%s2120_s13 + $0x398] sm:$0xff] }
  0xbd   : > { %1232 = vmatprep.mubr.f32.mxu0 %v422_v61  ;;  %v296_v61 = vld [vmem:[%s2120_s13 + $0x3b8] sm:$0xff] }
  0xbf   : > { %783 = vmatmul.mubr.f32.gmra.mrb[60].mxu1 %v417_v62  ;;  %v291_v62 = vld [vmem:[%s2120_s13 + $0x390] sm:$0xff] }
  0xc0   : > { %1233 = vmatmul.mubr.f32.gmra.mrb[60].mxu0 %v421_v63  ;;  %787 = vmatprep.mubr.f32.mxu1 %v426_v0  ;;  %v295_v63 = vld [vmem:[%s2120_s13 + $0x3b0] sm:$0xff]  ;;  %v300_v0 = vld [vmem:[%s2120_s13 + $0x3d8] sm:$0xff] }
  0xc1   : > { %1237 = vmatprep.mubr.f32.mxu0 %v430_v1  ;;  %v304_v1 = vld [vmem:[%s2120_s13 + $0x3f8] sm:$0xff] }
  0xc3   : > { %788 = vmatmul.mubr.f32.gmra.mrb[62].mxu1 %v425_v2  ;;  %v299_v2 = vld [vmem:[%s2120_s13 + $0x3d0] sm:$0xff] }
  0xc4   : > { %1238 = vmatmul.mubr.f32.gmra.mrb[62].mxu0 %v429_v4  ;;  %857 = vmatprep.mubr.f32.mxu1 %v180_v5  ;;  %v303_v4 = vld [vmem:[%s2120_s13 + $0x3f0] sm:$0xff]  ;;  %v308_v5 = vld [vmem:[%s2120_s13 + $0x418] sm:$0xff] }
  0xc5   : > { %1307 = vmatprep.mubr.f32.mxu0 %v184_v6  ;;  %v312_v6 = vld [vmem:[%s2120_s13 + $0x438] sm:$0xff] }
  0xc7   : > { %858 = vmatmul.mubr.f32.vlgmr.msra.gmra.mrb[0].mxu1 %v179_v7  ;;  %v307_v7 = vld [vmem:[%s2120_s13 + $0x410] sm:$0xff] }
  0xc8   : > { %1308 = vmatmul.mubr.f32.vlgmr.msra.gmra.mrb[0].mxu0 %v183_v8  ;;  %862 = vmatprep.mubr.f32.mxu1 %v188_v9  ;;  %v311_v8 = vld [vmem:[%s2120_s13 + $0x430] sm:$0xff]  ;;  %v316_v9 = vld [vmem:[%s2120_s13 + $0x458] sm:$0xff] }
  0xc9   : > { %1312 = vmatprep.mubr.f32.mxu0 %v192_v10  ;;  %v320_v10 = vld [vmem:[%s2120_s13 + $0x478] sm:$0xff] }
  0xcb   : > { %863 = vmatmul.mubr.f32.gmra.mrb[2].mxu1 %v187_v11  ;;  %v315_v11 = vld [vmem:[%s2120_s13 + $0x450] sm:$0xff] }
  0xcc   : > { %1313 = vmatmul.mubr.f32.gmra.mrb[2].mxu0 %v191_v3  ;;  %867 = vmatprep.mubr.f32.mxu1 %v196_v12  ;;  %v319_v3 = vld [vmem:[%s2120_s13 + $0x470] sm:$0xff]  ;;  %v324_v12 = vld [vmem:[%s2120_s13 + $0x498] sm:$0xff] }
  0xcd   : > { %1317 = vmatprep.mubr.f32.mxu0 %v200_v13  ;;  %v328_v13 = vld [vmem:[%s2120_s13 + $0x4b8] sm:$0xff] }
  0xcf   : > { %868 = vmatmul.mubr.f32.gmra.mrb[4].mxu1 %v195_v14  ;;  %v323_v14 = vld [vmem:[%s2120_s13 + $0x490] sm:$0xff] }
  0xd0   : > { %1318 = vmatmul.mubr.f32.gmra.mrb[4].mxu0 %v199_v15  ;;  %872 = vmatprep.mubr.f32.mxu1 %v204_v16  ;;  %v327_v15 = vld [vmem:[%s2120_s13 + $0x4b0] sm:$0xff]  ;;  %v332_v16 = vld [vmem:[%s2120_s13 + $0x4d8] sm:$0xff] }
  0xd1   : > { %1322 = vmatprep.mubr.f32.mxu0 %v208_v17  ;;  %v336_v17 = vld [vmem:[%s2120_s13 + $0x4f8] sm:$0xff] }
  0xd3   : > { %873 = vmatmul.mubr.f32.gmra.mrb[6].mxu1 %v203_v18  ;;  %v331_v18 = vld [vmem:[%s2120_s13 + $0x4d0] sm:$0xff] }
  0xd4   : > { %1323 = vmatmul.mubr.f32.gmra.mrb[6].mxu0 %v207_v19  ;;  %877 = vmatprep.mubr.f32.mxu1 %v212_v20  ;;  %v335_v19 = vld [vmem:[%s2120_s13 + $0x4f0] sm:$0xff]  ;;  %v340_v20 = vld [vmem:[%s2120_s13 + $0x518] sm:$0xff] }
  0xd5   : > { %1327 = vmatprep.mubr.f32.mxu0 %v216_v21  ;;  %v344_v21 = vld [vmem:[%s2120_s13 + $0x538] sm:$0xff] }
  0xd7   : > { %878 = vmatmul.mubr.f32.gmra.mrb[8].mxu1 %v211_v22  ;;  %v339_v22 = vld [vmem:[%s2120_s13 + $0x510] sm:$0xff] }
  0xd8   : > { %1328 = vmatmul.mubr.f32.gmra.mrb[8].mxu0 %v215_v23  ;;  %882 = vmatprep.mubr.f32.mxu1 %v220_v24  ;;  %v343_v23 = vld [vmem:[%s2120_s13 + $0x530] sm:$0xff]  ;;  %v348_v24 = vld [vmem:[%s2120_s13 + $0x558] sm:$0xff] }
  0xd9   : > { %1332 = vmatprep.mubr.f32.mxu0 %v224_v25  ;;  %v352_v25 = vld [vmem:[%s2120_s13 + $0x578] sm:$0xff] }
  0xdb   : > { %883 = vmatmul.mubr.f32.gmra.mrb[10].mxu1 %v219_v26  ;;  %v347_v26 = vld [vmem:[%s2120_s13 + $0x550] sm:$0xff] }
  0xdc   : > { %1333 = vmatmul.mubr.f32.gmra.mrb[10].mxu0 %v223_v27  ;;  %887 = vmatprep.mubr.f32.mxu1 %v228_v28  ;;  %v351_v27 = vld [vmem:[%s2120_s13 + $0x570] sm:$0xff]  ;;  %v356_v28 = vld [vmem:[%s2120_s13 + $0x598] sm:$0xff] }
  0xdd   : > { %1337 = vmatprep.mubr.f32.mxu0 %v232_v29  ;;  %v360_v29 = vld [vmem:[%s2120_s13 + $0x5b8] sm:$0xff] }
  0xdf   : > { %888 = vmatmul.mubr.f32.gmra.mrb[12].mxu1 %v227_v30  ;;  %v355_v30 = vld [vmem:[%s2120_s13 + $0x590] sm:$0xff] }
  0xe0   : > { %1338 = vmatmul.mubr.f32.gmra.mrb[12].mxu0 %v231_v31  ;;  %892 = vmatprep.mubr.f32.mxu1 %v236_v32  ;;  %v359_v31 = vld [vmem:[%s2120_s13 + $0x5b0] sm:$0xff]  ;;  %v364_v32 = vld [vmem:[%s2120_s13 + $0x5d8] sm:$0xff] }
  0xe1   : > { %1342 = vmatprep.mubr.f32.mxu0 %v240_v33  ;;  %v368_v33 = vld [vmem:[%s2120_s13 + $0x5f8] sm:$0xff] }
  0xe3   : > { %893 = vmatmul.mubr.f32.gmra.mrb[14].mxu1 %v235_v34  ;;  %v363_v34 = vld [vmem:[%s2120_s13 + $0x5d0] sm:$0xff] }
  0xe4   : > { %1343 = vmatmul.mubr.f32.gmra.mrb[14].mxu0 %v239_v35  ;;  %897 = vmatprep.mubr.f32.mxu1 %v244_v36  ;;  %v367_v35 = vld [vmem:[%s2120_s13 + $0x5f0] sm:$0xff]  ;;  %v372_v36 = vld [vmem:[%s2120_s13 + $0x618] sm:$0xff] }
  0xe5   : > { %1347 = vmatprep.mubr.f32.mxu0 %v248_v37  ;;  %v376_v37 = vld [vmem:[%s2120_s13 + $0x638] sm:$0xff] }
  0xe7   : > { %898 = vmatmul.mubr.f32.gmra.mrb[16].mxu1 %v243_v38  ;;  %v371_v38 = vld [vmem:[%s2120_s13 + $0x610] sm:$0xff] }
  0xe8   : > { %1348 = vmatmul.mubr.f32.gmra.mrb[16].mxu0 %v247_v39  ;;  %902 = vmatprep.mubr.f32.mxu1 %v252_v40  ;;  %v375_v39 = vld [vmem:[%s2120_s13 + $0x630] sm:$0xff]  ;;  %v380_v40 = vld [vmem:[%s2120_s13 + $0x658] sm:$0xff] }
  0xe9   : > { %1352 = vmatprep.mubr.f32.mxu0 %v256_v41  ;;  %v384_v41 = vld [vmem:[%s2120_s13 + $0x678] sm:$0xff] }
  0xeb   : > { %903 = vmatmul.mubr.f32.gmra.mrb[18].mxu1 %v251_v42  ;;  %v379_v42 = vld [vmem:[%s2120_s13 + $0x650] sm:$0xff] }
  0xec   : > { %1353 = vmatmul.mubr.f32.gmra.mrb[18].mxu0 %v255_v43  ;;  %907 = vmatprep.mubr.f32.mxu1 %v260_v44  ;;  %v383_v43 = vld [vmem:[%s2120_s13 + $0x670] sm:$0xff]  ;;  %v388_v44 = vld [vmem:[%s2120_s13 + $0x698] sm:$0xff] }
  0xed   : > { %1357 = vmatprep.mubr.f32.mxu0 %v264_v45  ;;  %v392_v45 = vld [vmem:[%s2120_s13 + $0x6b8] sm:$0xff] }
  0xef   : > { %908 = vmatmul.mubr.f32.gmra.mrb[20].mxu1 %v259_v46  ;;  %v387_v46 = vld [vmem:[%s2120_s13 + $0x690] sm:$0xff] }
  0xf0   : > { %1358 = vmatmul.mubr.f32.gmra.mrb[20].mxu0 %v263_v47  ;;  %912 = vmatprep.mubr.f32.mxu1 %v268_v48  ;;  %v391_v47 = vld [vmem:[%s2120_s13 + $0x6b0] sm:$0xff]  ;;  %v396_v48 = vld [vmem:[%s2120_s13 + $0x6d8] sm:$0xff] }
  0xf1   : > { %1362 = vmatprep.mubr.f32.mxu0 %v272_v49  ;;  %v400_v49 = vld [vmem:[%s2120_s13 + $0x6f8] sm:$0xff] }
  0xf3   : > { %913 = vmatmul.mubr.f32.gmra.mrb[22].mxu1 %v267_v50  ;;  %v395_v50 = vld [vmem:[%s2120_s13 + $0x6d0] sm:$0xff] }
  0xf4   : > { %1363 = vmatmul.mubr.f32.gmra.mrb[22].mxu0 %v271_v51  ;;  %917 = vmatprep.mubr.f32.mxu1 %v276_v52  ;;  %v399_v51 = vld [vmem:[%s2120_s13 + $0x6f0] sm:$0xff]  ;;  %v404_v52 = vld [vmem:[%s2120_s13 + $0x718] sm:$0xff] }
  0xf5   : > { %1367 = vmatprep.mubr.f32.mxu0 %v280_v53  ;;  %v408_v53 = vld [vmem:[%s2120_s13 + $0x738] sm:$0xff] }
  0xf7   : > { %918 = vmatmul.mubr.f32.gmra.mrb[24].mxu1 %v275_v54  ;;  %v403_v54 = vld [vmem:[%s2120_s13 + $0x710] sm:$0xff] }
  0xf8   : > { %1368 = vmatmul.mubr.f32.gmra.mrb[24].mxu0 %v279_v55  ;;  %922 = vmatprep.mubr.f32.mxu1 %v284_v56  ;;  %v407_v55 = vld [vmem:[%s2120_s13 + $0x730] sm:$0xff]  ;;  %v412_v56 = vld [vmem:[%s2120_s13 + $0x758] sm:$0xff] }
  0xf9   : > { %1372 = vmatprep.mubr.f32.mxu0 %v288_v57  ;;  %v416_v57 = vld [vmem:[%s2120_s13 + $0x778] sm:$0xff] }
  0xfb   : > { %923 = vmatmul.mubr.f32.gmra.mrb[26].mxu1 %v283_v58  ;;  %v411_v58 = vld [vmem:[%s2120_s13 + $0x750] sm:$0xff] }
  0xfc   : > { %1373 = vmatmul.mubr.f32.gmra.mrb[26].mxu0 %v287_v59  ;;  %927 = vmatprep.mubr.f32.mxu1 %v292_v60  ;;  %v415_v59 = vld [vmem:[%s2120_s13 + $0x770] sm:$0xff]  ;;  %v420_v60 = vld [vmem:[%s2120_s13 + $0x798] sm:$0xff] }
  0xfd   : > { %1377 = vmatprep.mubr.f32.mxu0 %v296_v61  ;;  %v424_v61 = vld [vmem:[%s2120_s13 + $0x7b8] sm:$0xff] }
  0xff   : > { %928 = vmatmul.mubr.f32.gmra.mrb[28].mxu1 %v291_v62  ;;  %v419_v62 = vld [vmem:[%s2120_s13 + $0x790] sm:$0xff] }
 0x100   : > { %1378 = vmatmul.mubr.f32.gmra.mrb[28].mxu0 %v295_v63  ;;  %932 = vmatprep.mubr.f32.mxu1 %v300_v0  ;;  %v423_v63 = vld [vmem:[%s2120_s13 + $0x7b0] sm:$0xff]  ;;  %v428_v0 = vld [vmem:[%s2120_s13 + $0x7d8] sm:$0xff] }
 0x101   : > { %1382 = vmatprep.mubr.f32.mxu0 %v304_v1  ;;  %v432_v1 = vld [vmem:[%s2120_s13 + $0x7f8] sm:$0xff] }
 0x103   : > { %933 = vmatmul.mubr.f32.gmra.mrb[30].mxu1 %v299_v2  ;;  %v427_v2 = vld [vmem:[%s2120_s13 + $0x7d0] sm:$0xff] }
 0x104   : > { %1383 = vmatmul.mubr.f32.gmra.mrb[30].mxu0 %v303_v4  ;;  %937 = vmatprep.mubr.f32.mxu1 %v308_v5  ;;  %v431_v4 = vld [vmem:[%s2120_s13 + $0x7f0] sm:$0xff]  ;;  %v2747_v5 = vld [vmem:[%s2824_s2] ss:$0 sm:$0xff] }
 0x105   : > { %1387 = vmatprep.mubr.f32.mxu0 %v312_v6 }
 0x107   : > { %938 = vmatmul.mubr.f32.gmra.mrb[32].mxu1 %v307_v7 }
 0x108   : > { %1388 = vmatmul.mubr.f32.gmra.mrb[32].mxu0 %v311_v8  ;;  %942 = vmatprep.mubr.f32.mxu1 %v316_v9 }
 0x109   : > { %1392 = vmatprep.mubr.f32.mxu0 %v320_v10 }
 0x10b   : > { %943 = vmatmul.mubr.f32.gmra.mrb[34].mxu1 %v315_v11 }
 0x10c   : > { %1393 = vmatmul.mubr.f32.gmra.mrb[34].mxu0 %v319_v3  ;;  %947 = vmatprep.mubr.f32.mxu1 %v324_v12 }
 0x10d   : > { %1397 = vmatprep.mubr.f32.mxu0 %v328_v13 }
 0x10f   : > { %948 = vmatmul.mubr.f32.gmra.mrb[36].mxu1 %v323_v14 }
 0x110   : > { %1398 = vmatmul.mubr.f32.gmra.mrb[36].mxu0 %v327_v15  ;;  %952 = vmatprep.mubr.f32.mxu1 %v332_v16 }
 0x111   : > { %1402 = vmatprep.mubr.f32.mxu0 %v336_v17 }
 0x113   : > { %953 = vmatmul.mubr.f32.gmra.mrb[38].mxu1 %v331_v18 }
 0x114   : > { %1403 = vmatmul.mubr.f32.gmra.mrb[38].mxu0 %v335_v19  ;;  %957 = vmatprep.mubr.f32.mxu1 %v340_v20 }
 0x115   : > { %1407 = vmatprep.mubr.f32.mxu0 %v344_v21 }
 0x117   : > { %958 = vmatmul.mubr.f32.gmra.mrb[40].mxu1 %v339_v22 }
 0x118   : > { %1408 = vmatmul.mubr.f32.gmra.mrb[40].mxu0 %v343_v23  ;;  %962 = vmatprep.mubr.f32.mxu1 %v348_v24 }
 0x119   : > { %1412 = vmatprep.mubr.f32.mxu0 %v352_v25 }
 0x11b   : > { %963 = vmatmul.mubr.f32.gmra.mrb[42].mxu1 %v347_v26 }
 0x11c   : > { %1413 = vmatmul.mubr.f32.gmra.mrb[42].mxu0 %v351_v27  ;;  %967 = vmatprep.mubr.f32.mxu1 %v356_v28 }
 0x11d   : > { %1417 = vmatprep.mubr.f32.mxu0 %v360_v29 }
 0x11f   : > { %968 = vmatmul.mubr.f32.gmra.mrb[44].mxu1 %v355_v30 }
 0x120   : > { %1418 = vmatmul.mubr.f32.gmra.mrb[44].mxu0 %v359_v31  ;;  %972 = vmatprep.mubr.f32.mxu1 %v364_v32 }
 0x121   : > { %1422 = vmatprep.mubr.f32.mxu0 %v368_v33 }
 0x123   : > { %973 = vmatmul.mubr.f32.gmra.mrb[46].mxu1 %v363_v34 }
 0x124   : > { %1423 = vmatmul.mubr.f32.gmra.mrb[46].mxu0 %v367_v35  ;;  %977 = vmatprep.mubr.f32.mxu1 %v372_v36 }
 0x125   : > { %1427 = vmatprep.mubr.f32.mxu0 %v376_v37 }
 0x127   : > { %978 = vmatmul.mubr.f32.gmra.mrb[48].mxu1 %v371_v38 }
 0x128   : > { %1428 = vmatmul.mubr.f32.gmra.mrb[48].mxu0 %v375_v39  ;;  %982 = vmatprep.mubr.f32.mxu1 %v380_v40 }
 0x129   : > { %1432 = vmatprep.mubr.f32.mxu0 %v384_v41 }
 0x12b   : > { %983 = vmatmul.mubr.f32.gmra.mrb[50].mxu1 %v379_v42 }
 0x12c   : > { %1433 = vmatmul.mubr.f32.gmra.mrb[50].mxu0 %v383_v43  ;;  %987 = vmatprep.mubr.f32.mxu1 %v388_v44 }
 0x12d   : > { %1437 = vmatprep.mubr.f32.mxu0 %v392_v45 }
 0x12f   : > { %988 = vmatmul.mubr.f32.gmra.mrb[52].mxu1 %v387_v46 }
 0x130   : > { %1438 = vmatmul.mubr.f32.gmra.mrb[52].mxu0 %v391_v47  ;;  %992 = vmatprep.mubr.f32.mxu1 %v396_v48 }
 0x131   : > { %1442 = vmatprep.mubr.f32.mxu0 %v400_v49 }
 0x133   : > { %993 = vmatmul.mubr.f32.gmra.mrb[54].mxu1 %v395_v50 }
 0x134   : > { %1443 = vmatmul.mubr.f32.gmra.mrb[54].mxu0 %v399_v51  ;;  %997 = vmatprep.mubr.f32.mxu1 %v404_v52 }
 0x135   : > { %1447 = vmatprep.mubr.f32.mxu0 %v408_v53 }
 0x137   : > { %998 = vmatmul.mubr.f32.gmra.mrb[56].mxu1 %v403_v54 }
 0x138   : > { %1448 = vmatmul.mubr.f32.gmra.mrb[56].mxu0 %v407_v55  ;;  %1002 = vmatprep.mubr.f32.mxu1 %v412_v56 }
 0x139   : > { %1452 = vmatprep.mubr.f32.mxu0 %v416_v57 }
 0x13b   : > { %1003 = vmatmul.mubr.f32.gmra.mrb[58].mxu1 %v411_v58 }
 0x13c   : > { %1453 = vmatmul.mubr.f32.gmra.mrb[58].mxu0 %v415_v59  ;;  %1007 = vmatprep.mubr.f32.mxu1 %v420_v60 }
 0x13d   : > { %1457 = vmatprep.mubr.f32.mxu0 %v424_v61 }
 0x13f   : > { %1008 = vmatmul.mubr.f32.gmra.mrb[60].mxu1 %v419_v62 }
 0x140   : > { %1458 = vmatmul.mubr.f32.gmra.mrb[60].mxu0 %v423_v63  ;;  %1012 = vmatprep.mubr.f32.mxu1 %v428_v0 }
 0x141   : > { %1462 = vmatprep.mubr.f32.mxu0 %v432_v1 }
 0x143   : > { %1013 = vmatmul.mubr.f32.gmra.mrb[62].mxu1 %v427_v2 }
 0x144   : > { %1463 = vmatmul.mubr.f32.gmra.mrb[62].mxu0 %v431_v4 }
 0x19a   : > { %v859_v6 = vpop.f32.mrb[0].mxu1 }
 0x19b   : > { %v1794_v7 = vadd.f32 %v2747_v5, %v859_v6  ;;  %v1309_v8 = vpop.f32.mrb[0].mxu0  ;;  %v861_v9 = vpop.f32.mrb[1].mxu1 }
 0x19c   : > { %v1311_v10 = vpop.f32.mrb[1].mxu0 }
 0x19d   : > { %v1795_v11 = vadd.f32 %v1794_v7, %v1309_v8 }
 0x19e   : > { %v864_v3 = vpop.f32.mrb[2].mxu1 }
 0x19f   : > { %v1468_v12 = vmax.f32 %v1795_v11, 0.0  ;;  %v1796_v13 = vadd.f32 %v2747_v5, %v864_v3  ;;  %v1314_v14 = vpop.f32.mrb[2].mxu0  ;;  %v866_v15 = vpop.f32.mrb[3].mxu1 }
 0x1a0   : > { %v1316_v16 = vpop.f32.mrb[3].mxu0 }
 0x1a1   : > { %1500 = vst [vmem:[%s2754_s11] sm:$0xff] %v1468_v12  ;;  %v1797_v17 = vadd.f32 %v1796_v13, %v1314_v14 }
 0x1a2   : > { %v869_v18 = vpop.f32.mrb[4].mxu1 }
 0x1a3   : > { %v1469_v19 = vmax.f32 %v1797_v17, 0.0  ;;  %v1798_v20 = vadd.f32 %v2747_v5, %v869_v18  ;;  %v1319_v21 = vpop.f32.mrb[4].mxu0  ;;  %v871_v22 = vpop.f32.mrb[5].mxu1 }
 0x1a4   : > { %v1321_v23 = vpop.f32.mrb[5].mxu0 }
 0x1a5   : > { %1501 = vst [vmem:[%s2754_s11 + $0x8] sm:$0xff] %v1469_v19  ;;  %v1799_v24 = vadd.f32 %v1798_v20, %v1319_v21 }
 0x1a6   : > { %v874_v25 = vpop.f32.mrb[6].mxu1 }
 0x1a7   : > { %v1470_v26 = vmax.f32 %v1799_v24, 0.0  ;;  %v1800_v27 = vadd.f32 %v2747_v5, %v874_v25  ;;  %v1324_v28 = vpop.f32.mrb[6].mxu0  ;;  %v876_v29 = vpop.f32.mrb[7].mxu1 }
 0x1a8   : > { %v1326_v30 = vpop.f32.mrb[7].mxu0 }
 0x1a9   : > { %1502 = vst [vmem:[%s2754_s11 + $0x10] sm:$0xff] %v1470_v26  ;;  %v1801_v31 = vadd.f32 %v1800_v27, %v1324_v28 }
 0x1aa   : > { %v879_v32 = vpop.f32.mrb[8].mxu1 }
 0x1ab   : > { %v1471_v33 = vmax.f32 %v1801_v31, 0.0  ;;  %v1802_v34 = vadd.f32 %v2747_v5, %v879_v32  ;;  %v1329_v35 = vpop.f32.mrb[8].mxu0  ;;  %v881_v36 = vpop.f32.mrb[9].mxu1 }
 0x1ac   : > { %v1331_v37 = vpop.f32.mrb[9].mxu0 }
 0x1ad   : > { %1503 = vst [vmem:[%s2754_s11 + $0x18] sm:$0xff] %v1471_v33  ;;  %v1803_v38 = vadd.f32 %v1802_v34, %v1329_v35 }
 0x1ae   : > { %v884_v39 = vpop.f32.mrb[10].mxu1 }
 0x1af   : > { %v1472_v40 = vmax.f32 %v1803_v38, 0.0  ;;  %v1804_v41 = vadd.f32 %v2747_v5, %v884_v39  ;;  %v1334_v42 = vpop.f32.mrb[10].mxu0  ;;  %v886_v43 = vpop.f32.mrb[11].mxu1 }
 0x1b0   : > { %v1336_v44 = vpop.f32.mrb[11].mxu0 }
 0x1b1   : > { %1504 = vst [vmem:[%s2754_s11 + $0x20] sm:$0xff] %v1472_v40  ;;  %v1805_v45 = vadd.f32 %v1804_v41, %v1334_v42 }
 0x1b2   : > { %v889_v46 = vpop.f32.mrb[12].mxu1 }
 0x1b3   : > { %v1473_v47 = vmax.f32 %v1805_v45, 0.0  ;;  %v1806_v48 = vadd.f32 %v2747_v5, %v889_v46  ;;  %v1339_v49 = vpop.f32.mrb[12].mxu0  ;;  %v891_v50 = vpop.f32.mrb[13].mxu1 }
 0x1b4   : > { %v1341_v51 = vpop.f32.mrb[13].mxu0 }
 0x1b5   : > { %1505 = vst [vmem:[%s2754_s11 + $0x28] sm:$0xff] %v1473_v47  ;;  %v1807_v52 = vadd.f32 %v1806_v48, %v1339_v49 }
 0x1b6   : > { %v894_v53 = vpop.f32.mrb[14].mxu1 }
 0x1b7   : > { %v1474_v54 = vmax.f32 %v1807_v52, 0.0  ;;  %v1808_v55 = vadd.f32 %v2747_v5, %v894_v53  ;;  %v1344_v56 = vpop.f32.mrb[14].mxu0  ;;  %v896_v57 = vpop.f32.mrb[15].mxu1 }
 0x1b8   : > { %v1346_v58 = vpop.f32.mrb[15].mxu0 }
 0x1b9   : > { %1506 = vst [vmem:[%s2754_s11 + $0x30] sm:$0xff] %v1474_v54  ;;  %v1809_v59 = vadd.f32 %v1808_v55, %v1344_v56 }
 0x1ba   : > { %v899_v60 = vpop.f32.mrb[16].mxu1 }
 0x1bb   : > { %v1475_v61 = vmax.f32 %v1809_v59, 0.0  ;;  %v1810_v62 = vadd.f32 %v2747_v5, %v899_v60  ;;  %v1349_v63 = vpop.f32.mrb[16].mxu0  ;;  %v901_v0 = vpop.f32.mrb[17].mxu1 }
 0x1bc   : > { %v1351_v1 = vpop.f32.mrb[17].mxu0 }
 0x1bd   : > { %1507 = vst [vmem:[%s2754_s11 + $0x38] sm:$0xff] %v1475_v61  ;;  %v1811_v2 = vadd.f32 %v1810_v62, %v1349_v63 }
 0x1be   : > { %v904_v4 = vpop.f32.mrb[18].mxu1 }
 0x1bf   : > { %v1476_v6 = vmax.f32 %v1811_v2, 0.0  ;;  %v1812_v7 = vadd.f32 %v2747_v5, %v904_v4  ;;  %v1354_v8 = vpop.f32.mrb[18].mxu0  ;;  %v906_v9 = vpop.f32.mrb[19].mxu1 }
 0x1c0   : > { %v1356_v10 = vpop.f32.mrb[19].mxu0 }
 0x1c1   : > { %1508 = vst [vmem:[%s2754_s11 + $0x40] sm:$0xff] %v1476_v6  ;;  %v1813_v11 = vadd.f32 %v1812_v7, %v1354_v8 }
 0x1c2   : > { %v909_v3 = vpop.f32.mrb[20].mxu1 }
 0x1c3   : > { %v1477_v12 = vmax.f32 %v1813_v11, 0.0  ;;  %v1814_v13 = vadd.f32 %v2747_v5, %v909_v3  ;;  %v1359_v14 = vpop.f32.mrb[20].mxu0  ;;  %v911_v15 = vpop.f32.mrb[21].mxu1 }
 0x1c4   : > { %v1361_v16 = vpop.f32.mrb[21].mxu0 }
 0x1c5   : > { %1509 = vst [vmem:[%s2754_s11 + $0x48] sm:$0xff] %v1477_v12  ;;  %v1815_v17 = vadd.f32 %v1814_v13, %v1359_v14 }
 0x1c6   : > { %v914_v18 = vpop.f32.mrb[22].mxu1 }
 0x1c7   : > { %v1478_v19 = vmax.f32 %v1815_v17, 0.0  ;;  %v1816_v20 = vadd.f32 %v2747_v5, %v914_v18  ;;  %v1364_v21 = vpop.f32.mrb[22].mxu0  ;;  %v916_v22 = vpop.f32.mrb[23].mxu1 }
 0x1c8   : > { %v1366_v23 = vpop.f32.mrb[23].mxu0 }
 0x1c9   : > { %1510 = vst [vmem:[%s2754_s11 + $0x50] sm:$0xff] %v1478_v19  ;;  %v1817_v24 = vadd.f32 %v1816_v20, %v1364_v21 }
 0x1ca   : > { %v919_v25 = vpop.f32.mrb[24].mxu1 }
 0x1cb   : > { %v1479_v26 = vmax.f32 %v1817_v24, 0.0  ;;  %v1818_v27 = vadd.f32 %v2747_v5, %v919_v25  ;;  %v1369_v28 = vpop.f32.mrb[24].mxu0  ;;  %v921_v29 = vpop.f32.mrb[25].mxu1 }
 0x1cc   : > { %v1371_v30 = vpop.f32.mrb[25].mxu0 }
 0x1cd   : > { %1511 = vst [vmem:[%s2754_s11 + $0x58] sm:$0xff] %v1479_v26  ;;  %v1819_v31 = vadd.f32 %v1818_v27, %v1369_v28 }
 0x1ce   : > { %v924_v32 = vpop.f32.mrb[26].mxu1 }
 0x1cf   : > { %v1480_v33 = vmax.f32 %v1819_v31, 0.0  ;;  %v1820_v34 = vadd.f32 %v2747_v5, %v924_v32  ;;  %v1374_v35 = vpop.f32.mrb[26].mxu0  ;;  %v926_v36 = vpop.f32.mrb[27].mxu1 }
 0x1d0   : > { %v1376_v37 = vpop.f32.mrb[27].mxu0 }
 0x1d1   : > { %1512 = vst [vmem:[%s2754_s11 + $0x60] sm:$0xff] %v1480_v33  ;;  %v1821_v38 = vadd.f32 %v1820_v34, %v1374_v35 }
 0x1d2   : > { %v929_v39 = vpop.f32.mrb[28].mxu1 }
 0x1d3   : > { %v1481_v40 = vmax.f32 %v1821_v38, 0.0  ;;  %v1822_v41 = vadd.f32 %v2747_v5, %v929_v39  ;;  %v1379_v42 = vpop.f32.mrb[28].mxu0  ;;  %v931_v43 = vpop.f32.mrb[29].mxu1 }
 0x1d4   : > { %v1381_v44 = vpop.f32.mrb[29].mxu0 }
 0x1d5   : > { %1513 = vst [vmem:[%s2754_s11 + $0x68] sm:$0xff] %v1481_v40  ;;  %v1823_v45 = vadd.f32 %v1822_v41, %v1379_v42 }
 0x1d6   : > { %v934_v46 = vpop.f32.mrb[30].mxu1 }
 0x1d7   : > { %v1482_v47 = vmax.f32 %v1823_v45, 0.0  ;;  %v1824_v48 = vadd.f32 %v2747_v5, %v934_v46  ;;  %v1384_v49 = vpop.f32.mrb[30].mxu0  ;;  %v936_v50 = vpop.f32.mrb[31].mxu1 }
 0x1d8   : > { %v1386_v51 = vpop.f32.mrb[31].mxu0 }
 0x1d9   : > { %1514 = vst [vmem:[%s2754_s11 + $0x70] sm:$0xff] %v1482_v47  ;;  %v1825_v52 = vadd.f32 %v1824_v48, %v1384_v49 }
 0x1da   : > { %v939_v53 = vpop.f32.mrb[32].mxu1 }
 0x1db   : > { %v1483_v54 = vmax.f32 %v1825_v52, 0.0  ;;  %v1826_v55 = vadd.f32 %v2747_v5, %v939_v53  ;;  %v1389_v56 = vpop.f32.mrb[32].mxu0  ;;  %v941_v57 = vpop.f32.mrb[33].mxu1 }
 0x1dc   : > { %v1391_v58 = vpop.f32.mrb[33].mxu0 }
 0x1dd   : > { %1515 = vst [vmem:[%s2754_s11 + $0x78] sm:$0xff] %v1483_v54  ;;  %v1827_v59 = vadd.f32 %v1826_v55, %v1389_v56 }
 0x1de   : > { %v944_v60 = vpop.f32.mrb[34].mxu1 }
 0x1df   : > { %v1484_v61 = vmax.f32 %v1827_v59, 0.0  ;;  %v1828_v62 = vadd.f32 %v2747_v5, %v944_v60  ;;  %v1394_v63 = vpop.f32.mrb[34].mxu0  ;;  %v946_v0 = vpop.f32.mrb[35].mxu1 }
 0x1e0   : > { %v1396_v1 = vpop.f32.mrb[35].mxu0 }
 0x1e1   : > { %1516 = vst [vmem:[%s2754_s11 + $0x80] sm:$0xff] %v1484_v61  ;;  %v1829_v2 = vadd.f32 %v1828_v62, %v1394_v63 }
 0x1e2   : > { %v949_v4 = vpop.f32.mrb[36].mxu1 }
 0x1e3   : > { %v1485_v6 = vmax.f32 %v1829_v2, 0.0  ;;  %v1830_v7 = vadd.f32 %v2747_v5, %v949_v4  ;;  %v1399_v8 = vpop.f32.mrb[36].mxu0  ;;  %v951_v9 = vpop.f32.mrb[37].mxu1 }
 0x1e4   : > { %v1401_v10 = vpop.f32.mrb[37].mxu0 }
 0x1e5   : > { %1517 = vst [vmem:[%s2754_s11 + $0x88] sm:$0xff] %v1485_v6  ;;  %v1831_v11 = vadd.f32 %v1830_v7, %v1399_v8 }
 0x1e6   : > { %v954_v3 = vpop.f32.mrb[38].mxu1 }
 0x1e7   : > { %v1486_v12 = vmax.f32 %v1831_v11, 0.0  ;;  %v1832_v13 = vadd.f32 %v2747_v5, %v954_v3  ;;  %v1404_v14 = vpop.f32.mrb[38].mxu0  ;;  %v956_v15 = vpop.f32.mrb[39].mxu1 }
 0x1e8   : > { %v1406_v16 = vpop.f32.mrb[39].mxu0 }
 0x1e9   : > { %1518 = vst [vmem:[%s2754_s11 + $0x90] sm:$0xff] %v1486_v12  ;;  %v1833_v17 = vadd.f32 %v1832_v13, %v1404_v14 }
 0x1ea   : > { %v959_v18 = vpop.f32.mrb[40].mxu1 }
 0x1eb   : > { %v1487_v19 = vmax.f32 %v1833_v17, 0.0  ;;  %v1834_v20 = vadd.f32 %v2747_v5, %v959_v18  ;;  %v1409_v21 = vpop.f32.mrb[40].mxu0  ;;  %v961_v22 = vpop.f32.mrb[41].mxu1 }
 0x1ec   : > { %v1411_v23 = vpop.f32.mrb[41].mxu0 }
 0x1ed   : > { %1519 = vst [vmem:[%s2754_s11 + $0x98] sm:$0xff] %v1487_v19  ;;  %v1835_v24 = vadd.f32 %v1834_v20, %v1409_v21 }
 0x1ee   : > { %v964_v25 = vpop.f32.mrb[42].mxu1 }
 0x1ef   : > { %v1488_v26 = vmax.f32 %v1835_v24, 0.0  ;;  %v1836_v27 = vadd.f32 %v2747_v5, %v964_v25  ;;  %v1414_v28 = vpop.f32.mrb[42].mxu0  ;;  %v966_v29 = vpop.f32.mrb[43].mxu1 }
 0x1f0   : > { %v1416_v30 = vpop.f32.mrb[43].mxu0 }
 0x1f1   : > { %1520 = vst [vmem:[%s2754_s11 + $0xa0] sm:$0xff] %v1488_v26  ;;  %v1837_v31 = vadd.f32 %v1836_v27, %v1414_v28 }
 0x1f2   : > { %v969_v32 = vpop.f32.mrb[44].mxu1 }
 0x1f3   : > { %v1489_v33 = vmax.f32 %v1837_v31, 0.0  ;;  %v1838_v34 = vadd.f32 %v2747_v5, %v969_v32  ;;  %v1419_v35 = vpop.f32.mrb[44].mxu0  ;;  %v971_v36 = vpop.f32.mrb[45].mxu1 }
 0x1f4   : > { %v1421_v37 = vpop.f32.mrb[45].mxu0 }
 0x1f5   : > { %1521 = vst [vmem:[%s2754_s11 + $0xa8] sm:$0xff] %v1489_v33  ;;  %v1839_v38 = vadd.f32 %v1838_v34, %v1419_v35 }
 0x1f6   : > { %v974_v39 = vpop.f32.mrb[46].mxu1 }
 0x1f7   : > { %v1490_v40 = vmax.f32 %v1839_v38, 0.0  ;;  %v1840_v41 = vadd.f32 %v2747_v5, %v974_v39  ;;  %v1424_v42 = vpop.f32.mrb[46].mxu0  ;;  %v976_v43 = vpop.f32.mrb[47].mxu1 }
 0x1f8   : > { %v1426_v44 = vpop.f32.mrb[47].mxu0 }
 0x1f9   : > { %1522 = vst [vmem:[%s2754_s11 + $0xb0] sm:$0xff] %v1490_v40  ;;  %v1841_v45 = vadd.f32 %v1840_v41, %v1424_v42 }
 0x1fa   : > { %v979_v46 = vpop.f32.mrb[48].mxu1 }
 0x1fb   : > { %v1491_v47 = vmax.f32 %v1841_v45, 0.0  ;;  %v1842_v48 = vadd.f32 %v2747_v5, %v979_v46  ;;  %v1429_v49 = vpop.f32.mrb[48].mxu0  ;;  %v981_v50 = vpop.f32.mrb[49].mxu1 }
 0x1fc   : > { %v1431_v51 = vpop.f32.mrb[49].mxu0 }
 0x1fd   : > { %1523 = vst [vmem:[%s2754_s11 + $0xb8] sm:$0xff] %v1491_v47  ;;  %v1843_v52 = vadd.f32 %v1842_v48, %v1429_v49 }
 0x1fe   : > { %v984_v53 = vpop.f32.mrb[50].mxu1 }
 0x1ff   : > { %v1492_v54 = vmax.f32 %v1843_v52, 0.0  ;;  %v1844_v55 = vadd.f32 %v2747_v5, %v984_v53  ;;  %v1434_v56 = vpop.f32.mrb[50].mxu0  ;;  %v986_v57 = vpop.f32.mrb[51].mxu1 }
 0x200   : > { %v1436_v58 = vpop.f32.mrb[51].mxu0 }
 0x201   : > { %1524 = vst [vmem:[%s2754_s11 + $0xc0] sm:$0xff] %v1492_v54  ;;  %v1845_v59 = vadd.f32 %v1844_v55, %v1434_v56 }
 0x202   : > { %v989_v60 = vpop.f32.mrb[52].mxu1 }
 0x203   : > { %v1493_v61 = vmax.f32 %v1845_v59, 0.0  ;;  %v1846_v62 = vadd.f32 %v2747_v5, %v989_v60  ;;  %v1439_v63 = vpop.f32.mrb[52].mxu0  ;;  %v991_v0 = vpop.f32.mrb[53].mxu1 }
 0x204   : > { %v1441_v1 = vpop.f32.mrb[53].mxu0 }
 0x205   : > { %1525 = vst [vmem:[%s2754_s11 + $0xc8] sm:$0xff] %v1493_v61  ;;  %v1847_v2 = vadd.f32 %v1846_v62, %v1439_v63 }
 0x206   : > { %v994_v4 = vpop.f32.mrb[54].mxu1 }
 0x207   : > { %v1494_v6 = vmax.f32 %v1847_v2, 0.0  ;;  %v1848_v7 = vadd.f32 %v2747_v5, %v994_v4  ;;  %v1444_v8 = vpop.f32.mrb[54].mxu0  ;;  %v996_v9 = vpop.f32.mrb[55].mxu1 }
 0x208   : > { %v1446_v10 = vpop.f32.mrb[55].mxu0 }
 0x209   : > { %1526 = vst [vmem:[%s2754_s11 + $0xd0] sm:$0xff] %v1494_v6  ;;  %v1849_v11 = vadd.f32 %v1848_v7, %v1444_v8 }
 0x20a   : > { %v999_v3 = vpop.f32.mrb[56].mxu1 }
 0x20b   : > { %v1495_v12 = vmax.f32 %v1849_v11, 0.0  ;;  %v1850_v13 = vadd.f32 %v2747_v5, %v999_v3  ;;  %v1449_v14 = vpop.f32.mrb[56].mxu0  ;;  %v1001_v15 = vpop.f32.mrb[57].mxu1 }
 0x20c   : > { %v1451_v16 = vpop.f32.mrb[57].mxu0 }
 0x20d   : > { %1527 = vst [vmem:[%s2754_s11 + $0xd8] sm:$0xff] %v1495_v12  ;;  %v1851_v17 = vadd.f32 %v1850_v13, %v1449_v14 }
 0x20e   : > { %v1004_v18 = vpop.f32.mrb[58].mxu1 }
 0x20f   : > { %v1496_v19 = vmax.f32 %v1851_v17, 0.0  ;;  %v1852_v20 = vadd.f32 %v2747_v5, %v1004_v18  ;;  %v1454_v21 = vpop.f32.mrb[58].mxu0  ;;  %v1006_v22 = vpop.f32.mrb[59].mxu1 }
 0x210   : > { %v1456_v23 = vpop.f32.mrb[59].mxu0 }
 0x211   : > { %1528 = vst [vmem:[%s2754_s11 + $0xe0] sm:$0xff] %v1496_v19  ;;  %v1853_v24 = vadd.f32 %v1852_v20, %v1454_v21 }
 0x212   : > { %v1009_v25 = vpop.f32.mrb[60].mxu1 }
 0x213   : > { %v1497_v26 = vmax.f32 %v1853_v24, 0.0  ;;  %v1854_v27 = vadd.f32 %v2747_v5, %v1009_v25  ;;  %v1459_v28 = vpop.f32.mrb[60].mxu0  ;;  %v1011_v29 = vpop.f32.mrb[61].mxu1 }
 0x214   : > { %v1461_v30 = vpop.f32.mrb[61].mxu0 }
 0x215   : > { %1529 = vst [vmem:[%s2754_s11 + $0xe8] sm:$0xff] %v1497_v26  ;;  %v1855_v31 = vadd.f32 %v1854_v27, %v1459_v28 }
 0x216   : > { %v1014_v32 = vpop.f32.mrb[62].mxu1 }
 0x217   : > { %v1498_v33 = vmax.f32 %v1855_v31, 0.0  ;;  %v1856_v34 = vadd.f32 %v2747_v5, %v1014_v32  ;;  %v1464_v35 = vpop.f32.mrb[62].mxu0  ;;  %v1016_v36 = vpop.f32.mrb[63].mxu1 }
 0x218   : > { %v1466_v37 = vpop.f32.mrb[63].mxu0 }
 0x219   : > { %1530 = vst [vmem:[%s2754_s11 + $0xf0] sm:$0xff] %v1498_v33  ;;  %v1857_v38 = vadd.f32 %v1856_v34, %v1464_v35 }
 0x21b   : > { %v1499_v39 = vmax.f32 %v1857_v38, 0.0 }
 0x21d   : > { %1531 = vst [vmem:[%s2754_s11 + $0xf8] sm:$0xff] %v1499_v39 }
 0x21e PF: > { %s13_s12 = sadd.s32 1, %s2001_s12  }
 0x21f   : > { %p10_p4 = scmp.ge.s32.totalorder %s13_s12, 4  }
 0x221   :  { %12 = sbr.rel (!%p10_p4) target bundleno = 1 (0x1), region = 62 }

// kernel: actor_forward.13
= control target key start
LH: loop header
LB: loop body
LE: loop exit
PB: predicated region body
PF: predicated region fallthrough
CT: control target
= control target key end

     0   :  { %vm164_vm0 = vcmask 1046528   ;;  %vm381_vm1 = vcmask 1045504   ;;  %s1578_s0 = inlined_call_operand.vmem [shape: f32[2,14,18,128], index: 0, kind: input, shape index: {}]   ;;  %s1579_s1 = inlined_call_operand.vmem [shape: f32[2,12,16,128], index: 1, kind: output, shape index: {}]  }
   0x1   :  { %v8_v0 = vld [vmem:[%s1578_s0] sm:$0xff]  ;;  %v9_v1 = vld [vmem:[%s1578_s0 + $0x8] sm:$0xff]  ;;  %v11_v2 = vld [vmem:[%s1578_s0 + $0x18] sm:$0xff] }
   0x2   :  { %v1028_v3 = vld [vmem:[%s1578_s0 + $0x20] sm:$0xff]  ;;  %v14_v4 = vld [vmem:[%s1578_s0 + $0x30] sm:$0xff]  ;;  %v1036_v5 = vld [vmem:[%s1578_s0 + $0x38] sm:$0xff]  ;;  %v165_v6 = vrot.slane %v8_v0, 1  ;;  %v166_v7 = vrot.slane %v9_v1, 1  ;;  %v170_v8 = vrot.slane %v11_v2, 1 }
   0x3   :  { %v171_v9 = vrot.slane %v1028_v3, 1  ;;  %v175_v10 = vrot.slane %v14_v4, 1  ;;  %v176_v11 = vrot.slane %v1036_v5, 1  ;;  %v382_v12 = vrot.slane %v8_v0, 2  ;;  %v10_v17 = vld [vmem:[%s1578_s0 + $0x10] sm:$0x3] }
   0x4   :  { %v167_v13 = vsel %vm164_vm0, %v165_v6, %v166_v7  ;;  %v383_v14 = vrot.slane %v9_v1, 2  ;;  %v387_v15 = vrot.slane %v11_v2, 2  ;;  %v388_v16 = vrot.slane %v1028_v3, 2  ;;  %v13_v22 = vld [vmem:[%s1578_s0 + $0x28] sm:$0x3]  ;;  %v18_v46 = vld [vmem:[%s1578_s0 + $0x50] sm:$0xff] }
   0x5   :  { %v172_v18 = vsel %vm164_vm0, %v170_v8, %v171_v9  ;;  %v177_v19 = vsel %vm164_vm0, %v175_v10, %v176_v11  ;;  %v333_v20 = vmax.f32 %v8_v0, %v167_v13  ;;  %v392_v21 = vrot.slane %v14_v4, 2  ;;  %v16_v23 = vld [vmem:[%s1578_s0 + $0x40] sm:$0x3]  ;;  %v17_v40 = vld [vmem:[%s1578_s0 + $0x48] sm:$0xff]  ;;  %v19_v58 = vld [vmem:[%s1578_s0 + $0x58] sm:$0x3] }
   0x6   :  { %v335_v24 = vmax.f32 %v11_v2, %v172_v18  ;;  %v337_v25 = vmax.f32 %v14_v4, %v177_v19  ;;  %v384_v26 = vsel %vm381_vm1, %v382_v12, %v383_v14  ;;  %v389_v27 = vsel %vm381_vm1, %v387_v15, %v388_v16 }
   0x7   :  { %v393_v28 = vrot.slane %v1036_v5, 2  ;;  %v550_v29 = vmax.f32 %v333_v20, %v384_v26  ;;  %v168_v30 = vrot.slane %v10_v17, 1  ;;  %v173_v31 = vrot.slane %v13_v22, 1  ;;  %v20_v20 = vld [vmem:[%s1578_s0 + $0x60] sm:$0xff] }
   0x8   :  { %v552_v32 = vmax.f32 %v335_v24, %v389_v27  ;;  %v178_v33 = vrot.slane %v16_v23, 1  ;;  %v385_v34 = vrot.slane %v10_v17, 2  ;;  %v390_v35 = vrot.slane %v13_v22, 2 }
   0x9   :  { %v394_v36 = vsel %vm381_vm1, %v392_v21, %v393_v28  ;;  %v598_v37 = vmax.f32 %v550_v29, %v11_v2  ;;  %v169_v38 = vsel %vm164_vm0, %v166_v7, %v168_v30  ;;  %v174_v39 = vsel %vm164_vm0, %v171_v9, %v173_v31 }
   0xa   :  { %v554_v41 = vmax.f32 %v337_v25, %v394_v36  ;;  %v600_v42 = vmax.f32 %v552_v32, %v14_v4  ;;  %v1063_v43 = vsel %vm164_vm0, %v176_v11, %v178_v33  ;;  %v334_v44 = vmax.f32 %v9_v1, %v169_v38 }
   0xb   :  { %v666_v45 = vmax.f32 %v598_v37, %v172_v18  ;;  %v336_v47 = vmax.f32 %v1028_v3, %v174_v39  ;;  %v338_v48 = vmax.f32 %v1036_v5, %v1063_v43  ;;  %v386_v49 = vsel %vm381_vm1, %v383_v14, %v385_v34 }
   0xc   :  { %v602_v50 = vmax.f32 %v554_v41, %v17_v40  ;;  %v668_v51 = vmax.f32 %v600_v42, %v177_v19  ;;  %v391_v52 = vsel %vm381_vm1, %v388_v16, %v390_v35  ;;  %v395_v53 = vrot.slane %v16_v23, 2 }
   0xd   :  { %v728_v54 = vmax.f32 %v666_v45, %v389_v27  ;;  %v551_v55 = vmax.f32 %v334_v44, %v386_v49  ;;  %v553_v56 = vmax.f32 %v336_v47, %v391_v52  ;;  %v180_v57 = vrot.slane %v17_v40, 1  ;;  %v24_v47 = vld [vmem:[%s1578_s0 + $0x80] sm:$0xff] }
   0xe   :  { %v730_v59 = vmax.f32 %v668_v51, %v394_v36  ;;  %v396_v60 = vsel %vm381_vm1, %v393_v28, %v395_v53  ;;  %v181_v61 = vrot.slane %v18_v46, 1  ;;  %v397_v62 = vrot.slane %v17_v40, 2 }
   0xf   :  { %v776_v63 = vmax.f32 %v728_v54, %v14_v4  ;;  %v555_v0 = vmax.f32 %v338_v48, %v396_v60  ;;  %v599_v1 = vmax.f32 %v551_v55, %v1028_v3  ;;  %v601_v2 = vmax.f32 %v553_v56, %v1036_v5 }
  0x10   :  { %v182_v6 = vsel %vm164_vm0, %v180_v57, %v181_v61  ;;  %v398_v7 = vrot.slane %v18_v46, 2  ;;  %v778_v8 = vmax.f32 %v730_v59, %v17_v40  ;;  %v183_v9 = vrot.slane %v19_v58, 1 }
  0x11   :  { %v844_v10 = vmax.f32 %v776_v63, %v177_v19  ;;  %v603_v11 = vmax.f32 %v555_v0, %v18_v46  ;;  %v667_v12 = vmax.f32 %v599_v1, %v174_v39  ;;  %v669_v13 = vmax.f32 %v601_v2, %v1063_v43  ;;  %v21_v19 = vld [vmem:[%s1578_s0 + $0x68] sm:$0xff] }
  0x12   :  { %v339_v14 = vmax.f32 %v17_v40, %v182_v6  ;;  %v399_v15 = vsel %vm381_vm1, %v397_v62, %v398_v7  ;;  %v670_v16 = vmax.f32 %v602_v50, %v182_v6  ;;  %v846_v4 = vmax.f32 %v778_v8, %v182_v6  ;;  %v23_v40 = vld [vmem:[%s1578_s0 + $0x78] sm:$0xff]  ;;  %v25_v0 = vld [vmem:[%s1578_s0 + $0x88] sm:$0x3] }
  0x13   :  { %v906_v17 = vmax.f32 %v844_v10, %v394_v36  ;;  %v729_v18 = vmax.f32 %v667_v12, %v391_v52  ;;  %v731_v3 = vmax.f32 %v669_v13, %v396_v60  ;;  %v184_v21 = vsel %vm164_vm0, %v181_v61, %v183_v9  ;;  %v26_v10 = vld [vmem:[%s1578_s0 + $0x90] sm:$0xff] }
  0x14   :  { %v556_v22 = vmax.f32 %v339_v14, %v399_v15  ;;  %v732_v23 = vmax.f32 %v670_v16, %v399_v15  ;;  %v908_v24 = vmax.f32 %v846_v4, %v399_v15  ;;  %v340_v25 = vmax.f32 %v18_v46, %v184_v21 }
  0x15   :  { %954 = vst [vmem:[%s1579_s1] sm:$0xff] %v906_v17  ;;  %v777_v26 = vmax.f32 %v729_v18, %v1036_v5  ;;  %v400_v27 = vrot.slane %v19_v58, 2  ;;  %v671_v28 = vmax.f32 %v603_v11, %v184_v21  ;;  %v779_v29 = vmax.f32 %v731_v3, %v18_v46  ;;  %v22_v5 = vld [vmem:[%s1578_s0 + $0x70] sm:$0x3]  ;;  %v27_v3 = vld [vmem:[%s1578_s0 + $0x98] sm:$0xff] }
  0x16   :  { %v604_v30 = vmax.f32 %v556_v22, %v20_v20  ;;  %956 = vst [vmem:[%s1579_s1 + $0x10] sm:$0xff] %v908_v24  ;;  %v185_v31 = vrot.slane %v20_v20, 1  ;;  %v186_v32 = vrot.slane %v21_v19, 1  ;;  %v402_v33 = vrot.slane %v20_v20, 2 }
  0x17   :  { %v845_v34 = vmax.f32 %v777_v26, %v1063_v43  ;;  %v401_v35 = vsel %vm381_vm1, %v398_v7, %v400_v27  ;;  %v847_v36 = vmax.f32 %v779_v29, %v184_v21  ;;  %v403_v37 = vrot.slane %v21_v19, 2 }
  0x18   :  { %v557_v38 = vmax.f32 %v340_v25, %v401_v35  ;;  %v733_v39 = vmax.f32 %v671_v28, %v401_v35  ;;  %v187_v41 = vsel %vm164_vm0, %v185_v31, %v186_v32  ;;  %v780_v42 = vmax.f32 %v732_v23, %v20_v20  ;;  %v28_v28 = vld [vmem:[%s1578_s0 + $0xa0] sm:$0x3] }
  0x19   :  { %v907_v44 = vmax.f32 %v845_v34, %v396_v60  ;;  %v909_v45 = vmax.f32 %v847_v36, %v401_v35  ;;  %v341_v43 = vmax.f32 %v20_v20, %v187_v41  ;;  %v404_v46 = vsel %vm381_vm1, %v402_v33, %v403_v37 }
  0x1a   :  { %v605_v48 = vmax.f32 %v557_v38, %v21_v19  ;;  %v672_v49 = vmax.f32 %v604_v30, %v187_v41  ;;  %v848_v50 = vmax.f32 %v780_v42, %v187_v41  ;;  %v188_v51 = vrot.slane %v22_v5, 1  ;;  %v29_v41 = vld [vmem:[%s1578_s0 + $0xa8] sm:$0xff] }
  0x1b   :  { %955 = vst [vmem:[%s1579_s1 + $0x8] sm:$0xff] %v907_v44  ;;  %957 = vst [vmem:[%s1579_s1 + $0x18] sm:$0xff] %v909_v45  ;;  %v558_v52 = vmax.f32 %v341_v43, %v404_v46  ;;  %v405_v53 = vrot.slane %v22_v5, 2  ;;  %v781_v54 = vmax.f32 %v733_v39, %v21_v19  ;;  %v190_v55 = vrot.slane %v23_v40, 1  ;;  %v30_v43 = vld [vmem:[%s1578_s0 + $0xb0] sm:$0xff] }
  0x1c   :  { %v734_v56 = vmax.f32 %v672_v49, %v404_v46  ;;  %v910_v57 = vmax.f32 %v848_v50, %v404_v46  ;;  %v189_v58 = vsel %vm164_vm0, %v186_v32, %v188_v51  ;;  %v191_v59 = vrot.slane %v24_v47, 1 }
  0x1d   :  { %v606_v60 = vmax.f32 %v558_v52, %v23_v40  ;;  %v342_v61 = vmax.f32 %v21_v19, %v189_v58  ;;  %v406_v62 = vsel %vm381_vm1, %v403_v37, %v405_v53  ;;  %v673_v63 = vmax.f32 %v605_v48, %v189_v58 }
  0x1e   :  { %958 = vst [vmem:[%s1579_s1 + $0x20] sm:$0xff] %v910_v57  ;;  %v849_v1 = vmax.f32 %v781_v54, %v189_v58  ;;  %v192_v2 = vsel %vm164_vm0, %v190_v55, %v191_v59  ;;  %v407_v6 = vrot.slane %v23_v40, 2  ;;  %v408_v7 = vrot.slane %v24_v47, 2  ;;  %v31_v58 = vld [vmem:[%s1578_s0 + $0xb8] sm:$0x3] }
  0x1f   :  { %v559_v8 = vmax.f32 %v342_v61, %v406_v62  ;;  %v735_v9 = vmax.f32 %v673_v63, %v406_v62  ;;  %v343_v11 = vmax.f32 %v23_v40, %v192_v2  ;;  %v674_v12 = vmax.f32 %v606_v60, %v192_v2 }
  0x20   :  { %v911_v13 = vmax.f32 %v849_v1, %v406_v62  ;;  %v409_v14 = vsel %vm381_vm1, %v407_v6, %v408_v7  ;;  %v782_v15 = vmax.f32 %v734_v56, %v23_v40  ;;  %v193_v16 = vrot.slane %v25_v0, 1 }
  0x21   :  { %v607_v4 = vmax.f32 %v559_v8, %v24_v47  ;;  %v560_v17 = vmax.f32 %v343_v11, %v409_v14  ;;  %v736_v18 = vmax.f32 %v674_v12, %v409_v14  ;;  %v410_v20 = vrot.slane %v25_v0, 2  ;;  %v32_v0 = vld [vmem:[%s1578_s0 + $0xc0] sm:$0xff] }
  0x22   :  { %959 = vst [vmem:[%s1579_s1 + $0x28] sm:$0xff] %v911_v13  ;;  %v850_v19 = vmax.f32 %v782_v15, %v192_v2  ;;  %v194_v21 = vsel %vm164_vm0, %v191_v59, %v193_v16  ;;  %v783_v22 = vmax.f32 %v735_v9, %v24_v47  ;;  %v195_v23 = vrot.slane %v26_v10, 1  ;;  %v33_v13 = vld [vmem:[%s1578_s0 + $0xc8] sm:$0xff] }
  0x23   :  { %v608_v24 = vmax.f32 %v560_v17, %v26_v10  ;;  %v344_v25 = vmax.f32 %v24_v47, %v194_v21  ;;  %v411_v26 = vsel %vm381_vm1, %v408_v7, %v410_v20  ;;  %v675_v27 = vmax.f32 %v607_v4, %v194_v21 }
  0x24   :  { %v912_v29 = vmax.f32 %v850_v19, %v409_v14  ;;  %v851_v30 = vmax.f32 %v783_v22, %v194_v21  ;;  %v196_v31 = vrot.slane %v27_v3, 1  ;;  %v412_v32 = vrot.slane %v26_v10, 2  ;;  %v34_v22 = vld [vmem:[%s1578_s0 + $0xd0] sm:$0x3] }
  0x25   :  { %v561_v33 = vmax.f32 %v344_v25, %v411_v26  ;;  %v737_v34 = vmax.f32 %v675_v27, %v411_v26  ;;  %v413_v35 = vrot.slane %v27_v3, 2  ;;  %v784_v36 = vmax.f32 %v736_v18, %v26_v10 }
  0x26   :  { %960 = vst [vmem:[%s1579_s1 + $0x30] sm:$0xff] %v912_v29  ;;  %v913_v37 = vmax.f32 %v851_v30, %v411_v26  ;;  %v197_v5 = vsel %vm164_vm0, %v195_v23, %v196_v31  ;;  %v198_v38 = vrot.slane %v28_v28, 1  ;;  %v415_v39 = vrot.slane %v28_v28, 2 }
  0x27   :  { %v609_v40 = vmax.f32 %v561_v33, %v27_v3  ;;  %v345_v42 = vmax.f32 %v26_v10, %v197_v5  ;;  %v414_v44 = vsel %vm381_vm1, %v412_v32, %v413_v35  ;;  %v676_v45 = vmax.f32 %v608_v24, %v197_v5 }
  0x28   :  { %961 = vst [vmem:[%s1579_s1 + $0x38] sm:$0xff] %v913_v37  ;;  %v852_v46 = vmax.f32 %v784_v36, %v197_v5  ;;  %v199_v47 = vsel %vm164_vm0, %v196_v31, %v198_v38  ;;  %v416_v48 = vsel %vm381_vm1, %v413_v35, %v415_v39  ;;  %v785_v49 = vmax.f32 %v737_v34, %v27_v3  ;;  %v35_v36 = vld [vmem:[%s1578_s0 + $0xd8] sm:$0xff]  ;;  %v36_v39 = vld [vmem:[%s1578_s0 + $0xe0] sm:$0xff] }
  0x29   :  { %v562_v50 = vmax.f32 %v345_v42, %v414_v44  ;;  %v738_v51 = vmax.f32 %v676_v45, %v414_v44  ;;  %v346_v52 = vmax.f32 %v27_v3, %v199_v47  ;;  %v677_v53 = vmax.f32 %v609_v40, %v199_v47 }
  0x2a   :  { %v914_v54 = vmax.f32 %v852_v46, %v414_v44  ;;  %v853_v55 = vmax.f32 %v785_v49, %v199_v47  ;;  %v200_v56 = vrot.slane %v29_v41, 1  ;;  %v201_v57 = vrot.slane %v30_v43, 1 }
  0x2b   :  { %v610_v59 = vmax.f32 %v562_v50, %v29_v41  ;;  %v563_v60 = vmax.f32 %v346_v52, %v416_v48  ;;  %v739_v61 = vmax.f32 %v677_v53, %v416_v48  ;;  %v417_v62 = vrot.slane %v29_v41, 2  ;;  %v37_v52 = vld [vmem:[%s1578_s0 + $0xe8] sm:$0x3] }
  0x2c   :  { %962 = vst [vmem:[%s1579_s1 + $0x40] sm:$0xff] %v914_v54  ;;  %v915_v63 = vmax.f32 %v853_v55, %v416_v48  ;;  %v202_v1 = vsel %vm164_vm0, %v200_v56, %v201_v57  ;;  %v418_v2 = vrot.slane %v30_v43, 2  ;;  %v786_v6 = vmax.f32 %v738_v51, %v29_v41 }
  0x2d   :  { %v611_v7 = vmax.f32 %v563_v60, %v30_v43  ;;  %v347_v8 = vmax.f32 %v29_v41, %v202_v1  ;;  %v678_v9 = vmax.f32 %v610_v59, %v202_v1  ;;  %v203_v10 = vrot.slane %v31_v58, 1 }
  0x2e   :  { %963 = vst [vmem:[%s1579_s1 + $0x48] sm:$0xff] %v915_v63  ;;  %v419_v11 = vsel %vm381_vm1, %v417_v62, %v418_v2  ;;  %v854_v12 = vmax.f32 %v786_v6, %v202_v1  ;;  %v420_v14 = vrot.slane %v31_v58, 2  ;;  %v787_v15 = vmax.f32 %v739_v61, %v30_v43  ;;  %v38_v58 = vld [vmem:[%s1578_s0 + $0xf0] sm:$0xff] }
  0x2f   :  { %v564_v16 = vmax.f32 %v347_v8, %v419_v11  ;;  %v740_v4 = vmax.f32 %v678_v9, %v419_v11  ;;  %v204_v17 = vsel %vm164_vm0, %v201_v57, %v203_v10  ;;  %v205_v18 = vrot.slane %v32_v0, 1 }
  0x30   :  { %v916_v3 = vmax.f32 %v854_v12, %v419_v11  ;;  %v348_v20 = vmax.f32 %v30_v43, %v204_v17  ;;  %v421_v19 = vsel %vm381_vm1, %v418_v2, %v420_v14  ;;  %v679_v21 = vmax.f32 %v611_v7, %v204_v17  ;;  %v39_v7 = vld [vmem:[%s1578_s0 + $0xf8] sm:$0xff] }
  0x31   :  { %v612_v23 = vmax.f32 %v564_v16, %v32_v0  ;;  %v855_v24 = vmax.f32 %v787_v15, %v204_v17  ;;  %v206_v25 = vrot.slane %v33_v13, 1  ;;  %v422_v26 = vrot.slane %v32_v0, 2  ;;  %v40_v17 = vld [vmem:[%s1578_s0 + $0x100] sm:$0x3] }
  0x32   :  { %964 = vst [vmem:[%s1579_s1 + $0x50] sm:$0xff] %v916_v3  ;;  %v565_v27 = vmax.f32 %v348_v20, %v421_v19  ;;  %v741_v28 = vmax.f32 %v679_v21, %v421_v19  ;;  %v423_v29 = vrot.slane %v33_v13, 2  ;;  %v788_v30 = vmax.f32 %v740_v4, %v32_v0 }
  0x33   :  { %v917_v31 = vmax.f32 %v855_v24, %v421_v19  ;;  %v207_v32 = vsel %vm164_vm0, %v205_v18, %v206_v25  ;;  %v208_v33 = vrot.slane %v34_v22, 1  ;;  %v425_v34 = vrot.slane %v34_v22, 2 }
  0x34   :  { %v613_v35 = vmax.f32 %v565_v27, %v33_v13  ;;  %v349_v37 = vmax.f32 %v32_v0, %v207_v32  ;;  %v424_v5 = vsel %vm381_vm1, %v422_v26, %v423_v29  ;;  %v680_v38 = vmax.f32 %v612_v23, %v207_v32 }
  0x35   :  { %965 = vst [vmem:[%s1579_s1 + $0x58] sm:$0xff] %v917_v31  ;;  %v856_v40 = vmax.f32 %v788_v30, %v207_v32  ;;  %v209_v41 = vsel %vm164_vm0, %v206_v25, %v208_v33  ;;  %v426_v42 = vsel %vm381_vm1, %v423_v29, %v425_v34  ;;  %v789_v44 = vmax.f32 %v741_v28, %v33_v13  ;;  %v41_v30 = vld [vmem:[%s1578_s0 + $0x108] sm:$0xff]  ;;  %v42_v34 = vld [vmem:[%s1578_s0 + $0x110] sm:$0xff] }
  0x36   :  { %v566_v45 = vmax.f32 %v349_v37, %v424_v5  ;;  %v742_v43 = vmax.f32 %v680_v38, %v424_v5  ;;  %v350_v46 = vmax.f32 %v33_v13, %v209_v41  ;;  %v681_v47 = vmax.f32 %v613_v35, %v209_v41 }
  0x37   :  { %v918_v48 = vmax.f32 %v856_v40, %v424_v5  ;;  %v857_v49 = vmax.f32 %v789_v44, %v209_v41  ;;  %v210_v50 = vrot.slane %v35_v36, 1  ;;  %v211_v51 = vrot.slane %v36_v39, 1 }
  0x38   :  { %v614_v53 = vmax.f32 %v566_v45, %v35_v36  ;;  %v567_v54 = vmax.f32 %v350_v46, %v426_v42  ;;  %v743_v55 = vmax.f32 %v681_v47, %v426_v42  ;;  %v427_v56 = vrot.slane %v35_v36, 2  ;;  %v43_v46 = vld [vmem:[%s1578_s0 + $0x118] sm:$0x3] }
  0x39   :  { %966 = vst [vmem:[%s1579_s1 + $0x60] sm:$0xff] %v918_v48  ;;  %v919_v57 = vmax.f32 %v857_v49, %v426_v42  ;;  %v212_v59 = vsel %vm164_vm0, %v210_v50, %v211_v51  ;;  %v428_v60 = vrot.slane %v36_v39, 2  ;;  %v790_v61 = vmax.f32 %v742_v43, %v35_v36 }
  0x3a   :  { %v615_v62 = vmax.f32 %v567_v54, %v36_v39  ;;  %v351_v63 = vmax.f32 %v35_v36, %v212_v59  ;;  %v682_v0 = vmax.f32 %v614_v53, %v212_v59  ;;  %v213_v1 = vrot.slane %v37_v52, 1 }
  0x3b   :  { %967 = vst [vmem:[%s1579_s1 + $0x68] sm:$0xff] %v919_v57  ;;  %v429_v2 = vsel %vm381_vm1, %v427_v56, %v428_v60  ;;  %v858_v6 = vmax.f32 %v790_v61, %v212_v59  ;;  %v430_v8 = vrot.slane %v37_v52, 2  ;;  %v791_v9 = vmax.f32 %v743_v55, %v36_v39  ;;  %v44_v55 = vld [vmem:[%s1578_s0 + $0x120] sm:$0xff] }
  0x3c   :  { %v568_v10 = vmax.f32 %v351_v63, %v429_v2  ;;  %v744_v11 = vmax.f32 %v682_v0, %v429_v2  ;;  %v214_v12 = vsel %vm164_vm0, %v211_v51, %v213_v1  ;;  %v215_v13 = vrot.slane %v38_v58, 1  ;;  %v45_v0 = vld [vmem:[%s1578_s0 + $0x128] sm:$0xff] }
  0x3d   :  { %v920_v14 = vmax.f32 %v858_v6, %v429_v2  ;;  %v352_v15 = vmax.f32 %v36_v39, %v214_v12  ;;  %v431_v16 = vsel %vm381_vm1, %v428_v60, %v430_v8  ;;  %v683_v4 = vmax.f32 %v615_v62, %v214_v12 }
  0x3e   :  { %v616_v18 = vmax.f32 %v568_v10, %v38_v58  ;;  %v859_v3 = vmax.f32 %v791_v9, %v214_v12  ;;  %v216_v20 = vrot.slane %v39_v7, 1  ;;  %v432_v19 = vrot.slane %v38_v58, 2  ;;  %v46_v12 = vld [vmem:[%s1578_s0 + $0x130] sm:$0x3] }
  0x3f   :  { %968 = vst [vmem:[%s1579_s1 + $0x70] sm:$0xff] %v920_v14  ;;  %v569_v21 = vmax.f32 %v352_v15, %v431_v16  ;;  %v745_v22 = vmax.f32 %v683_v4, %v431_v16  ;;  %v433_v23 = vrot.slane %v39_v7, 2  ;;  %v792_v24 = vmax.f32 %v744_v11, %v38_v58 }
  0x40   :  { %v921_v25 = vmax.f32 %v859_v3, %v431_v16  ;;  %v217_v26 = vsel %vm164_vm0, %v215_v13, %v216_v20  ;;  %v218_v27 = vrot.slane %v40_v17, 1  ;;  %v435_v28 = vrot.slane %v40_v17, 2 }
  0x41   :  { %v617_v29 = vmax.f32 %v569_v21, %v39_v7  ;;  %v353_v31 = vmax.f32 %v38_v58, %v217_v26  ;;  %v434_v32 = vsel %vm381_vm1, %v432_v19, %v433_v23  ;;  %v684_v33 = vmax.f32 %v616_v18, %v217_v26 }
  0x42   :  { %969 = vst [vmem:[%s1579_s1 + $0x78] sm:$0xff] %v921_v25  ;;  %v860_v35 = vmax.f32 %v792_v24, %v217_v26  ;;  %v219_v36 = vsel %vm164_vm0, %v216_v20, %v218_v27  ;;  %v436_v37 = vsel %vm381_vm1, %v433_v23, %v435_v28  ;;  %v793_v5 = vmax.f32 %v745_v22, %v39_v7  ;;  %v47_v20 = vld [vmem:[%s1578_s0 + $0x138] sm:$0xff]  ;;  %v48_v24 = vld [vmem:[%s1578_s0 + $0x140] sm:$0xff] }
  0x43   :  { %v570_v38 = vmax.f32 %v353_v31, %v434_v32  ;;  %v746_v39 = vmax.f32 %v684_v33, %v434_v32  ;;  %v354_v40 = vmax.f32 %v39_v7, %v219_v36  ;;  %v685_v41 = vmax.f32 %v617_v29, %v219_v36  ;;  %v49_v29 = vld [vmem:[%s1578_s0 + $0x148] sm:$0x3] }
  0x44   :  { %v922_v42 = vmax.f32 %v860_v35, %v434_v32  ;;  %v861_v44 = vmax.f32 %v793_v5, %v219_v36  ;;  %v220_v45 = vrot.slane %v41_v30, 1  ;;  %v221_v43 = vrot.slane %v42_v34, 1  ;;  %v50_v5 = vld [vmem:[%s1578_s0 + $0x150] sm:$0xff] }
  0x45   :  { %v618_v47 = vmax.f32 %v570_v38, %v41_v30  ;;  %v571_v48 = vmax.f32 %v354_v40, %v436_v37  ;;  %v747_v49 = vmax.f32 %v685_v41, %v436_v37  ;;  %v437_v50 = vrot.slane %v41_v30, 2 }
  0x46   :  { %970 = vst [vmem:[%s1579_s1 + $0x80] sm:$0xff] %v922_v42  ;;  %v923_v51 = vmax.f32 %v861_v44, %v436_v37  ;;  %v222_v52 = vsel %vm164_vm0, %v220_v45, %v221_v43  ;;  %v438_v53 = vrot.slane %v42_v34, 2  ;;  %v794_v54 = vmax.f32 %v746_v39, %v41_v30  ;;  %v1278_v42 = vld [vmem:[%s1578_s0 + $0x158] sm:$0xff]  ;;  %v1283_v44 = vld [vmem:[%s1578_s0 + $0x168] sm:$0xff] }
  0x47   :  { %v619_v56 = vmax.f32 %v571_v48, %v42_v34  ;;  %v355_v57 = vmax.f32 %v41_v30, %v222_v52  ;;  %v686_v58 = vmax.f32 %v618_v47, %v222_v52  ;;  %v223_v59 = vrot.slane %v43_v46, 1  ;;  %v1292_v48 = vld [vmem:[%s1578_s0 + $0x170] sm:$0xff] }
  0x48   :  { %971 = vst [vmem:[%s1579_s1 + $0x88] sm:$0xff] %v923_v51  ;;  %v439_v60 = vsel %vm381_vm1, %v437_v50, %v438_v53  ;;  %v862_v61 = vmax.f32 %v794_v54, %v222_v52  ;;  %v440_v62 = vrot.slane %v43_v46, 2  ;;  %v795_v63 = vmax.f32 %v747_v49, %v42_v34  ;;  %v1297_v49 = vld [vmem:[%s1578_s0 + $0x180] sm:$0xff]  ;;  %v1302_v50 = vld [vmem:[%s1578_s0 + $0x188] sm:$0xff] }
  0x49   :  { %v572_v1 = vmax.f32 %v355_v57, %v439_v60  ;;  %v748_v2 = vmax.f32 %v686_v58, %v439_v60  ;;  %v224_v6 = vsel %vm164_vm0, %v221_v43, %v223_v59  ;;  %v652_v7 = vrot.slane %v44_v55, 1 }
  0x4a   :  { %v924_v8 = vmax.f32 %v862_v61, %v439_v60  ;;  %v356_v9 = vmax.f32 %v42_v34, %v224_v6  ;;  %v441_v10 = vsel %vm381_vm1, %v438_v53, %v440_v62  ;;  %v687_v11 = vmax.f32 %v619_v56, %v224_v6 }
  0x4b   :  { %v863_v13 = vmax.f32 %v795_v63, %v224_v6  ;;  %v620_v14 = vmax.f32 %v572_v1, %v44_v55  ;;  %v653_v15 = vrot.slane %v45_v0, 1  ;;  %v714_v16 = vrot.slane %v44_v55, 2  ;;  %v52_v6 = vld [vmem:[%s1578_s0 + $0x160] sm:$0x3] }
  0x4c   :  { %972 = vst [vmem:[%s1579_s1 + $0x90] sm:$0xff] %v924_v8  ;;  %v573_v4 = vmax.f32 %v356_v9, %v441_v10  ;;  %v749_v17 = vmax.f32 %v687_v11, %v441_v10  ;;  %v715_v18 = vrot.slane %v45_v0, 2  ;;  %v796_v3 = vmax.f32 %v748_v2, %v44_v55  ;;  %v55_v11 = vld [vmem:[%s1578_s0 + $0x178] sm:$0x3] }
  0x4d   :  { %v925_v19 = vmax.f32 %v863_v13, %v441_v10  ;;  %v654_v21 = vsel %vm164_vm0, %v652_v7, %v653_v15  ;;  %v655_v22 = vrot.slane %v46_v12, 1  ;;  %v717_v23 = vrot.slane %v46_v12, 2  ;;  %v58_v12 = vld [vmem:[%s1578_s0 + $0x190] sm:$0x3] }
  0x4e   :  { %v688_v25 = vmax.f32 %v620_v14, %v654_v21  ;;  %v716_v26 = vsel %vm381_vm1, %v714_v16, %v715_v18  ;;  %v864_v27 = vmax.f32 %v796_v3, %v654_v21  ;;  %v621_v28 = vmax.f32 %v573_v4, %v45_v0 }
  0x4f   :  { %973 = vst [vmem:[%s1579_s1 + $0x98] sm:$0xff] %v925_v19  ;;  %v656_v30 = vsel %vm164_vm0, %v653_v15, %v655_v22  ;;  %v718_v31 = vsel %vm381_vm1, %v715_v18, %v717_v23  ;;  %v797_v32 = vmax.f32 %v749_v17, %v45_v0  ;;  %v830_v33 = vrot.slane %v47_v20, 1 }
  0x50   :  { %v750_v34 = vmax.f32 %v688_v25, %v716_v26  ;;  %v926_v35 = vmax.f32 %v864_v27, %v716_v26  ;;  %v689_v36 = vmax.f32 %v621_v28, %v656_v30  ;;  %v831_v37 = vrot.slane %v48_v24, 1 }
  0x51   :  { %v865_v38 = vmax.f32 %v797_v32, %v656_v30  ;;  %v892_v39 = vrot.slane %v47_v20, 2  ;;  %v893_v40 = vrot.slane %v48_v24, 2  ;;  %v833_v41 = vrot.slane %v49_v29, 1 }
  0x52   :  { %974 = vst [vmem:[%s1579_s1 + $0xa0] sm:$0xff] %v926_v35  ;;  %v751_v45 = vmax.f32 %v689_v36, %v718_v31  ;;  %v798_v43 = vmax.f32 %v750_v34, %v47_v20  ;;  %v832_v46 = vsel %vm164_vm0, %v830_v33, %v831_v37  ;;  %v895_v47 = vrot.slane %v49_v29, 2 }
  0x53   :  { %v927_v51 = vmax.f32 %v865_v38, %v718_v31  ;;  %v894_v52 = vsel %vm381_vm1, %v892_v39, %v893_v40  ;;  %v834_v53 = vsel %vm164_vm0, %v831_v37, %v833_v41  ;;  %v225_v54 = vrot.slane %v50_v5, 1  ;;  %v59_v31 = vld [vmem:[%s1578_s0 + $0x198] sm:$0xff]  ;;  %v60_v38 = vld [vmem:[%s1578_s0 + $0x1a0] sm:$0xff] }
  0x54   :  { %v866_v55 = vmax.f32 %v798_v43, %v832_v46  ;;  %v799_v56 = vmax.f32 %v751_v45, %v48_v24  ;;  %v896_v57 = vsel %vm381_vm1, %v893_v40, %v895_v47  ;;  %v226_v58 = vrot.slane %v1278_v42, 1 }
  0x55   :  { %975 = vst [vmem:[%s1579_s1 + $0xa8] sm:$0xff] %v927_v51  ;;  %v230_v59 = vrot.slane %v1283_v44, 1  ;;  %v231_v60 = vrot.slane %v1292_v48, 1  ;;  %v235_v61 = vrot.slane %v1297_v49, 1  ;;  %v236_v62 = vrot.slane %v1302_v50, 1 }
  0x56   :  { %v928_v63 = vmax.f32 %v866_v55, %v894_v52  ;;  %v867_v0 = vmax.f32 %v799_v56, %v834_v53  ;;  %v227_v1 = vsel %vm164_vm0, %v225_v54, %v226_v58  ;;  %v442_v2 = vrot.slane %v50_v5, 2  ;;  %v61_v51 = vld [vmem:[%s1578_s0 + $0x1a8] sm:$0x3] }
  0x57   :  { %v232_v7 = vsel %vm164_vm0, %v230_v59, %v231_v60  ;;  %v1321_v8 = vsel %vm164_vm0, %v235_v61, %v236_v62  ;;  %v357_v9 = vmax.f32 %v50_v5, %v227_v1  ;;  %v443_v10 = vrot.slane %v1278_v42, 2 }
  0x58   :  { %976 = vst [vmem:[%s1579_s1 + $0xb0] sm:$0xff] %v928_v63  ;;  %v929_v13 = vmax.f32 %v867_v0, %v896_v57  ;;  %v359_v14 = vmax.f32 %v1283_v44, %v232_v7  ;;  %v361_v15 = vmax.f32 %v1297_v49, %v1321_v8  ;;  %v447_v16 = vrot.slane %v1283_v44, 2 }
  0x59   :  { %v444_v4 = vsel %vm381_vm1, %v442_v2, %v443_v10  ;;  %v448_v17 = vrot.slane %v1292_v48, 2  ;;  %v452_v18 = vrot.slane %v1297_v49, 2  ;;  %v453_v3 = vrot.slane %v1302_v50, 2 }
  0x5a   :  { %977 = vst [vmem:[%s1579_s1 + $0xb8] sm:$0xff] %v929_v13  ;;  %v574_v20 = vmax.f32 %v357_v9, %v444_v4  ;;  %v228_v19 = vrot.slane %v52_v6, 1  ;;  %v233_v21 = vrot.slane %v55_v11, 1  ;;  %v238_v22 = vrot.slane %v58_v12, 1 }
  0x5b   :  { %v449_v23 = vsel %vm381_vm1, %v447_v16, %v448_v17  ;;  %v454_v24 = vsel %vm381_vm1, %v452_v18, %v453_v3  ;;  %v445_v25 = vrot.slane %v52_v6, 2  ;;  %v450_v26 = vrot.slane %v55_v11, 2 }
  0x5c   :  { %v576_v27 = vmax.f32 %v359_v14, %v449_v23  ;;  %v578_v28 = vmax.f32 %v361_v15, %v454_v24  ;;  %v622_v29 = vmax.f32 %v574_v20, %v1283_v44  ;;  %v229_v30 = vsel %vm164_vm0, %v226_v58, %v228_v19  ;;  %v63_v14 = vld [vmem:[%s1578_s0 + $0x1b8] sm:$0xff] }
  0x5d   :  { %v234_v32 = vsel %vm164_vm0, %v231_v60, %v233_v21  ;;  %v239_v33 = vsel %vm164_vm0, %v236_v62, %v238_v22  ;;  %v358_v34 = vmax.f32 %v1278_v42, %v229_v30  ;;  %v446_v35 = vsel %vm381_vm1, %v443_v10, %v445_v25 }
  0x5e   :  { %v624_v36 = vmax.f32 %v576_v27, %v1297_v49  ;;  %v626_v37 = vmax.f32 %v578_v28, %v59_v31  ;;  %v690_v5 = vmax.f32 %v622_v29, %v232_v7  ;;  %v360_v39 = vmax.f32 %v1292_v48, %v234_v32  ;;  %v64_v28 = vld [vmem:[%s1578_s0 + $0x1c0] sm:$0x3] }
  0x5f   :  { %v362_v40 = vmax.f32 %v1302_v50, %v239_v33  ;;  %v451_v41 = vsel %vm381_vm1, %v448_v17, %v450_v26  ;;  %v455_v44 = vrot.slane %v58_v12, 2  ;;  %v575_v45 = vmax.f32 %v358_v34, %v446_v35  ;;  %v62_v12 = vld [vmem:[%s1578_s0 + $0x1b0] sm:$0xff] }
  0x60   :  { %v692_v42 = vmax.f32 %v624_v36, %v1321_v8  ;;  %v752_v43 = vmax.f32 %v690_v5, %v449_v23  ;;  %v577_v46 = vmax.f32 %v360_v39, %v451_v41  ;;  %v240_v47 = vrot.slane %v59_v31, 1  ;;  %v66_v5 = vld [vmem:[%s1578_s0 + $0x1d0] sm:$0xff] }
  0x61   :  { %v456_v52 = vsel %vm381_vm1, %v453_v3, %v455_v44  ;;  %v623_v53 = vmax.f32 %v575_v45, %v1292_v48  ;;  %v241_v54 = vrot.slane %v60_v38, 1  ;;  %v457_v55 = vrot.slane %v59_v31, 2 }
  0x62   :  { %v754_v56 = vmax.f32 %v692_v42, %v454_v24  ;;  %v800_v57 = vmax.f32 %v752_v43, %v1297_v49  ;;  %v579_v58 = vmax.f32 %v362_v40, %v456_v52  ;;  %v625_v59 = vmax.f32 %v577_v46, %v1302_v50 }
  0x63   :  { %v691_v60 = vmax.f32 %v623_v53, %v234_v32  ;;  %v242_v61 = vsel %vm164_vm0, %v240_v47, %v241_v54  ;;  %v458_v62 = vrot.slane %v60_v38, 2  ;;  %v243_v63 = vrot.slane %v61_v51, 1  ;;  %v65_v32 = vld [vmem:[%s1578_s0 + $0x1c8] sm:$0xff] }
  0x64   :  { %v868_v0 = vmax.f32 %v800_v57, %v1321_v8  ;;  %v627_v1 = vmax.f32 %v579_v58, %v60_v38  ;;  %v693_v2 = vmax.f32 %v625_v59, %v239_v33  ;;  %v363_v6 = vmax.f32 %v59_v31, %v242_v61  ;;  %v67_v57 = vld [vmem:[%s1578_s0 + $0x1d8] sm:$0x3] }
  0x65   :  { %v753_v7 = vmax.f32 %v691_v60, %v451_v41  ;;  %v459_v48 = vsel %vm381_vm1, %v457_v55, %v458_v62  ;;  %v694_v9 = vmax.f32 %v626_v37, %v242_v61  ;;  %v802_v10 = vmax.f32 %v754_v56, %v59_v31 }
  0x66   :  { %v930_v11 = vmax.f32 %v868_v0, %v454_v24  ;;  %v755_v49 = vmax.f32 %v693_v2, %v456_v52  ;;  %v580_v13 = vmax.f32 %v363_v6, %v459_v48  ;;  %v244_v8 = vsel %vm164_vm0, %v241_v54, %v243_v63 }
  0x67   :  { %v801_v15 = vmax.f32 %v753_v7, %v1302_v50  ;;  %v756_v16 = vmax.f32 %v694_v9, %v459_v48  ;;  %v870_v4 = vmax.f32 %v802_v10, %v242_v61  ;;  %v364_v17 = vmax.f32 %v60_v38, %v244_v8 }
  0x68   :  { %978 = vst [vmem:[%s1579_s1 + $0xc0] sm:$0xff] %v930_v11  ;;  %v628_v18 = vmax.f32 %v580_v13, %v62_v12  ;;  %v460_v3 = vrot.slane %v61_v51, 2  ;;  %v695_v20 = vmax.f32 %v627_v1, %v244_v8  ;;  %v803_v19 = vmax.f32 %v755_v49, %v60_v38  ;;  %v68_v1 = vld [vmem:[%s1578_s0 + $0x1e0] sm:$0xff]  ;;  %v69_v49 = vld [vmem:[%s1578_s0 + $0x1e8] sm:$0xff] }
  0x69   :  { %v869_v21 = vmax.f32 %v801_v15, %v239_v33  ;;  %v932_v22 = vmax.f32 %v870_v4, %v459_v48  ;;  %v245_v23 = vrot.slane %v62_v12, 1  ;;  %v246_v24 = vrot.slane %v63_v14, 1 }
  0x6a   :  { %v461_v25 = vsel %vm381_vm1, %v458_v62, %v460_v3  ;;  %v871_v26 = vmax.f32 %v803_v19, %v244_v8  ;;  %v462_v27 = vrot.slane %v62_v12, 2  ;;  %v463_v50 = vrot.slane %v63_v14, 2 }
  0x6b   :  { %v931_v29 = vmax.f32 %v869_v21, %v456_v52  ;;  %980 = vst [vmem:[%s1579_s1 + $0xd0] sm:$0xff] %v932_v22  ;;  %v581_v30 = vmax.f32 %v364_v17, %v461_v25  ;;  %v757_v31 = vmax.f32 %v695_v20, %v461_v25  ;;  %v247_v33 = vsel %vm164_vm0, %v245_v23, %v246_v24  ;;  %v70_v20 = vld [vmem:[%s1578_s0 + $0x1f0] sm:$0x3] }
  0x6c   :  { %v933_v34 = vmax.f32 %v871_v26, %v461_v25  ;;  %v365_v35 = vmax.f32 %v62_v12, %v247_v33  ;;  %v464_v36 = vsel %vm381_vm1, %v462_v27, %v463_v50  ;;  %v696_v37 = vmax.f32 %v628_v18, %v247_v33 }
  0x6d   :  { %979 = vst [vmem:[%s1579_s1 + $0xc8] sm:$0xff] %v931_v29  ;;  %v629_v38 = vmax.f32 %v581_v30, %v63_v14  ;;  %v804_v39 = vmax.f32 %v756_v16, %v62_v12  ;;  %v248_v40 = vrot.slane %v64_v28, 1  ;;  %v465_v41 = vrot.slane %v64_v28, 2 }
  0x6e   :  { %981 = vst [vmem:[%s1579_s1 + $0xd8] sm:$0xff] %v933_v34  ;;  %v582_v44 = vmax.f32 %v365_v35, %v464_v36  ;;  %v758_v45 = vmax.f32 %v696_v37, %v464_v36  ;;  %v805_v42 = vmax.f32 %v757_v31, %v63_v14  ;;  %v250_v43 = vrot.slane %v65_v32, 1 }
  0x6f   :  { %v872_v46 = vmax.f32 %v804_v39, %v247_v33  ;;  %v249_v47 = vsel %vm164_vm0, %v246_v24, %v248_v40  ;;  %v466_v51 = vsel %vm381_vm1, %v463_v50, %v465_v41  ;;  %v251_v52 = vrot.slane %v66_v5, 1 }
  0x70   :  { %v630_v53 = vmax.f32 %v582_v44, %v65_v32  ;;  %v366_v54 = vmax.f32 %v63_v14, %v249_v47  ;;  %v697_v55 = vmax.f32 %v629_v38, %v249_v47  ;;  %v873_v56 = vmax.f32 %v805_v42, %v249_v47 }
  0x71   :  { %v934_v58 = vmax.f32 %v872_v46, %v464_v36  ;;  %v252_v59 = vsel %vm164_vm0, %v250_v43, %v251_v52  ;;  %v467_v60 = vrot.slane %v65_v32, 2  ;;  %v468_v61 = vrot.slane %v66_v5, 2  ;;  %v72_v36 = vld [vmem:[%s1578_s0 + $0x200] sm:$0xff] }
  0x72   :  { %v583_v62 = vmax.f32 %v366_v54, %v466_v51  ;;  %v759_v63 = vmax.f32 %v697_v55, %v466_v51  ;;  %v935_v0 = vmax.f32 %v873_v56, %v466_v51  ;;  %v367_v2 = vmax.f32 %v65_v32, %v252_v59  ;;  %v73_v51 = vld [vmem:[%s1578_s0 + $0x208] sm:$0x3] }
  0x73   :  { %982 = vst [vmem:[%s1579_s1 + $0xe0] sm:$0xff] %v934_v58  ;;  %v469_v6 = vsel %vm381_vm1, %v467_v60, %v468_v61  ;;  %v698_v7 = vmax.f32 %v630_v53, %v252_v59  ;;  %v806_v48 = vmax.f32 %v758_v45, %v65_v32  ;;  %v253_v9 = vrot.slane %v67_v57, 1  ;;  %v71_v32 = vld [vmem:[%s1578_s0 + $0x1f8] sm:$0xff] }
  0x74   :  { %v631_v10 = vmax.f32 %v583_v62, %v66_v5  ;;  %983 = vst [vmem:[%s1579_s1 + $0xe8] sm:$0xff] %v935_v0  ;;  %v584_v11 = vmax.f32 %v367_v2, %v469_v6  ;;  %v470_v12 = vrot.slane %v67_v57, 2  ;;  %v807_v13 = vmax.f32 %v759_v63, %v66_v5  ;;  %v74_v57 = vld [vmem:[%s1578_s0 + $0x210] sm:$0xff] }
  0x75   :  { %v760_v14 = vmax.f32 %v698_v7, %v469_v6  ;;  %v874_v8 = vmax.f32 %v806_v48, %v252_v59  ;;  %v254_v15 = vsel %vm164_vm0, %v251_v52, %v253_v9  ;;  %v255_v16 = vrot.slane %v68_v1, 1 }
  0x76   :  { %v632_v4 = vmax.f32 %v584_v11, %v68_v1  ;;  %v368_v17 = vmax.f32 %v66_v5, %v254_v15  ;;  %v471_v18 = vsel %vm381_vm1, %v468_v61, %v470_v12  ;;  %v699_v3 = vmax.f32 %v631_v10, %v254_v15 }
  0x77   :  { %v936_v19 = vmax.f32 %v874_v8, %v469_v6  ;;  %v875_v21 = vmax.f32 %v807_v13, %v254_v15  ;;  %v256_v22 = vrot.slane %v69_v49, 1  ;;  %v472_v23 = vrot.slane %v68_v1, 2  ;;  %v75_v6 = vld [vmem:[%s1578_s0 + $0x218] sm:$0xff]  ;;  %v76_v15 = vld [vmem:[%s1578_s0 + $0x220] sm:$0x3] }
  0x78   :  { %v585_v24 = vmax.f32 %v368_v17, %v471_v18  ;;  %v761_v25 = vmax.f32 %v699_v3, %v471_v18  ;;  %v473_v26 = vrot.slane %v69_v49, 2  ;;  %v808_v27 = vmax.f32 %v760_v14, %v68_v1 }
  0x79   :  { %984 = vst [vmem:[%s1579_s1 + $0xf0] sm:$0xff] %v936_v19  ;;  %v937_v50 = vmax.f32 %v875_v21, %v471_v18  ;;  %v257_v28 = vsel %vm164_vm0, %v255_v16, %v256_v22  ;;  %v258_v29 = vrot.slane %v70_v20, 1  ;;  %v475_v30 = vrot.slane %v70_v20, 2 }
  0x7a   :  { %v633_v31 = vmax.f32 %v585_v24, %v69_v49  ;;  %v369_v33 = vmax.f32 %v68_v1, %v257_v28  ;;  %v474_v34 = vsel %vm381_vm1, %v472_v23, %v473_v26  ;;  %v700_v35 = vmax.f32 %v632_v4, %v257_v28 }
  0x7b   :  { %985 = vst [vmem:[%s1579_s1 + $0xf8] sm:$0xff] %v937_v50  ;;  %v876_v37 = vmax.f32 %v808_v27, %v257_v28  ;;  %v259_v5 = vsel %vm164_vm0, %v256_v22, %v258_v29  ;;  %v476_v38 = vsel %vm381_vm1, %v473_v26, %v475_v30  ;;  %v809_v39 = vmax.f32 %v761_v25, %v69_v49  ;;  %v77_v27 = vld [vmem:[%s1578_s0 + $0x228] sm:$0xff]  ;;  %v78_v30 = vld [vmem:[%s1578_s0 + $0x230] sm:$0xff] }
  0x7c   :  { %v586_v40 = vmax.f32 %v369_v33, %v474_v34  ;;  %v762_v41 = vmax.f32 %v700_v35, %v474_v34  ;;  %v370_v44 = vmax.f32 %v69_v49, %v259_v5  ;;  %v701_v45 = vmax.f32 %v633_v31, %v259_v5 }
  0x7d   :  { %v938_v42 = vmax.f32 %v876_v37, %v474_v34  ;;  %v877_v43 = vmax.f32 %v809_v39, %v259_v5  ;;  %v260_v46 = vrot.slane %v71_v32, 1  ;;  %v261_v47 = vrot.slane %v72_v36, 1 }
  0x7e   :  { %v634_v52 = vmax.f32 %v586_v40, %v71_v32  ;;  %v587_v53 = vmax.f32 %v370_v44, %v476_v38  ;;  %v763_v54 = vmax.f32 %v701_v45, %v476_v38  ;;  %v477_v55 = vrot.slane %v71_v32, 2  ;;  %v79_v44 = vld [vmem:[%s1578_s0 + $0x238] sm:$0x3] }
  0x7f   :  { %986 = vst [vmem:[%s1579_s1 + $0x100] sm:$0xff] %v938_v42  ;;  %v939_v56 = vmax.f32 %v877_v43, %v476_v38  ;;  %v262_v58 = vsel %vm164_vm0, %v260_v46, %v261_v47  ;;  %v478_v59 = vrot.slane %v72_v36, 2  ;;  %v810_v60 = vmax.f32 %v762_v41, %v71_v32 }
  0x80   :  { %v635_v61 = vmax.f32 %v587_v53, %v72_v36  ;;  %v371_v62 = vmax.f32 %v71_v32, %v262_v58  ;;  %v702_v63 = vmax.f32 %v634_v52, %v262_v58  ;;  %v263_v0 = vrot.slane %v73_v51, 1 }
  0x81   :  { %987 = vst [vmem:[%s1579_s1 + $0x108] sm:$0xff] %v939_v56  ;;  %v479_v1 = vsel %vm381_vm1, %v477_v55, %v478_v59  ;;  %v878_v2 = vmax.f32 %v810_v60, %v262_v58  ;;  %v480_v7 = vrot.slane %v73_v51, 2  ;;  %v811_v48 = vmax.f32 %v763_v54, %v72_v36  ;;  %v80_v51 = vld [vmem:[%s1578_s0 + $0x240] sm:$0xff] }
  0x82   :  { %v588_v9 = vmax.f32 %v371_v62, %v479_v1  ;;  %v764_v10 = vmax.f32 %v702_v63, %v479_v1  ;;  %v264_v11 = vsel %vm164_vm0, %v261_v47, %v263_v0  ;;  %v265_v49 = vrot.slane %v74_v57, 1 }
  0x83   :  { %v940_v12 = vmax.f32 %v878_v2, %v479_v1  ;;  %v372_v13 = vmax.f32 %v72_v36, %v264_v11  ;;  %v481_v14 = vsel %vm381_vm1, %v478_v59, %v480_v7  ;;  %v703_v8 = vmax.f32 %v635_v61, %v264_v11  ;;  %v81_v61 = vld [vmem:[%s1578_s0 + $0x248] sm:$0xff] }
  0x84   :  { %v636_v16 = vmax.f32 %v588_v9, %v74_v57  ;;  %v879_v4 = vmax.f32 %v811_v48, %v264_v11  ;;  %v266_v17 = vrot.slane %v75_v6, 1  ;;  %v482_v18 = vrot.slane %v74_v57, 2  ;;  %v82_v11 = vld [vmem:[%s1578_s0 + $0x250] sm:$0x3] }
  0x85   :  { %988 = vst [vmem:[%s1579_s1 + $0x110] sm:$0xff] %v940_v12  ;;  %v589_v3 = vmax.f32 %v372_v13, %v481_v14  ;;  %v765_v20 = vmax.f32 %v703_v8, %v481_v14  ;;  %v483_v19 = vrot.slane %v75_v6, 2  ;;  %v812_v21 = vmax.f32 %v764_v10, %v74_v57 }
  0x86   :  { %v941_v22 = vmax.f32 %v879_v4, %v481_v14  ;;  %v267_v23 = vsel %vm164_vm0, %v265_v49, %v266_v17  ;;  %v268_v24 = vrot.slane %v76_v15, 1  ;;  %v485_v25 = vrot.slane %v76_v15, 2 }
  0x87   :  { %v637_v26 = vmax.f32 %v589_v3, %v75_v6  ;;  %v373_v50 = vmax.f32 %v74_v57, %v267_v23  ;;  %v484_v28 = vsel %vm381_vm1, %v482_v18, %v483_v19  ;;  %v704_v29 = vmax.f32 %v636_v16, %v267_v23 }
  0x88   :  { %989 = vst [vmem:[%s1579_s1 + $0x118] sm:$0xff] %v941_v22  ;;  %v880_v31 = vmax.f32 %v812_v21, %v267_v23  ;;  %v269_v32 = vsel %vm164_vm0, %v266_v17, %v268_v24  ;;  %v486_v33 = vsel %vm381_vm1, %v483_v19, %v485_v25  ;;  %v813_v34 = vmax.f32 %v765_v20, %v75_v6  ;;  %v83_v21 = vld [vmem:[%s1578_s0 + $0x258] sm:$0xff]  ;;  %v84_v25 = vld [vmem:[%s1578_s0 + $0x260] sm:$0xff] }
  0x89   :  { %v590_v35 = vmax.f32 %v373_v50, %v484_v28  ;;  %v766_v36 = vmax.f32 %v704_v29, %v484_v28  ;;  %v374_v37 = vmax.f32 %v75_v6, %v269_v32  ;;  %v705_v5 = vmax.f32 %v637_v26, %v269_v32 }
  0x8a   :  { %v942_v38 = vmax.f32 %v880_v31, %v484_v28  ;;  %v881_v39 = vmax.f32 %v813_v34, %v269_v32  ;;  %v270_v40 = vrot.slane %v77_v27, 1  ;;  %v271_v41 = vrot.slane %v78_v30, 1 }
  0x8b   :  { %v638_v45 = vmax.f32 %v590_v35, %v77_v27  ;;  %v591_v42 = vmax.f32 %v374_v37, %v486_v33  ;;  %v767_v43 = vmax.f32 %v705_v5, %v486_v33  ;;  %v487_v46 = vrot.slane %v77_v27, 2  ;;  %v85_v37 = vld [vmem:[%s1578_s0 + $0x268] sm:$0x3] }
  0x8c   :  { %990 = vst [vmem:[%s1579_s1 + $0x120] sm:$0xff] %v942_v38  ;;  %v943_v47 = vmax.f32 %v881_v39, %v486_v33  ;;  %v272_v52 = vsel %vm164_vm0, %v270_v40, %v271_v41  ;;  %v488_v53 = vrot.slane %v78_v30, 2  ;;  %v814_v54 = vmax.f32 %v766_v36, %v77_v27 }
  0x8d   :  { %v639_v55 = vmax.f32 %v591_v42, %v78_v30  ;;  %v375_v56 = vmax.f32 %v77_v27, %v272_v52  ;;  %v706_v57 = vmax.f32 %v638_v45, %v272_v52  ;;  %v273_v58 = vrot.slane %v79_v44, 1 }
  0x8e   :  { %991 = vst [vmem:[%s1579_s1 + $0x128] sm:$0xff] %v943_v47  ;;  %v489_v59 = vsel %vm381_vm1, %v487_v46, %v488_v53  ;;  %v882_v60 = vmax.f32 %v814_v54, %v272_v52  ;;  %v490_v62 = vrot.slane %v79_v44, 2  ;;  %v815_v63 = vmax.f32 %v767_v43, %v78_v30  ;;  %v86_v43 = vld [vmem:[%s1578_s0 + $0x270] sm:$0xff] }
  0x8f   :  { %v592_v0 = vmax.f32 %v375_v56, %v489_v59  ;;  %v768_v1 = vmax.f32 %v706_v57, %v489_v59  ;;  %v274_v2 = vsel %vm164_vm0, %v271_v41, %v273_v58  ;;  %v275_v6 = vrot.slane %v80_v51, 1  ;;  %v87_v57 = vld [vmem:[%s1578_s0 + $0x278] sm:$0xff] }
  0x90   :  { %v944_v7 = vmax.f32 %v882_v60, %v489_v59  ;;  %v376_v48 = vmax.f32 %v78_v30, %v274_v2  ;;  %v491_v9 = vsel %vm381_vm1, %v488_v53, %v490_v62  ;;  %v707_v10 = vmax.f32 %v639_v55, %v274_v2 }
  0x91   :  { %v640_v49 = vmax.f32 %v592_v0, %v80_v51  ;;  %v883_v12 = vmax.f32 %v815_v63, %v274_v2  ;;  %v276_v13 = vrot.slane %v81_v61, 1  ;;  %v492_v14 = vrot.slane %v80_v51, 2  ;;  %v88_v2 = vld [vmem:[%s1578_s0 + $0x280] sm:$0x3] }
  0x92   :  { %992 = vst [vmem:[%s1579_s1 + $0x130] sm:$0xff] %v944_v7  ;;  %v593_v8 = vmax.f32 %v376_v48, %v491_v9  ;;  %v769_v15 = vmax.f32 %v707_v10, %v491_v9  ;;  %v493_v16 = vrot.slane %v81_v61, 2  ;;  %v816_v4 = vmax.f32 %v768_v1, %v80_v51 }
  0x93   :  { %v945_v17 = vmax.f32 %v883_v12, %v491_v9  ;;  %v277_v18 = vsel %vm164_vm0, %v275_v6, %v276_v13  ;;  %v278_v3 = vrot.slane %v82_v11, 1  ;;  %v495_v20 = vrot.slane %v82_v11, 2 }
  0x94   :  { %v641_v19 = vmax.f32 %v593_v8, %v81_v61  ;;  %v377_v22 = vmax.f32 %v80_v51, %v277_v18  ;;  %v494_v23 = vsel %vm381_vm1, %v492_v14, %v493_v16  ;;  %v708_v24 = vmax.f32 %v640_v49, %v277_v18 }
  0x95   :  { %993 = vst [vmem:[%s1579_s1 + $0x138] sm:$0xff] %v945_v17  ;;  %v884_v26 = vmax.f32 %v816_v4, %v277_v18  ;;  %v279_v27 = vsel %vm164_vm0, %v276_v13, %v278_v3  ;;  %v496_v50 = vsel %vm381_vm1, %v493_v16, %v495_v20  ;;  %v817_v28 = vmax.f32 %v769_v15, %v81_v61  ;;  %v89_v13 = vld [vmem:[%s1578_s0 + $0x288] sm:$0xff]  ;;  %v90_v4 = vld [vmem:[%s1578_s0 + $0x290] sm:$0xff] }
  0x96   :  { %v594_v29 = vmax.f32 %v377_v22, %v494_v23  ;;  %v770_v30 = vmax.f32 %v708_v24, %v494_v23  ;;  %v378_v31 = vmax.f32 %v81_v61, %v279_v27  ;;  %v709_v32 = vmax.f32 %v641_v19, %v279_v27  ;;  %v91_v19 = vld [vmem:[%s1578_s0 + $0x298] sm:$0x3] }
  0x97   :  { %v946_v33 = vmax.f32 %v884_v26, %v494_v23  ;;  %v885_v34 = vmax.f32 %v817_v28, %v279_v27  ;;  %v280_v35 = vrot.slane %v83_v21, 1  ;;  %v281_v36 = vrot.slane %v84_v25, 1 }
  0x98   :  { %v642_v5 = vmax.f32 %v594_v29, %v83_v21  ;;  %v595_v38 = vmax.f32 %v378_v31, %v496_v50  ;;  %v771_v39 = vmax.f32 %v709_v32, %v496_v50  ;;  %v497_v40 = vrot.slane %v83_v21, 2 }
  0x99   :  { %994 = vst [vmem:[%s1579_s1 + $0x140] sm:$0xff] %v946_v33  ;;  %v947_v41 = vmax.f32 %v885_v34, %v496_v50  ;;  %v282_v44 = vsel %vm164_vm0, %v280_v35, %v281_v36  ;;  %v498_v45 = vrot.slane %v84_v25, 2  ;;  %v818_v42 = vmax.f32 %v770_v30, %v83_v21 }
  0x9a   :  { %v643_v46 = vmax.f32 %v595_v38, %v84_v25  ;;  %v379_v47 = vmax.f32 %v83_v21, %v282_v44  ;;  %v710_v51 = vmax.f32 %v642_v5, %v282_v44  ;;  %v283_v52 = vrot.slane %v85_v37, 1 }
  0x9b   :  { %995 = vst [vmem:[%s1579_s1 + $0x148] sm:$0xff] %v947_v41  ;;  %v499_v53 = vsel %vm381_vm1, %v497_v40, %v498_v45  ;;  %v886_v54 = vmax.f32 %v818_v42, %v282_v44  ;;  %v500_v55 = vrot.slane %v85_v37, 2  ;;  %v819_v56 = vmax.f32 %v771_v39, %v84_v25 }
  0x9c   :  { %v596_v58 = vmax.f32 %v379_v47, %v499_v53  ;;  %v772_v59 = vmax.f32 %v710_v51, %v499_v53  ;;  %v284_v60 = vsel %vm164_vm0, %v281_v36, %v283_v52  ;;  %v657_v61 = vrot.slane %v86_v43, 1 }
  0x9d   :  { %v948_v62 = vmax.f32 %v886_v54, %v499_v53  ;;  %v380_v63 = vmax.f32 %v84_v25, %v284_v60  ;;  %v501_v0 = vsel %vm381_vm1, %v498_v45, %v500_v55  ;;  %v711_v1 = vmax.f32 %v643_v46, %v284_v60 }
  0x9e   :  { %v887_v6 = vmax.f32 %v819_v56, %v284_v60  ;;  %v644_v7 = vmax.f32 %v596_v58, %v86_v43  ;;  %v658_v48 = vrot.slane %v87_v57, 1  ;;  %v719_v9 = vrot.slane %v86_v43, 2 }
  0x9f   :  { %996 = vst [vmem:[%s1579_s1 + $0x150] sm:$0xff] %v948_v62  ;;  %v597_v10 = vmax.f32 %v380_v63, %v501_v0  ;;  %v773_v11 = vmax.f32 %v711_v1, %v501_v0  ;;  %v720_v49 = vrot.slane %v87_v57, 2  ;;  %v820_v12 = vmax.f32 %v772_v59, %v86_v43 }
  0xa0   :  { %v949_v14 = vmax.f32 %v887_v6, %v501_v0  ;;  %v659_v8 = vsel %vm164_vm0, %v657_v61, %v658_v48  ;;  %v660_v15 = vrot.slane %v88_v2, 1  ;;  %v722_v16 = vrot.slane %v88_v2, 2 }
  0xa1   :  { %v712_v17 = vmax.f32 %v644_v7, %v659_v8  ;;  %v721_v18 = vsel %vm381_vm1, %v719_v9, %v720_v49  ;;  %v888_v3 = vmax.f32 %v820_v12, %v659_v8  ;;  %v645_v20 = vmax.f32 %v597_v10, %v87_v57 }
  0xa2   :  { %997 = vst [vmem:[%s1579_s1 + $0x158] sm:$0xff] %v949_v14  ;;  %v661_v21 = vsel %vm164_vm0, %v658_v48, %v660_v15  ;;  %v723_v22 = vsel %vm381_vm1, %v720_v49, %v722_v16  ;;  %v821_v23 = vmax.f32 %v773_v11, %v87_v57  ;;  %v835_v24 = vrot.slane %v89_v13, 1 }
  0xa3   :  { %v774_v25 = vmax.f32 %v712_v17, %v721_v18  ;;  %v950_v26 = vmax.f32 %v888_v3, %v721_v18  ;;  %v713_v27 = vmax.f32 %v645_v20, %v661_v21  ;;  %v836_v50 = vrot.slane %v90_v4, 1 }
  0xa4   :  { %v889_v28 = vmax.f32 %v821_v23, %v661_v21  ;;  %v897_v29 = vrot.slane %v89_v13, 2  ;;  %v898_v30 = vrot.slane %v90_v4, 2  ;;  %v838_v31 = vrot.slane %v91_v19, 1 }
  0xa5   :  { %998 = vst [vmem:[%s1579_s1 + $0x160] sm:$0xff] %v950_v26  ;;  %v775_v32 = vmax.f32 %v713_v27, %v723_v22  ;;  %v822_v33 = vmax.f32 %v774_v25, %v89_v13  ;;  %v837_v34 = vsel %vm164_vm0, %v835_v24, %v836_v50  ;;  %v900_v35 = vrot.slane %v91_v19, 2 }
  0xa6   :  { %v951_v36 = vmax.f32 %v889_v28, %v723_v22  ;;  %v899_v37 = vsel %vm381_vm1, %v897_v29, %v898_v30  ;;  %v839_v5 = vsel %vm164_vm0, %v836_v50, %v838_v31 }
  0xa7   :  { %v890_v38 = vmax.f32 %v822_v33, %v837_v34  ;;  %v823_v39 = vmax.f32 %v775_v32, %v90_v4  ;;  %v901_v40 = vsel %vm381_vm1, %v898_v30, %v900_v35 }
  0xa8   :  { %999 = vst [vmem:[%s1579_s1 + $0x168] sm:$0xff] %v951_v36 }
  0xa9   :  { %v952_v41 = vmax.f32 %v890_v38, %v899_v37  ;;  %v891_v44 = vmax.f32 %v823_v39, %v839_v5 }
  0xab   :  { %1000 = vst [vmem:[%s1579_s1 + $0x170] sm:$0xff] %v952_v41  ;;  %v953_v45 = vmax.f32 %v891_v44, %v901_v40 }
  0xad   :  { %1001 = vst [vmem:[%s1579_s1 + $0x178] sm:$0xff] %v953_v45 }

// kernel: actor_forward.14
= control target key start
LH: loop header
LB: loop body
LE: loop exit
PB: predicated region body
PF: predicated region fallthrough
CT: control target
= control target key end

     0   :  { %s3030_s12 = smov 0   ;;  %s3619_s0 = inlined_call_operand.vmem [shape: f32[8,24576], index: 0, kind: input, shape index: {}]   ;;  %s3620_s1 = inlined_call_operand.vmem [shape: f32[24576,128], index: 1, kind: input, shape index: {}]   ;;  %s3621_s2 = inlined_call_operand.vmem [shape: f32[1,128], index: 2, kind: input, shape index: {}]   ;;  %s3622_s3 = inlined_call_operand.vmem [shape: f32[8,128], index: 3, kind: output, shape index: {}]  }
   0x1 LB: > { %s3036_s13 = sadd.s32 4294967295, %s3007_s12   ;;  %p1910_p0 = scmp.ge.s32.totalorder %s3007_s12, 1  ;;  %s3007_s12 = sphi %s3030_s12, %s13_s12  }
   0x2   : > { %p144_p1 = scmp.lt.s32.totalorder %s3007_s12, 7 }
   0x4   : > { %p145_p2 = pnand %p1910_p0, %p144_p1 }
   0x5   : > { %s1911_s14 = sshll.u32 (!%p145_p2), %s3036_s13, 5  ;;  %s1913_s15 = sshll.u32 (!%p145_p2), %s3036_s13, 9 }
   0x6   : > { %148 = sbr.rel (%p145_p2) target bundleno = 517 (0x205), region = 32  ;;  %p169_p3 = scmp.lt.s32.totalorder (!%p145_p2), %s1911_s14, 191 }
   0x7   : > { %p175_p4 = scmp.lt.s32.totalorder (!%p145_p2), %s1913_s15, 3071  ;;  %p1915_p5 = scmp.ne.s32.totalorder (!%p145_p2), %s3036_s13, 0 }
   0xd   : > { %s3624_s14 = smov (!%p169_p3, %s1911_s14), 191  ;;  %s3626_s15 = smov (!%p175_p4, %s1913_s15), 3071 }
   0xe   : > { %s1912_s16 = sshll.u32 %s3624_s14, 3  ;;  %s1914_s20 = sshll.u32 %s3626_s15, 3  ;;  %v3009_v0 = vmov (!%p1915_p5), 0.0  }
   0xf   : > { %s3045_s19 = scalar_lea.vmem %s3619_s0, %s1912_s16  ;;  %s3050_s23 = scalar_lea.vmem %s3620_s1, %s1914_s20  ;;  %184 = vst [vmem:[%s3622_s3] sm:$0xff] (!%p1915_p5), %v3009_v0 }
  0x10   : > { %183 = sbr.rel (%p1915_p5) target bundleno = 23 (0x17), region = 36 }
  0x17 PF: > { %v234_v1 = vld [vmem:[%s3050_s23 + $0x80] sm:$0xff]  ;;  %v235_v2 = vld [vmem:[%s3050_s23 + $0x88] sm:$0xff]  ;;  %v236_v12 = vld [vmem:[%s3050_s23 + $0x90] sm:$0xff]  ;;  %p1916_p6 = scmp.ne.s32.totalorder %s3036_s13, 5 }
  0x18   : > { %v266_v3 = vld [vmem:[%s3050_s23 + $0x180] sm:$0xff]  ;;  %v2480_v4 = vpack.c.bf16 %v235_v2, %v234_v1  ;;  %v267_v5 = vld [vmem:[%s3050_s23 + $0x188] sm:$0xff]  ;;  %v237_v14 = vld [vmem:[%s3050_s23 + $0x98] sm:$0xff] }
  0x19   : > { %v218_v6 = vld [vmem:[%s3050_s23] sm:$0xff]  ;;  %v219_v7 = vld [vmem:[%s3050_s23 + $0x8] sm:$0xff]  ;;  %v2512_v8 = vpack.c.bf16 %v267_v5, %v266_v3  ;;  %v268_v15 = vld [vmem:[%s3050_s23 + $0x190] sm:$0xff]  ;;  %v2484_v17 = vpack.c.bf16 %v237_v14, %v236_v12 }
  0x1a   : > { %v2482_v9 = vpack.c.bf16 %v219_v7, %v218_v6  ;;  %v250_v10 = vld [vmem:[%s3050_s23 + $0x100] sm:$0xff]  ;;  %v251_v11 = vld [vmem:[%s3050_s23 + $0x108] sm:$0xff]  ;;  %2481 = vmatprep.subr.bf16.mxu0 %v2480_v4  ;;  %v269_v16 = vld [vmem:[%s3050_s23 + $0x198] sm:$0xff] }
  0x1b   : > { %v2514_v13 = vpack.c.bf16 %v251_v11, %v250_v10  ;;  %2513 = vmatprep.subr.bf16.mxu1 %v2512_v8  ;;  %v2516_v18 = vpack.c.bf16 %v269_v16, %v268_v15  ;;  %v220_v19 = vld [vmem:[%s3050_s23 + $0x10] sm:$0xff]  ;;  %v221_v20 = vld [vmem:[%s3050_s23 + $0x18] sm:$0xff]  ;;  %v238_v24 = vld [vmem:[%s3050_s23 + $0xa0] sm:$0xff] }
  0x1c   : > { %2483 = vmatpush3.bf16.msra.mxu0 %v2482_v9  ;;  %v252_v21 = vld [vmem:[%s3050_s23 + $0x110] sm:$0xff]  ;;  %v2486_v22 = vpack.c.bf16 %v221_v20, %v220_v19  ;;  %v253_v23 = vld [vmem:[%s3050_s23 + $0x118] sm:$0xff]  ;;  %v239_v25 = vld [vmem:[%s3050_s23 + $0xa8] sm:$0xff] }
  0x1d   : > { %2515 = vmatpush3.bf16.msra.mxu1 %v2514_v13  ;;  %2485 = vmatprep.subr.bf16.mxu0 %v2484_v17  ;;  %v2518_v26 = vpack.c.bf16 %v253_v23, %v252_v21  ;;  %v2488_v27 = vpack.c.bf16 %v239_v25, %v238_v24  ;;  %v270_v28 = vld [vmem:[%s3050_s23 + $0x1a0] sm:$0xff]  ;;  %v271_v29 = vld [vmem:[%s3050_s23 + $0x1a8] sm:$0xff]  ;;  %v240_v36 = vld [vmem:[%s3050_s23 + $0xb0] sm:$0xff] }
  0x1e   : > { %2517 = vmatprep.subr.bf16.mxu1 %v2516_v18  ;;  %v222_v30 = vld [vmem:[%s3050_s23 + $0x20] sm:$0xff]  ;;  %v2520_v31 = vpack.c.bf16 %v271_v29, %v270_v28  ;;  %v223_v32 = vld [vmem:[%s3050_s23 + $0x28] sm:$0xff]  ;;  %v241_v37 = vld [vmem:[%s3050_s23 + $0xb8] sm:$0xff] }
  0x1f   : > { %v254_v33 = vld [vmem:[%s3050_s23 + $0x120] sm:$0xff]  ;;  %v255_v34 = vld [vmem:[%s3050_s23 + $0x128] sm:$0xff]  ;;  %v2490_v35 = vpack.c.bf16 %v223_v32, %v222_v30  ;;  %v272_v38 = vld [vmem:[%s3050_s23 + $0x1b0] sm:$0xff]  ;;  %v2492_v40 = vpack.c.bf16 %v241_v37, %v240_v36 }
  0x20   : > { %2487 = vmatpush3.bf16.msra.mxu0 %v2486_v22  ;;  %v2522_v39 = vpack.c.bf16 %v255_v34, %v254_v33  ;;  %v273_v41 = vld [vmem:[%s3050_s23 + $0x1b8] sm:$0xff]  ;;  %v224_v42 = vld [vmem:[%s3050_s23 + $0x30] sm:$0xff]  ;;  %v242_v47 = vld [vmem:[%s3050_s23 + $0xc0] sm:$0xff] }
  0x21   : > { %2519 = vmatpush3.bf16.msra.mxu1 %v2518_v26  ;;  %2489 = vmatprep.subr.bf16.mxu0 %v2488_v27  ;;  %v225_v43 = vld [vmem:[%s3050_s23 + $0x38] sm:$0xff]  ;;  %v2524_v44 = vpack.c.bf16 %v273_v41, %v272_v38  ;;  %v256_v45 = vld [vmem:[%s3050_s23 + $0x130] sm:$0xff]  ;;  %v243_v48 = vld [vmem:[%s3050_s23 + $0xc8] sm:$0xff] }
  0x22   : > { %2521 = vmatprep.subr.bf16.mxu1 %v2520_v31  ;;  %v257_v46 = vld [vmem:[%s3050_s23 + $0x138] sm:$0xff]  ;;  %v274_v49 = vld [vmem:[%s3050_s23 + $0x1c0] sm:$0xff]  ;;  %v275_v50 = vld [vmem:[%s3050_s23 + $0x1c8] sm:$0xff]  ;;  %v2494_v51 = vpack.c.bf16 %v225_v43, %v224_v42  ;;  %v2496_v53 = vpack.c.bf16 %v243_v48, %v242_v47 }
  0x23   : > { %v2526_v52 = vpack.c.bf16 %v257_v46, %v256_v45  ;;  %v226_v54 = vld [vmem:[%s3050_s23 + $0x40] sm:$0xff]  ;;  %v227_v55 = vld [vmem:[%s3050_s23 + $0x48] sm:$0xff]  ;;  %v2528_v57 = vpack.c.bf16 %v275_v50, %v274_v49  ;;  %v244_v59 = vld [vmem:[%s3050_s23 + $0xd0] sm:$0xff] }
  0x24   : > { %2491 = vmatpush3.bf16.msra.mxu0 %v2490_v35  ;;  %v258_v56 = vld [vmem:[%s3050_s23 + $0x140] sm:$0xff]  ;;  %v259_v58 = vld [vmem:[%s3050_s23 + $0x148] sm:$0xff]  ;;  %v245_v60 = vld [vmem:[%s3050_s23 + $0xd8] sm:$0xff]  ;;  %v2498_v63 = vpack.c.bf16 %v227_v55, %v226_v54 }
  0x25   : > { %2523 = vmatpush3.bf16.msra.mxu1 %v2522_v39  ;;  %2493 = vmatprep.subr.bf16.mxu0 %v2492_v40  ;;  %v276_v61 = vld [vmem:[%s3050_s23 + $0x1d0] sm:$0xff]  ;;  %v277_v62 = vld [vmem:[%s3050_s23 + $0x1d8] sm:$0xff]  ;;  %v2530_v0 = vpack.c.bf16 %v259_v58, %v258_v56  ;;  %v2500_v1 = vpack.c.bf16 %v245_v60, %v244_v59  ;;  %v246_v7 = vld [vmem:[%s3050_s23 + $0xe0] sm:$0xff] }
  0x26   : > { %2525 = vmatprep.subr.bf16.mxu1 %v2524_v44  ;;  %v228_v2 = vld [vmem:[%s3050_s23 + $0x50] sm:$0xff]  ;;  %v229_v3 = vld [vmem:[%s3050_s23 + $0x58] sm:$0xff]  ;;  %v2532_v5 = vpack.c.bf16 %v277_v62, %v276_v61  ;;  %v247_v8 = vld [vmem:[%s3050_s23 + $0xe8] sm:$0xff] }
  0x27   : > { %v260_v4 = vld [vmem:[%s3050_s23 + $0x150] sm:$0xff]  ;;  %v261_v6 = vld [vmem:[%s3050_s23 + $0x158] sm:$0xff]  ;;  %v278_v9 = vld [vmem:[%s3050_s23 + $0x1e0] sm:$0xff]  ;;  %v2502_v11 = vpack.c.bf16 %v229_v3, %v228_v2  ;;  %v2504_v15 = vpack.c.bf16 %v247_v8, %v246_v7 }
  0x28   : > { %2495 = vmatpush3.bf16.msra.mxu0 %v2494_v51  ;;  %v279_v10 = vld [vmem:[%s3050_s23 + $0x1e8] sm:$0xff]  ;;  %v230_v12 = vld [vmem:[%s3050_s23 + $0x60] sm:$0xff]  ;;  %v2534_v14 = vpack.c.bf16 %v261_v6, %v260_v4  ;;  %v189_v18 = vld [vmem:[%s3045_s19 + $0x18] sm:$0xff] }
  0x29   : > { %2527 = vmatpush3.bf16.msra.mxu1 %v2526_v52  ;;  %2497 = vmatprep.subr.bf16.mxu0 %v2496_v53  ;;  %v231_v13 = vld [vmem:[%s3050_s23 + $0x68] sm:$0xff]  ;;  %v262_v16 = vld [vmem:[%s3050_s23 + $0x160] sm:$0xff]  ;;  %v2536_v19 = vpack.c.bf16 %v279_v10, %v278_v9  ;;  %v248_v21 = vld [vmem:[%s3050_s23 + $0xf0] sm:$0xff] }
  0x2a   : > { %2529 = vmatprep.subr.bf16.mxu1 %v2528_v57  ;;  %v187_v17 = vld [vmem:[%s3045_s19 + $0x8] sm:$0xff]  ;;  %v249_v22 = vld [vmem:[%s3050_s23 + $0xf8] sm:$0xff]  ;;  %v280_v23 = vld [vmem:[%s3050_s23 + $0x1f0] sm:$0xff]  ;;  %864 = vmatprep.mubr.f32.mxu1 %v189_v18  ;;  %v2506_v25 = vpack.c.bf16 %v231_v13, %v230_v12 }
  0x2b   : > { %v263_v20 = vld [vmem:[%s3050_s23 + $0x168] sm:$0xff]  ;;  %794 = vmatprep.mubr.f32.mxu0 %v187_v17  ;;  %v281_v24 = vld [vmem:[%s3050_s23 + $0x1f8] sm:$0xff]  ;;  %v2508_v27 = vpack.c.bf16 %v249_v22, %v248_v21  ;;  %v232_v28 = vld [vmem:[%s3050_s23 + $0x70] sm:$0xff] }
  0x2c   : > { %2499 = vmatpush3.bf16.msra.mxu0 %v2498_v63  ;;  %v2538_v26 = vpack.c.bf16 %v263_v20, %v262_v16  ;;  %v233_v29 = vld [vmem:[%s3050_s23 + $0x78] sm:$0xff]  ;;  %v264_v30 = vld [vmem:[%s3050_s23 + $0x170] sm:$0xff]  ;;  %v2540_v31 = vpack.c.bf16 %v281_v24, %v280_v23  ;;  %v298_v33 = vld [vmem:[%s3050_s23 + $0x280] sm:$0xff] }
  0x2d   : > { %2531 = vmatpush3.bf16.msra.mxu1 %v2530_v0  ;;  %2501 = vmatprep.subr.bf16.mxu0 %v2500_v1  ;;  %v265_v32 = vld [vmem:[%s3050_s23 + $0x178] sm:$0xff]  ;;  %v299_v34 = vld [vmem:[%s3050_s23 + $0x288] sm:$0xff]  ;;  %v330_v35 = vld [vmem:[%s3050_s23 + $0x380] sm:$0xff]  ;;  %v2510_v37 = vpack.c.bf16 %v233_v29, %v232_v28 }
  0x2e   : > { %2533 = vmatprep.subr.bf16.mxu1 %v2532_v5  ;;  %v331_v36 = vld [vmem:[%s3050_s23 + $0x388] sm:$0xff]  ;;  %v2542_v38 = vpack.c.bf16 %v265_v32, %v264_v30  ;;  %v2544_v39 = vpack.c.bf16 %v299_v34, %v298_v33  ;;  %v282_v40 = vld [vmem:[%s3050_s23 + $0x200] sm:$0xff]  ;;  %v300_v45 = vld [vmem:[%s3050_s23 + $0x290] sm:$0xff] }
  0x2f   : > { %v283_v41 = vld [vmem:[%s3050_s23 + $0x208] sm:$0xff]  ;;  %v314_v42 = vld [vmem:[%s3050_s23 + $0x300] sm:$0xff]  ;;  %v2576_v43 = vpack.c.bf16 %v331_v36, %v330_v35  ;;  %v301_v46 = vld [vmem:[%s3050_s23 + $0x298] sm:$0xff] }
  0x30   : > { %2503 = vmatpush3.bf16.msra.mxu0 %v2502_v11  ;;  %v315_v44 = vld [vmem:[%s3050_s23 + $0x308] sm:$0xff]  ;;  %v332_v47 = vld [vmem:[%s3050_s23 + $0x390] sm:$0xff]  ;;  %v333_v48 = vld [vmem:[%s3050_s23 + $0x398] sm:$0xff]  ;;  %v2546_v51 = vpack.c.bf16 %v283_v41, %v282_v40  ;;  %v2548_v53 = vpack.c.bf16 %v301_v46, %v300_v45 }
  0x31   : > { %2535 = vmatpush3.bf16.msra.mxu1 %v2534_v14  ;;  %2505 = vmatprep.subr.bf16.mxu0 %v2504_v15  ;;  %v186_v49 = vld [vmem:[%s3045_s19] sm:$0xff]  ;;  %v188_v50 = vld [vmem:[%s3045_s19 + $0x10] sm:$0xff]  ;;  %v2578_v52 = vpack.c.bf16 %v315_v44, %v314_v42  ;;  %v285_v55 = vld [vmem:[%s3050_s23 + $0x218] sm:$0xff]  ;;  %v2580_v57 = vpack.c.bf16 %v333_v48, %v332_v47 }
  0x32   : > { %2537 = vmatprep.subr.bf16.mxu1 %v2536_v19  ;;  %v284_v54 = vld [vmem:[%s3050_s23 + $0x210] sm:$0xff]  ;;  %v317_v58 = vld [vmem:[%s3050_s23 + $0x318] sm:$0xff]  ;;  %v302_v59 = vld [vmem:[%s3050_s23 + $0x2a0] sm:$0xff] }
  0x33   : > { %v316_v56 = vld [vmem:[%s3050_s23 + $0x310] sm:$0xff]  ;;  %v303_v60 = vld [vmem:[%s3050_s23 + $0x2a8] sm:$0xff]  ;;  %v334_v61 = vld [vmem:[%s3050_s23 + $0x3a0] sm:$0xff]  ;;  %v2550_v63 = vpack.c.bf16 %v285_v55, %v284_v54 }
  0x34   : > { %2507 = vmatpush3.bf16.msra.mxu0 %v2506_v25  ;;  %v335_v62 = vld [vmem:[%s3050_s23 + $0x3a8] sm:$0xff]  ;;  %v2582_v0 = vpack.c.bf16 %v317_v58, %v316_v56  ;;  %v2552_v1 = vpack.c.bf16 %v303_v60, %v302_v59  ;;  %v286_v2 = vld [vmem:[%s3050_s23 + $0x220] sm:$0xff]  ;;  %v304_v7 = vld [vmem:[%s3050_s23 + $0x2b0] sm:$0xff] }
  0x35   : > { %2539 = vmatpush3.bf16.msra.mxu1 %v2538_v26  ;;  %2509 = vmatprep.subr.bf16.mxu0 %v2508_v27  ;;  %v287_v3 = vld [vmem:[%s3050_s23 + $0x228] sm:$0xff]  ;;  %v318_v4 = vld [vmem:[%s3050_s23 + $0x320] sm:$0xff]  ;;  %v2584_v5 = vpack.c.bf16 %v335_v62, %v334_v61  ;;  %v305_v8 = vld [vmem:[%s3050_s23 + $0x2b8] sm:$0xff] }
  0x36   : > { %2541 = vmatprep.subr.bf16.mxu1 %v2540_v31  ;;  %v319_v6 = vld [vmem:[%s3050_s23 + $0x328] sm:$0xff]  ;;  %v336_v9 = vld [vmem:[%s3050_s23 + $0x3b0] sm:$0xff]  ;;  %v337_v10 = vld [vmem:[%s3050_s23 + $0x3b8] sm:$0xff]  ;;  %v2554_v11 = vpack.c.bf16 %v287_v3, %v286_v2  ;;  %v2556_v13 = vpack.c.bf16 %v305_v8, %v304_v7 }
  0x37   : > { %v2586_v12 = vpack.c.bf16 %v319_v6, %v318_v4  ;;  %v288_v14 = vld [vmem:[%s3050_s23 + $0x230] sm:$0xff]  ;;  %v289_v15 = vld [vmem:[%s3050_s23 + $0x238] sm:$0xff]  ;;  %v2588_v17 = vpack.c.bf16 %v337_v10, %v336_v9  ;;  %v306_v19 = vld [vmem:[%s3050_s23 + $0x2c0] sm:$0xff] }
  0x38   : > { %2511 = vmatpush3.bf16.msra.mxu0 %v2510_v37  ;;  %v320_v16 = vld [vmem:[%s3050_s23 + $0x330] sm:$0xff]  ;;  %v321_v18 = vld [vmem:[%s3050_s23 + $0x338] sm:$0xff]  ;;  %v307_v20 = vld [vmem:[%s3050_s23 + $0x2c8] sm:$0xff]  ;;  %v2558_v23 = vpack.c.bf16 %v289_v15, %v288_v14 }
  0x39   : > { %2543 = vmatpush3.bf16.msra.mxu1 %v2542_v38  ;;  %2545 = vmatprep.subr.bf16.mxu0 %v2544_v39  ;;  %v338_v21 = vld [vmem:[%s3050_s23 + $0x3c0] sm:$0xff]  ;;  %v339_v22 = vld [vmem:[%s3050_s23 + $0x3c8] sm:$0xff]  ;;  %v2590_v26 = vpack.c.bf16 %v321_v18, %v320_v16  ;;  %v2560_v27 = vpack.c.bf16 %v307_v20, %v306_v19  ;;  %v193_v30 = vld [vmem:[%s3045_s19 + $0x38] sm:$0xff] }
  0x3a   : > { %2577 = vmatprep.subr.bf16.mxu1 %v2576_v43  ;;  %v290_v24 = vld [vmem:[%s3050_s23 + $0x240] sm:$0xff]  ;;  %v191_v25 = vld [vmem:[%s3045_s19 + $0x28] sm:$0xff]  ;;  %v2592_v31 = vpack.c.bf16 %v339_v22, %v338_v21  ;;  %v308_v33 = vld [vmem:[%s3050_s23 + $0x2d0] sm:$0xff] }
  0x3b   : > { %795 = vmatmul.mubr.f32.vlgmr.msra.gmra.mrb[0].mxu0 %v186_v49  ;;  %v291_v28 = vld [vmem:[%s3050_s23 + $0x248] sm:$0xff]  ;;  %v322_v29 = vld [vmem:[%s3050_s23 + $0x340] sm:$0xff]  ;;  %v309_v34 = vld [vmem:[%s3050_s23 + $0x2d8] sm:$0xff] }
  0x3c   : > { %865 = vmatmul.mubr.f32.vlgmr.msra.gmra.mrb[0].mxu1 %v188_v50  ;;  %2547 = vmatpush3.bf16.msra.mxu0 %v2546_v51  ;;  %v323_v32 = vld [vmem:[%s3050_s23 + $0x348] sm:$0xff]  ;;  %v340_v35 = vld [vmem:[%s3050_s23 + $0x3d0] sm:$0xff]  ;;  %v341_v36 = vld [vmem:[%s3050_s23 + $0x3d8] sm:$0xff]  ;;  %v2562_v37 = vpack.c.bf16 %v291_v28, %v290_v24  ;;  %v2564_v39 = vpack.c.bf16 %v309_v34, %v308_v33 }
  0x3d   : > { %2579 = vmatpush3.bf16.msra.mxu1 %v2578_v52  ;;  %2549 = vmatprep.subr.bf16.mxu0 %v2548_v53  ;;  %v2594_v38 = vpack.c.bf16 %v323_v32, %v322_v29  ;;  %v292_v40 = vld [vmem:[%s3050_s23 + $0x250] sm:$0xff]  ;;  %v293_v41 = vld [vmem:[%s3050_s23 + $0x258] sm:$0xff]  ;;  %v2596_v43 = vpack.c.bf16 %v341_v36, %v340_v35  ;;  %v310_v45 = vld [vmem:[%s3050_s23 + $0x2e0] sm:$0xff] }
  0x3e   : > { %2581 = vmatprep.subr.bf16.mxu1 %v2580_v57  ;;  %934 = vmatprep.mubr.f32.mxu0 %v191_v25  ;;  %v324_v42 = vld [vmem:[%s3050_s23 + $0x350] sm:$0xff]  ;;  %v325_v44 = vld [vmem:[%s3050_s23 + $0x358] sm:$0xff]  ;;  %v311_v46 = vld [vmem:[%s3050_s23 + $0x2e8] sm:$0xff]  ;;  %v2566_v49 = vpack.c.bf16 %v293_v41, %v292_v40 }
  0x3f   : > { %1004 = vmatprep.mubr.f32.mxu1 %v193_v30  ;;  %v342_v47 = vld [vmem:[%s3050_s23 + $0x3e0] sm:$0xff]  ;;  %v343_v48 = vld [vmem:[%s3050_s23 + $0x3e8] sm:$0xff]  ;;  %v2598_v50 = vpack.c.bf16 %v325_v44, %v324_v42  ;;  %v2568_v51 = vpack.c.bf16 %v311_v46, %v310_v45  ;;  %v312_v57 = vld [vmem:[%s3050_s23 + $0x2f0] sm:$0xff] }
  0x40   : > { %2551 = vmatpush3.bf16.msra.mxu0 %v2550_v63  ;;  %v294_v52 = vld [vmem:[%s3050_s23 + $0x260] sm:$0xff]  ;;  %v295_v53 = vld [vmem:[%s3050_s23 + $0x268] sm:$0xff]  ;;  %v2600_v55 = vpack.c.bf16 %v343_v48, %v342_v47  ;;  %v313_v58 = vld [vmem:[%s3050_s23 + $0x2f8] sm:$0xff] }
  0x41   : > { %2583 = vmatpush3.bf16.msra.mxu1 %v2582_v0  ;;  %2553 = vmatprep.subr.bf16.mxu0 %v2552_v1  ;;  %v326_v54 = vld [vmem:[%s3050_s23 + $0x360] sm:$0xff]  ;;  %v327_v56 = vld [vmem:[%s3050_s23 + $0x368] sm:$0xff]  ;;  %v344_v59 = vld [vmem:[%s3050_s23 + $0x3f0] sm:$0xff]  ;;  %v2570_v61 = vpack.c.bf16 %v295_v53, %v294_v52  ;;  %v2572_v63 = vpack.c.bf16 %v313_v58, %v312_v57 }
  0x42   : > { %2585 = vmatprep.subr.bf16.mxu1 %v2584_v5  ;;  %v345_v60 = vld [vmem:[%s3050_s23 + $0x3f8] sm:$0xff]  ;;  %v2602_v62 = vpack.c.bf16 %v327_v56, %v326_v54  ;;  %v296_v0 = vld [vmem:[%s3050_s23 + $0x270] sm:$0xff]  ;;  %v362_v5 = vld [vmem:[%s3050_s23 + $0x480] sm:$0xff] }
  0x43   : > { %v297_v1 = vld [vmem:[%s3050_s23 + $0x278] sm:$0xff]  ;;  %v328_v2 = vld [vmem:[%s3050_s23 + $0x370] sm:$0xff]  ;;  %v2604_v3 = vpack.c.bf16 %v345_v60, %v344_v59  ;;  %v363_v6 = vld [vmem:[%s3050_s23 + $0x488] sm:$0xff] }
  0x44   : > { %2555 = vmatpush3.bf16.msra.mxu0 %v2554_v11  ;;  %v329_v4 = vld [vmem:[%s3050_s23 + $0x378] sm:$0xff]  ;;  %v394_v7 = vld [vmem:[%s3050_s23 + $0x580] sm:$0xff]  ;;  %v395_v8 = vld [vmem:[%s3050_s23 + $0x588] sm:$0xff]  ;;  %v2574_v9 = vpack.c.bf16 %v297_v1, %v296_v0  ;;  %v2608_v11 = vpack.c.bf16 %v363_v6, %v362_v5 }
  0x45   : > { %2587 = vmatpush3.bf16.msra.mxu1 %v2586_v12  ;;  %2557 = vmatprep.subr.bf16.mxu0 %v2556_v13  ;;  %v2606_v10 = vpack.c.bf16 %v329_v4, %v328_v2  ;;  %v346_v12 = vld [vmem:[%s3050_s23 + $0x400] sm:$0xff]  ;;  %v347_v13 = vld [vmem:[%s3050_s23 + $0x408] sm:$0xff]  ;;  %v2640_v15 = vpack.c.bf16 %v395_v8, %v394_v7  ;;  %v365_v18 = vld [vmem:[%s3050_s23 + $0x498] sm:$0xff] }
  0x46   : > { %2589 = vmatprep.subr.bf16.mxu1 %v2588_v17  ;;  %v378_v14 = vld [vmem:[%s3050_s23 + $0x500] sm:$0xff]  ;;  %v379_v16 = vld [vmem:[%s3050_s23 + $0x508] sm:$0xff]  ;;  %v364_v17 = vld [vmem:[%s3050_s23 + $0x490] sm:$0xff]  ;;  %v2610_v22 = vpack.c.bf16 %v347_v13, %v346_v12 }
  0x47   : > { %v396_v19 = vld [vmem:[%s3050_s23 + $0x590] sm:$0xff]  ;;  %v397_v20 = vld [vmem:[%s3050_s23 + $0x598] sm:$0xff]  ;;  %v190_v21 = vld [vmem:[%s3045_s19 + $0x20] sm:$0xff]  ;;  %v2642_v24 = vpack.c.bf16 %v379_v16, %v378_v14  ;;  %v2612_v25 = vpack.c.bf16 %v365_v18, %v364_v17 }
  0x48   : > { %2559 = vmatpush3.bf16.msra.mxu0 %v2558_v23  ;;  %v192_v23 = vld [vmem:[%s3045_s19 + $0x30] sm:$0xff]  ;;  %v2644_v29 = vpack.c.bf16 %v397_v20, %v396_v19  ;;  %v381_v30 = vld [vmem:[%s3050_s23 + $0x518] sm:$0xff]  ;;  %v367_v32 = vld [vmem:[%s3050_s23 + $0x4a8] sm:$0xff] }
  0x49   : > { %2591 = vmatpush3.bf16.msra.mxu1 %v2590_v26  ;;  %2561 = vmatprep.subr.bf16.mxu0 %v2560_v27  ;;  %v348_v26 = vld [vmem:[%s3050_s23 + $0x410] sm:$0xff]  ;;  %v349_v27 = vld [vmem:[%s3050_s23 + $0x418] sm:$0xff]  ;;  %v398_v33 = vld [vmem:[%s3050_s23 + $0x5a0] sm:$0xff] }
  0x4a   : > { %2593 = vmatprep.subr.bf16.mxu1 %v2592_v31  ;;  %v380_v28 = vld [vmem:[%s3050_s23 + $0x510] sm:$0xff]  ;;  %v366_v31 = vld [vmem:[%s3050_s23 + $0x4a0] sm:$0xff]  ;;  %v399_v34 = vld [vmem:[%s3050_s23 + $0x5a8] sm:$0xff]  ;;  %v2614_v36 = vpack.c.bf16 %v349_v27, %v348_v26 }
  0x4b   : > { %v195_v35 = vld [vmem:[%s3045_s19 + $0x48] sm:$0xff]  ;;  %v350_v40 = vld [vmem:[%s3050_s23 + $0x420] sm:$0xff]  ;;  %v368_v45 = vld [vmem:[%s3050_s23 + $0x4b0] sm:$0xff] }
  0x4c   : > { %2563 = vmatpush3.bf16.msra.mxu0 %v2562_v37  ;;  %v197_v37 = vld [vmem:[%s3045_s19 + $0x58] sm:$0xff]  ;;  %v351_v41 = vld [vmem:[%s3050_s23 + $0x428] sm:$0xff]  ;;  %v382_v42 = vld [vmem:[%s3050_s23 + $0x520] sm:$0xff] }
  0x4d   : > { %2595 = vmatpush3.bf16.msra.mxu1 %v2594_v38  ;;  %2565 = vmatprep.subr.bf16.mxu0 %v2564_v39  ;;  %v2646_v38 = vpack.c.bf16 %v381_v30, %v380_v28  ;;  %v2616_v39 = vpack.c.bf16 %v367_v32, %v366_v31  ;;  %v383_v44 = vld [vmem:[%s3050_s23 + $0x528] sm:$0xff]  ;;  %v369_v46 = vld [vmem:[%s3050_s23 + $0x4b8] sm:$0xff]  ;;  %v400_v47 = vld [vmem:[%s3050_s23 + $0x5b0] sm:$0xff] }
  0x4e   : > { %2597 = vmatprep.subr.bf16.mxu1 %v2596_v43  ;;  %v2648_v43 = vpack.c.bf16 %v399_v34, %v398_v33  ;;  %v401_v48 = vld [vmem:[%s3050_s23 + $0x5b8] sm:$0xff]  ;;  %v352_v52 = vld [vmem:[%s3050_s23 + $0x430] sm:$0xff]  ;;  %v370_v57 = vld [vmem:[%s3050_s23 + $0x4c0] sm:$0xff] }
  0x4f   : > { %v353_v53 = vld [vmem:[%s3050_s23 + $0x438] sm:$0xff]  ;;  %v384_v54 = vld [vmem:[%s3050_s23 + $0x530] sm:$0xff]  ;;  %v371_v58 = vld [vmem:[%s3050_s23 + $0x4c8] sm:$0xff] }
  0x50   : > { %2567 = vmatpush3.bf16.msra.mxu0 %v2566_v49  ;;  %v2618_v49 = vpack.c.bf16 %v351_v41, %v350_v40  ;;  %v385_v56 = vld [vmem:[%s3050_s23 + $0x538] sm:$0xff]  ;;  %v402_v59 = vld [vmem:[%s3050_s23 + $0x5c0] sm:$0xff]  ;;  %v403_v60 = vld [vmem:[%s3050_s23 + $0x5c8] sm:$0xff] }
  0x51   : > { %2599 = vmatpush3.bf16.msra.mxu1 %v2598_v50  ;;  %2569 = vmatprep.subr.bf16.mxu0 %v2568_v51  ;;  %v2650_v50 = vpack.c.bf16 %v383_v44, %v382_v42  ;;  %v2620_v51 = vpack.c.bf16 %v369_v46, %v368_v45  ;;  %v354_v0 = vld [vmem:[%s3050_s23 + $0x440] sm:$0xff]  ;;  %v355_v1 = vld [vmem:[%s3050_s23 + $0x448] sm:$0xff]  ;;  %v372_v5 = vld [vmem:[%s3050_s23 + $0x4d0] sm:$0xff] }
  0x52   : > { %2601 = vmatprep.subr.bf16.mxu1 %v2600_v55  ;;  %v2652_v55 = vpack.c.bf16 %v401_v48, %v400_v47  ;;  %v386_v2 = vld [vmem:[%s3050_s23 + $0x540] sm:$0xff]  ;;  %v387_v4 = vld [vmem:[%s3050_s23 + $0x548] sm:$0xff]  ;;  %v373_v6 = vld [vmem:[%s3050_s23 + $0x4d8] sm:$0xff] }
  0x53   : > { %v404_v7 = vld [vmem:[%s3050_s23 + $0x5d0] sm:$0xff]  ;;  %v405_v8 = vld [vmem:[%s3050_s23 + $0x5d8] sm:$0xff]  ;;  %v374_v17 = vld [vmem:[%s3050_s23 + $0x4e0] sm:$0xff] }
  0x54   : > { %2571 = vmatpush3.bf16.msra.mxu0 %v2570_v61  ;;  %v2622_v61 = vpack.c.bf16 %v353_v53, %v352_v52  ;;  %v356_v12 = vld [vmem:[%s3050_s23 + $0x450] sm:$0xff]  ;;  %v357_v13 = vld [vmem:[%s3050_s23 + $0x458] sm:$0xff]  ;;  %v375_v18 = vld [vmem:[%s3050_s23 + $0x4e8] sm:$0xff] }
  0x55   : > { %2603 = vmatpush3.bf16.msra.mxu1 %v2602_v62  ;;  %2573 = vmatprep.subr.bf16.mxu0 %v2572_v63  ;;  %v2654_v62 = vpack.c.bf16 %v385_v56, %v384_v54  ;;  %v2624_v63 = vpack.c.bf16 %v371_v58, %v370_v57  ;;  %v388_v14 = vld [vmem:[%s3050_s23 + $0x550] sm:$0xff]  ;;  %v389_v16 = vld [vmem:[%s3050_s23 + $0x558] sm:$0xff]  ;;  %v406_v19 = vld [vmem:[%s3050_s23 + $0x5e0] sm:$0xff] }
  0x56   : > { %2605 = vmatprep.subr.bf16.mxu1 %v2604_v3  ;;  %v2656_v3 = vpack.c.bf16 %v403_v60, %v402_v59  ;;  %v407_v20 = vld [vmem:[%s3050_s23 + $0x5e8] sm:$0xff]  ;;  %v390_v26 = vld [vmem:[%s3050_s23 + $0x560] sm:$0xff]  ;;  %v377_v30 = vld [vmem:[%s3050_s23 + $0x4f8] sm:$0xff] }
  0x57   : > { %v2664_v27 = vpack.c.bf16 %v407_v20, %v406_v19  ;;  %v391_v28 = vld [vmem:[%s3050_s23 + $0x568] sm:$0xff]  ;;  %v408_v31 = vld [vmem:[%s3050_s23 + $0x5f0] sm:$0xff]  ;;  %v409_v32 = vld [vmem:[%s3050_s23 + $0x5f8] sm:$0xff] }
  0x58   : > { %2575 = vmatpush3.bf16.msra.mxu0 %v2574_v9  ;;  %v2626_v9 = vpack.c.bf16 %v355_v1, %v354_v0  ;;  %v2666_v34 = vpack.c.bf16 %v391_v28, %v390_v26  ;;  %v393_v40 = vld [vmem:[%s3050_s23 + $0x578] sm:$0xff]  ;;  %v426_v41 = vld [vmem:[%s3050_s23 + $0x680] sm:$0xff]  ;;  %v427_v42 = vld [vmem:[%s3050_s23 + $0x688] sm:$0xff] }
  0x59   : > { %2607 = vmatpush3.bf16.msra.mxu1 %v2606_v10  ;;  %2609 = vmatprep.subr.bf16.mxu0 %v2608_v11  ;;  %v2658_v10 = vpack.c.bf16 %v387_v4, %v386_v2  ;;  %v2628_v11 = vpack.c.bf16 %v373_v6, %v372_v5  ;;  %v459_v44 = vld [vmem:[%s3050_s23 + $0x788] sm:$0xff]  ;;  %v2672_v47 = vpack.c.bf16 %v427_v42, %v426_v41  ;;  %v410_v48 = vld [vmem:[%s3050_s23 + $0x600] sm:$0xff]  ;;  %v428_v53 = vld [vmem:[%s3050_s23 + $0x690] sm:$0xff] }
  0x5a   : > { %2641 = vmatprep.subr.bf16.mxu1 %v2640_v15  ;;  %v2660_v15 = vpack.c.bf16 %v405_v8, %v404_v7  ;;  %v443_v52 = vld [vmem:[%s3050_s23 + $0x708] sm:$0xff]  ;;  %v429_v54 = vld [vmem:[%s3050_s23 + $0x698] sm:$0xff]  ;;  %v194_v57 = vld [vmem:[%s3045_s19 + $0x40] sm:$0xff] }
  0x5b   : > { %935 = vmatmul.mubr.f32.vlgmr.msra.gmra.mrb[2].mxu0 %v190_v21  ;;  %v2630_v21 = vpack.c.bf16 %v357_v13, %v356_v12  ;;  %v461_v56 = vld [vmem:[%s3050_s23 + $0x798] sm:$0xff]  ;;  %v196_v59 = vld [vmem:[%s3045_s19 + $0x50] sm:$0xff]  ;;  %v431_v4 = vld [vmem:[%s3050_s23 + $0x6a8] sm:$0xff] }
  0x5c   : > { %2611 = vmatpush3.bf16.msra.mxu0 %v2610_v22  ;;  %1005 = vmatmul.mubr.f32.vlgmr.msra.gmra.mrb[2].mxu1 %v192_v23  ;;  %v2662_v22 = vpack.c.bf16 %v389_v16, %v388_v14  ;;  %v2632_v23 = vpack.c.bf16 %v375_v18, %v374_v17  ;;  %v444_v0 = vld [vmem:[%s3050_s23 + $0x710] sm:$0xff]  ;;  %v445_v2 = vld [vmem:[%s3050_s23 + $0x718] sm:$0xff]  ;;  %v462_v5 = vld [vmem:[%s3050_s23 + $0x7a0] sm:$0xff] }
  0x5d   : > { %2643 = vmatpush3.bf16.msra.mxu1 %v2642_v24  ;;  %2613 = vmatprep.subr.bf16.mxu0 %v2612_v25  ;;  %v358_v24 = vld [vmem:[%s3050_s23 + $0x460] sm:$0xff]  ;;  %v359_v25 = vld [vmem:[%s3050_s23 + $0x468] sm:$0xff]  ;;  %v432_v17 = vld [vmem:[%s3050_s23 + $0x6b0] sm:$0xff] }
  0x5e   : > { %2645 = vmatprep.subr.bf16.mxu1 %v2644_v29  ;;  %1074 = vmatprep.mubr.f32.mxu0 %v195_v35  ;;  %v376_v29 = vld [vmem:[%s3050_s23 + $0x4f0] sm:$0xff]  ;;  %v2634_v33 = vpack.c.bf16 %v359_v25, %v358_v24  ;;  %v463_v6 = vld [vmem:[%s3050_s23 + $0x7a8] sm:$0xff]  ;;  %v414_v12 = vld [vmem:[%s3050_s23 + $0x620] sm:$0xff] }
  0x5f   : > { %1144 = vmatprep.mubr.f32.mxu1 %v197_v37  ;;  %v2636_v35 = vpack.c.bf16 %v377_v30, %v376_v29  ;;  %v361_v37 = vld [vmem:[%s3050_s23 + $0x478] sm:$0xff]  ;;  %v199_v7 = vld [vmem:[%s3045_s19 + $0x68] sm:$0xff]  ;;  %v446_v14 = vld [vmem:[%s3050_s23 + $0x720] sm:$0xff] }
  0x60   : > { %2615 = vmatpush3.bf16.msra.mxu0 %v2614_v36  ;;  %v360_v36 = vld [vmem:[%s3050_s23 + $0x470] sm:$0xff]  ;;  %v415_v13 = vld [vmem:[%s3050_s23 + $0x628] sm:$0xff]  ;;  %v433_v18 = vld [vmem:[%s3050_s23 + $0x6b8] sm:$0xff] }
  0x61   : > { %2647 = vmatpush3.bf16.msra.mxu1 %v2646_v38  ;;  %2617 = vmatprep.subr.bf16.mxu0 %v2616_v39  ;;  %v392_v38 = vld [vmem:[%s3050_s23 + $0x570] sm:$0xff]  ;;  %v2668_v39 = vpack.c.bf16 %v409_v32, %v408_v31  ;;  %v2638_v45 = vpack.c.bf16 %v361_v37, %v360_v36  ;;  %v447_v16 = vld [vmem:[%s3050_s23 + $0x728] sm:$0xff]  ;;  %v465_v20 = vld [vmem:[%s3050_s23 + $0x7b8] sm:$0xff] }
  0x62   : > { %2649 = vmatprep.subr.bf16.mxu1 %v2648_v43  ;;  %v458_v43 = vld [vmem:[%s3050_s23 + $0x780] sm:$0xff]  ;;  %v2670_v46 = vpack.c.bf16 %v393_v40, %v392_v38  ;;  %v464_v19 = vld [vmem:[%s3050_s23 + $0x7b0] sm:$0xff]  ;;  %v417_v25 = vld [vmem:[%s3050_s23 + $0x638] sm:$0xff] }
  0x63   : > { %v416_v24 = vld [vmem:[%s3050_s23 + $0x630] sm:$0xff]  ;;  %v449_v28 = vld [vmem:[%s3050_s23 + $0x738] sm:$0xff]  ;;  %v434_v29 = vld [vmem:[%s3050_s23 + $0x6c0] sm:$0xff] }
  0x64   : > { %2619 = vmatpush3.bf16.msra.mxu0 %v2618_v49  ;;  %v411_v49 = vld [vmem:[%s3050_s23 + $0x608] sm:$0xff]  ;;  %v448_v26 = vld [vmem:[%s3050_s23 + $0x730] sm:$0xff]  ;;  %v466_v31 = vld [vmem:[%s3050_s23 + $0x7c0] sm:$0xff] }
  0x65   : > { %2651 = vmatpush3.bf16.msra.mxu1 %v2650_v50  ;;  %2621 = vmatprep.subr.bf16.mxu0 %v2620_v51  ;;  %v442_v50 = vld [vmem:[%s3050_s23 + $0x700] sm:$0xff]  ;;  %v2704_v51 = vpack.c.bf16 %v459_v44, %v458_v43  ;;  %v2674_v58 = vpack.c.bf16 %v411_v49, %v410_v48  ;;  %v435_v30 = vld [vmem:[%s3050_s23 + $0x6c8] sm:$0xff]  ;;  %v436_v41 = vld [vmem:[%s3050_s23 + $0x6d0] sm:$0xff] }
  0x66   : > { %2653 = vmatprep.subr.bf16.mxu1 %v2652_v55  ;;  %v460_v55 = vld [vmem:[%s3050_s23 + $0x790] sm:$0xff]  ;;  %v2706_v60 = vpack.c.bf16 %v443_v52, %v442_v50  ;;  %v467_v32 = vld [vmem:[%s3050_s23 + $0x7c8] sm:$0xff]  ;;  %v418_v36 = vld [vmem:[%s3050_s23 + $0x640] sm:$0xff] }
  0x67   : > { %v2708_v1 = vpack.c.bf16 %v461_v56, %v460_v55  ;;  %v419_v37 = vld [vmem:[%s3050_s23 + $0x648] sm:$0xff]  ;;  %v450_v38 = vld [vmem:[%s3050_s23 + $0x740] sm:$0xff]  ;;  %v437_v42 = vld [vmem:[%s3050_s23 + $0x6d8] sm:$0xff] }
  0x68   : > { %2623 = vmatpush3.bf16.msra.mxu0 %v2622_v61  ;;  %v2676_v61 = vpack.c.bf16 %v429_v54, %v428_v53  ;;  %v451_v40 = vld [vmem:[%s3050_s23 + $0x748] sm:$0xff]  ;;  %v468_v43 = vld [vmem:[%s3050_s23 + $0x7d0] sm:$0xff]  ;;  %v469_v44 = vld [vmem:[%s3050_s23 + $0x7d8] sm:$0xff] }
  0x69   : > { %2655 = vmatpush3.bf16.msra.mxu1 %v2654_v62  ;;  %2625 = vmatprep.subr.bf16.mxu0 %v2624_v63  ;;  %v412_v62 = vld [vmem:[%s3050_s23 + $0x610] sm:$0xff]  ;;  %v413_v63 = vld [vmem:[%s3050_s23 + $0x618] sm:$0xff]  ;;  %v438_v53 = vld [vmem:[%s3050_s23 + $0x6e0] sm:$0xff] }
  0x6a   : > { %2657 = vmatprep.subr.bf16.mxu1 %v2656_v3  ;;  %v430_v3 = vld [vmem:[%s3050_s23 + $0x6a0] sm:$0xff]  ;;  %v2678_v8 = vpack.c.bf16 %v413_v63, %v412_v62  ;;  %v420_v48 = vld [vmem:[%s3050_s23 + $0x650] sm:$0xff]  ;;  %v421_v49 = vld [vmem:[%s3050_s23 + $0x658] sm:$0xff] }
  0x6b   : > { %v452_v50 = vld [vmem:[%s3050_s23 + $0x750] sm:$0xff]  ;;  %v453_v52 = vld [vmem:[%s3050_s23 + $0x758] sm:$0xff]  ;;  %v439_v54 = vld [vmem:[%s3050_s23 + $0x6e8] sm:$0xff] }
  0x6c   : > { %2627 = vmatpush3.bf16.msra.mxu0 %v2626_v9  ;;  %v201_v9 = vld [vmem:[%s3045_s19 + $0x78] sm:$0xff]  ;;  %v470_v55 = vld [vmem:[%s3050_s23 + $0x7e0] sm:$0xff]  ;;  %v471_v56 = vld [vmem:[%s3050_s23 + $0x7e8] sm:$0xff] }
  0x6d   : > { %2659 = vmatpush3.bf16.msra.mxu1 %v2658_v10  ;;  %2629 = vmatprep.subr.bf16.mxu0 %v2628_v11  ;;  %v2710_v10 = vpack.c.bf16 %v445_v2, %v444_v0  ;;  %v2680_v11 = vpack.c.bf16 %v431_v4, %v430_v3  ;;  %v454_v62 = vld [vmem:[%s3050_s23 + $0x760] sm:$0xff]  ;;  %v2728_v63 = vpack.c.bf16 %v471_v56, %v470_v55  ;;  %v455_v0 = vld [vmem:[%s3050_s23 + $0x768] sm:$0xff]  ;;  %v441_v2 = vld [vmem:[%s3050_s23 + $0x6f8] sm:$0xff] }
  0x6e   : > { %2661 = vmatprep.subr.bf16.mxu1 %v2660_v15  ;;  %v2712_v15 = vpack.c.bf16 %v463_v6, %v462_v5  ;;  %v472_v3 = vld [vmem:[%s3050_s23 + $0x7f0] sm:$0xff]  ;;  %v473_v4 = vld [vmem:[%s3050_s23 + $0x7f8] sm:$0xff]  ;;  %v2730_v6 = vpack.c.bf16 %v455_v0, %v454_v62 }
  0x6f   : > { %v528_v55 = vld [vmem:[%s3050_s23 + $0x9b0] sm:$0xff]  ;;  %v529_v56 = vld [vmem:[%s3050_s23 + $0x9b8] sm:$0xff] }
  0x70   : > { %2631 = vmatpush3.bf16.msra.mxu0 %v2630_v21  ;;  %v2682_v21 = vpack.c.bf16 %v415_v13, %v414_v12  ;;  %v457_v12 = vld [vmem:[%s3050_s23 + $0x778] sm:$0xff]  ;;  %v490_v13 = vld [vmem:[%s3050_s23 + $0x880] sm:$0xff]  ;;  %v512_v62 = vld [vmem:[%s3050_s23 + $0x930] sm:$0xff] }
  0x71   : > { %2663 = vmatpush3.bf16.msra.mxu1 %v2662_v22  ;;  %2633 = vmatprep.subr.bf16.mxu0 %v2632_v23  ;;  %v2714_v22 = vpack.c.bf16 %v447_v16, %v446_v14  ;;  %v2684_v23 = vpack.c.bf16 %v433_v18, %v432_v17  ;;  %v491_v14 = vld [vmem:[%s3050_s23 + $0x888] sm:$0xff]  ;;  %v513_v0 = vld [vmem:[%s3050_s23 + $0x938] sm:$0xff] }
  0x72   : > { %2665 = vmatprep.subr.bf16.mxu1 %v2664_v27  ;;  %v2716_v27 = vpack.c.bf16 %v465_v20, %v464_v19  ;;  %v523_v16 = vld [vmem:[%s3050_s23 + $0x988] sm:$0xff]  ;;  %v2736_v19 = vpack.c.bf16 %v491_v14, %v490_v13  ;;  %v474_v20 = vld [vmem:[%s3050_s23 + $0x800] sm:$0xff]  ;;  %v500_v13 = vld [vmem:[%s3050_s23 + $0x8d0] sm:$0xff] }
  0x73   : > { %v501_v14 = vld [vmem:[%s3050_s23 + $0x8d8] sm:$0xff] }
  0x74   : > { %2635 = vmatpush3.bf16.msra.mxu0 %v2634_v33  ;;  %v2686_v33 = vpack.c.bf16 %v417_v25, %v416_v24  ;;  %v507_v24 = vld [vmem:[%s3050_s23 + $0x908] sm:$0xff]  ;;  %v492_v25 = vld [vmem:[%s3050_s23 + $0x890] sm:$0xff] }
  0x75   : > { %2667 = vmatpush3.bf16.msra.mxu1 %v2666_v34  ;;  %2637 = vmatprep.subr.bf16.mxu0 %v2636_v35  ;;  %v2718_v34 = vpack.c.bf16 %v449_v28, %v448_v26  ;;  %v2688_v35 = vpack.c.bf16 %v435_v30, %v434_v29  ;;  %v493_v26 = vld [vmem:[%s3050_s23 + $0x898] sm:$0xff]  ;;  %v198_v29 = vld [vmem:[%s3045_s19 + $0x60] sm:$0xff] }
  0x76   : > { %2669 = vmatprep.subr.bf16.mxu1 %v2668_v39  ;;  %v2720_v39 = vpack.c.bf16 %v467_v32, %v466_v31  ;;  %v525_v28 = vld [vmem:[%s3050_s23 + $0x998] sm:$0xff]  ;;  %v200_v31 = vld [vmem:[%s3045_s19 + $0x70] sm:$0xff] }
  0x78   : > { %2639 = vmatpush3.bf16.msra.mxu0 %v2638_v45  ;;  %v2690_v45 = vpack.c.bf16 %v419_v37, %v418_v36  ;;  %v508_v36 = vld [vmem:[%s3050_s23 + $0x910] sm:$0xff] }
  0x79   : > { %2671 = vmatpush3.bf16.msra.mxu1 %v2670_v46  ;;  %2673 = vmatprep.subr.bf16.mxu0 %v2672_v47  ;;  %v2722_v46 = vpack.c.bf16 %v451_v40, %v450_v38  ;;  %v2692_v47 = vpack.c.bf16 %v437_v42, %v436_v41  ;;  %v509_v38 = vld [vmem:[%s3050_s23 + $0x918] sm:$0xff]  ;;  %v495_v40 = vld [vmem:[%s3050_s23 + $0x8a8] sm:$0xff]  ;;  %v526_v41 = vld [vmem:[%s3050_s23 + $0x9a0] sm:$0xff] }
  0x7a   : > { %2705 = vmatprep.subr.bf16.mxu1 %v2704_v51  ;;  %v2724_v51 = vpack.c.bf16 %v469_v44, %v468_v43  ;;  %v527_v42 = vld [vmem:[%s3050_s23 + $0x9a8] sm:$0xff] }
  0x7b   : > { %1075 = vmatmul.mubr.f32.vlgmr.msra.gmra.mrb[4].mxu0 %v194_v57  ;;  %v2694_v57 = vpack.c.bf16 %v421_v49, %v420_v48  ;;  %v203_v43 = vld [vmem:[%s3045_s19 + $0x88] sm:$0xff]  ;;  %v478_v48 = vld [vmem:[%s3050_s23 + $0x820] sm:$0xff] }
  0x7c   : > { %2675 = vmatpush3.bf16.msra.mxu0 %v2674_v58  ;;  %1145 = vmatmul.mubr.f32.vlgmr.msra.gmra.mrb[4].mxu1 %v196_v59  ;;  %v2726_v58 = vpack.c.bf16 %v453_v52, %v452_v50  ;;  %v2696_v59 = vpack.c.bf16 %v439_v54, %v438_v53  ;;  %v479_v49 = vld [vmem:[%s3050_s23 + $0x828] sm:$0xff]  ;;  %v510_v50 = vld [vmem:[%s3050_s23 + $0x920] sm:$0xff]  ;;  %v496_v53 = vld [vmem:[%s3050_s23 + $0x8b0] sm:$0xff] }
  0x7d   : > { %2707 = vmatpush3.bf16.msra.mxu1 %v2706_v60  ;;  %2677 = vmatprep.subr.bf16.mxu0 %v2676_v61  ;;  %v422_v60 = vld [vmem:[%s3050_s23 + $0x660] sm:$0xff]  ;;  %v423_v61 = vld [vmem:[%s3050_s23 + $0x668] sm:$0xff]  ;;  %v497_v54 = vld [vmem:[%s3050_s23 + $0x8b8] sm:$0xff] }
  0x7e   : > { %2709 = vmatprep.subr.bf16.mxu1 %v2708_v1  ;;  %1214 = vmatprep.mubr.f32.mxu0 %v199_v7  ;;  %v440_v1 = vld [vmem:[%s3050_s23 + $0x6f0] sm:$0xff]  ;;  %v2698_v5 = vpack.c.bf16 %v423_v61, %v422_v60  ;;  %v511_v52 = vld [vmem:[%s3050_s23 + $0x928] sm:$0xff]  ;;  %v481_v61 = vld [vmem:[%s3050_s23 + $0x838] sm:$0xff] }
  0x7f   : > { %1284 = vmatprep.mubr.f32.mxu1 %v201_v9  ;;  %v2700_v7 = vpack.c.bf16 %v441_v2, %v440_v1  ;;  %v425_v9 = vld [vmem:[%s3050_s23 + $0x678] sm:$0xff]  ;;  %v480_v60 = vld [vmem:[%s3050_s23 + $0x830] sm:$0xff]  ;;  %v498_v1 = vld [vmem:[%s3050_s23 + $0x8c0] sm:$0xff] }
  0x80   : > { %2679 = vmatpush3.bf16.msra.mxu0 %v2678_v8  ;;  %v424_v8 = vld [vmem:[%s3050_s23 + $0x670] sm:$0xff]  ;;  %v499_v2 = vld [vmem:[%s3050_s23 + $0x8c8] sm:$0xff] }
  0x81   : > { %2711 = vmatpush3.bf16.msra.mxu1 %v2710_v10  ;;  %2681 = vmatprep.subr.bf16.mxu0 %v2680_v11  ;;  %v456_v10 = vld [vmem:[%s3050_s23 + $0x770] sm:$0xff]  ;;  %v2732_v11 = vpack.c.bf16 %v473_v4, %v472_v3  ;;  %v2702_v17 = vpack.c.bf16 %v425_v9, %v424_v8  ;;  %v530_v3 = vld [vmem:[%s3050_s23 + $0x9c0] sm:$0xff]  ;;  %v531_v4 = vld [vmem:[%s3050_s23 + $0x9c8] sm:$0xff] }
  0x82   : > { %2713 = vmatprep.subr.bf16.mxu1 %v2712_v15  ;;  %v522_v15 = vld [vmem:[%s3050_s23 + $0x980] sm:$0xff]  ;;  %v2734_v18 = vpack.c.bf16 %v457_v12, %v456_v10  ;;  %v483_v9 = vld [vmem:[%s3050_s23 + $0x848] sm:$0xff] }
  0x83   : > { %v482_v8 = vld [vmem:[%s3050_s23 + $0x840] sm:$0xff]  ;;  %v515_v12 = vld [vmem:[%s3050_s23 + $0x948] sm:$0xff] }
  0x84   : > { %2683 = vmatpush3.bf16.msra.mxu0 %v2682_v21  ;;  %v475_v21 = vld [vmem:[%s3050_s23 + $0x808] sm:$0xff]  ;;  %v514_v10 = vld [vmem:[%s3050_s23 + $0x940] sm:$0xff] }
  0x85   : > { %2715 = vmatpush3.bf16.msra.mxu1 %v2714_v22  ;;  %2685 = vmatprep.subr.bf16.mxu0 %v2684_v23  ;;  %v506_v22 = vld [vmem:[%s3050_s23 + $0x900] sm:$0xff]  ;;  %v2768_v23 = vpack.c.bf16 %v523_v16, %v522_v15  ;;  %v2738_v30 = vpack.c.bf16 %v475_v21, %v474_v20  ;;  %v532_v15 = vld [vmem:[%s3050_s23 + $0x9d0] sm:$0xff]  ;;  %v533_v16 = vld [vmem:[%s3050_s23 + $0x9d8] sm:$0xff] }
  0x86   : > { %2717 = vmatprep.subr.bf16.mxu1 %v2716_v27  ;;  %v524_v27 = vld [vmem:[%s3050_s23 + $0x990] sm:$0xff]  ;;  %v2770_v32 = vpack.c.bf16 %v507_v24, %v506_v22  ;;  %v485_v21 = vld [vmem:[%s3050_s23 + $0x858] sm:$0xff] }
  0x87   : > { %v2772_v37 = vpack.c.bf16 %v525_v28, %v524_v27  ;;  %v484_v20 = vld [vmem:[%s3050_s23 + $0x850] sm:$0xff]  ;;  %v517_v24 = vld [vmem:[%s3050_s23 + $0x958] sm:$0xff]  ;;  %v534_v27 = vld [vmem:[%s3050_s23 + $0x9e0] sm:$0xff] }
  0x88   : > { %2687 = vmatpush3.bf16.msra.mxu0 %v2686_v33  ;;  %v2740_v33 = vpack.c.bf16 %v493_v26, %v492_v25  ;;  %v516_v22 = vld [vmem:[%s3050_s23 + $0x950] sm:$0xff]  ;;  %v502_v25 = vld [vmem:[%s3050_s23 + $0x8e0] sm:$0xff]  ;;  %v503_v26 = vld [vmem:[%s3050_s23 + $0x8e8] sm:$0xff] }
  0x89   : > { %2719 = vmatpush3.bf16.msra.mxu1 %v2718_v34  ;;  %2689 = vmatprep.subr.bf16.mxu0 %v2688_v35  ;;  %v476_v34 = vld [vmem:[%s3050_s23 + $0x810] sm:$0xff]  ;;  %v477_v35 = vld [vmem:[%s3050_s23 + $0x818] sm:$0xff]  ;;  %v535_v28 = vld [vmem:[%s3050_s23 + $0x9e8] sm:$0xff] }
  0x8a   : > { %2721 = vmatprep.subr.bf16.mxu1 %v2720_v39  ;;  %v494_v39 = vld [vmem:[%s3050_s23 + $0x8a0] sm:$0xff]  ;;  %v2742_v44 = vpack.c.bf16 %v477_v35, %v476_v34  ;;  %v2792_v35 = vpack.c.bf16 %v535_v28, %v534_v27  ;;  %v592_v27 = vld [vmem:[%s3050_s23 + $0xbb0] sm:$0xff]  ;;  %v593_v28 = vld [vmem:[%s3050_s23 + $0xbb8] sm:$0xff] }
  0x8b   : > { %v518_v34 = vld [vmem:[%s3050_s23 + $0x960] sm:$0xff] }
  0x8c   : > { %2691 = vmatpush3.bf16.msra.mxu0 %v2690_v45  ;;  %v205_v45 = vld [vmem:[%s3045_s19 + $0x98] sm:$0xff] }
  0x8d   : > { %2723 = vmatpush3.bf16.msra.mxu1 %v2722_v46  ;;  %2693 = vmatprep.subr.bf16.mxu0 %v2692_v47  ;;  %v2774_v46 = vpack.c.bf16 %v509_v38, %v508_v36  ;;  %v2744_v47 = vpack.c.bf16 %v495_v40, %v494_v39  ;;  %v519_v36 = vld [vmem:[%s3050_s23 + $0x968] sm:$0xff]  ;;  %v505_v38 = vld [vmem:[%s3050_s23 + $0x8f8] sm:$0xff]  ;;  %v536_v39 = vld [vmem:[%s3050_s23 + $0x9f0] sm:$0xff] }
  0x8e   : > { %2725 = vmatprep.subr.bf16.mxu1 %v2724_v51  ;;  %v2776_v51 = vpack.c.bf16 %v527_v42, %v526_v41  ;;  %v537_v40 = vld [vmem:[%s3050_s23 + $0x9f8] sm:$0xff]  ;;  %v2794_v42 = vpack.c.bf16 %v519_v36, %v518_v34  ;;  %v576_v34 = vld [vmem:[%s3050_s23 + $0xb30] sm:$0xff] }
  0x8f   : > { %v577_v36 = vld [vmem:[%s3050_s23 + $0xb38] sm:$0xff] }
  0x90   : > { %2695 = vmatpush3.bf16.msra.mxu0 %v2694_v57  ;;  %v2746_v57 = vpack.c.bf16 %v479_v49, %v478_v48  ;;  %v521_v48 = vld [vmem:[%s3050_s23 + $0x978] sm:$0xff]  ;;  %v554_v49 = vld [vmem:[%s3050_s23 + $0xa80] sm:$0xff] }
  0x91   : > { %2727 = vmatpush3.bf16.msra.mxu1 %v2726_v58  ;;  %2697 = vmatprep.subr.bf16.mxu0 %v2696_v59  ;;  %v2778_v58 = vpack.c.bf16 %v511_v52, %v510_v50  ;;  %v2748_v59 = vpack.c.bf16 %v497_v54, %v496_v53  ;;  %v555_v50 = vld [vmem:[%s3050_s23 + $0xa88] sm:$0xff] }
  0x92   : > { %2729 = vmatprep.subr.bf16.mxu1 %v2728_v63  ;;  %v2780_v63 = vpack.c.bf16 %v529_v56, %v528_v55  ;;  %v587_v52 = vld [vmem:[%s3050_s23 + $0xb88] sm:$0xff]  ;;  %v2800_v55 = vpack.c.bf16 %v555_v50, %v554_v49  ;;  %v538_v56 = vld [vmem:[%s3050_s23 + $0xa00] sm:$0xff]  ;;  %v564_v49 = vld [vmem:[%s3050_s23 + $0xad0] sm:$0xff] }
  0x93   : > { %v565_v50 = vld [vmem:[%s3050_s23 + $0xad8] sm:$0xff] }
  0x94   : > { %2699 = vmatpush3.bf16.msra.mxu0 %v2698_v5  ;;  %v2750_v5 = vpack.c.bf16 %v481_v61, %v480_v60  ;;  %v571_v60 = vld [vmem:[%s3050_s23 + $0xb08] sm:$0xff]  ;;  %v556_v61 = vld [vmem:[%s3050_s23 + $0xa90] sm:$0xff] }
  0x95   : > { %2731 = vmatpush3.bf16.msra.mxu1 %v2730_v6  ;;  %2701 = vmatprep.subr.bf16.mxu0 %v2700_v7  ;;  %v2782_v6 = vpack.c.bf16 %v513_v0, %v512_v62  ;;  %v2752_v7 = vpack.c.bf16 %v499_v2, %v498_v1  ;;  %v557_v62 = vld [vmem:[%s3050_s23 + $0xa98] sm:$0xff]  ;;  %v202_v1 = vld [vmem:[%s3045_s19 + $0x80] sm:$0xff] }
  0x96   : > { %2733 = vmatprep.subr.bf16.mxu1 %v2732_v11  ;;  %v2784_v11 = vpack.c.bf16 %v531_v4, %v530_v3  ;;  %v589_v0 = vld [vmem:[%s3050_s23 + $0xb98] sm:$0xff]  ;;  %v204_v3 = vld [vmem:[%s3045_s19 + $0x90] sm:$0xff] }
  0x98   : > { %2703 = vmatpush3.bf16.msra.mxu0 %v2702_v17  ;;  %v2754_v17 = vpack.c.bf16 %v483_v9, %v482_v8  ;;  %v572_v8 = vld [vmem:[%s3050_s23 + $0xb10] sm:$0xff] }
  0x99   : > { %2735 = vmatpush3.bf16.msra.mxu1 %v2734_v18  ;;  %2737 = vmatprep.subr.bf16.mxu0 %v2736_v19  ;;  %v2786_v18 = vpack.c.bf16 %v515_v12, %v514_v10  ;;  %v2756_v19 = vpack.c.bf16 %v501_v14, %v500_v13  ;;  %v573_v10 = vld [vmem:[%s3050_s23 + $0xb18] sm:$0xff]  ;;  %v559_v12 = vld [vmem:[%s3050_s23 + $0xaa8] sm:$0xff]  ;;  %v590_v13 = vld [vmem:[%s3050_s23 + $0xba0] sm:$0xff] }
  0x9a   : > { %2769 = vmatprep.subr.bf16.mxu1 %v2768_v23  ;;  %v2788_v23 = vpack.c.bf16 %v533_v16, %v532_v15  ;;  %v591_v14 = vld [vmem:[%s3050_s23 + $0xba8] sm:$0xff] }
  0x9b   : > { %1215 = vmatmul.mubr.f32.vlgmr.msra.gmra.mrb[6].mxu0 %v198_v29  ;;  %v2758_v29 = vpack.c.bf16 %v485_v21, %v484_v20  ;;  %v207_v15 = vld [vmem:[%s3045_s19 + $0xa8] sm:$0xff]  ;;  %v542_v20 = vld [vmem:[%s3050_s23 + $0xa20] sm:$0xff] }
  0x9c   : > { %2739 = vmatpush3.bf16.msra.mxu0 %v2738_v30  ;;  %1285 = vmatmul.mubr.f32.vlgmr.msra.gmra.mrb[6].mxu1 %v200_v31  ;;  %v2790_v30 = vpack.c.bf16 %v517_v24, %v516_v22  ;;  %v2760_v31 = vpack.c.bf16 %v503_v26, %v502_v25  ;;  %v543_v21 = vld [vmem:[%s3050_s23 + $0xa28] sm:$0xff]  ;;  %v574_v22 = vld [vmem:[%s3050_s23 + $0xb20] sm:$0xff]  ;;  %v560_v25 = vld [vmem:[%s3050_s23 + $0xab0] sm:$0xff] }
  0x9d   : > { %2771 = vmatpush3.bf16.msra.mxu1 %v2770_v32  ;;  %2741 = vmatprep.subr.bf16.mxu0 %v2740_v33  ;;  %v486_v32 = vld [vmem:[%s3050_s23 + $0x860] sm:$0xff]  ;;  %v487_v33 = vld [vmem:[%s3050_s23 + $0x868] sm:$0xff]  ;;  %v561_v26 = vld [vmem:[%s3050_s23 + $0xab8] sm:$0xff] }
  0x9e   : > { %2773 = vmatprep.subr.bf16.mxu1 %v2772_v37  ;;  %1354 = vmatprep.mubr.f32.mxu0 %v203_v43  ;;  %v504_v37 = vld [vmem:[%s3050_s23 + $0x8f0] sm:$0xff]  ;;  %v2762_v41 = vpack.c.bf16 %v487_v33, %v486_v32  ;;  %v575_v24 = vld [vmem:[%s3050_s23 + $0xb28] sm:$0xff]  ;;  %v545_v33 = vld [vmem:[%s3050_s23 + $0xa38] sm:$0xff] }
  0x9f   : > { %1424 = vmatprep.mubr.f32.mxu1 %v205_v45  ;;  %v2764_v43 = vpack.c.bf16 %v505_v38, %v504_v37  ;;  %v489_v45 = vld [vmem:[%s3050_s23 + $0x878] sm:$0xff]  ;;  %v544_v32 = vld [vmem:[%s3050_s23 + $0xa30] sm:$0xff]  ;;  %v562_v37 = vld [vmem:[%s3050_s23 + $0xac0] sm:$0xff] }
  0xa0   : > { %2743 = vmatpush3.bf16.msra.mxu0 %v2742_v44  ;;  %v488_v44 = vld [vmem:[%s3050_s23 + $0x870] sm:$0xff]  ;;  %v563_v38 = vld [vmem:[%s3050_s23 + $0xac8] sm:$0xff] }
  0xa1   : > { %2775 = vmatpush3.bf16.msra.mxu1 %v2774_v46  ;;  %2745 = vmatprep.subr.bf16.mxu0 %v2744_v47  ;;  %v520_v46 = vld [vmem:[%s3050_s23 + $0x970] sm:$0xff]  ;;  %v2796_v47 = vpack.c.bf16 %v537_v40, %v536_v39  ;;  %v2766_v53 = vpack.c.bf16 %v489_v45, %v488_v44  ;;  %v594_v39 = vld [vmem:[%s3050_s23 + $0xbc0] sm:$0xff]  ;;  %v595_v40 = vld [vmem:[%s3050_s23 + $0xbc8] sm:$0xff] }
  0xa2   : > { %2777 = vmatprep.subr.bf16.mxu1 %v2776_v51  ;;  %v586_v51 = vld [vmem:[%s3050_s23 + $0xb80] sm:$0xff]  ;;  %v2798_v54 = vpack.c.bf16 %v521_v48, %v520_v46  ;;  %v547_v45 = vld [vmem:[%s3050_s23 + $0xa48] sm:$0xff] }
  0xa3   : > { %v546_v44 = vld [vmem:[%s3050_s23 + $0xa40] sm:$0xff]  ;;  %v579_v48 = vld [vmem:[%s3050_s23 + $0xb48] sm:$0xff] }
  0xa4   : > { %2747 = vmatpush3.bf16.msra.mxu0 %v2746_v57  ;;  %v539_v57 = vld [vmem:[%s3050_s23 + $0xa08] sm:$0xff]  ;;  %v578_v46 = vld [vmem:[%s3050_s23 + $0xb40] sm:$0xff] }
  0xa5   : > { %2779 = vmatpush3.bf16.msra.mxu1 %v2778_v58  ;;  %2749 = vmatprep.subr.bf16.mxu0 %v2748_v59  ;;  %v570_v58 = vld [vmem:[%s3050_s23 + $0xb00] sm:$0xff]  ;;  %v2832_v59 = vpack.c.bf16 %v587_v52, %v586_v51  ;;  %v2802_v2 = vpack.c.bf16 %v539_v57, %v538_v56  ;;  %v596_v51 = vld [vmem:[%s3050_s23 + $0xbd0] sm:$0xff]  ;;  %v597_v52 = vld [vmem:[%s3050_s23 + $0xbd8] sm:$0xff] }
  0xa6   : > { %2781 = vmatprep.subr.bf16.mxu1 %v2780_v63  ;;  %v588_v63 = vld [vmem:[%s3050_s23 + $0xb90] sm:$0xff]  ;;  %v2834_v4 = vpack.c.bf16 %v571_v60, %v570_v58  ;;  %v549_v57 = vld [vmem:[%s3050_s23 + $0xa58] sm:$0xff] }
  0xa7   : > { %v2836_v9 = vpack.c.bf16 %v589_v0, %v588_v63  ;;  %v548_v56 = vld [vmem:[%s3050_s23 + $0xa50] sm:$0xff]  ;;  %v581_v60 = vld [vmem:[%s3050_s23 + $0xb58] sm:$0xff]  ;;  %v598_v63 = vld [vmem:[%s3050_s23 + $0xbe0] sm:$0xff] }
  0xa8   : > { %2751 = vmatpush3.bf16.msra.mxu0 %v2750_v5  ;;  %v2804_v5 = vpack.c.bf16 %v557_v62, %v556_v61  ;;  %v580_v58 = vld [vmem:[%s3050_s23 + $0xb50] sm:$0xff]  ;;  %v566_v61 = vld [vmem:[%s3050_s23 + $0xae0] sm:$0xff]  ;;  %v567_v62 = vld [vmem:[%s3050_s23 + $0xae8] sm:$0xff] }
  0xa9   : > { %2783 = vmatpush3.bf16.msra.mxu1 %v2782_v6  ;;  %2753 = vmatprep.subr.bf16.mxu0 %v2752_v7  ;;  %v540_v6 = vld [vmem:[%s3050_s23 + $0xa10] sm:$0xff]  ;;  %v541_v7 = vld [vmem:[%s3050_s23 + $0xa18] sm:$0xff]  ;;  %v599_v0 = vld [vmem:[%s3050_s23 + $0xbe8] sm:$0xff] }
  0xaa   : > { %2785 = vmatprep.subr.bf16.mxu1 %v2784_v11  ;;  %v558_v11 = vld [vmem:[%s3050_s23 + $0xaa0] sm:$0xff]  ;;  %v2806_v16 = vpack.c.bf16 %v541_v7, %v540_v6  ;;  %v2856_v7 = vpack.c.bf16 %v599_v0, %v598_v63  ;;  %v656_v63 = vld [vmem:[%s3050_s23 + $0xdb0] sm:$0xff]  ;;  %v657_v0 = vld [vmem:[%s3050_s23 + $0xdb8] sm:$0xff] }
  0xab   : > { %v582_v6 = vld [vmem:[%s3050_s23 + $0xb60] sm:$0xff] }
  0xac   : > { %2755 = vmatpush3.bf16.msra.mxu0 %v2754_v17  ;;  %v209_v17 = vld [vmem:[%s3045_s19 + $0xb8] sm:$0xff] }
  0xad   : > { %2787 = vmatpush3.bf16.msra.mxu1 %v2786_v18  ;;  %2757 = vmatprep.subr.bf16.mxu0 %v2756_v19  ;;  %v2838_v18 = vpack.c.bf16 %v573_v10, %v572_v8  ;;  %v2808_v19 = vpack.c.bf16 %v559_v12, %v558_v11  ;;  %v583_v8 = vld [vmem:[%s3050_s23 + $0xb68] sm:$0xff]  ;;  %v569_v10 = vld [vmem:[%s3050_s23 + $0xaf8] sm:$0xff]  ;;  %v600_v11 = vld [vmem:[%s3050_s23 + $0xbf0] sm:$0xff] }
  0xae   : > { %2789 = vmatprep.subr.bf16.mxu1 %v2788_v23  ;;  %v2840_v23 = vpack.c.bf16 %v591_v14, %v590_v13  ;;  %v601_v12 = vld [vmem:[%s3050_s23 + $0xbf8] sm:$0xff]  ;;  %v2858_v14 = vpack.c.bf16 %v583_v8, %v582_v6  ;;  %v640_v6 = vld [vmem:[%s3050_s23 + $0xd30] sm:$0xff] }
  0xaf   : > { %v641_v8 = vld [vmem:[%s3050_s23 + $0xd38] sm:$0xff] }
  0xb0   : > { %2759 = vmatpush3.bf16.msra.mxu0 %v2758_v29  ;;  %v2810_v29 = vpack.c.bf16 %v543_v21, %v542_v20  ;;  %v585_v20 = vld [vmem:[%s3050_s23 + $0xb78] sm:$0xff]  ;;  %v618_v21 = vld [vmem:[%s3050_s23 + $0xc80] sm:$0xff] }
  0xb1   : > { %2791 = vmatpush3.bf16.msra.mxu1 %v2790_v30  ;;  %2761 = vmatprep.subr.bf16.mxu0 %v2760_v31  ;;  %v2842_v30 = vpack.c.bf16 %v575_v24, %v574_v22  ;;  %v2812_v31 = vpack.c.bf16 %v561_v26, %v560_v25  ;;  %v619_v22 = vld [vmem:[%s3050_s23 + $0xc88] sm:$0xff] }
  0xb2   : > { %2793 = vmatprep.subr.bf16.mxu1 %v2792_v35  ;;  %v2844_v35 = vpack.c.bf16 %v593_v28, %v592_v27  ;;  %v651_v24 = vld [vmem:[%s3050_s23 + $0xd88] sm:$0xff]  ;;  %v2864_v27 = vpack.c.bf16 %v619_v22, %v618_v21  ;;  %v602_v28 = vld [vmem:[%s3050_s23 + $0xc00] sm:$0xff]  ;;  %v628_v21 = vld [vmem:[%s3050_s23 + $0xcd0] sm:$0xff] }
  0xb3   : > { %v629_v22 = vld [vmem:[%s3050_s23 + $0xcd8] sm:$0xff] }
  0xb4   : > { %2763 = vmatpush3.bf16.msra.mxu0 %v2762_v41  ;;  %v2814_v41 = vpack.c.bf16 %v545_v33, %v544_v32  ;;  %v635_v32 = vld [vmem:[%s3050_s23 + $0xd08] sm:$0xff]  ;;  %v620_v33 = vld [vmem:[%s3050_s23 + $0xc90] sm:$0xff] }
  0xb5   : > { %2795 = vmatpush3.bf16.msra.mxu1 %v2794_v42  ;;  %2765 = vmatprep.subr.bf16.mxu0 %v2764_v43  ;;  %v2846_v42 = vpack.c.bf16 %v577_v36, %v576_v34  ;;  %v2816_v43 = vpack.c.bf16 %v563_v38, %v562_v37  ;;  %v621_v34 = vld [vmem:[%s3050_s23 + $0xc98] sm:$0xff]  ;;  %v206_v37 = vld [vmem:[%s3045_s19 + $0xa0] sm:$0xff] }
  0xb6   : > { %2797 = vmatprep.subr.bf16.mxu1 %v2796_v47  ;;  %v2848_v47 = vpack.c.bf16 %v595_v40, %v594_v39  ;;  %v653_v36 = vld [vmem:[%s3050_s23 + $0xd98] sm:$0xff]  ;;  %v208_v39 = vld [vmem:[%s3045_s19 + $0xb0] sm:$0xff] }
  0xb8   : > { %2767 = vmatpush3.bf16.msra.mxu0 %v2766_v53  ;;  %v2818_v53 = vpack.c.bf16 %v547_v45, %v546_v44  ;;  %v636_v44 = vld [vmem:[%s3050_s23 + $0xd10] sm:$0xff] }
  0xb9   : > { %2799 = vmatpush3.bf16.msra.mxu1 %v2798_v54  ;;  %2801 = vmatprep.subr.bf16.mxu0 %v2800_v55  ;;  %v2850_v54 = vpack.c.bf16 %v579_v48, %v578_v46  ;;  %v2820_v55 = vpack.c.bf16 %v565_v50, %v564_v49  ;;  %v637_v46 = vld [vmem:[%s3050_s23 + $0xd18] sm:$0xff]  ;;  %v623_v48 = vld [vmem:[%s3050_s23 + $0xca8] sm:$0xff]  ;;  %v654_v49 = vld [vmem:[%s3050_s23 + $0xda0] sm:$0xff] }
  0xba   : > { %2833 = vmatprep.subr.bf16.mxu1 %v2832_v59  ;;  %v2852_v59 = vpack.c.bf16 %v597_v52, %v596_v51  ;;  %v655_v50 = vld [vmem:[%s3050_s23 + $0xda8] sm:$0xff] }
  0xbb   : > { %1355 = vmatmul.mubr.f32.vlgmr.msra.gmra.mrb[8].mxu0 %v202_v1  ;;  %v2822_v1 = vpack.c.bf16 %v549_v57, %v548_v56  ;;  %v211_v51 = vld [vmem:[%s3045_s19 + $0xc8] sm:$0xff]  ;;  %v606_v56 = vld [vmem:[%s3050_s23 + $0xc20] sm:$0xff] }
  0xbc   : > { %2803 = vmatpush3.bf16.msra.mxu0 %v2802_v2  ;;  %1425 = vmatmul.mubr.f32.vlgmr.msra.gmra.mrb[8].mxu1 %v204_v3  ;;  %v2854_v2 = vpack.c.bf16 %v581_v60, %v580_v58  ;;  %v2824_v3 = vpack.c.bf16 %v567_v62, %v566_v61  ;;  %v607_v57 = vld [vmem:[%s3050_s23 + $0xc28] sm:$0xff]  ;;  %v638_v58 = vld [vmem:[%s3050_s23 + $0xd20] sm:$0xff]  ;;  %v624_v61 = vld [vmem:[%s3050_s23 + $0xcb0] sm:$0xff] }
  0xbd   : > { %2835 = vmatpush3.bf16.msra.mxu1 %v2834_v4  ;;  %2805 = vmatprep.subr.bf16.mxu0 %v2804_v5  ;;  %v550_v4 = vld [vmem:[%s3050_s23 + $0xa60] sm:$0xff]  ;;  %v551_v5 = vld [vmem:[%s3050_s23 + $0xa68] sm:$0xff]  ;;  %v625_v62 = vld [vmem:[%s3050_s23 + $0xcb8] sm:$0xff] }
  0xbe   : > { %2837 = vmatprep.subr.bf16.mxu1 %v2836_v9  ;;  %1494 = vmatprep.mubr.f32.mxu0 %v207_v15  ;;  %v568_v9 = vld [vmem:[%s3050_s23 + $0xaf0] sm:$0xff]  ;;  %v2826_v13 = vpack.c.bf16 %v551_v5, %v550_v4  ;;  %v639_v60 = vld [vmem:[%s3050_s23 + $0xd28] sm:$0xff]  ;;  %v609_v5 = vld [vmem:[%s3050_s23 + $0xc38] sm:$0xff] }
  0xbf   : > { %1564 = vmatprep.mubr.f32.mxu1 %v209_v17  ;;  %v2828_v15 = vpack.c.bf16 %v569_v10, %v568_v9  ;;  %v553_v17 = vld [vmem:[%s3050_s23 + $0xa78] sm:$0xff]  ;;  %v608_v4 = vld [vmem:[%s3050_s23 + $0xc30] sm:$0xff]  ;;  %v626_v9 = vld [vmem:[%s3050_s23 + $0xcc0] sm:$0xff] }
  0xc0   : > { %2807 = vmatpush3.bf16.msra.mxu0 %v2806_v16  ;;  %v552_v16 = vld [vmem:[%s3050_s23 + $0xa70] sm:$0xff]  ;;  %v627_v10 = vld [vmem:[%s3050_s23 + $0xcc8] sm:$0xff] }
  0xc1   : > { %2839 = vmatpush3.bf16.msra.mxu1 %v2838_v18  ;;  %2809 = vmatprep.subr.bf16.mxu0 %v2808_v19  ;;  %v584_v18 = vld [vmem:[%s3050_s23 + $0xb70] sm:$0xff]  ;;  %v2860_v19 = vpack.c.bf16 %v601_v12, %v600_v11  ;;  %v2830_v25 = vpack.c.bf16 %v553_v17, %v552_v16  ;;  %v658_v11 = vld [vmem:[%s3050_s23 + $0xdc0] sm:$0xff]  ;;  %v659_v12 = vld [vmem:[%s3050_s23 + $0xdc8] sm:$0xff] }
  0xc2   : > { %2841 = vmatprep.subr.bf16.mxu1 %v2840_v23  ;;  %v650_v23 = vld [vmem:[%s3050_s23 + $0xd80] sm:$0xff]  ;;  %v2862_v26 = vpack.c.bf16 %v585_v20, %v584_v18  ;;  %v611_v17 = vld [vmem:[%s3050_s23 + $0xc48] sm:$0xff] }
  0xc3   : > { %v610_v16 = vld [vmem:[%s3050_s23 + $0xc40] sm:$0xff]  ;;  %v643_v20 = vld [vmem:[%s3050_s23 + $0xd48] sm:$0xff] }
  0xc4   : > { %2811 = vmatpush3.bf16.msra.mxu0 %v2810_v29  ;;  %v603_v29 = vld [vmem:[%s3050_s23 + $0xc08] sm:$0xff]  ;;  %v642_v18 = vld [vmem:[%s3050_s23 + $0xd40] sm:$0xff] }
  0xc5   : > { %2843 = vmatpush3.bf16.msra.mxu1 %v2842_v30  ;;  %2813 = vmatprep.subr.bf16.mxu0 %v2812_v31  ;;  %v634_v30 = vld [vmem:[%s3050_s23 + $0xd00] sm:$0xff]  ;;  %v2896_v31 = vpack.c.bf16 %v651_v24, %v650_v23  ;;  %v2866_v38 = vpack.c.bf16 %v603_v29, %v602_v28  ;;  %v660_v23 = vld [vmem:[%s3050_s23 + $0xdd0] sm:$0xff]  ;;  %v661_v24 = vld [vmem:[%s3050_s23 + $0xdd8] sm:$0xff] }
  0xc6   : > { %2845 = vmatprep.subr.bf16.mxu1 %v2844_v35  ;;  %v652_v35 = vld [vmem:[%s3050_s23 + $0xd90] sm:$0xff]  ;;  %v2898_v40 = vpack.c.bf16 %v635_v32, %v634_v30  ;;  %v613_v29 = vld [vmem:[%s3050_s23 + $0xc58] sm:$0xff] }
  0xc7   : > { %v2900_v45 = vpack.c.bf16 %v653_v36, %v652_v35  ;;  %v612_v28 = vld [vmem:[%s3050_s23 + $0xc50] sm:$0xff]  ;;  %v645_v32 = vld [vmem:[%s3050_s23 + $0xd58] sm:$0xff]  ;;  %v662_v35 = vld [vmem:[%s3050_s23 + $0xde0] sm:$0xff] }
  0xc8   : > { %2815 = vmatpush3.bf16.msra.mxu0 %v2814_v41  ;;  %v2868_v41 = vpack.c.bf16 %v621_v34, %v620_v33  ;;  %v644_v30 = vld [vmem:[%s3050_s23 + $0xd50] sm:$0xff]  ;;  %v630_v33 = vld [vmem:[%s3050_s23 + $0xce0] sm:$0xff]  ;;  %v631_v34 = vld [vmem:[%s3050_s23 + $0xce8] sm:$0xff] }
  0xc9   : > { %2847 = vmatpush3.bf16.msra.mxu1 %v2846_v42  ;;  %2817 = vmatprep.subr.bf16.mxu0 %v2816_v43  ;;  %v604_v42 = vld [vmem:[%s3050_s23 + $0xc10] sm:$0xff]  ;;  %v605_v43 = vld [vmem:[%s3050_s23 + $0xc18] sm:$0xff]  ;;  %v663_v36 = vld [vmem:[%s3050_s23 + $0xde8] sm:$0xff] }
  0xca   : > { %2849 = vmatprep.subr.bf16.mxu1 %v2848_v47  ;;  %v622_v47 = vld [vmem:[%s3050_s23 + $0xca0] sm:$0xff]  ;;  %v2870_v52 = vpack.c.bf16 %v605_v43, %v604_v42  ;;  %v2920_v43 = vpack.c.bf16 %v663_v36, %v662_v35  ;;  %v720_v35 = vld [vmem:[%s3050_s23 + $0xfb0] sm:$0xff]  ;;  %v721_v36 = vld [vmem:[%s3050_s23 + $0xfb8] sm:$0xff] }
  0xcb   : > { %v646_v42 = vld [vmem:[%s3050_s23 + $0xd60] sm:$0xff] }
  0xcc   : > { %2819 = vmatpush3.bf16.msra.mxu0 %v2818_v53  ;;  %v213_v53 = vld [vmem:[%s3045_s19 + $0xd8] sm:$0xff] }
  0xcd   : > { %2851 = vmatpush3.bf16.msra.mxu1 %v2850_v54  ;;  %2821 = vmatprep.subr.bf16.mxu0 %v2820_v55  ;;  %v2902_v54 = vpack.c.bf16 %v637_v46, %v636_v44  ;;  %v2872_v55 = vpack.c.bf16 %v623_v48, %v622_v47  ;;  %v647_v44 = vld [vmem:[%s3050_s23 + $0xd68] sm:$0xff]  ;;  %v633_v46 = vld [vmem:[%s3050_s23 + $0xcf8] sm:$0xff]  ;;  %v664_v47 = vld [vmem:[%s3050_s23 + $0xdf0] sm:$0xff] }
  0xce   : > { %2853 = vmatprep.subr.bf16.mxu1 %v2852_v59  ;;  %v2904_v59 = vpack.c.bf16 %v655_v50, %v654_v49  ;;  %v665_v48 = vld [vmem:[%s3050_s23 + $0xdf8] sm:$0xff]  ;;  %v2922_v50 = vpack.c.bf16 %v647_v44, %v646_v42  ;;  %v704_v42 = vld [vmem:[%s3050_s23 + $0xf30] sm:$0xff] }
  0xcf   : > { %v705_v44 = vld [vmem:[%s3050_s23 + $0xf38] sm:$0xff] }
  0xd0   : > { %2823 = vmatpush3.bf16.msra.mxu0 %v2822_v1  ;;  %v2874_v1 = vpack.c.bf16 %v607_v57, %v606_v56  ;;  %v649_v56 = vld [vmem:[%s3050_s23 + $0xd78] sm:$0xff]  ;;  %v682_v57 = vld [vmem:[%s3050_s23 + $0xe80] sm:$0xff] }
  0xd1   : > { %2855 = vmatpush3.bf16.msra.mxu1 %v2854_v2  ;;  %2825 = vmatprep.subr.bf16.mxu0 %v2824_v3  ;;  %v2906_v2 = vpack.c.bf16 %v639_v60, %v638_v58  ;;  %v2876_v3 = vpack.c.bf16 %v625_v62, %v624_v61  ;;  %v683_v58 = vld [vmem:[%s3050_s23 + $0xe88] sm:$0xff] }
  0xd2   : > { %2857 = vmatprep.subr.bf16.mxu1 %v2856_v7  ;;  %v2908_v7 = vpack.c.bf16 %v657_v0, %v656_v63  ;;  %v715_v60 = vld [vmem:[%s3050_s23 + $0xf88] sm:$0xff]  ;;  %v2928_v63 = vpack.c.bf16 %v683_v58, %v682_v57  ;;  %v666_v0 = vld [vmem:[%s3050_s23 + $0xe00] sm:$0xff]  ;;  %v692_v57 = vld [vmem:[%s3050_s23 + $0xed0] sm:$0xff] }
  0xd3   : > { %v693_v58 = vld [vmem:[%s3050_s23 + $0xed8] sm:$0xff] }
  0xd4   : > { %2827 = vmatpush3.bf16.msra.mxu0 %v2826_v13  ;;  %v2878_v13 = vpack.c.bf16 %v609_v5, %v608_v4  ;;  %v699_v4 = vld [vmem:[%s3050_s23 + $0xf08] sm:$0xff]  ;;  %v684_v5 = vld [vmem:[%s3050_s23 + $0xe90] sm:$0xff] }
  0xd5   : > { %2859 = vmatpush3.bf16.msra.mxu1 %v2858_v14  ;;  %2829 = vmatprep.subr.bf16.mxu0 %v2828_v15  ;;  %v2910_v14 = vpack.c.bf16 %v641_v8, %v640_v6  ;;  %v2880_v15 = vpack.c.bf16 %v627_v10, %v626_v9  ;;  %v685_v6 = vld [vmem:[%s3050_s23 + $0xe98] sm:$0xff]  ;;  %v210_v9 = vld [vmem:[%s3045_s19 + $0xc0] sm:$0xff] }
  0xd6   : > { %2861 = vmatprep.subr.bf16.mxu1 %v2860_v19  ;;  %v2912_v19 = vpack.c.bf16 %v659_v12, %v658_v11  ;;  %v717_v8 = vld [vmem:[%s3050_s23 + $0xf98] sm:$0xff]  ;;  %v212_v11 = vld [vmem:[%s3045_s19 + $0xd0] sm:$0xff] }
  0xd8   : > { %2831 = vmatpush3.bf16.msra.mxu0 %v2830_v25  ;;  %v2882_v25 = vpack.c.bf16 %v611_v17, %v610_v16  ;;  %v700_v16 = vld [vmem:[%s3050_s23 + $0xf10] sm:$0xff] }
  0xd9   : > { %2863 = vmatpush3.bf16.msra.mxu1 %v2862_v26  ;;  %2865 = vmatprep.subr.bf16.mxu0 %v2864_v27  ;;  %v2914_v26 = vpack.c.bf16 %v643_v20, %v642_v18  ;;  %v2884_v27 = vpack.c.bf16 %v629_v22, %v628_v21  ;;  %v701_v18 = vld [vmem:[%s3050_s23 + $0xf18] sm:$0xff]  ;;  %v687_v20 = vld [vmem:[%s3050_s23 + $0xea8] sm:$0xff]  ;;  %v718_v21 = vld [vmem:[%s3050_s23 + $0xfa0] sm:$0xff] }
  0xda   : > { %2897 = vmatprep.subr.bf16.mxu1 %v2896_v31  ;;  %v2916_v31 = vpack.c.bf16 %v661_v24, %v660_v23  ;;  %v719_v22 = vld [vmem:[%s3050_s23 + $0xfa8] sm:$0xff] }
  0xdb   : > { %1495 = vmatmul.mubr.f32.vlgmr.msra.gmra.mrb[10].mxu0 %v206_v37  ;;  %v2886_v37 = vpack.c.bf16 %v613_v29, %v612_v28  ;;  %v215_v23 = vld [vmem:[%s3045_s19 + $0xe8] sm:$0xff]  ;;  %v670_v28 = vld [vmem:[%s3050_s23 + $0xe20] sm:$0xff] }
  0xdc   : > { %2867 = vmatpush3.bf16.msra.mxu0 %v2866_v38  ;;  %1565 = vmatmul.mubr.f32.vlgmr.msra.gmra.mrb[10].mxu1 %v208_v39  ;;  %v2918_v38 = vpack.c.bf16 %v645_v32, %v644_v30  ;;  %v2888_v39 = vpack.c.bf16 %v631_v34, %v630_v33  ;;  %v671_v29 = vld [vmem:[%s3050_s23 + $0xe28] sm:$0xff]  ;;  %v702_v30 = vld [vmem:[%s3050_s23 + $0xf20] sm:$0xff]  ;;  %v688_v33 = vld [vmem:[%s3050_s23 + $0xeb0] sm:$0xff] }
  0xdd   : > { %2899 = vmatpush3.bf16.msra.mxu1 %v2898_v40  ;;  %2869 = vmatprep.subr.bf16.mxu0 %v2868_v41  ;;  %v614_v40 = vld [vmem:[%s3050_s23 + $0xc60] sm:$0xff]  ;;  %v615_v41 = vld [vmem:[%s3050_s23 + $0xc68] sm:$0xff]  ;;  %v689_v34 = vld [vmem:[%s3050_s23 + $0xeb8] sm:$0xff] }
  0xde   : > { %2901 = vmatprep.subr.bf16.mxu1 %v2900_v45  ;;  %1634 = vmatprep.mubr.f32.mxu0 %v211_v51  ;;  %v632_v45 = vld [vmem:[%s3050_s23 + $0xcf0] sm:$0xff]  ;;  %v2890_v49 = vpack.c.bf16 %v615_v41, %v614_v40  ;;  %v703_v32 = vld [vmem:[%s3050_s23 + $0xf28] sm:$0xff]  ;;  %v673_v41 = vld [vmem:[%s3050_s23 + $0xe38] sm:$0xff] }
  0xdf   : > { %1704 = vmatprep.mubr.f32.mxu1 %v213_v53  ;;  %v2892_v51 = vpack.c.bf16 %v633_v46, %v632_v45  ;;  %v617_v53 = vld [vmem:[%s3050_s23 + $0xc78] sm:$0xff]  ;;  %v672_v40 = vld [vmem:[%s3050_s23 + $0xe30] sm:$0xff]  ;;  %v690_v45 = vld [vmem:[%s3050_s23 + $0xec0] sm:$0xff] }
  0xe0   : > { %2871 = vmatpush3.bf16.msra.mxu0 %v2870_v52  ;;  %v616_v52 = vld [vmem:[%s3050_s23 + $0xc70] sm:$0xff]  ;;  %v691_v46 = vld [vmem:[%s3050_s23 + $0xec8] sm:$0xff] }
  0xe1   : > { %2903 = vmatpush3.bf16.msra.mxu1 %v2902_v54  ;;  %2873 = vmatprep.subr.bf16.mxu0 %v2872_v55  ;;  %v648_v54 = vld [vmem:[%s3050_s23 + $0xd70] sm:$0xff]  ;;  %v2924_v55 = vpack.c.bf16 %v665_v48, %v664_v47  ;;  %v2894_v61 = vpack.c.bf16 %v617_v53, %v616_v52  ;;  %v722_v47 = vld [vmem:[%s3050_s23 + $0xfc0] sm:$0xff]  ;;  %v723_v48 = vld [vmem:[%s3050_s23 + $0xfc8] sm:$0xff] }
  0xe2   : > { %2905 = vmatprep.subr.bf16.mxu1 %v2904_v59  ;;  %v714_v59 = vld [vmem:[%s3050_s23 + $0xf80] sm:$0xff]  ;;  %v2926_v62 = vpack.c.bf16 %v649_v56, %v648_v54  ;;  %v675_v53 = vld [vmem:[%s3050_s23 + $0xe48] sm:$0xff] }
  0xe3   : > { %v674_v52 = vld [vmem:[%s3050_s23 + $0xe40] sm:$0xff]  ;;  %v707_v56 = vld [vmem:[%s3050_s23 + $0xf48] sm:$0xff] }
  0xe4   : > { %2875 = vmatpush3.bf16.msra.mxu0 %v2874_v1  ;;  %v667_v1 = vld [vmem:[%s3050_s23 + $0xe08] sm:$0xff]  ;;  %v706_v54 = vld [vmem:[%s3050_s23 + $0xf40] sm:$0xff] }
  0xe5   : > { %2907 = vmatpush3.bf16.msra.mxu1 %v2906_v2  ;;  %2877 = vmatprep.subr.bf16.mxu0 %v2876_v3  ;;  %v698_v2 = vld [vmem:[%s3050_s23 + $0xf00] sm:$0xff]  ;;  %v2960_v3 = vpack.c.bf16 %v715_v60, %v714_v59  ;;  %v2930_v10 = vpack.c.bf16 %v667_v1, %v666_v0  ;;  %v724_v59 = vld [vmem:[%s3050_s23 + $0xfd0] sm:$0xff]  ;;  %v725_v60 = vld [vmem:[%s3050_s23 + $0xfd8] sm:$0xff] }
  0xe6   : > { %2909 = vmatprep.subr.bf16.mxu1 %v2908_v7  ;;  %v716_v7 = vld [vmem:[%s3050_s23 + $0xf90] sm:$0xff]  ;;  %v2962_v12 = vpack.c.bf16 %v699_v4, %v698_v2  ;;  %v677_v1 = vld [vmem:[%s3050_s23 + $0xe58] sm:$0xff] }
  0xe7   : > { %v2964_v17 = vpack.c.bf16 %v717_v8, %v716_v7  ;;  %v676_v0 = vld [vmem:[%s3050_s23 + $0xe50] sm:$0xff]  ;;  %v709_v4 = vld [vmem:[%s3050_s23 + $0xf58] sm:$0xff]  ;;  %v726_v7 = vld [vmem:[%s3050_s23 + $0xfe0] sm:$0xff] }
  0xe8   : > { %2879 = vmatpush3.bf16.msra.mxu0 %v2878_v13  ;;  %v2932_v13 = vpack.c.bf16 %v685_v6, %v684_v5  ;;  %v708_v2 = vld [vmem:[%s3050_s23 + $0xf50] sm:$0xff]  ;;  %v694_v5 = vld [vmem:[%s3050_s23 + $0xee0] sm:$0xff]  ;;  %v695_v6 = vld [vmem:[%s3050_s23 + $0xee8] sm:$0xff] }
  0xe9   : > { %2911 = vmatpush3.bf16.msra.mxu1 %v2910_v14  ;;  %2881 = vmatprep.subr.bf16.mxu0 %v2880_v15  ;;  %v668_v14 = vld [vmem:[%s3050_s23 + $0xe10] sm:$0xff]  ;;  %v669_v15 = vld [vmem:[%s3050_s23 + $0xe18] sm:$0xff]  ;;  %v727_v8 = vld [vmem:[%s3050_s23 + $0xfe8] sm:$0xff] }
  0xea   : > { %2913 = vmatprep.subr.bf16.mxu1 %v2912_v19  ;;  %v686_v19 = vld [vmem:[%s3050_s23 + $0xea0] sm:$0xff]  ;;  %v2934_v24 = vpack.c.bf16 %v669_v15, %v668_v14 }
  0xeb   : > { %v710_v14 = vld [vmem:[%s3050_s23 + $0xf60] sm:$0xff] }
  0xec   : > { %2883 = vmatpush3.bf16.msra.mxu0 %v2882_v25  ;;  %v217_v25 = vld [vmem:[%s3045_s19 + $0xf8] sm:$0xff] }
  0xed   : > { %2915 = vmatpush3.bf16.msra.mxu1 %v2914_v26  ;;  %2885 = vmatprep.subr.bf16.mxu0 %v2884_v27  ;;  %v2966_v26 = vpack.c.bf16 %v701_v18, %v700_v16  ;;  %v2936_v27 = vpack.c.bf16 %v687_v20, %v686_v19  ;;  %v2984_v16 = vpack.c.bf16 %v727_v8, %v726_v7  ;;  %v696_v18 = vld [vmem:[%s3050_s23 + $0xef0] sm:$0xff]  ;;  %v697_v19 = vld [vmem:[%s3050_s23 + $0xef8] sm:$0xff] }
  0xee   : > { %2917 = vmatprep.subr.bf16.mxu1 %v2916_v31  ;;  %v2968_v31 = vpack.c.bf16 %v719_v22, %v718_v21  ;;  %v728_v22 = vld [vmem:[%s3050_s23 + $0xff0] sm:$0xff] }
  0xf0   : > { %2887 = vmatpush3.bf16.msra.mxu0 %v2886_v37  ;;  %v2938_v37 = vpack.c.bf16 %v671_v29, %v670_v28  ;;  %v2956_v29 = vpack.c.bf16 %v697_v19, %v696_v18 }
  0xf1   : > { %2919 = vmatpush3.bf16.msra.mxu1 %v2918_v38  ;;  %2889 = vmatprep.subr.bf16.mxu0 %v2888_v39  ;;  %v2970_v38 = vpack.c.bf16 %v703_v32, %v702_v30  ;;  %v2940_v39 = vpack.c.bf16 %v689_v34, %v688_v33  ;;  %v680_v30 = vld [vmem:[%s3050_s23 + $0xe70] sm:$0xff]  ;;  %v713_v34 = vld [vmem:[%s3050_s23 + $0xf78] sm:$0xff] }
  0xf2   : > { %2921 = vmatprep.subr.bf16.mxu1 %v2920_v43  ;;  %v2972_v43 = vpack.c.bf16 %v721_v36, %v720_v35  ;;  %v712_v33 = vld [vmem:[%s3050_s23 + $0xf70] sm:$0xff] }
  0xf4   : > { %2891 = vmatpush3.bf16.msra.mxu0 %v2890_v49  ;;  %v2942_v49 = vpack.c.bf16 %v673_v41, %v672_v40 }
  0xf5   : > { %2923 = vmatpush3.bf16.msra.mxu1 %v2922_v50  ;;  %2893 = vmatprep.subr.bf16.mxu0 %v2892_v51  ;;  %v2974_v50 = vpack.c.bf16 %v705_v44, %v704_v42  ;;  %v2944_v51 = vpack.c.bf16 %v691_v46, %v690_v45 }
  0xf6   : > { %2925 = vmatprep.subr.bf16.mxu1 %v2924_v55  ;;  %v2976_v55 = vpack.c.bf16 %v723_v48, %v722_v47 }
  0xf8   : > { %2895 = vmatpush3.bf16.msra.mxu0 %v2894_v61  ;;  %v2946_v61 = vpack.c.bf16 %v675_v53, %v674_v52 }
  0xf9   : > { %2927 = vmatpush3.bf16.msra.mxu1 %v2926_v62  ;;  %2929 = vmatprep.subr.bf16.mxu0 %v2928_v63  ;;  %v2978_v62 = vpack.c.bf16 %v707_v56, %v706_v54  ;;  %v2948_v63 = vpack.c.bf16 %v693_v58, %v692_v57 }
  0xfa   : > { %2961 = vmatprep.subr.bf16.mxu1 %v2960_v3  ;;  %v2980_v3 = vpack.c.bf16 %v725_v60, %v724_v59 }
  0xfb   : > { %1635 = vmatmul.mubr.f32.vlgmr.msra.gmra.mrb[12].mxu0 %v210_v9  ;;  %v2950_v9 = vpack.c.bf16 %v677_v1, %v676_v0 }
  0xfc   : > { %2931 = vmatpush3.bf16.msra.mxu0 %v2930_v10  ;;  %1705 = vmatmul.mubr.f32.vlgmr.msra.gmra.mrb[12].mxu1 %v212_v11  ;;  %v2982_v10 = vpack.c.bf16 %v709_v4, %v708_v2  ;;  %v2952_v11 = vpack.c.bf16 %v695_v6, %v694_v5 }
  0xfd   : > { %2963 = vmatpush3.bf16.msra.mxu1 %v2962_v12  ;;  %2933 = vmatprep.subr.bf16.mxu0 %v2932_v13  ;;  %v678_v12 = vld [vmem:[%s3050_s23 + $0xe60] sm:$0xff]  ;;  %v679_v13 = vld [vmem:[%s3050_s23 + $0xe68] sm:$0xff] }
  0xfe   : > { %2965 = vmatprep.subr.bf16.mxu1 %v2964_v17  ;;  %1774 = vmatprep.mubr.f32.mxu0 %v215_v23  ;;  %v711_v17 = vld [vmem:[%s3050_s23 + $0xf68] sm:$0xff]  ;;  %v729_v23 = vld [vmem:[%s3050_s23 + $0xff8] sm:$0xff] }
  0xff   : > { %1844 = vmatprep.mubr.f32.mxu1 %v217_v25  ;;  %v2986_v28 = vpack.c.bf16 %v711_v17, %v710_v14  ;;  %v2988_v32 = vpack.c.bf16 %v729_v23, %v728_v22 }
 0x100   : > { %2935 = vmatpush3.bf16.msra.mxu0 %v2934_v24 }
 0x101   : > { %2967 = vmatpush3.bf16.msra.mxu1 %v2966_v26  ;;  %2937 = vmatprep.subr.bf16.mxu0 %v2936_v27  ;;  %v2954_v26 = vpack.c.bf16 %v679_v13, %v678_v12 }
 0x102   : > { %2969 = vmatprep.subr.bf16.mxu1 %v2968_v31  ;;  %v681_v31 = vld [vmem:[%s3050_s23 + $0xe78] sm:$0xff] }
 0x103   : > { %v2958_v36 = vpack.c.bf16 %v681_v31, %v680_v30  ;;  %v185_v31 = vld [vmem:[%s3622_s3] sm:$0xff] }
 0x104   : > { %2939 = vmatpush3.bf16.msra.mxu0 %v2938_v37  ;;  %v2990_v37 = vpack.c.bf16 %v713_v34, %v712_v33 }
 0x105   : > { %2971 = vmatpush3.bf16.msra.mxu1 %v2970_v38  ;;  %2941 = vmatprep.subr.bf16.mxu0 %v2940_v39  ;;  %v214_v38 = vld [vmem:[%s3045_s19 + $0xe0] sm:$0xff]  ;;  %v216_v39 = vld [vmem:[%s3045_s19 + $0xf0] sm:$0xff] }
 0x106   : > { %2973 = vmatprep.subr.bf16.mxu1 %v2972_v43 }
 0x108   : > { %2943 = vmatpush3.bf16.msra.mxu0 %v2942_v49 }
 0x109   : > { %2975 = vmatpush3.bf16.msra.mxu1 %v2974_v50  ;;  %2945 = vmatprep.subr.bf16.mxu0 %v2944_v51 }
 0x10a   : > { %2977 = vmatprep.subr.bf16.mxu1 %v2976_v55 }
 0x10c   : > { %2947 = vmatpush3.bf16.msra.mxu0 %v2946_v61 }
 0x10d   : > { %2979 = vmatpush3.bf16.msra.mxu1 %v2978_v62  ;;  %2949 = vmatprep.subr.bf16.mxu0 %v2948_v63 }
 0x10e   : > { %v1952_v15 = vpop.f32.mrb[0].mxu0  ;;  %2981 = vmatprep.subr.bf16.mxu1 %v2980_v3 }
 0x10f   : > { %v1987_v20 = vpop.f32.mrb[0].mxu1  ;;  %v1953_v21 = vpop.f32.mrb[1].mxu0 }
 0x110   : > { %v1954_v24 = vadd.f32 %v1953_v21, %v1952_v15  ;;  %v1988_v25 = vpop.f32.mrb[1].mxu1  ;;  %2951 = vmatpush3.bf16.msra.mxu0 %v2950_v9 }
 0x111   : > { %v1989_v27 = vadd.f32 %v1988_v25, %v1987_v20  ;;  %2983 = vmatpush3.bf16.msra.mxu1 %v2982_v10  ;;  %2953 = vmatprep.subr.bf16.mxu0 %v2952_v11 }
 0x112   : > { %2985 = vmatprep.subr.bf16.mxu1 %v2984_v16 }
 0x113   : > { %v867_v35 = vadd.f32 %v1989_v27, %v1954_v24 }
 0x114   : > { %2955 = vmatpush3.bf16.msra.mxu0 %v2954_v26 }
 0x115   : > { %2987 = vmatpush3.bf16.msra.mxu1 %v2986_v28  ;;  %2957 = vmatprep.subr.bf16.mxu0 %v2956_v29 }
 0x116   : > { %2989 = vmatprep.subr.bf16.mxu1 %v2988_v32 }
 0x118   : > { %2959 = vmatpush3.bf16.msra.mxu0 %v2958_v36 }
 0x119   : > { %2991 = vmatpush3.bf16.msra.mxu1 %v2990_v37 }
 0x11b   : > { %1775 = vmatmul.mubr.f32.vlgmr.msra.gmra.mrb[14].mxu0 %v214_v38 }
 0x11c   : > { %1845 = vmatmul.mubr.f32.vlgmr.msra.gmra.mrb[14].mxu1 %v216_v39 }
 0x12e   : > { %v2022_v40 = vpop.f32.mrb[2].mxu0 }
 0x12f   : > { %v2023_v41 = vpop.f32.mrb[3].mxu0  ;;  %v2057_v42 = vpop.f32.mrb[2].mxu1 }
 0x130   : > { %v2024_v43 = vadd.f32 %v2023_v41, %v2022_v40  ;;  %v2058_v44 = vpop.f32.mrb[3].mxu1 }
 0x131   : > { %v2059_v45 = vadd.f32 %v2058_v44, %v2057_v42 }
 0x132   : > { %v937_v46 = vadd.f32 %v2024_v43, %v867_v35  ;;  %v1917_v35 = vld [vmem:[%s3621_s2] ss:$0 sm:$0xff] (!%p1916_p6) }
 0x134   : > { %v1007_v47 = vadd.f32 %v2059_v45, %v937_v46 }
 0x14e   : > { %v2092_v48 = vpop.f32.mrb[4].mxu0 }
 0x14f   : > { %v2093_v49 = vpop.f32.mrb[5].mxu0  ;;  %v2127_v50 = vpop.f32.mrb[4].mxu1 }
 0x150   : > { %v2094_v51 = vadd.f32 %v2093_v49, %v2092_v48  ;;  %v2128_v52 = vpop.f32.mrb[5].mxu1 }
 0x151   : > { %v2129_v53 = vadd.f32 %v2128_v52, %v2127_v50 }
 0x152   : > { %v1077_v54 = vadd.f32 %v2094_v51, %v1007_v47 }
 0x154   : > { %v1147_v55 = vadd.f32 %v2129_v53, %v1077_v54 }
 0x16e   : > { %v2162_v56 = vpop.f32.mrb[6].mxu0 }
 0x16f   : > { %v2163_v57 = vpop.f32.mrb[7].mxu0  ;;  %v2197_v58 = vpop.f32.mrb[6].mxu1 }
 0x170   : > { %v2164_v59 = vadd.f32 %v2163_v57, %v2162_v56  ;;  %v2198_v60 = vpop.f32.mrb[7].mxu1 }
 0x171   : > { %v2199_v61 = vadd.f32 %v2198_v60, %v2197_v58 }
 0x172   : > { %v1217_v62 = vadd.f32 %v2164_v59, %v1147_v55 }
 0x174   : > { %v1287_v63 = vadd.f32 %v2199_v61, %v1217_v62 }
 0x18e   : > { %v2232_v0 = vpop.f32.mrb[8].mxu0 }
 0x18f   : > { %v2233_v1 = vpop.f32.mrb[9].mxu0  ;;  %v2267_v2 = vpop.f32.mrb[8].mxu1 }
 0x190   : > { %v2234_v3 = vadd.f32 %v2233_v1, %v2232_v0  ;;  %v2268_v4 = vpop.f32.mrb[9].mxu1 }
 0x191   : > { %v2269_v5 = vadd.f32 %v2268_v4, %v2267_v2 }
 0x192   : > { %v1357_v6 = vadd.f32 %v2234_v3, %v1287_v63 }
 0x194   : > { %v1427_v7 = vadd.f32 %v2269_v5, %v1357_v6 }
 0x1ae   : > { %v2302_v8 = vpop.f32.mrb[10].mxu0 }
 0x1af   : > { %v2303_v9 = vpop.f32.mrb[11].mxu0  ;;  %v2337_v10 = vpop.f32.mrb[10].mxu1 }
 0x1b0   : > { %v2304_v11 = vadd.f32 %v2303_v9, %v2302_v8  ;;  %v2338_v12 = vpop.f32.mrb[11].mxu1 }
 0x1b1   : > { %v2339_v13 = vadd.f32 %v2338_v12, %v2337_v10 }
 0x1b2   : > { %v1497_v14 = vadd.f32 %v2304_v11, %v1427_v7 }
 0x1b4   : > { %v1567_v15 = vadd.f32 %v2339_v13, %v1497_v14 }
 0x1ce   : > { %v2372_v16 = vpop.f32.mrb[12].mxu0 }
 0x1cf   : > { %v2373_v17 = vpop.f32.mrb[13].mxu0  ;;  %v2407_v18 = vpop.f32.mrb[12].mxu1 }
 0x1d0   : > { %v2374_v19 = vadd.f32 %v2373_v17, %v2372_v16  ;;  %v2408_v20 = vpop.f32.mrb[13].mxu1 }
 0x1d1   : > { %v2409_v21 = vadd.f32 %v2408_v20, %v2407_v18 }
 0x1d2   : > { %v1637_v22 = vadd.f32 %v2374_v19, %v1567_v15 }
 0x1d4   : > { %v1707_v23 = vadd.f32 %v2409_v21, %v1637_v22 }
 0x1ee   : > { %v2442_v24 = vpop.f32.mrb[14].mxu0 }
 0x1ef   : > { %v2443_v25 = vpop.f32.mrb[15].mxu0  ;;  %v2477_v26 = vpop.f32.mrb[14].mxu1 }
 0x1f0   : > { %v2444_v27 = vadd.f32 %v2443_v25, %v2442_v24  ;;  %v2478_v28 = vpop.f32.mrb[15].mxu1 }
 0x1f1   : > { %v2479_v29 = vadd.f32 %v2478_v28, %v2477_v26 }
 0x1f2   : > { %v1777_v30 = vadd.f32 %v2444_v27, %v1707_v23  ;;  %1855 = sbr.rel (%p1916_p6) target bundleno = 517 (0x205), region = 40 }
 0x1f4   : > { %v1847_v32 = vadd.f32 %v2479_v29, %v1777_v30 }
 0x1f6   : > { %v1850_v33 = vadd.f32 %v1847_v32, %v185_v31 }
 0x1f8   : > { %1851 = vst [vmem:[%s3622_s3] sm:$0xff] %v1850_v33 }
 0x1ff   : > { %v1856_v34 = vld [vmem:[%s3622_s3] sm:$0xff] }
 0x200   : > { %v1864_v36 = vadd.f32 %v1917_v35, %v1856_v34 }
 0x202   : > { %v1865_v37 = vmax.f32 %v1864_v36, 0.0 }
 0x204   : > { %1866 = vst [vmem:[%s3622_s3] sm:$0xff] %v1865_v37 }
 0x205 PF: > { %s13_s12 = sadd.s32 1, %s3007_s12  }
 0x206   : > { %p10_p7 = scmp.ge.s32.totalorder %s13_s12, 8  }
 0x208   :  { %12 = sbr.rel (!%p10_p7) target bundleno = 1 (0x1), region = 69 }

// kernel: actor_forward.15
= control target key start
LH: loop header
LB: loop body
LE: loop exit
PB: predicated region body
PF: predicated region fallthrough
CT: control target
= control target key end

     0   :  { %v197_v0 = vmov 0.0|0.0   ;;  %vm198_vm0 = vmmov 0   ;;  %v199_v4 = vmov 0.0   ;;  %s277_s1 = inlined_call_operand.vmem [shape: f32[128,128], index: 1, kind: input, shape index: {}]   ;;  %s278_s0 = inlined_call_operand.vmem [shape: f32[8,128], index: 0, kind: input, shape index: {}]   ;;  %s279_s2 = inlined_call_operand.vmem [shape: f32[1,128], index: 2, kind: input, shape index: {}]   ;;  %s280_s3 = inlined_call_operand.vmem [shape: f32[8,128], index: 3, kind: output, shape index: {}]  }
   0x1   :  { %168 = vmatprep.subr.bf16.mxu0 %v197_v0  ;;  %v15_v1 = vld [vmem:[%s277_s1] sm:$0xff]  ;;  %v16_v2 = vld [vmem:[%s277_s1 + $0x8] sm:$0xff]  ;;  %v17_v3 = vld [vmem:[%s277_s1 + $0x10] sm:$0xff]  ;;  %165 = vmatprep.mubr.msk.f32.mxu0 %vm198_vm0, %v199_v4 }
   0x2   :  { %v169_v5 = vpack.c.bf16 %v16_v2, %v15_v1  ;;  %v18_v6 = vld [vmem:[%s277_s1 + $0x18] sm:$0xff]  ;;  %v19_v8 = vld [vmem:[%s277_s1 + $0x20] sm:$0xff]  ;;  %v20_v9 = vld [vmem:[%s277_s1 + $0x28] sm:$0xff] }
   0x3   :  { %v172_v7 = vpack.c.bf16 %v18_v6, %v17_v3  ;;  %v175_v10 = vpack.c.bf16 %v20_v9, %v19_v8  ;;  %v21_v11 = vld [vmem:[%s277_s1 + $0x30] sm:$0xff]  ;;  %v22_v12 = vld [vmem:[%s277_s1 + $0x38] sm:$0xff]  ;;  %v23_v14 = vld [vmem:[%s277_s1 + $0x40] sm:$0xff] }
   0x4   :  { %170 = vmatpush3.bf16.msra.mxu0 %v169_v5  ;;  %v178_v13 = vpack.c.bf16 %v22_v12, %v21_v11  ;;  %v24_v15 = vld [vmem:[%s277_s1 + $0x48] sm:$0xff]  ;;  %v25_v17 = vld [vmem:[%s277_s1 + $0x50] sm:$0xff]  ;;  %v26_v18 = vld [vmem:[%s277_s1 + $0x58] sm:$0xff] }
   0x5   :  { %171 = vmatprep.subr.bf16.mxu0 %v197_v0  ;;  %v181_v16 = vpack.c.bf16 %v24_v15, %v23_v14  ;;  %v184_v19 = vpack.c.bf16 %v26_v18, %v25_v17  ;;  %v27_v20 = vld [vmem:[%s277_s1 + $0x60] sm:$0xff]  ;;  %v28_v21 = vld [vmem:[%s277_s1 + $0x68] sm:$0xff]  ;;  %v29_v23 = vld [vmem:[%s277_s1 + $0x70] sm:$0xff] }
   0x6   :  { %v187_v22 = vpack.c.bf16 %v28_v21, %v27_v20  ;;  %v30_v24 = vld [vmem:[%s277_s1 + $0x78] sm:$0xff]  ;;  %v14_v26 = vld [vmem:[%s278_s0] sm:$0xff] }
   0x7   :  { %v190_v25 = vpack.c.bf16 %v30_v24, %v29_v23  ;;  %v115_v27 = vld [vmem:[%s279_s2] ss:$0 sm:$0xff] }
   0x8   :  { %173 = vmatpush3.bf16.msra.mxu0 %v172_v7 }
   0x9   :  { %174 = vmatprep.subr.bf16.mxu0 %v197_v0 }
   0xc   :  { %176 = vmatpush3.bf16.msra.mxu0 %v175_v10 }
   0xd   :  { %177 = vmatprep.subr.bf16.mxu0 %v197_v0 }
  0x10   :  { %179 = vmatpush3.bf16.msra.mxu0 %v178_v13 }
  0x11   :  { %180 = vmatprep.subr.bf16.mxu0 %v197_v0 }
  0x14   :  { %182 = vmatpush3.bf16.msra.mxu0 %v181_v16 }
  0x15   :  { %183 = vmatprep.subr.bf16.mxu0 %v197_v0 }
  0x18   :  { %185 = vmatpush3.bf16.msra.mxu0 %v184_v19 }
  0x19   :  { %186 = vmatprep.subr.bf16.mxu0 %v197_v0 }
  0x1c   :  { %188 = vmatpush3.bf16.msra.mxu0 %v187_v22 }
  0x1d   :  { %189 = vmatprep.subr.bf16.mxu0 %v197_v0 }
  0x20   :  { %191 = vmatpush3.bf16.msra.mxu0 %v190_v25 }
  0x23   :  { %166 = vmatmul.mubr.f32.vlgmr.msra.gmra.mrb[0].mxu0 %v14_v26 }
  0xf6   :  { %v104_v28 = vpop.f32.mrb[0].mxu0 }
  0xf7   :  { %v105_v29 = vadd.f32 %v115_v27, %v104_v28  ;;  %v167_v30 = vpop.f32.mrb[1].mxu0 }
  0xf9   :  { %195 = vtanh.f32 %v105_v29 }
 0x103   :  { %v196_v31 = vpop.eup %195 }
 0x104   :  { %v109_v32 = vmul.f32 10.0, %v196_v31 }
 0x106   :  { %110 = vst [vmem:[%s280_s3] sm:$0xff] %v109_v32 }

</bundles_post_ra>
